<compile_context>
chip_gen: v7x
topology: tpu7x:2x2x1
jax: 0.10.0
libtpu: 0.0.40
codegen_flags: <defaults>
</compile_context>

<pallas_src>
import functools

import jax
import jax.numpy as jnp
from jax import lax
from jax.experimental import pallas as pl


def _round_up(x, m):
    return ((x + m - 1) // m) * m


# ----------------------------- Pallas kernel ------------------------------ #
def _convt_phase_kernel(x_ref, w_ref, b_ref, o_ref, *, tap_offsets, cin, sigmoid):
    """Fused ConvTranspose2d (phase-decomposed) + bias + ReLU/Sigmoid.

    x_ref: (Rpad, Cin)   zero-padded input, rows = flattened (b, i, j)
    w_ref: (T*Cin, Npad) per-tap weight blocks stacked along rows (Npad = 128-padded)
    b_ref: (1, Npad)     bias tiled per phase, zero in the padded lanes
    o_ref: (Mpad, Npad)  rows = flattened padded output grid, lanes = (ph, pw, Cout)
    """
    mpad = o_ref.shape[0]
    acc = None
    for t, d in enumerate(tap_offsets):               # static unroll over KH*KW taps
        lhs = x_ref[d:d + mpad, :]                    # static sublane-shifted view
        rhs = w_ref[t * cin:(t + 1) * cin, :]         # (Cin, Npad) weight block
        part = jnp.dot(lhs, rhs, preferred_element_type=jnp.float32)
        acc = part if acc is None else acc + part
    acc = acc + b_ref[...]                            # (Mpad, Npad) + (1, Npad)
    if sigmoid:
        e = jnp.exp(-jnp.abs(acc))                    # stable: never overflows
        acc = jnp.where(acc >= 0.0, 1.0 / (1.0 + e), e / (1.0 + e))
    else:
        acc = jnp.maximum(acc, 0.0)
    o_ref[...] = acc.astype(o_ref.dtype)


def _convt_phase_gemm(x_flat, w_cat, b_cat, *, tap_offsets, cin, mpad, sigmoid):
    """x_flat: (Rpad, Cin), w_cat: (T*Cin, Npad), b_cat: (1, Npad) -> (Mpad, Npad)."""
    rpad = x_flat.shape[0]
    k, npad = w_cat.shape
    kernel = functools.partial(_convt_phase_kernel, tap_offsets=tap_offsets,
                               cin=cin, sigmoid=sigmoid)
    return pl.pallas_call(
        kernel,
        out_shape=jax.ShapeDtypeStruct((mpad, npad), jnp.float32),
        grid=(1,),                                    # single step: overhead-bound workload
        in_specs=[
            pl.BlockSpec((rpad, cin), lambda i: (0, 0)),
            pl.BlockSpec((k, npad), lambda i: (0, 0)),
            pl.BlockSpec((1, npad), lambda i: (0, 0)),
        ],
        out_specs=pl.BlockSpec((mpad, npad), lambda i: (0, 0)),
    )(x_flat, w_cat, b_cat)


# ----------------------- weight packing (done once) ------------------------ #
def _pack_conv_transpose(w, b, s, lane_pad=128):
    """PyTorch ConvTranspose2d weight (Cin, Cout, kH, kW) -> per-tap phase-GEMM form.

    w_cat[(mh*KW + mw)*Cin + ci, (ph*s + pw)*Cout + co] = w[ci, co, ph + mh*s, pw + mw*s]
    (zero where the tap falls outside the kernel), zero-padded along lanes to 128.
    """
    Cin, Cout, kH, kW = w.shape
    KH = -(-kH // s)                                  # ceil(kH / s)
    KW = -(-kW // s)
    N = s * s * Cout
    Npad = _round_up(max(N, lane_pad), lane_pad)
    wt = jnp.transpose(w, (2, 3, 0, 1))               # (kH, kW, Cin, Cout)
    wk = jnp.zeros((KH, KW, Cin, s, s, Cout), jnp.float32)
    for mh in range(KH):
        for mw in range(KW):
            for ph in range(s):
                for pw in range(s):
                    kh, kw = ph + mh * s, pw + mw * s
                    if kh < kH and kw < kW:
                        wk = wk.at[mh, mw, :, ph, pw, :].set(wt[kh, kw])
    w_cat = jnp.pad(wk.reshape(KH * KW * Cin, N), ((0, 0), (0, Npad - N)))
    b_cat = jnp.pad(jnp.tile(b, s * s).reshape(1, N), ((0, 0), (0, Npad - N)))
    return w_cat, b_cat, KH, KW


# ------------------------- ConvTranspose2d + act --------------------------- #
def conv_transpose2d_act(x_nhwc, layer, sigmoid):
    """One ConvTranspose2d (padding=0, output_padding=0) + ReLU/Sigmoid, NHWC in/out."""
    w_cat, b_cat = layer["w_cat"], layer["b_cat"]
    s, kH, kW = layer["stride"], layer["kH"], layer["kW"]
    KH, KW, Cout = layer["KH"], layer["KW"], layer["Cout"]

    B, H, W, Cin = x_nhwc.shape
    Ho, Wo = (H - 1) * s + kH, (W - 1) * s + kW
    PH, PW = KH - 1, KW - 1
    Hp, Wp = H + 2 * PH, W + 2 * PW
    NH, NW = H + KH - 1, W + KW - 1                   # valid per-phase output extent

    # Flatten the zero-padded input: row r = b*Hp*Wp + i*Wp + j.  In-kernel, every tap
    # (mh, mw) is then just the constant row offset d = (PH-mh)*Wp + (PW-mw); rows whose
    # (i0, j0) fall outside the valid (NH, NW) window produce junk that is cropped below.
    M = B * Hp * Wp
    Mpad = _round_up(M, 8)
    d_max = PH * Wp + PW
    Rpad = _round_up(Mpad + d_max, 8)

    xp = jnp.pad(x_nhwc, ((0, 0), (PH, PH), (PW, PW), (0, 0)))
    x_flat = jnp.pad(xp.reshape(M, Cin), ((0, Rpad - M), (0, 0)))

    tap_offsets = tuple((PH - mh) * Wp + (PW - mw)
                        for mh in range(KH) for mw in range(KW))

    y = _convt_phase_gemm(x_flat, w_cat, b_cat, tap_offsets=tap_offsets,
                          cin=Cin, mpad=Mpad, sigmoid=sigmoid)        # (Mpad, 128)

    # Crop junk rows / padded lanes, pixel-shuffle the s*s phases, crop to (Ho, Wo).
    y = y[:M, :s * s * Cout].reshape(B, Hp, Wp, s, s, Cout)[:, :NH, :NW]
    y = jnp.transpose(y, (0, 1, 3, 2, 4, 5)).reshape(B, NH * s, NW * s, Cout)
    return y[:, :Ho, :Wo, :]


# ----------------------------- Module wrapper ------------------------------ #
class ConvTransDecode:
    """Pallas re-implementation of models/.../ConvTrans_Decode forward pass."""

    def __init__(self, params, key):
        channels, kernels, strides = params["channels"], params["kernels"], params["strides"]
        self.strides = strides
        self.n_layers = len(channels) - 1
        self.weights, self.biases, self.layers = [], [], []
        for i in range(self.n_layers):
            key, wk, bk = jax.random.split(key, 3)
            cin, cout, k, s = channels[i], channels[i + 1], kernels[i], strides[i]
            # Deterministic init mirroring PyTorch's uniform(-1/sqrt(fan), 1/sqrt(fan))
            bound = 1.0 / float(cout * k * k) ** 0.5
            w = jax.random.uniform(wk, (cin, cout, k, k), jnp.float32, -bound, bound)
            b = jax.random.uniform(bk, (cout,), jnp.float32, -bound, bound)
            self.weights.append(w)
            self.biases.append(b)
            w_cat, b_cat, KH, KW = _pack_conv_transpose(w, b, s)
            self.layers.append(dict(w_cat=w_cat, b_cat=b_cat, stride=s,
                                    kH=k, kW=k, KH=KH, KW=KW, Cout=cout))
        self._forward = jax.jit(self._forward_impl, static_argnums=1)

    def _forward_impl(self, x_flat, h_shape):
        B = x_flat.shape[0]
        x = x_flat.reshape(B, h_shape[1], h_shape[2], h_shape[3])   # NCHW (as in PyTorch)
        x = jnp.transpose(x, (0, 2, 3, 1))                          # NHWC: channels -> lanes
        for i, layer in enumerate(self.layers):
            x = conv_transpose2d_act(x, layer, sigmoid=(i == self.n_layers - 1))
        return jnp.transpose(x, (0, 3, 1, 2))                       # back to NCHW

    def __call__(self, x_flat, h_shape):
        return self._forward(x_flat, tuple(h_shape))


# ------------------------------- Reference --------------------------------- #
def reference_forward(x_flat, h_shape, weights, biases, strides):
    B = x_flat.shape[0]
    x = x_flat.reshape(B, h_shape[1], h_shape[2], h_shape[3])
    n = len(weights)
    for i in range(n):
        w, b, s = weights[i], biases[i], strides[i]
        kH, kW = w.shape[2], w.shape[3]
        w_oihw = jnp.transpose(w[:, :, ::-1, ::-1], (1, 0, 2, 3))
        y = lax.conv_general_dilated(
            x, w_oihw, window_strides=(1, 1),
            padding=[(kH - 1, kH - 1), (kW - 1, kW - 1)],
            lhs_dilation=(s, s),
            dimension_numbers=("NCHW", "OIHW", "NCHW"))
        y = y + b[None, :, None, None]
        x = jax.nn.sigmoid(y) if i == n - 1 else jnp.maximum(y, 0.0)
    return x


# --------------------------------- Main ------------------------------------ #
if __name__ == "__main__":
    params = {"channels": [16, 8, 3], "kernels": [3, 4], "strides": [2, 2]}
    h_shape = (2, 16, 8, 8)                      # (B, C, H, W) of the latent

    key = jax.random.PRNGKey(0)
    key, xk, pk = jax.random.split(key, 3)
    x = jax.random.normal(xk, (h_shape[0], h_shape[1] * h_shape[2] * h_shape[3]),
                          jnp.float32)

    model = ConvTransDecode(params, pk)
    out = model(x, h_shape)
    out = jax.block_until_ready(out)

    ref = reference_forward(x, h_shape, model.weights, model.biases, model.strides)
    assert out.shape == ref.shape, (out.shape, ref.shape)
    err = float(jnp.max(jnp.abs(out - ref)))
    assert jnp.allclose(out, ref, rtol=1e-5, atol=1e-5), err

    print("KERNEL_OK")
</pallas_src>

<mosaic_0001>
module attributes {stable_mosaic.version = 11 : i64} {
  func.func @_convt_phase_kernel(%arg0: i32, %arg1: memref<216x16xf32, #tpu.memory_space<vmem>>, %arg2: memref<64x128xf32, #tpu.memory_space<vmem>>, %arg3: memref<1x128xf32, #tpu.memory_space<vmem>>, %arg4: memref<200x128xf32, #tpu.memory_space<vmem>>) attributes {dimension_semantics = [#tpu.dimension_semantics<arbitrary>], iteration_bounds = array<i64: 1>, scalar_prefetch = 0 : i64, scratch_operands = 0 : i64, tpu.core_type = #tpu.core_type<tc>, window_params = [{pipeline_mode = #tpu.pipeline_mode<synchronous>, transform_indices = @transform_0, window_bounds = array<i64: 216, 16>}, {pipeline_mode = #tpu.pipeline_mode<synchronous>, transform_indices = @transform_1, window_bounds = array<i64: 64, 128>}, {pipeline_mode = #tpu.pipeline_mode<synchronous>, transform_indices = @transform_2, window_bounds = array<i64: 1, 128>}, {pipeline_mode = #tpu.pipeline_mode<synchronous>, transform_indices = @transform_3, window_bounds = array<i64: 200, 128>}]} {
    %c11 = arith.constant 11 : index
    %c0 = arith.constant 0 : index
    %0 = vector.load %arg1[%c11, %c0] : memref<216x16xf32, #tpu.memory_space<vmem>>, vector<200x16xf32>
    %c0_0 = arith.constant 0 : index
    %c0_1 = arith.constant 0 : index
    %1 = vector.load %arg2[%c0_0, %c0_1] : memref<64x128xf32, #tpu.memory_space<vmem>>, vector<16x128xf32>
    %cst = arith.constant dense<0.000000e+00> : vector<200x128xf32>
    %2 = tpu.matmul %0, %1, %cst {dimension_numbers = #tpu.dot_dimension_numbers<[1], [0], [0], [1], [0, 0, 1, 1], [], []>} : vector<200x16xf32>, vector<16x128xf32>, vector<200x128xf32> -> vector<200x128xf32>
    %c10 = arith.constant 10 : index
    %c0_2 = arith.constant 0 : index
    %3 = vector.load %arg1[%c10, %c0_2] : memref<216x16xf32, #tpu.memory_space<vmem>>, vector<200x16xf32>
    %c16 = arith.constant 16 : index
    %c0_3 = arith.constant 0 : index
    %4 = vector.load %arg2[%c16, %c0_3] : memref<64x128xf32, #tpu.memory_space<vmem>>, vector<16x128xf32>
    %cst_4 = arith.constant dense<0.000000e+00> : vector<200x128xf32>
    %5 = tpu.matmul %3, %4, %cst_4 {dimension_numbers = #tpu.dot_dimension_numbers<[1], [0], [0], [1], [0, 0, 1, 1], [], []>} : vector<200x16xf32>, vector<16x128xf32>, vector<200x128xf32> -> vector<200x128xf32>
    %6 = arith.addf %2, %5 : vector<200x128xf32>
    %c1 = arith.constant 1 : index
    %c0_5 = arith.constant 0 : index
    %7 = vector.load %arg1[%c1, %c0_5] : memref<216x16xf32, #tpu.memory_space<vmem>>, vector<200x16xf32>
    %c32 = arith.constant 32 : index
    %c0_6 = arith.constant 0 : index
    %8 = vector.load %arg2[%c32, %c0_6] : memref<64x128xf32, #tpu.memory_space<vmem>>, vector<16x128xf32>
    %cst_7 = arith.constant dense<0.000000e+00> : vector<200x128xf32>
    %9 = tpu.matmul %7, %8, %cst_7 {dimension_numbers = #tpu.dot_dimension_numbers<[1], [0], [0], [1], [0, 0, 1, 1], [], []>} : vector<200x16xf32>, vector<16x128xf32>, vector<200x128xf32> -> vector<200x128xf32>
    %10 = arith.addf %6, %9 : vector<200x128xf32>
    %c0_8 = arith.constant 0 : index
    %c0_9 = arith.constant 0 : index
    %11 = vector.load %arg1[%c0_8, %c0_9] : memref<216x16xf32, #tpu.memory_space<vmem>>, vector<200x16xf32>
    %c48 = arith.constant 48 : index
    %c0_10 = arith.constant 0 : index
    %12 = vector.load %arg2[%c48, %c0_10] : memref<64x128xf32, #tpu.memory_space<vmem>>, vector<16x128xf32>
    %cst_11 = arith.constant dense<0.000000e+00> : vector<200x128xf32>
    %13 = tpu.matmul %11, %12, %cst_11 {dimension_numbers = #tpu.dot_dimension_numbers<[1], [0], [0], [1], [0, 0, 1, 1], [], []>} : vector<200x16xf32>, vector<16x128xf32>, vector<200x128xf32> -> vector<200x128xf32>
    %14 = arith.addf %10, %13 : vector<200x128xf32>
    %c0_12 = arith.constant 0 : index
    %c0_13 = arith.constant 0 : index
    %15 = vector.load %arg3[%c0_12, %c0_13] : memref<1x128xf32, #tpu.memory_space<vmem>>, vector<1x128xf32>
    %16 = vector.broadcast %15 : vector<1x128xf32> to vector<200x128xf32>
    %17 = arith.addf %14, %16 : vector<200x128xf32>
    %cst_14 = arith.constant 0.000000e+00 : f32
    %18 = vector.broadcast %cst_14 : f32 to vector<200x128xf32>
    %19 = arith.maximumf %17, %18 : vector<200x128xf32>
    %c0_15 = arith.constant 0 : index
    %c0_16 = arith.constant 0 : index
    %20 = vector.load %arg4[%c0_15, %c0_16] : memref<200x128xf32, #tpu.memory_space<vmem>>, vector<200x128xf32>
    tpu.vector_store %arg4[%c0_15, %c0_16], %19 {strides = array<i32>} : memref<200x128xf32, #tpu.memory_space<vmem>>, vector<200x128xf32>,
    return
  }
  func.func @transform_0(%arg0: i32) -> (i32, i32) {
    %c0_i32 = arith.constant 0 : i32
    %c0_i32_0 = arith.constant 0 : i32
    %c0_i32_1 = arith.constant 0 : i32
    return %c0_i32, %c0_i32_0 : i32, i32
  }
  func.func @transform_1(%arg0: i32) -> (i32, i32) {
    %c0_i32 = arith.constant 0 : i32
    %c0_i32_0 = arith.constant 0 : i32
    %c0_i32_1 = arith.constant 0 : i32
    return %c0_i32, %c0_i32_0 : i32, i32
  }
  func.func @transform_2(%arg0: i32) -> (i32, i32) {
    %c0_i32 = arith.constant 0 : i32
    %c0_i32_0 = arith.constant 0 : i32
    %c0_i32_1 = arith.constant 0 : i32
    return %c0_i32, %c0_i32_0 : i32, i32
  }
  func.func @transform_3(%arg0: i32) -> (i32, i32) {
    %c0_i32 = arith.constant 0 : i32
    %c0_i32_0 = arith.constant 0 : i32
    %c0_i32_1 = arith.constant 0 : i32
    return %c0_i32, %c0_i32_0 : i32, i32
  }
}

module attributes {stable_mosaic.version = 11 : i64} {
  func.func @_convt_phase_kernel(%arg0: i32, %arg1: memref<752x8xf32, #tpu.memory_space<vmem>>, %arg2: memref<32x128xf32, #tpu.memory_space<vmem>>, %arg3: memref<1x128xf32, #tpu.memory_space<vmem>>, %arg4: memref<728x128xf32, #tpu.memory_space<vmem>>) attributes {dimension_semantics = [#tpu.dimension_semantics<arbitrary>], iteration_bounds = array<i64: 1>, scalar_prefetch = 0 : i64, scratch_operands = 0 : i64, tpu.core_type = #tpu.core_type<tc>, window_params = [{pipeline_mode = #tpu.pipeline_mode<synchronous>, transform_indices = @transform_0, window_bounds = array<i64: 752, 8>}, {pipeline_mode = #tpu.pipeline_mode<synchronous>, transform_indices = @transform_1, window_bounds = array<i64: 32, 128>}, {pipeline_mode = #tpu.pipeline_mode<synchronous>, transform_indices = @transform_2, window_bounds = array<i64: 1, 128>}, {pipeline_mode = #tpu.pipeline_mode<synchronous>, transform_indices = @transform_3, window_bounds = array<i64: 728, 128>}]} {
    %c20 = arith.constant 20 : index
    %c0 = arith.constant 0 : index
    %0 = vector.load %arg1[%c20, %c0] : memref<752x8xf32, #tpu.memory_space<vmem>>, vector<728x8xf32>
    %c0_0 = arith.constant 0 : index
    %c0_1 = arith.constant 0 : index
    %1 = vector.load %arg2[%c0_0, %c0_1] : memref<32x128xf32, #tpu.memory_space<vmem>>, vector<8x128xf32>
    %cst = arith.constant dense<0.000000e+00> : vector<728x128xf32>
    %2 = tpu.matmul %0, %1, %cst {dimension_numbers = #tpu.dot_dimension_numbers<[1], [0], [0], [1], [0, 0, 1, 1], [], []>} : vector<728x8xf32>, vector<8x128xf32>, vector<728x128xf32> -> vector<728x128xf32>
    %c19 = arith.constant 19 : index
    %c0_2 = arith.constant 0 : index
    %3 = vector.load %arg1[%c19, %c0_2] : memref<752x8xf32, #tpu.memory_space<vmem>>, vector<728x8xf32>
    %c8 = arith.constant 8 : index
    %c0_3 = arith.constant 0 : index
    %4 = vector.load %arg2[%c8, %c0_3] : memref<32x128xf32, #tpu.memory_space<vmem>>, vector<8x128xf32>
    %cst_4 = arith.constant dense<0.000000e+00> : vector<728x128xf32>
    %5 = tpu.matmul %3, %4, %cst_4 {dimension_numbers = #tpu.dot_dimension_numbers<[1], [0], [0], [1], [0, 0, 1, 1], [], []>} : vector<728x8xf32>, vector<8x128xf32>, vector<728x128xf32> -> vector<728x128xf32>
    %6 = arith.addf %2, %5 : vector<728x128xf32>
    %c1 = arith.constant 1 : index
    %c0_5 = arith.constant 0 : index
    %7 = vector.load %arg1[%c1, %c0_5] : memref<752x8xf32, #tpu.memory_space<vmem>>, vector<728x8xf32>
    %c16 = arith.constant 16 : index
    %c0_6 = arith.constant 0 : index
    %8 = vector.load %arg2[%c16, %c0_6] : memref<32x128xf32, #tpu.memory_space<vmem>>, vector<8x128xf32>
    %cst_7 = arith.constant dense<0.000000e+00> : vector<728x128xf32>
    %9 = tpu.matmul %7, %8, %cst_7 {dimension_numbers = #tpu.dot_dimension_numbers<[1], [0], [0], [1], [0, 0, 1, 1], [], []>} : vector<728x8xf32>, vector<8x128xf32>, vector<728x128xf32> -> vector<728x128xf32>
    %10 = arith.addf %6, %9 : vector<728x128xf32>
    %c0_8 = arith.constant 0 : index
    %c0_9 = arith.constant 0 : index
    %11 = vector.load %arg1[%c0_8, %c0_9] : memref<752x8xf32, #tpu.memory_space<vmem>>, vector<728x8xf32>
    %c24 = arith.constant 24 : index
    %c0_10 = arith.constant 0 : index
    %12 = vector.load %arg2[%c24, %c0_10] : memref<32x128xf32, #tpu.memory_space<vmem>>, vector<8x128xf32>
    %cst_11 = arith.constant dense<0.000000e+00> : vector<728x128xf32>
    %13 = tpu.matmul %11, %12, %cst_11 {dimension_numbers = #tpu.dot_dimension_numbers<[1], [0], [0], [1], [0, 0, 1, 1], [], []>} : vector<728x8xf32>, vector<8x128xf32>, vector<728x128xf32> -> vector<728x128xf32>
    %14 = arith.addf %10, %13 : vector<728x128xf32>
    %c0_12 = arith.constant 0 : index
    %c0_13 = arith.constant 0 : index
    %15 = vector.load %arg3[%c0_12, %c0_13] : memref<1x128xf32, #tpu.memory_space<vmem>>, vector<1x128xf32>
    %16 = vector.broadcast %15 : vector<1x128xf32> to vector<728x128xf32>
    %17 = arith.addf %14, %16 : vector<728x128xf32>
    %18 = math.absf %17 : vector<728x128xf32>
    %cst_14 = arith.constant 0.000000e+00 : f32
    %19 = vector.broadcast %cst_14 : f32 to vector<728x128xf32>
    %20 = arith.subf %19, %18 : vector<728x128xf32>
    %21 = math.exp %20 : vector<728x128xf32>
    %cst_15 = arith.constant 0.000000e+00 : f32
    %22 = vector.broadcast %cst_15 : f32 to vector<728x128xf32>
    %23 = arith.cmpf oge, %17, %22 : vector<728x128xf32>
    %cst_16 = arith.constant 1.000000e+00 : f32
    %24 = vector.broadcast %cst_16 : f32 to vector<728x128xf32>
    %25 = arith.addf %24, %21 : vector<728x128xf32>
    %cst_17 = arith.constant 1.000000e+00 : f32
    %26 = vector.broadcast %cst_17 : f32 to vector<728x128xf32>
    %27 = arith.divf %26, %25 : vector<728x128xf32>
    %cst_18 = arith.constant 1.000000e+00 : f32
    %28 = vector.broadcast %cst_18 : f32 to vector<728x128xf32>
    %29 = arith.addf %28, %21 : vector<728x128xf32>
    %30 = arith.divf %21, %29 : vector<728x128xf32>
    %31 = arith.select %23, %27, %30 : vector<728x128xi1>, vector<728x128xf32>
    %c0_19 = arith.constant 0 : index
    %c0_20 = arith.constant 0 : index
    %32 = vector.load %arg4[%c0_19, %c0_20] : memref<728x128xf32, #tpu.memory_space<vmem>>, vector<728x128xf32>
    tpu.vector_store %arg4[%c0_19, %c0_20], %31 {strides = array<i32>} : memref<728x128xf32, #tpu.memory_space<vmem>>, vector<728x128xf32>,
    return
  }
  func.func @transform_0(%arg0: i32) -> (i32, i32) {
    %c0_i32 = arith.constant 0 : i32
    %c0_i32_0 = arith.constant 0 : i32
    %c0_i32_1 = arith.constant 0 : i32
    return %c0_i32, %c0_i32_0 : i32, i32
  }
  func.func @transform_1(%arg0: i32) -> (i32, i32) {
    %c0_i32 = arith.constant 0 : i32
    %c0_i32_0 = arith.constant 0 : i32
    %c0_i32_1 = arith.constant 0 : i32
    return %c0_i32, %c0_i32_0 : i32, i32
  }
  func.func @transform_2(%arg0: i32) -> (i32, i32) {
    %c0_i32 = arith.constant 0 : i32
    %c0_i32_0 = arith.constant 0 : i32
    %c0_i32_1 = arith.constant 0 : i32
    return %c0_i32, %c0_i32_0 : i32, i32
  }
  func.func @transform_3(%arg0: i32) -> (i32, i32) {
    %c0_i32 = arith.constant 0 : i32
    %c0_i32_0 = arith.constant 0 : i32
    %c0_i32_1 = arith.constant 0 : i32
    return %c0_i32, %c0_i32_0 : i32, i32
  }
}

</mosaic_0001>

<bundles_post_ra>
// kernel: _forward_impl.2
= control target key start
LH: loop header
LB: loop body
LE: loop exit
PB: predicated region body
PF: predicated region fallthrough
CT: control target
= control target key end

     0   :  { %8 = vsyncpa [#allocation3], 0  ;;  %s2767_s0 = inlined_call_operand.vmem [shape: f32[216,16], index: 0, kind: input, shape index: {}]   ;;  %s2768_s1 = inlined_call_operand.hbm [shape: f32[64,128], index: 1, kind: input, shape index: {}]   ;;  %s2769_s2 = inlined_call_operand.hbm [shape: f32[1,128], index: 2, kind: input, shape index: {}]   ;;  %s2770_s3 = inlined_call_operand.vmem [shape: f32[200,128], index: 3, kind: output, shape index: {}]  }
   0x1   :  { %9 = vsyncpa [#allocation5], 0  ;;  %s1939_s12 = smov [#allocation2]   ;;  %s1891_s16 = scalar_lea.hbm %s2768_s1, 1024 }
   0x2   :  { %s17_s13 = sshll.u32 %s1939_s12, 4  ;;  %p1892_p0 = scmp.ne.s32.totalorder %s2768_s1, %s1891_s16  ;;  %s18_s13 = int_to_ptr.vmem [resolvable:$true] %s17_s13 }
   0x3   :  { %p1895_p1 = scmp.lt.u32.totalorder %s1891_s16, %s2768_s1 }
   0x5   :  { %p1897_p2 = pnand %p1895_p1, %p1892_p0 }
   0x7   :  { %1900 = shalt.err (!%p1897_p2)
}
   0x8   :  { %s1901_s21 = scalar_lea.vmem %s18_s13, 1024  ;;  %p1906_p4 = scmp.lt.s32.totalorder %s18_s13, %s18_s13 }
   0x9   :  { %p1902_p3 = scmp.ne.s32.totalorder %s18_s13, %s1901_s21  ;;  %p1907_p5 = scmp.lt.s32.totalorder %s1901_s21, %s1901_s21 }
   0xb   :  { %p1908_p6 = por %p1907_p5, %p1906_p4 }
   0xd   :  { %p1909_p7 = pnand %p1908_p6, %p1902_p3 }
   0xf   :  { %1912 = shalt.err (!%p1909_p7)
}
  0x10   :  { %s1940_s22 = smov 128   ;;  %s1941_s23 = smov 8  }
  0x11   :  { %23 = dma.hbm_to_vmem [thread:$0]  %s2768_s1, 1024, %s18_s13, [#allocation3], %s1940_s22, %s1940_s22, %s1941_s23  }
  0x12   :  { %s1942_s26 = smov [#allocation4]   ;;  %s1913_s30 = scalar_lea.hbm %s2769_s2, 16 }
  0x13   :  { %s30_s27 = sshll.u32 %s1942_s26, 4  ;;  %p1914_p8 = scmp.ne.s32.totalorder %s2769_s2, %s1913_s30  ;;  %s31_s27 = int_to_ptr.vmem [resolvable:$true] %s30_s27 }
  0x14   :  { %p1917_p9 = scmp.lt.u32.totalorder %s1913_s30, %s2769_s2 }
  0x16   :  { %p1919_p10 = pnand %p1917_p9, %p1914_p8 }
  0x18   :  { %1922 = shalt.err (!%p1919_p10)
}
  0x19   :  { %s1923_s8 = scalar_lea.vmem %s31_s27, 16  ;;  %s1927_s1 = scalar_lea.vmem %s31_s27, 32 }
  0x1a   :  { %p1924_p11 = scmp.ne.s32.totalorder %s31_s27, %s1923_s8  ;;  %p1928_p12 = scmp.lt.s32.totalorder %s31_s27, %s31_s27 }
  0x1b   :  { %p1929_p13 = scmp.lt.s32.totalorder %s1927_s1, %s1923_s8 }
  0x1d   :  { %p1930_p0 = por %p1929_p13, %p1928_p12 }
  0x1f   :  { %p1931_p1 = pnand %p1930_p0, %p1924_p11 }
  0x21   :  { %1934 = shalt.err (!%p1931_p1)
}
  0x22   :  { %33 = dma.hbm_to_vmem [thread:$0]  %s2769_s2, 16, %s31_s27, [#allocation5]  }
  0x23   :  { %1935 = dma.done.wait [#allocation3], 1024  }
  0x24   :  { %1936 = vsyncadd [#allocation3], 4294966272 }
  0x25   :  { %1937 = dma.done.wait [#allocation5], 16  }
  0x26   :  { %1938 = vsyncadd [#allocation5], 4294967280  ;;  %v1943_v0 = vmov 0.0|0.0   ;;  %vm1944_vm0 = vmmov 0   ;;  %v1945_v1 = vmov 0.0   ;;  %v92_v2 = vld [vmem:[#allocation2 + $0x10] sm:$0xff] }
  0x27   :  { %1872 = vmatprep.subr.bf16.mxu0 %v1943_v0  ;;  %1875 = vmatprep.subr.bf16.mxu1 %v1943_v0  ;;  %v93_v3 = vld [vmem:[#allocation2 + $0x18] sm:$0xff]  ;;  %v65_v4 = vld [vmem:[#allocation2] sm:$0xff]  ;;  %v66_v6 = vld [vmem:[#allocation2 + $0x8] sm:$0xff]  ;;  %vm94_vm1 = vcmask 130048  }
  0x28   :  { %1560 = vmatprep.mubr.msk.f32.mxu0 %vm1944_vm0, %v1945_v1  ;;  %1639 = vmatprep.mubr.msk.f32.mxu1 %vm1944_vm0, %v1945_v1  ;;  %v1873_v5 = vpack.c.bf16 %v93_v3, %v92_v2  ;;  %v1876_v7 = vpack.c.bf16 %v66_v6, %v65_v4  ;;  %v650_v8 = vld [vmem:[#allocation2 + $0x20] sm:$0xff]  ;;  %v651_v9 = vld [vmem:[#allocation2 + $0x28] sm:$0xff]  ;;  %v967_v10 = vld [vmem:[#allocation2 + $0x30] sm:$0xff] }
  0x29   :  { %v67_v11 = vld [vmem:[%s2767_s0 + $0xa] sm:$0xff]  ;;  %v1879_v12 = vpack.c.bf16 %v651_v9, %v650_v8  ;;  %v968_v13 = vld [vmem:[#allocation2 + $0x38] sm:$0xff]  ;;  %v70_v20 = vld [vmem:[%s2767_s0 + $0x22] sm:$0xff] }
  0x2a   :  { %1874 = vmatpush3.bf16.msra.mxu0 %v1873_v5  ;;  %1877 = vmatpush3.bf16.msra.mxu1 %v1876_v7  ;;  %v40_v14 = vld [vmem:[%s2767_s0 + $0xb] sm:$0xff]  ;;  %v1882_v15 = vpack.c.bf16 %v968_v13, %v967_v10  ;;  %v41_v17 = vld [vmem:[%s2767_s0 + $0x13] sm:$0xff]  ;;  %v42_v19 = vld [vmem:[%s2767_s0 + $0x1b] sm:$0xff] }
  0x2b   :  { %1878 = vmatprep.subr.bf16.mxu0 %v1943_v0  ;;  %1881 = vmatprep.subr.bf16.mxu1 %v1943_v0  ;;  %v68_v16 = vld [vmem:[%s2767_s0 + $0x12] sm:$0xff]  ;;  %v69_v18 = vld [vmem:[%s2767_s0 + $0x1a] sm:$0xff]  ;;  %v43_v21 = vld [vmem:[%s2767_s0 + $0x23] sm:$0xff] }
  0x2c   :  { %v71_v22 = vld [vmem:[%s2767_s0 + $0x2a] sm:$0xff]  ;;  %v72_v24 = vld [vmem:[%s2767_s0 + $0x32] sm:$0xff]  ;;  %v73_v26 = vld [vmem:[%s2767_s0 + $0x3a] sm:$0xff] }
  0x2d   :  { %1561 = vmatmul.mubr.msk.f32.vlgmr.msra.gmra.mrb[0].mxu0 %vm94_vm1, %v67_v11  ;;  %1640 = vmatmul.mubr.msk.f32.vlgmr.msra.gmra.mrb[0].mxu1 %vm94_vm1, %v40_v14  ;;  %v44_v23 = vld [vmem:[%s2767_s0 + $0x2b] sm:$0xff]  ;;  %v45_v25 = vld [vmem:[%s2767_s0 + $0x33] sm:$0xff]  ;;  %v46_v27 = vld [vmem:[%s2767_s0 + $0x3b] sm:$0xff] }
  0x2e   :  { %1880 = vmatpush3.bf16.msra.mxu0 %v1879_v12  ;;  %1563 = vmatprep.mubr.msk.f32.mxu0 %vm1944_vm0, %v1945_v1  ;;  %v74_v28 = vld [vmem:[%s2767_s0 + $0x42] sm:$0xff]  ;;  %v75_v30 = vld [vmem:[%s2767_s0 + $0x4a] sm:$0xff]  ;;  %v76_v32 = vld [vmem:[%s2767_s0 + $0x52] sm:$0xff] }
  0x2f   :  { %1883 = vmatpush3.bf16.msra.mxu1 %v1882_v15  ;;  %1642 = vmatprep.mubr.msk.f32.mxu1 %vm1944_vm0, %v1945_v1  ;;  %v47_v29 = vld [vmem:[%s2767_s0 + $0x43] sm:$0xff]  ;;  %v48_v31 = vld [vmem:[%s2767_s0 + $0x4b] sm:$0xff]  ;;  %v49_v33 = vld [vmem:[%s2767_s0 + $0x53] sm:$0xff] }
  0x30   :  { %v77_v34 = vld [vmem:[%s2767_s0 + $0x5a] sm:$0xff]  ;;  %v78_v36 = vld [vmem:[%s2767_s0 + $0x62] sm:$0xff]  ;;  %v79_v38 = vld [vmem:[%s2767_s0 + $0x6a] sm:$0xff] }
  0x31   :  { %1564 = vmatmul.mubr.msk.f32.gmra.mrb[2].mxu0 %vm94_vm1, %v68_v16  ;;  %1643 = vmatmul.mubr.msk.f32.gmra.mrb[2].mxu1 %vm94_vm1, %v41_v17  ;;  %v50_v35 = vld [vmem:[%s2767_s0 + $0x5b] sm:$0xff]  ;;  %v51_v37 = vld [vmem:[%s2767_s0 + $0x63] sm:$0xff]  ;;  %v52_v39 = vld [vmem:[%s2767_s0 + $0x6b] sm:$0xff] }
  0x32   :  { %1566 = vmatprep.mubr.msk.f32.mxu0 %vm1944_vm0, %v1945_v1  ;;  %1645 = vmatprep.mubr.msk.f32.mxu1 %vm1944_vm0, %v1945_v1  ;;  %v80_v40 = vld [vmem:[%s2767_s0 + $0x72] sm:$0xff]  ;;  %v81_v42 = vld [vmem:[%s2767_s0 + $0x7a] sm:$0xff]  ;;  %v82_v44 = vld [vmem:[%s2767_s0 + $0x82] sm:$0xff] }
  0x33   :  { %v53_v41 = vld [vmem:[%s2767_s0 + $0x73] sm:$0xff]  ;;  %v54_v43 = vld [vmem:[%s2767_s0 + $0x7b] sm:$0xff]  ;;  %v55_v45 = vld [vmem:[%s2767_s0 + $0x83] sm:$0xff] }
  0x34   :  { %v83_v46 = vld [vmem:[%s2767_s0 + $0x8a] sm:$0xff]  ;;  %v84_v48 = vld [vmem:[%s2767_s0 + $0x92] sm:$0xff]  ;;  %v85_v50 = vld [vmem:[%s2767_s0 + $0x9a] sm:$0xff] }
  0x35   :  { %1567 = vmatmul.mubr.msk.f32.gmra.mrb[4].mxu0 %vm94_vm1, %v69_v18  ;;  %1646 = vmatmul.mubr.msk.f32.gmra.mrb[4].mxu1 %vm94_vm1, %v42_v19  ;;  %v56_v47 = vld [vmem:[%s2767_s0 + $0x8b] sm:$0xff]  ;;  %v57_v49 = vld [vmem:[%s2767_s0 + $0x93] sm:$0xff]  ;;  %v58_v51 = vld [vmem:[%s2767_s0 + $0x9b] sm:$0xff] }
  0x36   :  { %1569 = vmatprep.mubr.msk.f32.mxu0 %vm1944_vm0, %v1945_v1  ;;  %1648 = vmatprep.mubr.msk.f32.mxu1 %vm1944_vm0, %v1945_v1  ;;  %v86_v52 = vld [vmem:[%s2767_s0 + $0xa2] sm:$0xff]  ;;  %v87_v54 = vld [vmem:[%s2767_s0 + $0xaa] sm:$0xff]  ;;  %v88_v56 = vld [vmem:[%s2767_s0 + $0xb2] sm:$0xff] }
  0x37   :  { %v59_v53 = vld [vmem:[%s2767_s0 + $0xa3] sm:$0xff]  ;;  %v60_v55 = vld [vmem:[%s2767_s0 + $0xab] sm:$0xff]  ;;  %v61_v57 = vld [vmem:[%s2767_s0 + $0xb3] sm:$0xff] }
  0x38   :  { %v89_v58 = vld [vmem:[%s2767_s0 + $0xba] sm:$0xff]  ;;  %v90_v60 = vld [vmem:[%s2767_s0 + $0xc2] sm:$0xff]  ;;  %v91_v62 = vld [vmem:[%s2767_s0 + $0xca] sm:$0xff] }
  0x39   :  { %1570 = vmatmul.mubr.msk.f32.gmra.mrb[6].mxu0 %vm94_vm1, %v70_v20  ;;  %1649 = vmatmul.mubr.msk.f32.gmra.mrb[6].mxu1 %vm94_vm1, %v43_v21  ;;  %v62_v59 = vld [vmem:[%s2767_s0 + $0xbb] sm:$0xff]  ;;  %v63_v61 = vld [vmem:[%s2767_s0 + $0xc3] sm:$0xff]  ;;  %v64_v63 = vld [vmem:[%s2767_s0 + $0xcb] sm:$0xff] }
  0x3a   :  { %1572 = vmatprep.mubr.msk.f32.mxu0 %vm1944_vm0, %v1945_v1  ;;  %1651 = vmatprep.mubr.msk.f32.mxu1 %vm1944_vm0, %v1945_v1  ;;  %v625_v0 = vld [vmem:[%s2767_s0 + $0x1] sm:$0xff]  ;;  %v626_v3 = vld [vmem:[%s2767_s0 + $0x9] sm:$0xff]  ;;  %v627_v5 = vld [vmem:[%s2767_s0 + $0x11] sm:$0xff] }
  0x3b   :  { %v942_v2 = vld [vmem:[%s2767_s0] sm:$0xff]  ;;  %v943_v4 = vld [vmem:[%s2767_s0 + $0x8] sm:$0xff]  ;;  %v944_v6 = vld [vmem:[%s2767_s0 + $0x10] sm:$0xff] }
  0x3c   :  { %v628_v7 = vld [vmem:[%s2767_s0 + $0x19] sm:$0xff]  ;;  %v629_v9 = vld [vmem:[%s2767_s0 + $0x21] sm:$0xff]  ;;  %v630_v11 = vld [vmem:[%s2767_s0 + $0x29] sm:$0xff] }
  0x3d   :  { %1573 = vmatmul.mubr.msk.f32.gmra.mrb[8].mxu0 %vm94_vm1, %v71_v22  ;;  %1652 = vmatmul.mubr.msk.f32.gmra.mrb[8].mxu1 %vm94_vm1, %v44_v23  ;;  %v945_v8 = vld [vmem:[%s2767_s0 + $0x18] sm:$0xff]  ;;  %v946_v10 = vld [vmem:[%s2767_s0 + $0x20] sm:$0xff]  ;;  %v947_v12 = vld [vmem:[%s2767_s0 + $0x28] sm:$0xff] }
  0x3e   :  { %1575 = vmatprep.mubr.msk.f32.mxu0 %vm1944_vm0, %v1945_v1  ;;  %1654 = vmatprep.mubr.msk.f32.mxu1 %vm1944_vm0, %v1945_v1  ;;  %v631_v13 = vld [vmem:[%s2767_s0 + $0x31] sm:$0xff]  ;;  %v632_v15 = vld [vmem:[%s2767_s0 + $0x39] sm:$0xff]  ;;  %v633_v17 = vld [vmem:[%s2767_s0 + $0x41] sm:$0xff] }
  0x3f   :  { %v948_v14 = vld [vmem:[%s2767_s0 + $0x30] sm:$0xff]  ;;  %v949_v16 = vld [vmem:[%s2767_s0 + $0x38] sm:$0xff]  ;;  %v950_v18 = vld [vmem:[%s2767_s0 + $0x40] sm:$0xff] }
  0x40   :  { %v634_v19 = vld [vmem:[%s2767_s0 + $0x49] sm:$0xff]  ;;  %v635_v21 = vld [vmem:[%s2767_s0 + $0x51] sm:$0xff]  ;;  %v636_v23 = vld [vmem:[%s2767_s0 + $0x59] sm:$0xff] }
  0x41   :  { %1576 = vmatmul.mubr.msk.f32.gmra.mrb[10].mxu0 %vm94_vm1, %v72_v24  ;;  %1655 = vmatmul.mubr.msk.f32.gmra.mrb[10].mxu1 %vm94_vm1, %v45_v25  ;;  %v951_v20 = vld [vmem:[%s2767_s0 + $0x48] sm:$0xff]  ;;  %v952_v22 = vld [vmem:[%s2767_s0 + $0x50] sm:$0xff]  ;;  %v953_v24 = vld [vmem:[%s2767_s0 + $0x58] sm:$0xff] }
  0x42   :  { %1578 = vmatprep.mubr.msk.f32.mxu0 %vm1944_vm0, %v1945_v1  ;;  %1657 = vmatprep.mubr.msk.f32.mxu1 %vm1944_vm0, %v1945_v1  ;;  %v637_v25 = vld [vmem:[%s2767_s0 + $0x61] sm:$0xff] }
  0x45   :  { %1579 = vmatmul.mubr.msk.f32.gmra.mrb[12].mxu0 %vm94_vm1, %v73_v26  ;;  %1658 = vmatmul.mubr.msk.f32.gmra.mrb[12].mxu1 %vm94_vm1, %v46_v27  ;;  %v954_v26 = vld [vmem:[%s2767_s0 + $0x60] sm:$0xff]  ;;  %v638_v27 = vld [vmem:[%s2767_s0 + $0x69] sm:$0xff] }
  0x46   :  { %1581 = vmatprep.mubr.msk.f32.mxu0 %vm1944_vm0, %v1945_v1  ;;  %1660 = vmatprep.mubr.msk.f32.mxu1 %vm1944_vm0, %v1945_v1 }
  0x49   :  { %1582 = vmatmul.mubr.msk.f32.gmra.mrb[14].mxu0 %vm94_vm1, %v74_v28  ;;  %1661 = vmatmul.mubr.msk.f32.gmra.mrb[14].mxu1 %vm94_vm1, %v47_v29  ;;  %v955_v28 = vld [vmem:[%s2767_s0 + $0x68] sm:$0xff]  ;;  %v639_v29 = vld [vmem:[%s2767_s0 + $0x71] sm:$0xff] }
  0x4a   :  { %1584 = vmatprep.mubr.msk.f32.mxu0 %vm1944_vm0, %v1945_v1  ;;  %1663 = vmatprep.mubr.msk.f32.mxu1 %vm1944_vm0, %v1945_v1 }
  0x4d   :  { %1585 = vmatmul.mubr.msk.f32.gmra.mrb[16].mxu0 %vm94_vm1, %v75_v30  ;;  %1664 = vmatmul.mubr.msk.f32.gmra.mrb[16].mxu1 %vm94_vm1, %v48_v31  ;;  %v956_v30 = vld [vmem:[%s2767_s0 + $0x70] sm:$0xff]  ;;  %v640_v31 = vld [vmem:[%s2767_s0 + $0x79] sm:$0xff] }
  0x4e   :  { %1587 = vmatprep.mubr.msk.f32.mxu0 %vm1944_vm0, %v1945_v1  ;;  %1666 = vmatprep.mubr.msk.f32.mxu1 %vm1944_vm0, %v1945_v1 }
  0x51   :  { %1588 = vmatmul.mubr.msk.f32.gmra.mrb[18].mxu0 %vm94_vm1, %v76_v32  ;;  %1667 = vmatmul.mubr.msk.f32.gmra.mrb[18].mxu1 %vm94_vm1, %v49_v33  ;;  %v957_v32 = vld [vmem:[%s2767_s0 + $0x78] sm:$0xff]  ;;  %v641_v33 = vld [vmem:[%s2767_s0 + $0x81] sm:$0xff] }
  0x52   :  { %1590 = vmatprep.mubr.msk.f32.mxu0 %vm1944_vm0, %v1945_v1  ;;  %1669 = vmatprep.mubr.msk.f32.mxu1 %vm1944_vm0, %v1945_v1 }
  0x55   :  { %1591 = vmatmul.mubr.msk.f32.gmra.mrb[20].mxu0 %vm94_vm1, %v77_v34  ;;  %1670 = vmatmul.mubr.msk.f32.gmra.mrb[20].mxu1 %vm94_vm1, %v50_v35  ;;  %v958_v34 = vld [vmem:[%s2767_s0 + $0x80] sm:$0xff]  ;;  %v642_v35 = vld [vmem:[%s2767_s0 + $0x89] sm:$0xff] }
  0x56   :  { %1593 = vmatprep.mubr.msk.f32.mxu0 %vm1944_vm0, %v1945_v1  ;;  %1672 = vmatprep.mubr.msk.f32.mxu1 %vm1944_vm0, %v1945_v1 }
  0x59   :  { %1594 = vmatmul.mubr.msk.f32.gmra.mrb[22].mxu0 %vm94_vm1, %v78_v36  ;;  %1673 = vmatmul.mubr.msk.f32.gmra.mrb[22].mxu1 %vm94_vm1, %v51_v37  ;;  %v959_v36 = vld [vmem:[%s2767_s0 + $0x88] sm:$0xff]  ;;  %v643_v37 = vld [vmem:[%s2767_s0 + $0x91] sm:$0xff] }
  0x5a   :  { %1596 = vmatprep.mubr.msk.f32.mxu0 %vm1944_vm0, %v1945_v1  ;;  %1675 = vmatprep.mubr.msk.f32.mxu1 %vm1944_vm0, %v1945_v1 }
  0x5d   :  { %1597 = vmatmul.mubr.msk.f32.gmra.mrb[24].mxu0 %vm94_vm1, %v79_v38  ;;  %1676 = vmatmul.mubr.msk.f32.gmra.mrb[24].mxu1 %vm94_vm1, %v52_v39  ;;  %v960_v38 = vld [vmem:[%s2767_s0 + $0x90] sm:$0xff]  ;;  %v644_v39 = vld [vmem:[%s2767_s0 + $0x99] sm:$0xff] }
  0x5e   :  { %1599 = vmatprep.mubr.msk.f32.mxu0 %vm1944_vm0, %v1945_v1  ;;  %1678 = vmatprep.mubr.msk.f32.mxu1 %vm1944_vm0, %v1945_v1 }
  0x61   :  { %1600 = vmatmul.mubr.msk.f32.gmra.mrb[26].mxu0 %vm94_vm1, %v80_v40  ;;  %1679 = vmatmul.mubr.msk.f32.gmra.mrb[26].mxu1 %vm94_vm1, %v53_v41  ;;  %v961_v40 = vld [vmem:[%s2767_s0 + $0x98] sm:$0xff]  ;;  %v645_v41 = vld [vmem:[%s2767_s0 + $0xa1] sm:$0xff] }
  0x62   :  { %1602 = vmatprep.mubr.msk.f32.mxu0 %vm1944_vm0, %v1945_v1  ;;  %1681 = vmatprep.mubr.msk.f32.mxu1 %vm1944_vm0, %v1945_v1 }
  0x65   :  { %1603 = vmatmul.mubr.msk.f32.gmra.mrb[28].mxu0 %vm94_vm1, %v81_v42  ;;  %1682 = vmatmul.mubr.msk.f32.gmra.mrb[28].mxu1 %vm94_vm1, %v54_v43  ;;  %v962_v42 = vld [vmem:[%s2767_s0 + $0xa0] sm:$0xff]  ;;  %v646_v43 = vld [vmem:[%s2767_s0 + $0xa9] sm:$0xff] }
  0x66   :  { %1605 = vmatprep.mubr.msk.f32.mxu0 %vm1944_vm0, %v1945_v1  ;;  %1684 = vmatprep.mubr.msk.f32.mxu1 %vm1944_vm0, %v1945_v1 }
  0x69   :  { %1606 = vmatmul.mubr.msk.f32.gmra.mrb[30].mxu0 %vm94_vm1, %v82_v44  ;;  %1685 = vmatmul.mubr.msk.f32.gmra.mrb[30].mxu1 %vm94_vm1, %v55_v45  ;;  %v963_v44 = vld [vmem:[%s2767_s0 + $0xa8] sm:$0xff]  ;;  %v647_v45 = vld [vmem:[%s2767_s0 + $0xb1] sm:$0xff] }
  0x6a   :  { %1608 = vmatprep.mubr.msk.f32.mxu0 %vm1944_vm0, %v1945_v1  ;;  %1687 = vmatprep.mubr.msk.f32.mxu1 %vm1944_vm0, %v1945_v1 }
  0x6d   :  { %1609 = vmatmul.mubr.msk.f32.gmra.mrb[32].mxu0 %vm94_vm1, %v83_v46  ;;  %1688 = vmatmul.mubr.msk.f32.gmra.mrb[32].mxu1 %vm94_vm1, %v56_v47  ;;  %v964_v46 = vld [vmem:[%s2767_s0 + $0xb0] sm:$0xff]  ;;  %v648_v47 = vld [vmem:[%s2767_s0 + $0xb9] sm:$0xff] }
  0x6e   :  { %1611 = vmatprep.mubr.msk.f32.mxu0 %vm1944_vm0, %v1945_v1  ;;  %1690 = vmatprep.mubr.msk.f32.mxu1 %vm1944_vm0, %v1945_v1 }
  0x71   :  { %1612 = vmatmul.mubr.msk.f32.gmra.mrb[34].mxu0 %vm94_vm1, %v84_v48  ;;  %1691 = vmatmul.mubr.msk.f32.gmra.mrb[34].mxu1 %vm94_vm1, %v57_v49  ;;  %v965_v48 = vld [vmem:[%s2767_s0 + $0xb8] sm:$0xff]  ;;  %v649_v49 = vld [vmem:[%s2767_s0 + $0xc1] sm:$0xff] }
  0x72   :  { %1614 = vmatprep.mubr.msk.f32.mxu0 %vm1944_vm0, %v1945_v1  ;;  %1693 = vmatprep.mubr.msk.f32.mxu1 %vm1944_vm0, %v1945_v1 }
  0x75   :  { %1615 = vmatmul.mubr.msk.f32.gmra.mrb[36].mxu0 %vm94_vm1, %v85_v50  ;;  %1694 = vmatmul.mubr.msk.f32.gmra.mrb[36].mxu1 %vm94_vm1, %v58_v51  ;;  %v966_v50 = vld [vmem:[%s2767_s0 + $0xc0] sm:$0xff] }
  0x76   :  { %1617 = vmatprep.mubr.msk.f32.mxu0 %vm1944_vm0, %v1945_v1  ;;  %1696 = vmatprep.mubr.msk.f32.mxu1 %vm1944_vm0, %v1945_v1 }
  0x79   :  { %1618 = vmatmul.mubr.msk.f32.gmra.mrb[38].mxu0 %vm94_vm1, %v86_v52  ;;  %1697 = vmatmul.mubr.msk.f32.gmra.mrb[38].mxu1 %vm94_vm1, %v59_v53 }
  0x7a   :  { %1620 = vmatprep.mubr.msk.f32.mxu0 %vm1944_vm0, %v1945_v1  ;;  %1699 = vmatprep.mubr.msk.f32.mxu1 %vm1944_vm0, %v1945_v1 }
  0x7d   :  { %1621 = vmatmul.mubr.msk.f32.gmra.mrb[40].mxu0 %vm94_vm1, %v87_v54  ;;  %1700 = vmatmul.mubr.msk.f32.gmra.mrb[40].mxu1 %vm94_vm1, %v60_v55 }
  0x7e   :  { %1623 = vmatprep.mubr.msk.f32.mxu0 %vm1944_vm0, %v1945_v1  ;;  %1702 = vmatprep.mubr.msk.f32.mxu1 %vm1944_vm0, %v1945_v1 }
  0x81   :  { %1624 = vmatmul.mubr.msk.f32.gmra.mrb[42].mxu0 %vm94_vm1, %v88_v56  ;;  %1703 = vmatmul.mubr.msk.f32.gmra.mrb[42].mxu1 %vm94_vm1, %v61_v57 }
  0x82   :  { %1626 = vmatprep.mubr.msk.f32.mxu0 %vm1944_vm0, %v1945_v1  ;;  %1705 = vmatprep.mubr.msk.f32.mxu1 %vm1944_vm0, %v1945_v1 }
  0x85   :  { %1627 = vmatmul.mubr.msk.f32.gmra.mrb[44].mxu0 %vm94_vm1, %v89_v58  ;;  %1706 = vmatmul.mubr.msk.f32.gmra.mrb[44].mxu1 %vm94_vm1, %v62_v59 }
  0x86   :  { %1629 = vmatprep.mubr.msk.f32.mxu0 %vm1944_vm0, %v1945_v1  ;;  %1708 = vmatprep.mubr.msk.f32.mxu1 %vm1944_vm0, %v1945_v1 }
  0x89   :  { %1630 = vmatmul.mubr.msk.f32.gmra.mrb[46].mxu0 %vm94_vm1, %v90_v60  ;;  %1709 = vmatmul.mubr.msk.f32.gmra.mrb[46].mxu1 %vm94_vm1, %v63_v61 }
  0x8a   :  { %1632 = vmatprep.mubr.msk.f32.mxu0 %vm1944_vm0, %v1945_v1  ;;  %1711 = vmatprep.mubr.msk.f32.mxu1 %vm1944_vm0, %v1945_v1 }
  0x8d   :  { %1633 = vmatmul.mubr.msk.f32.gmra.mrb[48].mxu0 %vm94_vm1, %v91_v62  ;;  %1712 = vmatmul.mubr.msk.f32.gmra.mrb[48].mxu1 %vm94_vm1, %v64_v63 }
  0x8e   :  { %1718 = vmatprep.mubr.msk.f32.mxu0 %vm1944_vm0, %v1945_v1  ;;  %1797 = vmatprep.mubr.msk.f32.mxu1 %vm1944_vm0, %v1945_v1 }
  0x91   :  { %1719 = vmatmul.mubr.msk.f32.vlgmr.msra.gmra.mrb[50].mxu0 %vm94_vm1, %v625_v0  ;;  %1798 = vmatmul.mubr.msk.f32.vlgmr.msra.gmra.mrb[50].mxu1 %vm94_vm1, %v942_v2 }
  0x92   :  { %1721 = vmatprep.mubr.msk.f32.mxu0 %vm1944_vm0, %v1945_v1  ;;  %1800 = vmatprep.mubr.msk.f32.mxu1 %vm1944_vm0, %v1945_v1 }
  0x95   :  { %1722 = vmatmul.mubr.msk.f32.gmra.mrb[52].mxu0 %vm94_vm1, %v626_v3  ;;  %1801 = vmatmul.mubr.msk.f32.gmra.mrb[52].mxu1 %vm94_vm1, %v943_v4 }
  0x96   :  { %1724 = vmatprep.mubr.msk.f32.mxu0 %vm1944_vm0, %v1945_v1  ;;  %1803 = vmatprep.mubr.msk.f32.mxu1 %vm1944_vm0, %v1945_v1 }
  0x99   :  { %1725 = vmatmul.mubr.msk.f32.gmra.mrb[54].mxu0 %vm94_vm1, %v627_v5  ;;  %1804 = vmatmul.mubr.msk.f32.gmra.mrb[54].mxu1 %vm94_vm1, %v944_v6 }
  0x9a   :  { %1727 = vmatprep.mubr.msk.f32.mxu0 %vm1944_vm0, %v1945_v1  ;;  %1806 = vmatprep.mubr.msk.f32.mxu1 %vm1944_vm0, %v1945_v1 }
  0x9d   :  { %1728 = vmatmul.mubr.msk.f32.gmra.mrb[56].mxu0 %vm94_vm1, %v628_v7  ;;  %1807 = vmatmul.mubr.msk.f32.gmra.mrb[56].mxu1 %vm94_vm1, %v945_v8 }
  0x9e   :  { %1730 = vmatprep.mubr.msk.f32.mxu0 %vm1944_vm0, %v1945_v1  ;;  %1809 = vmatprep.mubr.msk.f32.mxu1 %vm1944_vm0, %v1945_v1 }
  0xa1   :  { %1731 = vmatmul.mubr.msk.f32.gmra.mrb[58].mxu0 %vm94_vm1, %v629_v9  ;;  %1810 = vmatmul.mubr.msk.f32.gmra.mrb[58].mxu1 %vm94_vm1, %v946_v10 }
  0xa2   :  { %1733 = vmatprep.mubr.msk.f32.mxu0 %vm1944_vm0, %v1945_v1  ;;  %1812 = vmatprep.mubr.msk.f32.mxu1 %vm1944_vm0, %v1945_v1 }
  0xa5   :  { %1734 = vmatmul.mubr.msk.f32.gmra.mrb[60].mxu0 %vm94_vm1, %v630_v11  ;;  %1813 = vmatmul.mubr.msk.f32.gmra.mrb[60].mxu1 %vm94_vm1, %v947_v12 }
  0xa6   :  { %1736 = vmatprep.mubr.msk.f32.mxu0 %vm1944_vm0, %v1945_v1  ;;  %1815 = vmatprep.mubr.msk.f32.mxu1 %vm1944_vm0, %v1945_v1 }
  0xa9   :  { %1737 = vmatmul.mubr.msk.f32.gmra.mrb[62].mxu0 %vm94_vm1, %v631_v13  ;;  %1816 = vmatmul.mubr.msk.f32.gmra.mrb[62].mxu1 %vm94_vm1, %v948_v14 }
  0xaa   :  { %1739 = vmatprep.mubr.msk.f32.mxu0 %vm1944_vm0, %v1945_v1  ;;  %1818 = vmatprep.mubr.msk.f32.mxu1 %vm1944_vm0, %v1945_v1 }
  0xad   :  { %1740 = vmatmul.mubr.msk.f32.gmra.mrb[64].mxu0 %vm94_vm1, %v632_v15  ;;  %1819 = vmatmul.mubr.msk.f32.gmra.mrb[64].mxu1 %vm94_vm1, %v949_v16 }
  0xae   :  { %1742 = vmatprep.mubr.msk.f32.mxu0 %vm1944_vm0, %v1945_v1  ;;  %1821 = vmatprep.mubr.msk.f32.mxu1 %vm1944_vm0, %v1945_v1 }
  0xb1   :  { %1743 = vmatmul.mubr.msk.f32.gmra.mrb[66].mxu0 %vm94_vm1, %v633_v17  ;;  %1822 = vmatmul.mubr.msk.f32.gmra.mrb[66].mxu1 %vm94_vm1, %v950_v18 }
  0xb2   :  { %1745 = vmatprep.mubr.msk.f32.mxu0 %vm1944_vm0, %v1945_v1  ;;  %1824 = vmatprep.mubr.msk.f32.mxu1 %vm1944_vm0, %v1945_v1 }
  0xb5   :  { %1746 = vmatmul.mubr.msk.f32.gmra.mrb[68].mxu0 %vm94_vm1, %v634_v19  ;;  %1825 = vmatmul.mubr.msk.f32.gmra.mrb[68].mxu1 %vm94_vm1, %v951_v20 }
  0xb6   :  { %1748 = vmatprep.mubr.msk.f32.mxu0 %vm1944_vm0, %v1945_v1  ;;  %1827 = vmatprep.mubr.msk.f32.mxu1 %vm1944_vm0, %v1945_v1 }
  0xb9   :  { %1749 = vmatmul.mubr.msk.f32.gmra.mrb[70].mxu0 %vm94_vm1, %v635_v21  ;;  %1828 = vmatmul.mubr.msk.f32.gmra.mrb[70].mxu1 %vm94_vm1, %v952_v22 }
  0xba   :  { %1751 = vmatprep.mubr.msk.f32.mxu0 %vm1944_vm0, %v1945_v1  ;;  %1830 = vmatprep.mubr.msk.f32.mxu1 %vm1944_vm0, %v1945_v1 }
  0xbd   :  { %1752 = vmatmul.mubr.msk.f32.gmra.mrb[72].mxu0 %vm94_vm1, %v636_v23  ;;  %1831 = vmatmul.mubr.msk.f32.gmra.mrb[72].mxu1 %vm94_vm1, %v953_v24 }
  0xbe   :  { %1754 = vmatprep.mubr.msk.f32.mxu0 %vm1944_vm0, %v1945_v1  ;;  %1833 = vmatprep.mubr.msk.f32.mxu1 %vm1944_vm0, %v1945_v1 }
  0xc1   :  { %1755 = vmatmul.mubr.msk.f32.gmra.mrb[74].mxu0 %vm94_vm1, %v637_v25  ;;  %1834 = vmatmul.mubr.msk.f32.gmra.mrb[74].mxu1 %vm94_vm1, %v954_v26 }
  0xc2   :  { %1757 = vmatprep.mubr.msk.f32.mxu0 %vm1944_vm0, %v1945_v1  ;;  %1836 = vmatprep.mubr.msk.f32.mxu1 %vm1944_vm0, %v1945_v1 }
  0xc5   :  { %1758 = vmatmul.mubr.msk.f32.gmra.mrb[76].mxu0 %vm94_vm1, %v638_v27  ;;  %1837 = vmatmul.mubr.msk.f32.gmra.mrb[76].mxu1 %vm94_vm1, %v955_v28 }
  0xc6   :  { %1760 = vmatprep.mubr.msk.f32.mxu0 %vm1944_vm0, %v1945_v1  ;;  %1839 = vmatprep.mubr.msk.f32.mxu1 %vm1944_vm0, %v1945_v1 }
  0xc9   :  { %1761 = vmatmul.mubr.msk.f32.gmra.mrb[78].mxu0 %vm94_vm1, %v639_v29  ;;  %1840 = vmatmul.mubr.msk.f32.gmra.mrb[78].mxu1 %vm94_vm1, %v956_v30 }
  0xca   :  { %1763 = vmatprep.mubr.msk.f32.mxu0 %vm1944_vm0, %v1945_v1  ;;  %1842 = vmatprep.mubr.msk.f32.mxu1 %vm1944_vm0, %v1945_v1 }
  0xcd   :  { %1764 = vmatmul.mubr.msk.f32.gmra.mrb[80].mxu0 %vm94_vm1, %v640_v31  ;;  %1843 = vmatmul.mubr.msk.f32.gmra.mrb[80].mxu1 %vm94_vm1, %v957_v32 }
  0xce   :  { %1766 = vmatprep.mubr.msk.f32.mxu0 %vm1944_vm0, %v1945_v1  ;;  %1845 = vmatprep.mubr.msk.f32.mxu1 %vm1944_vm0, %v1945_v1 }
  0xd1   :  { %1767 = vmatmul.mubr.msk.f32.gmra.mrb[82].mxu0 %vm94_vm1, %v641_v33  ;;  %1846 = vmatmul.mubr.msk.f32.gmra.mrb[82].mxu1 %vm94_vm1, %v958_v34 }
  0xd2   :  { %1769 = vmatprep.mubr.msk.f32.mxu0 %vm1944_vm0, %v1945_v1  ;;  %1848 = vmatprep.mubr.msk.f32.mxu1 %vm1944_vm0, %v1945_v1 }
  0xd5   :  { %1770 = vmatmul.mubr.msk.f32.gmra.mrb[84].mxu0 %vm94_vm1, %v642_v35  ;;  %1849 = vmatmul.mubr.msk.f32.gmra.mrb[84].mxu1 %vm94_vm1, %v959_v36 }
  0xd6   :  { %1772 = vmatprep.mubr.msk.f32.mxu0 %vm1944_vm0, %v1945_v1  ;;  %1851 = vmatprep.mubr.msk.f32.mxu1 %vm1944_vm0, %v1945_v1 }
  0xd9   :  { %1773 = vmatmul.mubr.msk.f32.gmra.mrb[86].mxu0 %vm94_vm1, %v643_v37  ;;  %1852 = vmatmul.mubr.msk.f32.gmra.mrb[86].mxu1 %vm94_vm1, %v960_v38 }
  0xda   :  { %1775 = vmatprep.mubr.msk.f32.mxu0 %vm1944_vm0, %v1945_v1  ;;  %1854 = vmatprep.mubr.msk.f32.mxu1 %vm1944_vm0, %v1945_v1 }
  0xdd   :  { %1776 = vmatmul.mubr.msk.f32.gmra.mrb[88].mxu0 %vm94_vm1, %v644_v39  ;;  %1855 = vmatmul.mubr.msk.f32.gmra.mrb[88].mxu1 %vm94_vm1, %v961_v40 }
  0xde   :  { %1778 = vmatprep.mubr.msk.f32.mxu0 %vm1944_vm0, %v1945_v1  ;;  %1857 = vmatprep.mubr.msk.f32.mxu1 %vm1944_vm0, %v1945_v1 }
  0xe1   :  { %1779 = vmatmul.mubr.msk.f32.gmra.mrb[90].mxu0 %vm94_vm1, %v645_v41  ;;  %1858 = vmatmul.mubr.msk.f32.gmra.mrb[90].mxu1 %vm94_vm1, %v962_v42 }
  0xe2   :  { %1781 = vmatprep.mubr.msk.f32.mxu0 %vm1944_vm0, %v1945_v1  ;;  %1860 = vmatprep.mubr.msk.f32.mxu1 %vm1944_vm0, %v1945_v1 }
  0xe5   :  { %1782 = vmatmul.mubr.msk.f32.gmra.mrb[92].mxu0 %vm94_vm1, %v646_v43  ;;  %1861 = vmatmul.mubr.msk.f32.gmra.mrb[92].mxu1 %vm94_vm1, %v963_v44 }
  0xe6   :  { %1784 = vmatprep.mubr.msk.f32.mxu0 %vm1944_vm0, %v1945_v1  ;;  %1863 = vmatprep.mubr.msk.f32.mxu1 %vm1944_vm0, %v1945_v1 }
  0xe9   :  { %1785 = vmatmul.mubr.msk.f32.gmra.mrb[94].mxu0 %vm94_vm1, %v647_v45  ;;  %1864 = vmatmul.mubr.msk.f32.gmra.mrb[94].mxu1 %vm94_vm1, %v964_v46 }
  0xea   :  { %1787 = vmatprep.mubr.msk.f32.mxu0 %vm1944_vm0, %v1945_v1  ;;  %1866 = vmatprep.mubr.msk.f32.mxu1 %vm1944_vm0, %v1945_v1 }
  0xed   :  { %1788 = vmatmul.mubr.msk.f32.gmra.mrb[96].mxu0 %vm94_vm1, %v648_v47  ;;  %1867 = vmatmul.mubr.msk.f32.gmra.mrb[96].mxu1 %vm94_vm1, %v965_v48 }
  0xee   :  { %1790 = vmatprep.mubr.msk.f32.mxu0 %vm1944_vm0, %v1945_v1  ;;  %1869 = vmatprep.mubr.msk.f32.mxu1 %vm1944_vm0, %v1945_v1 }
  0xf1   :  { %1791 = vmatmul.mubr.msk.f32.gmra.mrb[98].mxu0 %vm94_vm1, %v649_v49  ;;  %1870 = vmatmul.mubr.msk.f32.gmra.mrb[98].mxu1 %vm94_vm1, %v966_v50 }
 0x100   :  { %v236_v51 = vpop.f32.mrb[0].mxu0  ;;  %v501_v53 = vpop.f32.mrb[0].mxu1 }
 0x101   :  { %v1562_v52 = vpop.f32.mrb[1].mxu0  ;;  %v2590_v54 = vadd.f32 %v501_v53, %v236_v51  ;;  %v1641_v55 = vpop.f32.mrb[1].mxu1 }
 0x104   :  { %v241_v56 = vpop.f32.mrb[2].mxu0  ;;  %v506_v58 = vpop.f32.mrb[2].mxu1 }
 0x105   :  { %v1565_v57 = vpop.f32.mrb[3].mxu0  ;;  %v2592_v59 = vadd.f32 %v506_v58, %v241_v56  ;;  %v1644_v1 = vpop.f32.mrb[3].mxu1 }
 0x108   :  { %v246_v60 = vpop.f32.mrb[4].mxu0  ;;  %v511_v62 = vpop.f32.mrb[4].mxu1 }
 0x109   :  { %v1568_v61 = vpop.f32.mrb[5].mxu0  ;;  %v2594_v63 = vadd.f32 %v511_v62, %v246_v60  ;;  %v1647_v0 = vpop.f32.mrb[5].mxu1 }
 0x10c   :  { %v251_v2 = vpop.f32.mrb[6].mxu0  ;;  %v516_v4 = vpop.f32.mrb[6].mxu1 }
 0x10d   :  { %v1571_v3 = vpop.f32.mrb[7].mxu0  ;;  %v2596_v5 = vadd.f32 %v516_v4, %v251_v2  ;;  %v1650_v6 = vpop.f32.mrb[7].mxu1 }
 0x110   :  { %v256_v7 = vpop.f32.mrb[8].mxu0  ;;  %v521_v9 = vpop.f32.mrb[8].mxu1 }
 0x111   :  { %v1574_v8 = vpop.f32.mrb[9].mxu0  ;;  %v2598_v10 = vadd.f32 %v521_v9, %v256_v7  ;;  %v1653_v11 = vpop.f32.mrb[9].mxu1 }
 0x114   :  { %v261_v12 = vpop.f32.mrb[10].mxu0  ;;  %v526_v14 = vpop.f32.mrb[10].mxu1 }
 0x115   :  { %v1577_v13 = vpop.f32.mrb[11].mxu0  ;;  %v2600_v15 = vadd.f32 %v526_v14, %v261_v12  ;;  %v1656_v16 = vpop.f32.mrb[11].mxu1 }
 0x118   :  { %v266_v17 = vpop.f32.mrb[12].mxu0  ;;  %v531_v19 = vpop.f32.mrb[12].mxu1 }
 0x119   :  { %v1580_v18 = vpop.f32.mrb[13].mxu0  ;;  %v2602_v20 = vadd.f32 %v531_v19, %v266_v17  ;;  %v1659_v21 = vpop.f32.mrb[13].mxu1 }
 0x11c   :  { %v271_v22 = vpop.f32.mrb[14].mxu0  ;;  %v536_v24 = vpop.f32.mrb[14].mxu1 }
 0x11d   :  { %v1583_v23 = vpop.f32.mrb[15].mxu0  ;;  %v2604_v25 = vadd.f32 %v536_v24, %v271_v22  ;;  %v1662_v26 = vpop.f32.mrb[15].mxu1 }
 0x120   :  { %v276_v27 = vpop.f32.mrb[16].mxu0  ;;  %v541_v29 = vpop.f32.mrb[16].mxu1 }
 0x121   :  { %v1586_v28 = vpop.f32.mrb[17].mxu0  ;;  %v2606_v30 = vadd.f32 %v541_v29, %v276_v27  ;;  %v1665_v31 = vpop.f32.mrb[17].mxu1 }
 0x124   :  { %v281_v32 = vpop.f32.mrb[18].mxu0  ;;  %v546_v34 = vpop.f32.mrb[18].mxu1 }
 0x125   :  { %v1589_v33 = vpop.f32.mrb[19].mxu0  ;;  %v2608_v35 = vadd.f32 %v546_v34, %v281_v32  ;;  %v1668_v36 = vpop.f32.mrb[19].mxu1 }
 0x128   :  { %v286_v37 = vpop.f32.mrb[20].mxu0  ;;  %v551_v39 = vpop.f32.mrb[20].mxu1 }
 0x129   :  { %v1592_v38 = vpop.f32.mrb[21].mxu0  ;;  %v2610_v40 = vadd.f32 %v551_v39, %v286_v37  ;;  %v1671_v41 = vpop.f32.mrb[21].mxu1 }
 0x12c   :  { %v291_v42 = vpop.f32.mrb[22].mxu0  ;;  %v556_v44 = vpop.f32.mrb[22].mxu1 }
 0x12d   :  { %v1595_v43 = vpop.f32.mrb[23].mxu0  ;;  %v2612_v45 = vadd.f32 %v556_v44, %v291_v42  ;;  %v1674_v46 = vpop.f32.mrb[23].mxu1 }
 0x130   :  { %v296_v47 = vpop.f32.mrb[24].mxu0  ;;  %v561_v49 = vpop.f32.mrb[24].mxu1 }
 0x131   :  { %v1598_v48 = vpop.f32.mrb[25].mxu0  ;;  %v2614_v50 = vadd.f32 %v561_v49, %v296_v47  ;;  %v1677_v51 = vpop.f32.mrb[25].mxu1 }
 0x134   :  { %v301_v52 = vpop.f32.mrb[26].mxu0  ;;  %v566_v55 = vpop.f32.mrb[26].mxu1 }
 0x135   :  { %v1601_v53 = vpop.f32.mrb[27].mxu0  ;;  %v2616_v56 = vadd.f32 %v566_v55, %v301_v52  ;;  %v1680_v57 = vpop.f32.mrb[27].mxu1 }
 0x138   :  { %v306_v58 = vpop.f32.mrb[28].mxu0  ;;  %v571_v60 = vpop.f32.mrb[28].mxu1 }
 0x139   :  { %v1604_v1 = vpop.f32.mrb[29].mxu0  ;;  %v2618_v61 = vadd.f32 %v571_v60, %v306_v58  ;;  %v1683_v62 = vpop.f32.mrb[29].mxu1 }
 0x13c   :  { %v311_v0 = vpop.f32.mrb[30].mxu0  ;;  %v576_v3 = vpop.f32.mrb[30].mxu1 }
 0x13d   :  { %v1607_v2 = vpop.f32.mrb[31].mxu0  ;;  %v2620_v4 = vadd.f32 %v576_v3, %v311_v0  ;;  %v1686_v6 = vpop.f32.mrb[31].mxu1 }
 0x140   :  { %v316_v7 = vpop.f32.mrb[32].mxu0  ;;  %v581_v9 = vpop.f32.mrb[32].mxu1 }
 0x141   :  { %v1610_v8 = vpop.f32.mrb[33].mxu0  ;;  %v2622_v11 = vadd.f32 %v581_v9, %v316_v7  ;;  %v1689_v12 = vpop.f32.mrb[33].mxu1 }
 0x142   :  { %v2641_v8 = vld [vmem:[#allocation4] ss:$0 sm:$0xff] }
 0x144   :  { %v321_v13 = vpop.f32.mrb[34].mxu0  ;;  %v586_v16 = vpop.f32.mrb[34].mxu1 }
 0x145   :  { %v1613_v14 = vpop.f32.mrb[35].mxu0  ;;  %v2624_v17 = vadd.f32 %v586_v16, %v321_v13  ;;  %v1692_v18 = vpop.f32.mrb[35].mxu1 }
 0x148   :  { %v326_v19 = vpop.f32.mrb[36].mxu0  ;;  %v591_v22 = vpop.f32.mrb[36].mxu1 }
 0x149   :  { %v1616_v21 = vpop.f32.mrb[37].mxu0  ;;  %v2626_v23 = vadd.f32 %v591_v22, %v326_v19  ;;  %v1695_v24 = vpop.f32.mrb[37].mxu1 }
 0x14c   :  { %v331_v26 = vpop.f32.mrb[38].mxu0  ;;  %v596_v28 = vpop.f32.mrb[38].mxu1 }
 0x14d   :  { %v1619_v27 = vpop.f32.mrb[39].mxu0  ;;  %v2628_v29 = vadd.f32 %v596_v28, %v331_v26  ;;  %v1698_v31 = vpop.f32.mrb[39].mxu1 }
 0x150   :  { %v336_v32 = vpop.f32.mrb[40].mxu0  ;;  %v601_v34 = vpop.f32.mrb[40].mxu1 }
 0x151   :  { %v1622_v33 = vpop.f32.mrb[41].mxu0  ;;  %v2630_v36 = vadd.f32 %v601_v34, %v336_v32  ;;  %v1701_v37 = vpop.f32.mrb[41].mxu1 }
 0x154   :  { %v341_v38 = vpop.f32.mrb[42].mxu0  ;;  %v606_v41 = vpop.f32.mrb[42].mxu1 }
 0x155   :  { %v1625_v39 = vpop.f32.mrb[43].mxu0  ;;  %v2632_v42 = vadd.f32 %v606_v41, %v341_v38  ;;  %v1704_v43 = vpop.f32.mrb[43].mxu1 }
 0x158   :  { %v346_v44 = vpop.f32.mrb[44].mxu0  ;;  %v611_v47 = vpop.f32.mrb[44].mxu1 }
 0x159   :  { %v1628_v46 = vpop.f32.mrb[45].mxu0  ;;  %v2634_v48 = vadd.f32 %v611_v47, %v346_v44  ;;  %v1707_v49 = vpop.f32.mrb[45].mxu1 }
 0x15c   :  { %v351_v51 = vpop.f32.mrb[46].mxu0  ;;  %v616_v53 = vpop.f32.mrb[46].mxu1 }
 0x15d   :  { %v1631_v52 = vpop.f32.mrb[47].mxu0  ;;  %v2636_v55 = vadd.f32 %v616_v53, %v351_v51  ;;  %v1710_v57 = vpop.f32.mrb[47].mxu1 }
 0x160   :  { %v356_v58 = vpop.f32.mrb[48].mxu0  ;;  %v621_v60 = vpop.f32.mrb[48].mxu1 }
 0x161   :  { %v1634_v1 = vpop.f32.mrb[49].mxu0  ;;  %v2638_v62 = vadd.f32 %v621_v60, %v356_v58  ;;  %v1713_v0 = vpop.f32.mrb[49].mxu1 }
 0x164   :  { %v793_v2 = vpop.f32.mrb[50].mxu0  ;;  %v1110_v7 = vpop.f32.mrb[50].mxu1 }
 0x165   :  { %v917_v3 = vadd.f32 %v793_v2, %v2590_v54  ;;  %v1720_v6 = vpop.f32.mrb[51].mxu0  ;;  %v1799_v9 = vpop.f32.mrb[51].mxu1 }
 0x167   :  { %v1234_v12 = vadd.f32 %v1110_v7, %v917_v3 }
 0x168   :  { %v798_v13 = vpop.f32.mrb[52].mxu0  ;;  %v1115_v19 = vpop.f32.mrb[52].mxu1 }
 0x169   :  { %v1266_v14 = vadd.f32 %v2641_v8, %v1234_v12  ;;  %v918_v16 = vadd.f32 %v798_v13, %v2592_v59  ;;  %v1723_v18 = vpop.f32.mrb[53].mxu0  ;;  %v1802_v21 = vpop.f32.mrb[53].mxu1 }
 0x16b   :  { %v1291_v22 = vmax.f32 %v1266_v14, 0.0  ;;  %v1235_v24 = vadd.f32 %v1115_v19, %v918_v16 }
 0x16c   :  { %v803_v26 = vpop.f32.mrb[54].mxu0  ;;  %v1120_v31 = vpop.f32.mrb[54].mxu1 }
 0x16d   :  { %1316 = vst [vmem:[%s2770_s3] sm:$0xff] %v1291_v22  ;;  %v1267_v54 = vadd.f32 %v2641_v8, %v1235_v24  ;;  %v919_v27 = vadd.f32 %v803_v26, %v2594_v63  ;;  %v1726_v28 = vpop.f32.mrb[55].mxu0  ;;  %v1805_v32 = vpop.f32.mrb[55].mxu1 }
 0x16f   :  { %v1292_v33 = vmax.f32 %v1267_v54, 0.0  ;;  %v1236_v34 = vadd.f32 %v1120_v31, %v919_v27 }
 0x170   :  { %v808_v59 = vpop.f32.mrb[56].mxu0  ;;  %v1125_v41 = vpop.f32.mrb[56].mxu1 }
 0x171   :  { %1317 = vst [vmem:[%s2770_s3 + $0x8] sm:$0xff] %v1292_v33  ;;  %v1268_v37 = vadd.f32 %v2641_v8, %v1236_v34  ;;  %v920_v38 = vadd.f32 %v808_v59, %v2596_v5  ;;  %v1729_v39 = vpop.f32.mrb[57].mxu0  ;;  %v1808_v43 = vpop.f32.mrb[57].mxu1 }
 0x173   :  { %v1293_v44 = vmax.f32 %v1268_v37, 0.0  ;;  %v1237_v46 = vadd.f32 %v1125_v41, %v920_v38 }
 0x174   :  { %v813_v63 = vpop.f32.mrb[58].mxu0  ;;  %v1130_v52 = vpop.f32.mrb[58].mxu1 }
 0x175   :  { %1318 = vst [vmem:[%s2770_s3 + $0x10] sm:$0xff] %v1293_v44  ;;  %v1269_v47 = vadd.f32 %v2641_v8, %v1237_v46  ;;  %v921_v49 = vadd.f32 %v813_v63, %v2598_v10  ;;  %v1732_v51 = vpop.f32.mrb[59].mxu0  ;;  %v1811_v53 = vpop.f32.mrb[59].mxu1 }
 0x177   :  { %v1294_v57 = vmax.f32 %v1269_v47, 0.0  ;;  %v1238_v58 = vadd.f32 %v1130_v52, %v921_v49 }
 0x178   :  { %v818_v5 = vpop.f32.mrb[60].mxu0  ;;  %v1135_v2 = vpop.f32.mrb[60].mxu1 }
 0x179   :  { %1319 = vst [vmem:[%s2770_s3 + $0x18] sm:$0xff] %v1294_v57  ;;  %v1270_v1 = vadd.f32 %v2641_v8, %v1238_v58  ;;  %v922_v60 = vadd.f32 %v818_v5, %v2600_v15  ;;  %v1735_v0 = vpop.f32.mrb[61].mxu0  ;;  %v1814_v3 = vpop.f32.mrb[61].mxu1 }
 0x17b   :  { %v1295_v6 = vmax.f32 %v1270_v1, 0.0  ;;  %v1239_v7 = vadd.f32 %v1135_v2, %v922_v60 }
 0x17c   :  { %v823_v10 = vpop.f32.mrb[62].mxu0  ;;  %v1140_v14 = vpop.f32.mrb[62].mxu1 }
 0x17d   :  { %1320 = vst [vmem:[%s2770_s3 + $0x20] sm:$0xff] %v1295_v6  ;;  %v1271_v9 = vadd.f32 %v2641_v8, %v1239_v7  ;;  %v923_v12 = vadd.f32 %v823_v10, %v2602_v20  ;;  %v1738_v13 = vpop.f32.mrb[63].mxu0  ;;  %v1817_v16 = vpop.f32.mrb[63].mxu1 }
 0x17f   :  { %v1296_v18 = vmax.f32 %v1271_v9, 0.0  ;;  %v1240_v19 = vadd.f32 %v1140_v14, %v923_v12 }
 0x180   :  { %v828_v15 = vpop.f32.mrb[64].mxu0  ;;  %v1145_v26 = vpop.f32.mrb[64].mxu1 }
 0x181   :  { %1321 = vst [vmem:[%s2770_s3 + $0x28] sm:$0xff] %v1296_v18  ;;  %v1272_v21 = vadd.f32 %v2641_v8, %v1240_v19  ;;  %v924_v22 = vadd.f32 %v828_v15, %v2604_v25  ;;  %v1741_v24 = vpop.f32.mrb[65].mxu0  ;;  %v1820_v54 = vpop.f32.mrb[65].mxu1 }
 0x183   :  { %v1297_v27 = vmax.f32 %v1272_v21, 0.0  ;;  %v1241_v28 = vadd.f32 %v1145_v26, %v924_v22 }
 0x184   :  { %v833_v20 = vpop.f32.mrb[66].mxu0  ;;  %v1150_v34 = vpop.f32.mrb[66].mxu1 }
 0x185   :  { %1322 = vst [vmem:[%s2770_s3 + $0x30] sm:$0xff] %v1297_v27  ;;  %v1273_v31 = vadd.f32 %v2641_v8, %v1241_v28  ;;  %v925_v32 = vadd.f32 %v833_v20, %v2606_v30  ;;  %v1744_v33 = vpop.f32.mrb[67].mxu0  ;;  %v1823_v59 = vpop.f32.mrb[67].mxu1 }
 0x187   :  { %v1298_v37 = vmax.f32 %v1273_v31, 0.0  ;;  %v1242_v38 = vadd.f32 %v1150_v34, %v925_v32 }
 0x188   :  { %v838_v25 = vpop.f32.mrb[68].mxu0  ;;  %v1155_v44 = vpop.f32.mrb[68].mxu1 }
 0x189   :  { %1323 = vst [vmem:[%s2770_s3 + $0x38] sm:$0xff] %v1298_v37  ;;  %v1274_v39 = vadd.f32 %v2641_v8, %v1242_v38  ;;  %v926_v41 = vadd.f32 %v838_v25, %v2608_v35  ;;  %v1747_v43 = vpop.f32.mrb[69].mxu0  ;;  %v1826_v46 = vpop.f32.mrb[69].mxu1 }
 0x18b   :  { %v1299_v63 = vmax.f32 %v1274_v39, 0.0  ;;  %v1243_v47 = vadd.f32 %v1155_v44, %v926_v41 }
 0x18c   :  { %v843_v30 = vpop.f32.mrb[70].mxu0  ;;  %v1160_v53 = vpop.f32.mrb[70].mxu1 }
 0x18d   :  { %1324 = vst [vmem:[%s2770_s3 + $0x40] sm:$0xff] %v1299_v63  ;;  %v1275_v49 = vadd.f32 %v2641_v8, %v1243_v47  ;;  %v927_v51 = vadd.f32 %v843_v30, %v2610_v40  ;;  %v1750_v52 = vpop.f32.mrb[71].mxu0  ;;  %v1829_v57 = vpop.f32.mrb[71].mxu1 }
 0x18f   :  { %v1300_v58 = vmax.f32 %v1275_v49, 0.0  ;;  %v1244_v5 = vadd.f32 %v1160_v53, %v927_v51 }
 0x190   :  { %v848_v35 = vpop.f32.mrb[72].mxu0  ;;  %v1165_v2 = vpop.f32.mrb[72].mxu1 }
 0x191   :  { %1325 = vst [vmem:[%s2770_s3 + $0x48] sm:$0xff] %v1300_v58  ;;  %v1276_v1 = vadd.f32 %v2641_v8, %v1244_v5  ;;  %v928_v60 = vadd.f32 %v848_v35, %v2612_v45  ;;  %v1753_v0 = vpop.f32.mrb[73].mxu0  ;;  %v1832_v3 = vpop.f32.mrb[73].mxu1 }
 0x193   :  { %v1301_v6 = vmax.f32 %v1276_v1, 0.0  ;;  %v1245_v7 = vadd.f32 %v1165_v2, %v928_v60 }
 0x194   :  { %v853_v40 = vpop.f32.mrb[74].mxu0  ;;  %v1170_v13 = vpop.f32.mrb[74].mxu1 }
 0x195   :  { %1326 = vst [vmem:[%s2770_s3 + $0x50] sm:$0xff] %v1301_v6  ;;  %v1277_v10 = vadd.f32 %v2641_v8, %v1245_v7  ;;  %v929_v9 = vadd.f32 %v853_v40, %v2614_v50  ;;  %v1756_v12 = vpop.f32.mrb[75].mxu0  ;;  %v1835_v14 = vpop.f32.mrb[75].mxu1 }
 0x197   :  { %v1302_v16 = vmax.f32 %v1277_v10, 0.0  ;;  %v1246_v18 = vadd.f32 %v1170_v13, %v929_v9 }
 0x198   :  { %v858_v45 = vpop.f32.mrb[76].mxu0  ;;  %v1175_v22 = vpop.f32.mrb[76].mxu1 }
 0x199   :  { %1327 = vst [vmem:[%s2770_s3 + $0x58] sm:$0xff] %v1302_v16  ;;  %v1278_v19 = vadd.f32 %v2641_v8, %v1246_v18  ;;  %v930_v15 = vadd.f32 %v858_v45, %v2616_v56  ;;  %v1759_v21 = vpop.f32.mrb[77].mxu0  ;;  %v1838_v24 = vpop.f32.mrb[77].mxu1 }
 0x19b   :  { %v1303_v26 = vmax.f32 %v1278_v19, 0.0  ;;  %v1247_v54 = vadd.f32 %v1175_v22, %v930_v15 }
 0x19c   :  { %v863_v50 = vpop.f32.mrb[78].mxu0  ;;  %v1180_v31 = vpop.f32.mrb[78].mxu1 }
 0x19d   :  { %1328 = vst [vmem:[%s2770_s3 + $0x60] sm:$0xff] %v1303_v26  ;;  %v1279_v27 = vadd.f32 %v2641_v8, %v1247_v54  ;;  %v931_v28 = vadd.f32 %v863_v50, %v2618_v61  ;;  %v1762_v20 = vpop.f32.mrb[79].mxu0  ;;  %v1841_v32 = vpop.f32.mrb[79].mxu1 }
 0x19f   :  { %v1304_v33 = vmax.f32 %v1279_v27, 0.0  ;;  %v1248_v34 = vadd.f32 %v1180_v31, %v931_v28 }
 0x1a0   :  { %v868_v56 = vpop.f32.mrb[80].mxu0  ;;  %v1185_v25 = vpop.f32.mrb[80].mxu1 }
 0x1a1   :  { %1329 = vst [vmem:[%s2770_s3 + $0x68] sm:$0xff] %v1304_v33  ;;  %v1280_v59 = vadd.f32 %v2641_v8, %v1248_v34  ;;  %v932_v37 = vadd.f32 %v868_v56, %v2620_v4  ;;  %v1765_v38 = vpop.f32.mrb[81].mxu0  ;;  %v1844_v39 = vpop.f32.mrb[81].mxu1 }
 0x1a3   :  { %v1305_v41 = vmax.f32 %v1280_v59, 0.0  ;;  %v1249_v43 = vadd.f32 %v1185_v25, %v932_v37 }
 0x1a4   :  { %v873_v61 = vpop.f32.mrb[82].mxu0  ;;  %v1190_v47 = vpop.f32.mrb[82].mxu1 }
 0x1a5   :  { %1330 = vst [vmem:[%s2770_s3 + $0x70] sm:$0xff] %v1305_v41  ;;  %v1281_v44 = vadd.f32 %v2641_v8, %v1249_v43  ;;  %v933_v46 = vadd.f32 %v873_v61, %v2622_v11  ;;  %v1768_v63 = vpop.f32.mrb[83].mxu0  ;;  %v1847_v30 = vpop.f32.mrb[83].mxu1 }
 0x1a7   :  { %v1306_v49 = vmax.f32 %v1281_v44, 0.0  ;;  %v1250_v51 = vadd.f32 %v1190_v47, %v933_v46 }
 0x1a8   :  { %v878_v4 = vpop.f32.mrb[84].mxu0  ;;  %v1195_v58 = vpop.f32.mrb[84].mxu1 }
 0x1a9   :  { %1331 = vst [vmem:[%s2770_s3 + $0x78] sm:$0xff] %v1306_v49  ;;  %v1282_v52 = vadd.f32 %v2641_v8, %v1250_v51  ;;  %v934_v53 = vadd.f32 %v878_v4, %v2624_v17  ;;  %v1771_v57 = vpop.f32.mrb[85].mxu0  ;;  %v1850_v5 = vpop.f32.mrb[85].mxu1 }
 0x1ab   :  { %v1307_v35 = vmax.f32 %v1282_v52, 0.0  ;;  %v1251_v1 = vadd.f32 %v1195_v58, %v934_v53 }
 0x1ac   :  { %v883_v11 = vpop.f32.mrb[86].mxu0  ;;  %v1200_v3 = vpop.f32.mrb[86].mxu1 }
 0x1ad   :  { %1332 = vst [vmem:[%s2770_s3 + $0x80] sm:$0xff] %v1307_v35  ;;  %v1283_v60 = vadd.f32 %v2641_v8, %v1251_v1  ;;  %v935_v0 = vadd.f32 %v883_v11, %v2626_v23  ;;  %v1774_v2 = vpop.f32.mrb[87].mxu0  ;;  %v1853_v6 = vpop.f32.mrb[87].mxu1 }
 0x1af   :  { %v1308_v7 = vmax.f32 %v1283_v60, 0.0  ;;  %v1252_v40 = vadd.f32 %v1200_v3, %v935_v0 }
 0x1b0   :  { %v888_v17 = vpop.f32.mrb[88].mxu0  ;;  %v1205_v13 = vpop.f32.mrb[88].mxu1 }
 0x1b1   :  { %1333 = vst [vmem:[%s2770_s3 + $0x88] sm:$0xff] %v1308_v7  ;;  %v1284_v10 = vadd.f32 %v2641_v8, %v1252_v40  ;;  %v936_v9 = vadd.f32 %v888_v17, %v2628_v29  ;;  %v1777_v12 = vpop.f32.mrb[89].mxu0  ;;  %v1856_v14 = vpop.f32.mrb[89].mxu1 }
 0x1b3   :  { %v1309_v16 = vmax.f32 %v1284_v10, 0.0  ;;  %v1253_v18 = vadd.f32 %v1205_v13, %v936_v9 }
 0x1b4   :  { %v893_v23 = vpop.f32.mrb[90].mxu0  ;;  %v1210_v21 = vpop.f32.mrb[90].mxu1 }
 0x1b5   :  { %1334 = vst [vmem:[%s2770_s3 + $0x90] sm:$0xff] %v1309_v16  ;;  %v1285_v45 = vadd.f32 %v2641_v8, %v1253_v18  ;;  %v937_v19 = vadd.f32 %v893_v23, %v2630_v36  ;;  %v1780_v15 = vpop.f32.mrb[91].mxu0  ;;  %v1859_v22 = vpop.f32.mrb[91].mxu1 }
 0x1b7   :  { %v1310_v24 = vmax.f32 %v1285_v45, 0.0  ;;  %v1254_v26 = vadd.f32 %v1210_v21, %v937_v19 }
 0x1b8   :  { %v898_v29 = vpop.f32.mrb[92].mxu0  ;;  %v1215_v28 = vpop.f32.mrb[92].mxu1 }
 0x1b9   :  { %1335 = vst [vmem:[%s2770_s3 + $0x98] sm:$0xff] %v1310_v24  ;;  %v1286_v54 = vadd.f32 %v2641_v8, %v1254_v26  ;;  %v938_v50 = vadd.f32 %v898_v29, %v2632_v42  ;;  %v1783_v27 = vpop.f32.mrb[93].mxu0  ;;  %v1862_v20 = vpop.f32.mrb[93].mxu1 }
 0x1bb   :  { %v1311_v31 = vmax.f32 %v1286_v54, 0.0  ;;  %v1255_v32 = vadd.f32 %v1215_v28, %v938_v50 }
 0x1bc   :  { %v903_v36 = vpop.f32.mrb[94].mxu0  ;;  %v1220_v59 = vpop.f32.mrb[94].mxu1 }
 0x1bd   :  { %1336 = vst [vmem:[%s2770_s3 + $0xa0] sm:$0xff] %v1311_v31  ;;  %v1287_v33 = vadd.f32 %v2641_v8, %v1255_v32  ;;  %v939_v34 = vadd.f32 %v903_v36, %v2634_v48  ;;  %v1786_v56 = vpop.f32.mrb[95].mxu0  ;;  %v1865_v37 = vpop.f32.mrb[95].mxu1 }
 0x1bf   :  { %v1312_v38 = vmax.f32 %v1287_v33, 0.0  ;;  %v1256_v25 = vadd.f32 %v1220_v59, %v939_v34 }
 0x1c0   :  { %v908_v42 = vpop.f32.mrb[96].mxu0  ;;  %v1225_v61 = vpop.f32.mrb[96].mxu1 }
 0x1c1   :  { %1337 = vst [vmem:[%s2770_s3 + $0xa8] sm:$0xff] %v1312_v38  ;;  %v1288_v39 = vadd.f32 %v2641_v8, %v1256_v25  ;;  %v940_v41 = vadd.f32 %v908_v42, %v2636_v55  ;;  %v1789_v43 = vpop.f32.mrb[97].mxu0  ;;  %v1868_v44 = vpop.f32.mrb[97].mxu1 }
 0x1c3   :  { %v1313_v46 = vmax.f32 %v1288_v39, 0.0  ;;  %v1257_v63 = vadd.f32 %v1225_v61, %v940_v41 }
 0x1c4   :  { %v913_v48 = vpop.f32.mrb[98].mxu0  ;;  %v1230_v51 = vpop.f32.mrb[98].mxu1 }
 0x1c5   :  { %1338 = vst [vmem:[%s2770_s3 + $0xb0] sm:$0xff] %v1313_v46  ;;  %v1289_v47 = vadd.f32 %v2641_v8, %v1257_v63  ;;  %v941_v30 = vadd.f32 %v913_v48, %v2638_v62  ;;  %v1792_v49 = vpop.f32.mrb[99].mxu0  ;;  %v1871_v4 = vpop.f32.mrb[99].mxu1 }
 0x1c7   :  { %v1314_v52 = vmax.f32 %v1289_v47, 0.0  ;;  %v1258_v53 = vadd.f32 %v1230_v51, %v941_v30 }
 0x1c9   :  { %1339 = vst [vmem:[%s2770_s3 + $0xb8] sm:$0xff] %v1314_v52  ;;  %v1290_v55 = vadd.f32 %v2641_v8, %v1258_v53 }
 0x1cb   :  { %v1315_v57 = vmax.f32 %v1290_v55, 0.0 }
 0x1cd   :  { %1340 = vst [vmem:[%s2770_s3 + $0xc0] sm:$0xff] %v1315_v57 }
 0x1ce   :  { %1345 = vsyncpa [#allocation3], 1 }
 0x1cf   :  { %1346 = vsyncpa [#allocation5], 1 }

// kernel: _forward_impl.3
= control target key start
LH: loop header
LB: loop body
LE: loop exit
PB: predicated region body
PF: predicated region fallthrough
CT: control target
= control target key end

     0   :  { %vm198_vm0 = vcmask 64512   ;;  %v7042_v0 = vmov 0.0   ;;  %vm7043_vm1 = vmmov 0   ;;  %s10621_s1 = inlined_call_operand.vmem [shape: f32[32,128], index: 1, kind: input, shape index: {}]   ;;  %s10622_s0 = inlined_call_operand.vmem [shape: f32[752,8], index: 0, kind: input, shape index: {}]   ;;  %s10623_s2 = inlined_call_operand.vmem [shape: f32[1,128], index: 2, kind: input, shape index: {}]   ;;  %s10624_s3 = inlined_call_operand.vmem [shape: f32[728,128], index: 3, kind: output, shape index: {}]  }
   0x1   :  { %5573 = vmatprep.subr.mxu0 %v7042_v0  ;;  %v197_v1 = vld [vmem:[%s10621_s1 + $0x8] sm:$0xff]  ;;  %5575 = vmatprep.mubr.msk.f32.mxu0 %vm7043_vm1, %v7042_v0  ;;  %v106_v2 = vld [vmem:[%s10622_s0 + $0x13] sm:$0xff]  ;;  %v105_v3 = vld [vmem:[%s10621_s1] sm:$0xff] }
   0x2   :  { %5574 = vmatpush3.msra.mxu0 %v197_v1  ;;  %5848 = vmatprep.subr.mxu1 %v7042_v0  ;;  %v14_v4 = vld [vmem:[%s10622_s0 + $0x14] sm:$0xff]  ;;  %v15_v8 = vld [vmem:[%s10622_s0 + $0x1c] sm:$0xff]  ;;  %v16_v10 = vld [vmem:[%s10622_s0 + $0x24] sm:$0xff] }
   0x3   :  { %v1876_v5 = vld [vmem:[%s10621_s1 + $0x10] sm:$0xff]  ;;  %5576 = vmatmul.mubr.msk.f32.vlgmr.msra.gmra.mrb[0].mxu0 %vm198_vm0, %v106_v2  ;;  %5849 = vmatpush3.msra.mxu1 %v105_v3  ;;  %v2852_v6 = vld [vmem:[%s10621_s1 + $0x18] sm:$0xff]  ;;  %v108_v9 = vld [vmem:[%s10622_s0 + $0x23] sm:$0xff] }
   0x4   :  { %5850 = vmatprep.mubr.msk.f32.mxu1 %vm7043_vm1, %v7042_v0  ;;  %6123 = vmatprep.subr.mxu0 %v7042_v0  ;;  %v107_v7 = vld [vmem:[%s10622_s0 + $0x1b] sm:$0xff]  ;;  %v109_v11 = vld [vmem:[%s10622_s0 + $0x2b] sm:$0xff]  ;;  %v110_v13 = vld [vmem:[%s10622_s0 + $0x33] sm:$0xff] }
   0x5   :  { %5851 = vmatmul.mubr.msk.f32.vlgmr.msra.gmra.mrb[0].mxu1 %vm198_vm0, %v14_v4  ;;  %6124 = vmatpush3.msra.mxu0 %v1876_v5  ;;  %v17_v12 = vld [vmem:[%s10622_s0 + $0x2c] sm:$0xff]  ;;  %v18_v14 = vld [vmem:[%s10622_s0 + $0x34] sm:$0xff]  ;;  %v19_v16 = vld [vmem:[%s10622_s0 + $0x3c] sm:$0xff] }
   0x6   :  { %6398 = vmatprep.subr.mxu1 %v7042_v0  ;;  %5578 = vmatprep.mubr.msk.f32.mxu0 %vm7043_vm1, %v7042_v0  ;;  %v111_v15 = vld [vmem:[%s10622_s0 + $0x3b] sm:$0xff]  ;;  %v112_v17 = vld [vmem:[%s10622_s0 + $0x43] sm:$0xff]  ;;  %v113_v19 = vld [vmem:[%s10622_s0 + $0x4b] sm:$0xff] }
   0x7   :  { %6399 = vmatpush3.msra.mxu1 %v2852_v6  ;;  %5579 = vmatmul.mubr.msk.f32.gmra.mrb[2].mxu0 %vm198_vm0, %v107_v7  ;;  %v20_v18 = vld [vmem:[%s10622_s0 + $0x44] sm:$0xff]  ;;  %v21_v20 = vld [vmem:[%s10622_s0 + $0x4c] sm:$0xff]  ;;  %v22_v22 = vld [vmem:[%s10622_s0 + $0x54] sm:$0xff] }
   0x8   :  { %5853 = vmatprep.mubr.msk.f32.mxu1 %vm7043_vm1, %v7042_v0  ;;  %5581 = vmatprep.mubr.msk.f32.mxu0 %vm7043_vm1, %v7042_v0  ;;  %v114_v21 = vld [vmem:[%s10622_s0 + $0x53] sm:$0xff]  ;;  %v115_v23 = vld [vmem:[%s10622_s0 + $0x5b] sm:$0xff]  ;;  %v116_v25 = vld [vmem:[%s10622_s0 + $0x63] sm:$0xff] }
   0x9   :  { %5854 = vmatmul.mubr.msk.f32.gmra.mrb[2].mxu1 %vm198_vm0, %v15_v8  ;;  %v23_v24 = vld [vmem:[%s10622_s0 + $0x5c] sm:$0xff]  ;;  %v24_v26 = vld [vmem:[%s10622_s0 + $0x64] sm:$0xff]  ;;  %v25_v28 = vld [vmem:[%s10622_s0 + $0x6c] sm:$0xff] }
   0xa   :  { %5856 = vmatprep.mubr.msk.f32.mxu1 %vm7043_vm1, %v7042_v0  ;;  %v117_v27 = vld [vmem:[%s10622_s0 + $0x6b] sm:$0xff]  ;;  %v118_v29 = vld [vmem:[%s10622_s0 + $0x73] sm:$0xff]  ;;  %v119_v31 = vld [vmem:[%s10622_s0 + $0x7b] sm:$0xff] }
   0xb   :  { %5582 = vmatmul.mubr.msk.f32.gmra.mrb[4].mxu0 %vm198_vm0, %v108_v9  ;;  %v26_v30 = vld [vmem:[%s10622_s0 + $0x74] sm:$0xff]  ;;  %v27_v32 = vld [vmem:[%s10622_s0 + $0x7c] sm:$0xff]  ;;  %v28_v34 = vld [vmem:[%s10622_s0 + $0x84] sm:$0xff] }
   0xc   :  { %5584 = vmatprep.mubr.msk.f32.mxu0 %vm7043_vm1, %v7042_v0  ;;  %v120_v33 = vld [vmem:[%s10622_s0 + $0x83] sm:$0xff]  ;;  %v121_v35 = vld [vmem:[%s10622_s0 + $0x8b] sm:$0xff]  ;;  %v122_v37 = vld [vmem:[%s10622_s0 + $0x93] sm:$0xff] }
   0xd   :  { %5857 = vmatmul.mubr.msk.f32.gmra.mrb[4].mxu1 %vm198_vm0, %v16_v10  ;;  %v29_v36 = vld [vmem:[%s10622_s0 + $0x8c] sm:$0xff]  ;;  %v30_v38 = vld [vmem:[%s10622_s0 + $0x94] sm:$0xff]  ;;  %v31_v40 = vld [vmem:[%s10622_s0 + $0x9c] sm:$0xff] }
   0xe   :  { %5859 = vmatprep.mubr.msk.f32.mxu1 %vm7043_vm1, %v7042_v0  ;;  %v123_v39 = vld [vmem:[%s10622_s0 + $0x9b] sm:$0xff]  ;;  %v124_v41 = vld [vmem:[%s10622_s0 + $0xa3] sm:$0xff]  ;;  %v125_v43 = vld [vmem:[%s10622_s0 + $0xab] sm:$0xff] }
   0xf   :  { %5585 = vmatmul.mubr.msk.f32.gmra.mrb[6].mxu0 %vm198_vm0, %v109_v11  ;;  %v32_v42 = vld [vmem:[%s10622_s0 + $0xa4] sm:$0xff]  ;;  %v33_v44 = vld [vmem:[%s10622_s0 + $0xac] sm:$0xff]  ;;  %v34_v46 = vld [vmem:[%s10622_s0 + $0xb4] sm:$0xff] }
  0x10   :  { %5587 = vmatprep.mubr.msk.f32.mxu0 %vm7043_vm1, %v7042_v0  ;;  %v126_v45 = vld [vmem:[%s10622_s0 + $0xb3] sm:$0xff]  ;;  %v127_v47 = vld [vmem:[%s10622_s0 + $0xbb] sm:$0xff]  ;;  %v128_v49 = vld [vmem:[%s10622_s0 + $0xc3] sm:$0xff] }
  0x11   :  { %5860 = vmatmul.mubr.msk.f32.gmra.mrb[6].mxu1 %vm198_vm0, %v17_v12  ;;  %v35_v48 = vld [vmem:[%s10622_s0 + $0xbc] sm:$0xff]  ;;  %v36_v50 = vld [vmem:[%s10622_s0 + $0xc4] sm:$0xff]  ;;  %v37_v52 = vld [vmem:[%s10622_s0 + $0xcc] sm:$0xff] }
  0x12   :  { %5862 = vmatprep.mubr.msk.f32.mxu1 %vm7043_vm1, %v7042_v0  ;;  %v129_v51 = vld [vmem:[%s10622_s0 + $0xcb] sm:$0xff]  ;;  %v130_v53 = vld [vmem:[%s10622_s0 + $0xd3] sm:$0xff]  ;;  %v131_v55 = vld [vmem:[%s10622_s0 + $0xdb] sm:$0xff] }
  0x13   :  { %5588 = vmatmul.mubr.msk.f32.gmra.mrb[8].mxu0 %vm198_vm0, %v110_v13  ;;  %v38_v54 = vld [vmem:[%s10622_s0 + $0xd4] sm:$0xff]  ;;  %v39_v56 = vld [vmem:[%s10622_s0 + $0xdc] sm:$0xff]  ;;  %v40_v58 = vld [vmem:[%s10622_s0 + $0xe4] sm:$0xff] }
  0x14   :  { %5590 = vmatprep.mubr.msk.f32.mxu0 %vm7043_vm1, %v7042_v0  ;;  %v132_v57 = vld [vmem:[%s10622_s0 + $0xe3] sm:$0xff]  ;;  %v133_v59 = vld [vmem:[%s10622_s0 + $0xeb] sm:$0xff]  ;;  %v134_v61 = vld [vmem:[%s10622_s0 + $0xf3] sm:$0xff] }
  0x15   :  { %5863 = vmatmul.mubr.msk.f32.gmra.mrb[8].mxu1 %vm198_vm0, %v18_v14  ;;  %v41_v60 = vld [vmem:[%s10622_s0 + $0xec] sm:$0xff]  ;;  %v42_v62 = vld [vmem:[%s10622_s0 + $0xf4] sm:$0xff]  ;;  %v43_v1 = vld [vmem:[%s10622_s0 + $0xfc] sm:$0xff] }
  0x16   :  { %5865 = vmatprep.mubr.msk.f32.mxu1 %vm7043_vm1, %v7042_v0  ;;  %v135_v63 = vld [vmem:[%s10622_s0 + $0xfb] sm:$0xff]  ;;  %v136_v2 = vld [vmem:[%s10622_s0 + $0x103] sm:$0xff]  ;;  %v137_v4 = vld [vmem:[%s10622_s0 + $0x10b] sm:$0xff] }
  0x17   :  { %5591 = vmatmul.mubr.msk.f32.gmra.mrb[10].mxu0 %vm198_vm0, %v111_v15  ;;  %v44_v3 = vld [vmem:[%s10622_s0 + $0x104] sm:$0xff]  ;;  %v45_v5 = vld [vmem:[%s10622_s0 + $0x10c] sm:$0xff]  ;;  %v46_v7 = vld [vmem:[%s10622_s0 + $0x114] sm:$0xff] }
  0x18   :  { %5593 = vmatprep.mubr.msk.f32.mxu0 %vm7043_vm1, %v7042_v0  ;;  %v138_v6 = vld [vmem:[%s10622_s0 + $0x113] sm:$0xff]  ;;  %v139_v8 = vld [vmem:[%s10622_s0 + $0x11b] sm:$0xff]  ;;  %v140_v10 = vld [vmem:[%s10622_s0 + $0x123] sm:$0xff] }
  0x19   :  { %5866 = vmatmul.mubr.msk.f32.gmra.mrb[10].mxu1 %vm198_vm0, %v19_v16  ;;  %v47_v9 = vld [vmem:[%s10622_s0 + $0x11c] sm:$0xff]  ;;  %v48_v11 = vld [vmem:[%s10622_s0 + $0x124] sm:$0xff]  ;;  %v49_v13 = vld [vmem:[%s10622_s0 + $0x12c] sm:$0xff] }
  0x1a   :  { %5868 = vmatprep.mubr.msk.f32.mxu1 %vm7043_vm1, %v7042_v0  ;;  %v141_v12 = vld [vmem:[%s10622_s0 + $0x12b] sm:$0xff]  ;;  %v142_v14 = vld [vmem:[%s10622_s0 + $0x133] sm:$0xff]  ;;  %v143_v16 = vld [vmem:[%s10622_s0 + $0x13b] sm:$0xff] }
  0x1b   :  { %5594 = vmatmul.mubr.msk.f32.gmra.mrb[12].mxu0 %vm198_vm0, %v112_v17  ;;  %v50_v15 = vld [vmem:[%s10622_s0 + $0x134] sm:$0xff]  ;;  %v51_v17 = vld [vmem:[%s10622_s0 + $0x13c] sm:$0xff] }
  0x1c   :  { %5596 = vmatprep.mubr.msk.f32.mxu0 %vm7043_vm1, %v7042_v0 }
  0x1d   :  { %5869 = vmatmul.mubr.msk.f32.gmra.mrb[12].mxu1 %vm198_vm0, %v20_v18  ;;  %v144_v18 = vld [vmem:[%s10622_s0 + $0x143] sm:$0xff] }
  0x1e   :  { %5871 = vmatprep.mubr.msk.f32.mxu1 %vm7043_vm1, %v7042_v0 }
  0x1f   :  { %5597 = vmatmul.mubr.msk.f32.gmra.mrb[14].mxu0 %vm198_vm0, %v113_v19  ;;  %v52_v19 = vld [vmem:[%s10622_s0 + $0x144] sm:$0xff] }
  0x20   :  { %5599 = vmatprep.mubr.msk.f32.mxu0 %vm7043_vm1, %v7042_v0 }
  0x21   :  { %5872 = vmatmul.mubr.msk.f32.gmra.mrb[14].mxu1 %vm198_vm0, %v21_v20  ;;  %v145_v20 = vld [vmem:[%s10622_s0 + $0x14b] sm:$0xff] }
  0x22   :  { %5874 = vmatprep.mubr.msk.f32.mxu1 %vm7043_vm1, %v7042_v0 }
  0x23   :  { %5600 = vmatmul.mubr.msk.f32.gmra.mrb[16].mxu0 %vm198_vm0, %v114_v21  ;;  %v53_v21 = vld [vmem:[%s10622_s0 + $0x14c] sm:$0xff] }
  0x24   :  { %5602 = vmatprep.mubr.msk.f32.mxu0 %vm7043_vm1, %v7042_v0 }
  0x25   :  { %5875 = vmatmul.mubr.msk.f32.gmra.mrb[16].mxu1 %vm198_vm0, %v22_v22  ;;  %v146_v22 = vld [vmem:[%s10622_s0 + $0x153] sm:$0xff] }
  0x26   :  { %5877 = vmatprep.mubr.msk.f32.mxu1 %vm7043_vm1, %v7042_v0 }
  0x27   :  { %5603 = vmatmul.mubr.msk.f32.gmra.mrb[18].mxu0 %vm198_vm0, %v115_v23  ;;  %v54_v23 = vld [vmem:[%s10622_s0 + $0x154] sm:$0xff] }
  0x28   :  { %5605 = vmatprep.mubr.msk.f32.mxu0 %vm7043_vm1, %v7042_v0 }
  0x29   :  { %5878 = vmatmul.mubr.msk.f32.gmra.mrb[18].mxu1 %vm198_vm0, %v23_v24  ;;  %v147_v24 = vld [vmem:[%s10622_s0 + $0x15b] sm:$0xff] }
  0x2a   :  { %5880 = vmatprep.mubr.msk.f32.mxu1 %vm7043_vm1, %v7042_v0 }
  0x2b   :  { %5606 = vmatmul.mubr.msk.f32.gmra.mrb[20].mxu0 %vm198_vm0, %v116_v25  ;;  %v55_v25 = vld [vmem:[%s10622_s0 + $0x15c] sm:$0xff] }
  0x2c   :  { %5608 = vmatprep.mubr.msk.f32.mxu0 %vm7043_vm1, %v7042_v0 }
  0x2d   :  { %5881 = vmatmul.mubr.msk.f32.gmra.mrb[20].mxu1 %vm198_vm0, %v24_v26  ;;  %v148_v26 = vld [vmem:[%s10622_s0 + $0x163] sm:$0xff] }
  0x2e   :  { %5883 = vmatprep.mubr.msk.f32.mxu1 %vm7043_vm1, %v7042_v0 }
  0x2f   :  { %5609 = vmatmul.mubr.msk.f32.gmra.mrb[22].mxu0 %vm198_vm0, %v117_v27  ;;  %v56_v27 = vld [vmem:[%s10622_s0 + $0x164] sm:$0xff] }
  0x30   :  { %5611 = vmatprep.mubr.msk.f32.mxu0 %vm7043_vm1, %v7042_v0 }
  0x31   :  { %5884 = vmatmul.mubr.msk.f32.gmra.mrb[22].mxu1 %vm198_vm0, %v25_v28  ;;  %v149_v28 = vld [vmem:[%s10622_s0 + $0x16b] sm:$0xff] }
  0x32   :  { %5886 = vmatprep.mubr.msk.f32.mxu1 %vm7043_vm1, %v7042_v0 }
  0x33   :  { %5612 = vmatmul.mubr.msk.f32.gmra.mrb[24].mxu0 %vm198_vm0, %v118_v29  ;;  %v57_v29 = vld [vmem:[%s10622_s0 + $0x16c] sm:$0xff] }
  0x34   :  { %5614 = vmatprep.mubr.msk.f32.mxu0 %vm7043_vm1, %v7042_v0 }
  0x35   :  { %5887 = vmatmul.mubr.msk.f32.gmra.mrb[24].mxu1 %vm198_vm0, %v26_v30  ;;  %v150_v30 = vld [vmem:[%s10622_s0 + $0x173] sm:$0xff] }
  0x36   :  { %5889 = vmatprep.mubr.msk.f32.mxu1 %vm7043_vm1, %v7042_v0 }
  0x37   :  { %5615 = vmatmul.mubr.msk.f32.gmra.mrb[26].mxu0 %vm198_vm0, %v119_v31  ;;  %v58_v31 = vld [vmem:[%s10622_s0 + $0x174] sm:$0xff] }
  0x38   :  { %5617 = vmatprep.mubr.msk.f32.mxu0 %vm7043_vm1, %v7042_v0 }
  0x39   :  { %5890 = vmatmul.mubr.msk.f32.gmra.mrb[26].mxu1 %vm198_vm0, %v27_v32  ;;  %v151_v32 = vld [vmem:[%s10622_s0 + $0x17b] sm:$0xff] }
  0x3a   :  { %5892 = vmatprep.mubr.msk.f32.mxu1 %vm7043_vm1, %v7042_v0 }
  0x3b   :  { %5618 = vmatmul.mubr.msk.f32.gmra.mrb[28].mxu0 %vm198_vm0, %v120_v33  ;;  %v59_v33 = vld [vmem:[%s10622_s0 + $0x17c] sm:$0xff] }
  0x3c   :  { %5620 = vmatprep.mubr.msk.f32.mxu0 %vm7043_vm1, %v7042_v0 }
  0x3d   :  { %5893 = vmatmul.mubr.msk.f32.gmra.mrb[28].mxu1 %vm198_vm0, %v28_v34  ;;  %v152_v34 = vld [vmem:[%s10622_s0 + $0x183] sm:$0xff] }
  0x3e   :  { %5895 = vmatprep.mubr.msk.f32.mxu1 %vm7043_vm1, %v7042_v0 }
  0x3f   :  { %5621 = vmatmul.mubr.msk.f32.gmra.mrb[30].mxu0 %vm198_vm0, %v121_v35  ;;  %v60_v35 = vld [vmem:[%s10622_s0 + $0x184] sm:$0xff] }
  0x40   :  { %5623 = vmatprep.mubr.msk.f32.mxu0 %vm7043_vm1, %v7042_v0 }
  0x41   :  { %5896 = vmatmul.mubr.msk.f32.gmra.mrb[30].mxu1 %vm198_vm0, %v29_v36  ;;  %v153_v36 = vld [vmem:[%s10622_s0 + $0x18b] sm:$0xff] }
  0x42   :  { %5898 = vmatprep.mubr.msk.f32.mxu1 %vm7043_vm1, %v7042_v0 }
  0x43   :  { %5624 = vmatmul.mubr.msk.f32.gmra.mrb[32].mxu0 %vm198_vm0, %v122_v37  ;;  %v61_v37 = vld [vmem:[%s10622_s0 + $0x18c] sm:$0xff] }
  0x44   :  { %5626 = vmatprep.mubr.msk.f32.mxu0 %vm7043_vm1, %v7042_v0 }
  0x45   :  { %5899 = vmatmul.mubr.msk.f32.gmra.mrb[32].mxu1 %vm198_vm0, %v30_v38  ;;  %v154_v38 = vld [vmem:[%s10622_s0 + $0x193] sm:$0xff] }
  0x46   :  { %5901 = vmatprep.mubr.msk.f32.mxu1 %vm7043_vm1, %v7042_v0 }
  0x47   :  { %5627 = vmatmul.mubr.msk.f32.gmra.mrb[34].mxu0 %vm198_vm0, %v123_v39  ;;  %v62_v39 = vld [vmem:[%s10622_s0 + $0x194] sm:$0xff] }
  0x48   :  { %5629 = vmatprep.mubr.msk.f32.mxu0 %vm7043_vm1, %v7042_v0 }
  0x49   :  { %5902 = vmatmul.mubr.msk.f32.gmra.mrb[34].mxu1 %vm198_vm0, %v31_v40  ;;  %v155_v40 = vld [vmem:[%s10622_s0 + $0x19b] sm:$0xff] }
  0x4a   :  { %5904 = vmatprep.mubr.msk.f32.mxu1 %vm7043_vm1, %v7042_v0 }
  0x4b   :  { %5630 = vmatmul.mubr.msk.f32.gmra.mrb[36].mxu0 %vm198_vm0, %v124_v41  ;;  %v63_v41 = vld [vmem:[%s10622_s0 + $0x19c] sm:$0xff] }
  0x4c   :  { %5632 = vmatprep.mubr.msk.f32.mxu0 %vm7043_vm1, %v7042_v0 }
  0x4d   :  { %5905 = vmatmul.mubr.msk.f32.gmra.mrb[36].mxu1 %vm198_vm0, %v32_v42  ;;  %v156_v42 = vld [vmem:[%s10622_s0 + $0x1a3] sm:$0xff] }
  0x4e   :  { %5907 = vmatprep.mubr.msk.f32.mxu1 %vm7043_vm1, %v7042_v0 }
  0x4f   :  { %5633 = vmatmul.mubr.msk.f32.gmra.mrb[38].mxu0 %vm198_vm0, %v125_v43  ;;  %v64_v43 = vld [vmem:[%s10622_s0 + $0x1a4] sm:$0xff] }
  0x50   :  { %5635 = vmatprep.mubr.msk.f32.mxu0 %vm7043_vm1, %v7042_v0 }
  0x51   :  { %5908 = vmatmul.mubr.msk.f32.gmra.mrb[38].mxu1 %vm198_vm0, %v33_v44  ;;  %v157_v44 = vld [vmem:[%s10622_s0 + $0x1ab] sm:$0xff] }
  0x52   :  { %5910 = vmatprep.mubr.msk.f32.mxu1 %vm7043_vm1, %v7042_v0 }
  0x53   :  { %5636 = vmatmul.mubr.msk.f32.gmra.mrb[40].mxu0 %vm198_vm0, %v126_v45  ;;  %v65_v45 = vld [vmem:[%s10622_s0 + $0x1ac] sm:$0xff] }
  0x54   :  { %5638 = vmatprep.mubr.msk.f32.mxu0 %vm7043_vm1, %v7042_v0 }
  0x55   :  { %5911 = vmatmul.mubr.msk.f32.gmra.mrb[40].mxu1 %vm198_vm0, %v34_v46  ;;  %v158_v46 = vld [vmem:[%s10622_s0 + $0x1b3] sm:$0xff] }
  0x56   :  { %5913 = vmatprep.mubr.msk.f32.mxu1 %vm7043_vm1, %v7042_v0 }
  0x57   :  { %5639 = vmatmul.mubr.msk.f32.gmra.mrb[42].mxu0 %vm198_vm0, %v127_v47  ;;  %v66_v47 = vld [vmem:[%s10622_s0 + $0x1b4] sm:$0xff] }
  0x58   :  { %5641 = vmatprep.mubr.msk.f32.mxu0 %vm7043_vm1, %v7042_v0 }
  0x59   :  { %5914 = vmatmul.mubr.msk.f32.gmra.mrb[42].mxu1 %vm198_vm0, %v35_v48  ;;  %v159_v48 = vld [vmem:[%s10622_s0 + $0x1bb] sm:$0xff] }
  0x5a   :  { %5916 = vmatprep.mubr.msk.f32.mxu1 %vm7043_vm1, %v7042_v0 }
  0x5b   :  { %5642 = vmatmul.mubr.msk.f32.gmra.mrb[44].mxu0 %vm198_vm0, %v128_v49 }
  0x5c   :  { %5644 = vmatprep.mubr.msk.f32.mxu0 %vm7043_vm1, %v7042_v0 }
  0x5d   :  { %5917 = vmatmul.mubr.msk.f32.gmra.mrb[44].mxu1 %vm198_vm0, %v36_v50  ;;  %v67_v50 = vld [vmem:[%s10622_s0 + $0x1bc] sm:$0xff] }
  0x5e   :  { %5919 = vmatprep.mubr.msk.f32.mxu1 %vm7043_vm1, %v7042_v0 }
  0x5f   :  { %5645 = vmatmul.mubr.msk.f32.gmra.mrb[46].mxu0 %vm198_vm0, %v129_v51 }
  0x60   :  { %5647 = vmatprep.mubr.msk.f32.mxu0 %vm7043_vm1, %v7042_v0 }
  0x61   :  { %5920 = vmatmul.mubr.msk.f32.gmra.mrb[46].mxu1 %vm198_vm0, %v37_v52 }
  0x62   :  { %5922 = vmatprep.mubr.msk.f32.mxu1 %vm7043_vm1, %v7042_v0 }
  0x63   :  { %5648 = vmatmul.mubr.msk.f32.gmra.mrb[48].mxu0 %vm198_vm0, %v130_v53  ;;  %v160_v53 = vld [vmem:[%s10622_s0 + $0x1c3] sm:$0xff] }
  0x64   :  { %5650 = vmatprep.mubr.msk.f32.mxu0 %vm7043_vm1, %v7042_v0 }
  0x65   :  { %5923 = vmatmul.mubr.msk.f32.gmra.mrb[48].mxu1 %vm198_vm0, %v38_v54 }
  0x66   :  { %5925 = vmatprep.mubr.msk.f32.mxu1 %vm7043_vm1, %v7042_v0 }
  0x67   :  { %5651 = vmatmul.mubr.msk.f32.gmra.mrb[50].mxu0 %vm198_vm0, %v131_v55 }
  0x68   :  { %5653 = vmatprep.mubr.msk.f32.mxu0 %vm7043_vm1, %v7042_v0 }
  0x69   :  { %5926 = vmatmul.mubr.msk.f32.gmra.mrb[50].mxu1 %vm198_vm0, %v39_v56 }
  0x6a   :  { %5928 = vmatprep.mubr.msk.f32.mxu1 %vm7043_vm1, %v7042_v0 }
  0x6b   :  { %5654 = vmatmul.mubr.msk.f32.gmra.mrb[52].mxu0 %vm198_vm0, %v132_v57  ;;  %v68_v57 = vld [vmem:[%s10622_s0 + $0x1c4] sm:$0xff] }
  0x6c   :  { %5656 = vmatprep.mubr.msk.f32.mxu0 %vm7043_vm1, %v7042_v0 }
  0x6d   :  { %5929 = vmatmul.mubr.msk.f32.gmra.mrb[52].mxu1 %vm198_vm0, %v40_v58 }
  0x6e   :  { %5931 = vmatprep.mubr.msk.f32.mxu1 %vm7043_vm1, %v7042_v0 }
  0x6f   :  { %5657 = vmatmul.mubr.msk.f32.gmra.mrb[54].mxu0 %vm198_vm0, %v133_v59 }
  0x70   :  { %5659 = vmatprep.mubr.msk.f32.mxu0 %vm7043_vm1, %v7042_v0 }
  0x71   :  { %5932 = vmatmul.mubr.msk.f32.gmra.mrb[54].mxu1 %vm198_vm0, %v41_v60  ;;  %v161_v60 = vld [vmem:[%s10622_s0 + $0x1cb] sm:$0xff] }
  0x72   :  { %5934 = vmatprep.mubr.msk.f32.mxu1 %vm7043_vm1, %v7042_v0 }
  0x73   :  { %5660 = vmatmul.mubr.msk.f32.gmra.mrb[56].mxu0 %vm198_vm0, %v134_v61 }
  0x74   :  { %5662 = vmatprep.mubr.msk.f32.mxu0 %vm7043_vm1, %v7042_v0 }
  0x75   :  { %5935 = vmatmul.mubr.msk.f32.gmra.mrb[56].mxu1 %vm198_vm0, %v42_v62 }
  0x76   :  { %5937 = vmatprep.mubr.msk.f32.mxu1 %vm7043_vm1, %v7042_v0 }
  0x77   :  { %5663 = vmatmul.mubr.msk.f32.gmra.mrb[58].mxu0 %vm198_vm0, %v135_v63 }
  0x78   :  { %5665 = vmatprep.mubr.msk.f32.mxu0 %vm7043_vm1, %v7042_v0 }
  0x79   :  { %5938 = vmatmul.mubr.msk.f32.gmra.mrb[58].mxu1 %vm198_vm0, %v43_v1  ;;  %v69_v1 = vld [vmem:[%s10622_s0 + $0x1cc] sm:$0xff] }
  0x7a   :  { %5940 = vmatprep.mubr.msk.f32.mxu1 %vm7043_vm1, %v7042_v0 }
  0x7b   :  { %5666 = vmatmul.mubr.msk.f32.gmra.mrb[60].mxu0 %vm198_vm0, %v136_v2 }
  0x7c   :  { %5668 = vmatprep.mubr.msk.f32.mxu0 %vm7043_vm1, %v7042_v0 }
  0x7d   :  { %5941 = vmatmul.mubr.msk.f32.gmra.mrb[60].mxu1 %vm198_vm0, %v44_v3 }
  0x7e   :  { %5943 = vmatprep.mubr.msk.f32.mxu1 %vm7043_vm1, %v7042_v0 }
  0x7f   :  { %5669 = vmatmul.mubr.msk.f32.gmra.mrb[62].mxu0 %vm198_vm0, %v137_v4  ;;  %v162_v4 = vld [vmem:[%s10622_s0 + $0x1d3] sm:$0xff] }
  0x80   :  { %5671 = vmatprep.mubr.msk.f32.mxu0 %vm7043_vm1, %v7042_v0 }
  0x81   :  { %5944 = vmatmul.mubr.msk.f32.gmra.mrb[62].mxu1 %vm198_vm0, %v45_v5 }
  0x82   :  { %5946 = vmatprep.mubr.msk.f32.mxu1 %vm7043_vm1, %v7042_v0 }
  0x83   :  { %5672 = vmatmul.mubr.msk.f32.gmra.mrb[64].mxu0 %vm198_vm0, %v138_v6 }
  0x84   :  { %5674 = vmatprep.mubr.msk.f32.mxu0 %vm7043_vm1, %v7042_v0 }
  0x85   :  { %5947 = vmatmul.mubr.msk.f32.gmra.mrb[64].mxu1 %vm198_vm0, %v46_v7 }
  0x86   :  { %5949 = vmatprep.mubr.msk.f32.mxu1 %vm7043_vm1, %v7042_v0 }
  0x87   :  { %5675 = vmatmul.mubr.msk.f32.gmra.mrb[66].mxu0 %vm198_vm0, %v139_v8  ;;  %v70_v8 = vld [vmem:[%s10622_s0 + $0x1d4] sm:$0xff] }
  0x88   :  { %5677 = vmatprep.mubr.msk.f32.mxu0 %vm7043_vm1, %v7042_v0 }
  0x89   :  { %5950 = vmatmul.mubr.msk.f32.gmra.mrb[66].mxu1 %vm198_vm0, %v47_v9 }
  0x8a   :  { %5952 = vmatprep.mubr.msk.f32.mxu1 %vm7043_vm1, %v7042_v0 }
  0x8b   :  { %5678 = vmatmul.mubr.msk.f32.gmra.mrb[68].mxu0 %vm198_vm0, %v140_v10 }
  0x8c   :  { %5680 = vmatprep.mubr.msk.f32.mxu0 %vm7043_vm1, %v7042_v0 }
  0x8d   :  { %5953 = vmatmul.mubr.msk.f32.gmra.mrb[68].mxu1 %vm198_vm0, %v48_v11  ;;  %v163_v11 = vld [vmem:[%s10622_s0 + $0x1db] sm:$0xff] }
  0x8e   :  { %5955 = vmatprep.mubr.msk.f32.mxu1 %vm7043_vm1, %v7042_v0 }
  0x8f   :  { %5681 = vmatmul.mubr.msk.f32.gmra.mrb[70].mxu0 %vm198_vm0, %v141_v12 }
  0x90   :  { %5683 = vmatprep.mubr.msk.f32.mxu0 %vm7043_vm1, %v7042_v0 }
  0x91   :  { %5956 = vmatmul.mubr.msk.f32.gmra.mrb[70].mxu1 %vm198_vm0, %v49_v13 }
  0x92   :  { %5958 = vmatprep.mubr.msk.f32.mxu1 %vm7043_vm1, %v7042_v0 }
  0x93   :  { %5684 = vmatmul.mubr.msk.f32.gmra.mrb[72].mxu0 %vm198_vm0, %v142_v14 }
  0x94   :  { %5686 = vmatprep.mubr.msk.f32.mxu0 %vm7043_vm1, %v7042_v0 }
  0x95   :  { %5959 = vmatmul.mubr.msk.f32.gmra.mrb[72].mxu1 %vm198_vm0, %v50_v15  ;;  %v71_v15 = vld [vmem:[%s10622_s0 + $0x1dc] sm:$0xff] }
  0x96   :  { %5961 = vmatprep.mubr.msk.f32.mxu1 %vm7043_vm1, %v7042_v0 }
  0x97   :  { %5687 = vmatmul.mubr.msk.f32.gmra.mrb[74].mxu0 %vm198_vm0, %v143_v16 }
  0x98   :  { %5689 = vmatprep.mubr.msk.f32.mxu0 %vm7043_vm1, %v7042_v0 }
  0x99   :  { %5962 = vmatmul.mubr.msk.f32.gmra.mrb[74].mxu1 %vm198_vm0, %v51_v17 }
  0x9a   :  { %5964 = vmatprep.mubr.msk.f32.mxu1 %vm7043_vm1, %v7042_v0 }
  0x9b   :  { %5690 = vmatmul.mubr.msk.f32.gmra.mrb[76].mxu0 %vm198_vm0, %v144_v18  ;;  %v164_v18 = vld [vmem:[%s10622_s0 + $0x1e3] sm:$0xff] }
  0x9c   :  { %5692 = vmatprep.mubr.msk.f32.mxu0 %vm7043_vm1, %v7042_v0 }
  0x9d   :  { %5965 = vmatmul.mubr.msk.f32.gmra.mrb[76].mxu1 %vm198_vm0, %v52_v19 }
  0x9e   :  { %5967 = vmatprep.mubr.msk.f32.mxu1 %vm7043_vm1, %v7042_v0 }
  0x9f   :  { %5693 = vmatmul.mubr.msk.f32.gmra.mrb[78].mxu0 %vm198_vm0, %v145_v20 }
  0xa0   :  { %5695 = vmatprep.mubr.msk.f32.mxu0 %vm7043_vm1, %v7042_v0 }
  0xa1   :  { %5968 = vmatmul.mubr.msk.f32.gmra.mrb[78].mxu1 %vm198_vm0, %v53_v21 }
  0xa2   :  { %5970 = vmatprep.mubr.msk.f32.mxu1 %vm7043_vm1, %v7042_v0 }
  0xa3   :  { %5696 = vmatmul.mubr.msk.f32.gmra.mrb[80].mxu0 %vm198_vm0, %v146_v22  ;;  %v72_v22 = vld [vmem:[%s10622_s0 + $0x1e4] sm:$0xff] }
  0xa4   :  { %5698 = vmatprep.mubr.msk.f32.mxu0 %vm7043_vm1, %v7042_v0 }
  0xa5   :  { %5971 = vmatmul.mubr.msk.f32.gmra.mrb[80].mxu1 %vm198_vm0, %v54_v23 }
  0xa6   :  { %5973 = vmatprep.mubr.msk.f32.mxu1 %vm7043_vm1, %v7042_v0 }
  0xa7   :  { %5699 = vmatmul.mubr.msk.f32.gmra.mrb[82].mxu0 %vm198_vm0, %v147_v24 }
  0xa8   :  { %5701 = vmatprep.mubr.msk.f32.mxu0 %vm7043_vm1, %v7042_v0 }
  0xa9   :  { %5974 = vmatmul.mubr.msk.f32.gmra.mrb[82].mxu1 %vm198_vm0, %v55_v25  ;;  %v165_v25 = vld [vmem:[%s10622_s0 + $0x1eb] sm:$0xff] }
  0xaa   :  { %5976 = vmatprep.mubr.msk.f32.mxu1 %vm7043_vm1, %v7042_v0 }
  0xab   :  { %5702 = vmatmul.mubr.msk.f32.gmra.mrb[84].mxu0 %vm198_vm0, %v148_v26 }
  0xac   :  { %5704 = vmatprep.mubr.msk.f32.mxu0 %vm7043_vm1, %v7042_v0 }
  0xad   :  { %5977 = vmatmul.mubr.msk.f32.gmra.mrb[84].mxu1 %vm198_vm0, %v56_v27 }
  0xae   :  { %5979 = vmatprep.mubr.msk.f32.mxu1 %vm7043_vm1, %v7042_v0 }
  0xaf   :  { %5705 = vmatmul.mubr.msk.f32.gmra.mrb[86].mxu0 %vm198_vm0, %v149_v28 }
  0xb0   :  { %5707 = vmatprep.mubr.msk.f32.mxu0 %vm7043_vm1, %v7042_v0 }
  0xb1   :  { %5980 = vmatmul.mubr.msk.f32.gmra.mrb[86].mxu1 %vm198_vm0, %v57_v29  ;;  %v73_v29 = vld [vmem:[%s10622_s0 + $0x1ec] sm:$0xff] }
  0xb2   :  { %5982 = vmatprep.mubr.msk.f32.mxu1 %vm7043_vm1, %v7042_v0 }
  0xb3   :  { %5708 = vmatmul.mubr.msk.f32.gmra.mrb[88].mxu0 %vm198_vm0, %v150_v30 }
  0xb4   :  { %5710 = vmatprep.mubr.msk.f32.mxu0 %vm7043_vm1, %v7042_v0 }
  0xb5   :  { %5983 = vmatmul.mubr.msk.f32.gmra.mrb[88].mxu1 %vm198_vm0, %v58_v31 }
  0xb6   :  { %5985 = vmatprep.mubr.msk.f32.mxu1 %vm7043_vm1, %v7042_v0 }
  0xb7   :  { %5711 = vmatmul.mubr.msk.f32.gmra.mrb[90].mxu0 %vm198_vm0, %v151_v32  ;;  %v166_v32 = vld [vmem:[%s10622_s0 + $0x1f3] sm:$0xff] }
  0xb8   :  { %5713 = vmatprep.mubr.msk.f32.mxu0 %vm7043_vm1, %v7042_v0 }
  0xb9   :  { %5986 = vmatmul.mubr.msk.f32.gmra.mrb[90].mxu1 %vm198_vm0, %v59_v33 }
  0xba   :  { %5988 = vmatprep.mubr.msk.f32.mxu1 %vm7043_vm1, %v7042_v0 }
  0xbb   :  { %5714 = vmatmul.mubr.msk.f32.gmra.mrb[92].mxu0 %vm198_vm0, %v152_v34 }
  0xbc   :  { %5716 = vmatprep.mubr.msk.f32.mxu0 %vm7043_vm1, %v7042_v0 }
  0xbd   :  { %5989 = vmatmul.mubr.msk.f32.gmra.mrb[92].mxu1 %vm198_vm0, %v60_v35 }
  0xbe   :  { %5991 = vmatprep.mubr.msk.f32.mxu1 %vm7043_vm1, %v7042_v0 }
  0xbf   :  { %5717 = vmatmul.mubr.msk.f32.gmra.mrb[94].mxu0 %vm198_vm0, %v153_v36  ;;  %v74_v36 = vld [vmem:[%s10622_s0 + $0x1f4] sm:$0xff] }
  0xc0   :  { %5719 = vmatprep.mubr.msk.f32.mxu0 %vm7043_vm1, %v7042_v0 }
  0xc1   :  { %5992 = vmatmul.mubr.msk.f32.gmra.mrb[94].mxu1 %vm198_vm0, %v61_v37 }
  0xc2   :  { %5994 = vmatprep.mubr.msk.f32.mxu1 %vm7043_vm1, %v7042_v0 }
  0xc3   :  { %5720 = vmatmul.mubr.msk.f32.gmra.mrb[96].mxu0 %vm198_vm0, %v154_v38 }
  0xc4   :  { %5722 = vmatprep.mubr.msk.f32.mxu0 %vm7043_vm1, %v7042_v0 }
  0xc5   :  { %5995 = vmatmul.mubr.msk.f32.gmra.mrb[96].mxu1 %vm198_vm0, %v62_v39  ;;  %v167_v39 = vld [vmem:[%s10622_s0 + $0x1fb] sm:$0xff] }
  0xc6   :  { %5997 = vmatprep.mubr.msk.f32.mxu1 %vm7043_vm1, %v7042_v0 }
  0xc7   :  { %5723 = vmatmul.mubr.msk.f32.gmra.mrb[98].mxu0 %vm198_vm0, %v155_v40 }
  0xc8   :  { %5725 = vmatprep.mubr.msk.f32.mxu0 %vm7043_vm1, %v7042_v0 }
  0xc9   :  { %5998 = vmatmul.mubr.msk.f32.gmra.mrb[98].mxu1 %vm198_vm0, %v63_v41 }
  0xca   :  { %6000 = vmatprep.mubr.msk.f32.mxu1 %vm7043_vm1, %v7042_v0 }
  0xcb   :  { %5726 = vmatmul.mubr.msk.f32.gmra.mrb[100].mxu0 %vm198_vm0, %v156_v42 }
  0xcc   :  { %5728 = vmatprep.mubr.msk.f32.mxu0 %vm7043_vm1, %v7042_v0 }
  0xcd   :  { %6001 = vmatmul.mubr.msk.f32.gmra.mrb[100].mxu1 %vm198_vm0, %v64_v43  ;;  %v75_v43 = vld [vmem:[%s10622_s0 + $0x1fc] sm:$0xff] }
  0xce   :  { %6003 = vmatprep.mubr.msk.f32.mxu1 %vm7043_vm1, %v7042_v0 }
  0xcf   :  { %5729 = vmatmul.mubr.msk.f32.gmra.mrb[102].mxu0 %vm198_vm0, %v157_v44 }
  0xd0   :  { %5731 = vmatprep.mubr.msk.f32.mxu0 %vm7043_vm1, %v7042_v0 }
  0xd1   :  { %6004 = vmatmul.mubr.msk.f32.gmra.mrb[102].mxu1 %vm198_vm0, %v65_v45 }
  0xd2   :  { %6006 = vmatprep.mubr.msk.f32.mxu1 %vm7043_vm1, %v7042_v0 }
  0xd3   :  { %5732 = vmatmul.mubr.msk.f32.gmra.mrb[104].mxu0 %vm198_vm0, %v158_v46  ;;  %v168_v46 = vld [vmem:[%s10622_s0 + $0x203] sm:$0xff] }
  0xd4   :  { %5734 = vmatprep.mubr.msk.f32.mxu0 %vm7043_vm1, %v7042_v0 }
  0xd5   :  { %6007 = vmatmul.mubr.msk.f32.gmra.mrb[104].mxu1 %vm198_vm0, %v66_v47 }
  0xd6   :  { %v538_v49 = vpop.f32.mrb[0].mxu0  ;;  %6009 = vmatprep.mubr.msk.f32.mxu1 %vm7043_vm1, %v7042_v0 }
  0xd7   :  { %v5577_v51 = vpop.f32.mrb[1].mxu0  ;;  %5735 = vmatmul.mubr.msk.f32.gmra.mrb[106].mxu0 %vm198_vm0, %v159_v48 }
  0xd8   :  { %v1331_v52 = vpop.f32.mrb[0].mxu1  ;;  %5737 = vmatprep.mubr.msk.f32.mxu0 %vm7043_vm1, %v7042_v0 }
  0xd9   :  { %6010 = vmatmul.mubr.msk.f32.gmra.mrb[106].mxu1 %vm198_vm0, %v67_v50  ;;  %v5852_v54 = vpop.f32.mrb[1].mxu1  ;;  %v7733_v55 = vadd.f32 %v1331_v52, %v538_v49  ;;  %v76_v50 = vld [vmem:[%s10622_s0 + $0x204] sm:$0xff] }
  0xda   :  { %v543_v56 = vpop.f32.mrb[2].mxu0  ;;  %6012 = vmatprep.mubr.msk.f32.mxu1 %vm7043_vm1, %v7042_v0 }
  0xdb   :  { %v5580_v58 = vpop.f32.mrb[3].mxu0  ;;  %5738 = vmatmul.mubr.msk.f32.gmra.mrb[108].mxu0 %vm198_vm0, %v160_v53  ;;  %v169_v53 = vld [vmem:[%s10622_s0 + $0x20b] sm:$0xff] }
  0xdc   :  { %v1336_v59 = vpop.f32.mrb[2].mxu1  ;;  %5740 = vmatprep.mubr.msk.f32.mxu0 %vm7043_vm1, %v7042_v0  ;;  %v77_v58 = vld [vmem:[%s10622_s0 + $0x20c] sm:$0xff] }
  0xdd   :  { %6013 = vmatmul.mubr.msk.f32.gmra.mrb[108].mxu1 %vm198_vm0, %v68_v57  ;;  %v5855_v61 = vpop.f32.mrb[3].mxu1  ;;  %v7747_v62 = vadd.f32 %v1336_v59, %v543_v56 }
  0xde   :  { %v548_v63 = vpop.f32.mrb[4].mxu0  ;;  %6015 = vmatprep.mubr.msk.f32.mxu1 %vm7043_vm1, %v7042_v0  ;;  %v170_v61 = vld [vmem:[%s10622_s0 + $0x213] sm:$0xff] }
  0xdf   :  { %v5583_v2 = vpop.f32.mrb[5].mxu0  ;;  %5741 = vmatmul.mubr.msk.f32.gmra.mrb[110].mxu0 %vm198_vm0, %v161_v60 }
  0xe0   :  { %v1341_v3 = vpop.f32.mrb[4].mxu1  ;;  %5743 = vmatprep.mubr.msk.f32.mxu0 %vm7043_vm1, %v7042_v0 }
  0xe1   :  { %6016 = vmatmul.mubr.msk.f32.gmra.mrb[110].mxu1 %vm198_vm0, %v69_v1  ;;  %v5858_v5 = vpop.f32.mrb[5].mxu1  ;;  %v7761_v6 = vadd.f32 %v1341_v3, %v548_v63  ;;  %v78_v3 = vld [vmem:[%s10622_s0 + $0x214] sm:$0xff] }
  0xe2   :  { %v553_v7 = vpop.f32.mrb[6].mxu0  ;;  %6018 = vmatprep.mubr.msk.f32.mxu1 %vm7043_vm1, %v7042_v0 }
  0xe3   :  { %v5586_v9 = vpop.f32.mrb[7].mxu0  ;;  %5744 = vmatmul.mubr.msk.f32.gmra.mrb[112].mxu0 %vm198_vm0, %v162_v4 }
  0xe4   :  { %v1346_v10 = vpop.f32.mrb[6].mxu1  ;;  %5746 = vmatprep.mubr.msk.f32.mxu0 %vm7043_vm1, %v7042_v0 }
  0xe5   :  { %6019 = vmatmul.mubr.msk.f32.gmra.mrb[112].mxu1 %vm198_vm0, %v70_v8  ;;  %v5861_v12 = vpop.f32.mrb[7].mxu1  ;;  %v7775_v13 = vadd.f32 %v1346_v10, %v553_v7  ;;  %v171_v7 = vld [vmem:[%s10622_s0 + $0x21b] sm:$0xff] }
  0xe6   :  { %v558_v14 = vpop.f32.mrb[8].mxu0  ;;  %6021 = vmatprep.mubr.msk.f32.mxu1 %vm7043_vm1, %v7042_v0 }
  0xe7   :  { %v5589_v16 = vpop.f32.mrb[9].mxu0  ;;  %5747 = vmatmul.mubr.msk.f32.gmra.mrb[114].mxu0 %vm198_vm0, %v163_v11  ;;  %v79_v11 = vld [vmem:[%s10622_s0 + $0x21c] sm:$0xff] }
  0xe8   :  { %v1351_v17 = vpop.f32.mrb[8].mxu1  ;;  %5749 = vmatprep.mubr.msk.f32.mxu0 %vm7043_vm1, %v7042_v0 }
  0xe9   :  { %6022 = vmatmul.mubr.msk.f32.gmra.mrb[114].mxu1 %vm198_vm0, %v71_v15  ;;  %v5864_v19 = vpop.f32.mrb[9].mxu1  ;;  %v7789_v20 = vadd.f32 %v1351_v17, %v558_v14  ;;  %v172_v15 = vld [vmem:[%s10622_s0 + $0x223] sm:$0xff] }
  0xea   :  { %v563_v21 = vpop.f32.mrb[10].mxu0  ;;  %6024 = vmatprep.mubr.msk.f32.mxu1 %vm7043_vm1, %v7042_v0  ;;  %v80_v19 = vld [vmem:[%s10622_s0 + $0x224] sm:$0xff] }
  0xeb   :  { %v5592_v23 = vpop.f32.mrb[11].mxu0  ;;  %5750 = vmatmul.mubr.msk.f32.gmra.mrb[116].mxu0 %vm198_vm0, %v164_v18 }
  0xec   :  { %v1356_v24 = vpop.f32.mrb[10].mxu1  ;;  %5752 = vmatprep.mubr.msk.f32.mxu0 %vm7043_vm1, %v7042_v0  ;;  %v173_v23 = vld [vmem:[%s10622_s0 + $0x22b] sm:$0xff] }
  0xed   :  { %6025 = vmatmul.mubr.msk.f32.gmra.mrb[116].mxu1 %vm198_vm0, %v72_v22  ;;  %v5867_v26 = vpop.f32.mrb[11].mxu1  ;;  %v7803_v27 = vadd.f32 %v1356_v24, %v563_v21 }
  0xee   :  { %v568_v28 = vpop.f32.mrb[12].mxu0  ;;  %6027 = vmatprep.mubr.msk.f32.mxu1 %vm7043_vm1, %v7042_v0 }
  0xef   :  { %v5595_v30 = vpop.f32.mrb[13].mxu0  ;;  %5753 = vmatmul.mubr.msk.f32.gmra.mrb[118].mxu0 %vm198_vm0, %v165_v25 }
  0xf0   :  { %v1361_v31 = vpop.f32.mrb[12].mxu1  ;;  %5755 = vmatprep.mubr.msk.f32.mxu0 %vm7043_vm1, %v7042_v0 }
  0xf1   :  { %6028 = vmatmul.mubr.msk.f32.gmra.mrb[118].mxu1 %vm198_vm0, %v73_v29  ;;  %v5870_v33 = vpop.f32.mrb[13].mxu1  ;;  %v7817_v34 = vadd.f32 %v1361_v31, %v568_v28  ;;  %v81_v28 = vld [vmem:[%s10622_s0 + $0x22c] sm:$0xff] }
  0xf2   :  { %v573_v35 = vpop.f32.mrb[14].mxu0  ;;  %6030 = vmatprep.mubr.msk.f32.mxu1 %vm7043_vm1, %v7042_v0  ;;  %v174_v31 = vld [vmem:[%s10622_s0 + $0x233] sm:$0xff] }
  0xf3   :  { %v5598_v37 = vpop.f32.mrb[15].mxu0  ;;  %5756 = vmatmul.mubr.msk.f32.gmra.mrb[120].mxu0 %vm198_vm0, %v166_v32 }
  0xf4   :  { %v1366_v38 = vpop.f32.mrb[14].mxu1  ;;  %5758 = vmatprep.mubr.msk.f32.mxu0 %vm7043_vm1, %v7042_v0 }
  0xf5   :  { %6031 = vmatmul.mubr.msk.f32.gmra.mrb[120].mxu1 %vm198_vm0, %v74_v36  ;;  %v5873_v40 = vpop.f32.mrb[15].mxu1  ;;  %v7831_v41 = vadd.f32 %v1366_v38, %v573_v35  ;;  %v82_v36 = vld [vmem:[%s10622_s0 + $0x234] sm:$0xff] }
  0xf6   :  { %v578_v42 = vpop.f32.mrb[16].mxu0  ;;  %6033 = vmatprep.mubr.msk.f32.mxu1 %vm7043_vm1, %v7042_v0 }
  0xf7   :  { %v5601_v44 = vpop.f32.mrb[17].mxu0  ;;  %5759 = vmatmul.mubr.msk.f32.gmra.mrb[122].mxu0 %vm198_vm0, %v167_v39  ;;  %v175_v39 = vld [vmem:[%s10622_s0 + $0x23b] sm:$0xff] }
  0xf8   :  { %v1371_v45 = vpop.f32.mrb[16].mxu1  ;;  %5761 = vmatprep.mubr.msk.f32.mxu0 %vm7043_vm1, %v7042_v0  ;;  %v83_v44 = vld [vmem:[%s10622_s0 + $0x23c] sm:$0xff] }
  0xf9   :  { %6034 = vmatmul.mubr.msk.f32.gmra.mrb[122].mxu1 %vm198_vm0, %v75_v43  ;;  %v5876_v47 = vpop.f32.mrb[17].mxu1  ;;  %v7845_v48 = vadd.f32 %v1371_v45, %v578_v42 }
  0xfa   :  { %v583_v49 = vpop.f32.mrb[18].mxu0  ;;  %6036 = vmatprep.mubr.msk.f32.mxu1 %vm7043_vm1, %v7042_v0  ;;  %v176_v47 = vld [vmem:[%s10622_s0 + $0x243] sm:$0xff] }
  0xfb   :  { %v5604_v51 = vpop.f32.mrb[19].mxu0  ;;  %5762 = vmatmul.mubr.msk.f32.gmra.mrb[124].mxu0 %vm198_vm0, %v168_v46 }
  0xfc   :  { %v1376_v52 = vpop.f32.mrb[18].mxu1  ;;  %5764 = vmatprep.mubr.msk.f32.mxu0 %vm7043_vm1, %v7042_v0 }
  0xfd   :  { %6037 = vmatmul.mubr.msk.f32.gmra.mrb[124].mxu1 %vm198_vm0, %v76_v50  ;;  %v5879_v54 = vpop.f32.mrb[19].mxu1  ;;  %v7859_v56 = vadd.f32 %v1376_v52, %v583_v49  ;;  %v84_v52 = vld [vmem:[%s10622_s0 + $0x244] sm:$0xff] }
  0xfe   :  { %v588_v57 = vpop.f32.mrb[20].mxu0  ;;  %6039 = vmatprep.mubr.msk.f32.mxu1 %vm7043_vm1, %v7042_v0 }
  0xff   :  { %v5607_v59 = vpop.f32.mrb[21].mxu0  ;;  %5765 = vmatmul.mubr.msk.f32.gmra.mrb[126].mxu0 %vm198_vm0, %v169_v53 }
 0x100   :  { %v1381_v60 = vpop.f32.mrb[20].mxu1  ;;  %5767 = vmatprep.mubr.msk.f32.mxu0 %vm7043_vm1, %v7042_v0 }
 0x101   :  { %6040 = vmatmul.mubr.msk.f32.gmra.mrb[126].mxu1 %vm198_vm0, %v77_v58  ;;  %v5882_v63 = vpop.f32.mrb[21].mxu1  ;;  %v7873_v1 = vadd.f32 %v1381_v60, %v588_v57  ;;  %v177_v57 = vld [vmem:[%s10622_s0 + $0x24b] sm:$0xff] }
 0x102   :  { %v593_v2 = vpop.f32.mrb[22].mxu0  ;;  %6042 = vmatprep.mubr.msk.f32.mxu1 %vm7043_vm1, %v7042_v0 }
 0x103   :  { %v5610_v4 = vpop.f32.mrb[23].mxu0  ;;  %5768 = vmatmul.mubr.msk.f32.gmra.mrb[128].mxu0 %vm198_vm0, %v170_v61  ;;  %v85_v61 = vld [vmem:[%s10622_s0 + $0x24c] sm:$0xff] }
 0x104   :  { %v1386_v5 = vpop.f32.mrb[22].mxu1  ;;  %5770 = vmatprep.mubr.msk.f32.mxu0 %vm7043_vm1, %v7042_v0 }
 0x105   :  { %6043 = vmatmul.mubr.msk.f32.gmra.mrb[128].mxu1 %vm198_vm0, %v78_v3  ;;  %v5885_v8 = vpop.f32.mrb[23].mxu1  ;;  %v7887_v9 = vadd.f32 %v1386_v5, %v593_v2  ;;  %v178_v3 = vld [vmem:[%s10622_s0 + $0x253] sm:$0xff] }
 0x106   :  { %v598_v10 = vpop.f32.mrb[24].mxu0  ;;  %6045 = vmatprep.mubr.msk.f32.mxu1 %vm7043_vm1, %v7042_v0  ;;  %v86_v8 = vld [vmem:[%s10622_s0 + $0x254] sm:$0xff] }
 0x107   :  { %v5613_v12 = vpop.f32.mrb[25].mxu0  ;;  %5771 = vmatmul.mubr.msk.f32.gmra.mrb[130].mxu0 %vm198_vm0, %v171_v7 }
 0x108   :  { %v1391_v14 = vpop.f32.mrb[24].mxu1  ;;  %5773 = vmatprep.mubr.msk.f32.mxu0 %vm7043_vm1, %v7042_v0  ;;  %v179_v12 = vld [vmem:[%s10622_s0 + $0x25b] sm:$0xff] }
 0x109   :  { %6046 = vmatmul.mubr.msk.f32.gmra.mrb[130].mxu1 %vm198_vm0, %v79_v11  ;;  %v5888_v16 = vpop.f32.mrb[25].mxu1  ;;  %v7901_v17 = vadd.f32 %v1391_v14, %v598_v10 }
 0x10a   :  { %v603_v18 = vpop.f32.mrb[26].mxu0  ;;  %6048 = vmatprep.mubr.msk.f32.mxu1 %vm7043_vm1, %v7042_v0 }
 0x10b   :  { %v5616_v21 = vpop.f32.mrb[27].mxu0  ;;  %5774 = vmatmul.mubr.msk.f32.gmra.mrb[132].mxu0 %vm198_vm0, %v172_v15 }
 0x10c   :  { %v1396_v22 = vpop.f32.mrb[26].mxu1  ;;  %5776 = vmatprep.mubr.msk.f32.mxu0 %vm7043_vm1, %v7042_v0 }
 0x10d   :  { %6049 = vmatmul.mubr.msk.f32.gmra.mrb[132].mxu1 %vm198_vm0, %v80_v19  ;;  %v5891_v24 = vpop.f32.mrb[27].mxu1  ;;  %v7915_v25 = vadd.f32 %v1396_v22, %v603_v18  ;;  %v87_v18 = vld [vmem:[%s10622_s0 + $0x25c] sm:$0xff] }
 0x10e   :  { %v608_v26 = vpop.f32.mrb[28].mxu0  ;;  %6051 = vmatprep.mubr.msk.f32.mxu1 %vm7043_vm1, %v7042_v0  ;;  %v180_v22 = vld [vmem:[%s10622_s0 + $0x263] sm:$0xff] }
 0x10f   :  { %v5619_v29 = vpop.f32.mrb[29].mxu0  ;;  %5777 = vmatmul.mubr.msk.f32.gmra.mrb[134].mxu0 %vm198_vm0, %v173_v23 }
 0x110   :  { %v1401_v30 = vpop.f32.mrb[28].mxu1  ;;  %5779 = vmatprep.mubr.msk.f32.mxu0 %vm7043_vm1, %v7042_v0 }
 0x111   :  { %6052 = vmatmul.mubr.msk.f32.gmra.mrb[134].mxu1 %vm198_vm0, %v81_v28  ;;  %v5894_v32 = vpop.f32.mrb[29].mxu1  ;;  %v7929_v33 = vadd.f32 %v1401_v30, %v608_v26  ;;  %v88_v28 = vld [vmem:[%s10622_s0 + $0x264] sm:$0xff] }
 0x112   :  { %v613_v35 = vpop.f32.mrb[30].mxu0  ;;  %6054 = vmatprep.mubr.msk.f32.mxu1 %vm7043_vm1, %v7042_v0 }
 0x113   :  { %v5622_v37 = vpop.f32.mrb[31].mxu0  ;;  %5780 = vmatmul.mubr.msk.f32.gmra.mrb[136].mxu0 %vm198_vm0, %v174_v31  ;;  %v181_v31 = vld [vmem:[%s10622_s0 + $0x26b] sm:$0xff] }
 0x114   :  { %v1406_v38 = vpop.f32.mrb[30].mxu1  ;;  %5782 = vmatprep.mubr.msk.f32.mxu0 %vm7043_vm1, %v7042_v0  ;;  %v89_v37 = vld [vmem:[%s10622_s0 + $0x26c] sm:$0xff] }
 0x115   :  { %6055 = vmatmul.mubr.msk.f32.gmra.mrb[136].mxu1 %vm198_vm0, %v82_v36  ;;  %v5897_v40 = vpop.f32.mrb[31].mxu1  ;;  %v7943_v42 = vadd.f32 %v1406_v38, %v613_v35 }
 0x116   :  { %v618_v43 = vpop.f32.mrb[32].mxu0  ;;  %6057 = vmatprep.mubr.msk.f32.mxu1 %vm7043_vm1, %v7042_v0  ;;  %v182_v40 = vld [vmem:[%s10622_s0 + $0x273] sm:$0xff] }
 0x117   :  { %v5625_v45 = vpop.f32.mrb[33].mxu0  ;;  %5783 = vmatmul.mubr.msk.f32.gmra.mrb[138].mxu0 %vm198_vm0, %v175_v39 }
 0x118   :  { %v1411_v46 = vpop.f32.mrb[32].mxu1  ;;  %5785 = vmatprep.mubr.msk.f32.mxu0 %vm7043_vm1, %v7042_v0 }
 0x119   :  { %6058 = vmatmul.mubr.msk.f32.gmra.mrb[138].mxu1 %vm198_vm0, %v83_v44  ;;  %v5900_v49 = vpop.f32.mrb[33].mxu1  ;;  %v7957_v50 = vadd.f32 %v1411_v46, %v618_v43  ;;  %v90_v46 = vld [vmem:[%s10622_s0 + $0x274] sm:$0xff] }
 0x11a   :  { %v623_v51 = vpop.f32.mrb[34].mxu0  ;;  %6060 = vmatprep.mubr.msk.f32.mxu1 %vm7043_vm1, %v7042_v0 }
 0x11b   :  { %v5628_v53 = vpop.f32.mrb[35].mxu0  ;;  %5786 = vmatmul.mubr.msk.f32.gmra.mrb[140].mxu0 %vm198_vm0, %v176_v47 }
 0x11c   :  { %v1416_v54 = vpop.f32.mrb[34].mxu1  ;;  %5788 = vmatprep.mubr.msk.f32.mxu0 %vm7043_vm1, %v7042_v0 }
 0x11d   :  { %6061 = vmatmul.mubr.msk.f32.gmra.mrb[140].mxu1 %vm198_vm0, %v84_v52  ;;  %v5903_v58 = vpop.f32.mrb[35].mxu1  ;;  %v7971_v59 = vadd.f32 %v1416_v54, %v623_v51  ;;  %v183_v51 = vld [vmem:[%s10622_s0 + $0x27b] sm:$0xff] }
 0x11e   :  { %v628_v60 = vpop.f32.mrb[36].mxu0  ;;  %6063 = vmatprep.mubr.msk.f32.mxu1 %vm7043_vm1, %v7042_v0 }
 0x11f   :  { %v5631_v63 = vpop.f32.mrb[37].mxu0  ;;  %5789 = vmatmul.mubr.msk.f32.gmra.mrb[142].mxu0 %vm198_vm0, %v177_v57  ;;  %v91_v57 = vld [vmem:[%s10622_s0 + $0x27c] sm:$0xff] }
 0x120   :  { %v1421_v2 = vpop.f32.mrb[36].mxu1  ;;  %5791 = vmatprep.mubr.msk.f32.mxu0 %vm7043_vm1, %v7042_v0 }
 0x121   :  { %6064 = vmatmul.mubr.msk.f32.gmra.mrb[142].mxu1 %vm198_vm0, %v85_v61  ;;  %v5906_v4 = vpop.f32.mrb[37].mxu1  ;;  %v7985_v5 = vadd.f32 %v1421_v2, %v628_v60  ;;  %v184_v61 = vld [vmem:[%s10622_s0 + $0x283] sm:$0xff] }
 0x122   :  { %v633_v7 = vpop.f32.mrb[38].mxu0  ;;  %6066 = vmatprep.mubr.msk.f32.mxu1 %vm7043_vm1, %v7042_v0  ;;  %v92_v4 = vld [vmem:[%s10622_s0 + $0x284] sm:$0xff] }
 0x123   :  { %v5634_v10 = vpop.f32.mrb[39].mxu0  ;;  %5792 = vmatmul.mubr.msk.f32.gmra.mrb[144].mxu0 %vm198_vm0, %v178_v3 }
 0x124   :  { %v1426_v11 = vpop.f32.mrb[38].mxu1  ;;  %5794 = vmatprep.mubr.msk.f32.mxu0 %vm7043_vm1, %v7042_v0  ;;  %v185_v10 = vld [vmem:[%s10622_s0 + $0x28b] sm:$0xff] }
 0x125   :  { %6067 = vmatmul.mubr.msk.f32.gmra.mrb[144].mxu1 %vm198_vm0, %v86_v8  ;;  %v5909_v14 = vpop.f32.mrb[39].mxu1  ;;  %v7999_v15 = vadd.f32 %v1426_v11, %v633_v7 }
 0x126   :  { %v638_v16 = vpop.f32.mrb[40].mxu0  ;;  %6069 = vmatprep.mubr.msk.f32.mxu1 %vm7043_vm1, %v7042_v0 }
 0x127   :  { %v5637_v19 = vpop.f32.mrb[41].mxu0  ;;  %5795 = vmatmul.mubr.msk.f32.gmra.mrb[146].mxu0 %vm198_vm0, %v179_v12 }
 0x128   :  { %v1431_v21 = vpop.f32.mrb[40].mxu1  ;;  %5797 = vmatprep.mubr.msk.f32.mxu0 %vm7043_vm1, %v7042_v0 }
 0x129   :  { %6070 = vmatmul.mubr.msk.f32.gmra.mrb[146].mxu1 %vm198_vm0, %v87_v18  ;;  %v5912_v23 = vpop.f32.mrb[41].mxu1  ;;  %v8013_v24 = vadd.f32 %v1431_v21, %v638_v16  ;;  %v93_v16 = vld [vmem:[%s10622_s0 + $0x28c] sm:$0xff] }
 0x12a   :  { %v643_v26 = vpop.f32.mrb[42].mxu0  ;;  %6072 = vmatprep.mubr.msk.f32.mxu1 %vm7043_vm1, %v7042_v0  ;;  %v186_v21 = vld [vmem:[%s10622_s0 + $0x293] sm:$0xff] }
 0x12b   :  { %v5640_v29 = vpop.f32.mrb[43].mxu0  ;;  %5798 = vmatmul.mubr.msk.f32.gmra.mrb[148].mxu0 %vm198_vm0, %v180_v22 }
 0x12c   :  { %v1436_v30 = vpop.f32.mrb[42].mxu1  ;;  %5800 = vmatprep.mubr.msk.f32.mxu0 %vm7043_vm1, %v7042_v0 }
 0x12d   :  { %6073 = vmatmul.mubr.msk.f32.gmra.mrb[148].mxu1 %vm198_vm0, %v88_v28  ;;  %v5915_v32 = vpop.f32.mrb[43].mxu1  ;;  %v8027_v35 = vadd.f32 %v1436_v30, %v643_v26  ;;  %v94_v28 = vld [vmem:[%s10622_s0 + $0x294] sm:$0xff] }
 0x12e   :  { %v648_v36 = vpop.f32.mrb[44].mxu0  ;;  %6075 = vmatprep.mubr.msk.f32.mxu1 %vm7043_vm1, %v7042_v0 }
 0x12f   :  { %v5643_v38 = vpop.f32.mrb[45].mxu0  ;;  %5801 = vmatmul.mubr.msk.f32.gmra.mrb[150].mxu0 %vm198_vm0, %v181_v31  ;;  %v187_v31 = vld [vmem:[%s10622_s0 + $0x29b] sm:$0xff] }
 0x130   :  { %v1441_v39 = vpop.f32.mrb[44].mxu1  ;;  %5803 = vmatprep.mubr.msk.f32.mxu0 %vm7043_vm1, %v7042_v0  ;;  %v95_v38 = vld [vmem:[%s10622_s0 + $0x29c] sm:$0xff] }
 0x131   :  { %6076 = vmatmul.mubr.msk.f32.gmra.mrb[150].mxu1 %vm198_vm0, %v89_v37  ;;  %v5918_v43 = vpop.f32.mrb[45].mxu1  ;;  %v8041_v44 = vadd.f32 %v1441_v39, %v648_v36 }
 0x132   :  { %v653_v45 = vpop.f32.mrb[46].mxu0  ;;  %6078 = vmatprep.mubr.msk.f32.mxu1 %vm7043_vm1, %v7042_v0  ;;  %v188_v43 = vld [vmem:[%s10622_s0 + $0x2a3] sm:$0xff] }
 0x133   :  { %v5646_v47 = vpop.f32.mrb[47].mxu0  ;;  %5804 = vmatmul.mubr.msk.f32.gmra.mrb[152].mxu0 %vm198_vm0, %v182_v40 }
 0x134   :  { %v1446_v49 = vpop.f32.mrb[46].mxu1  ;;  %5806 = vmatprep.mubr.msk.f32.mxu0 %vm7043_vm1, %v7042_v0 }
 0x135   :  { %6079 = vmatmul.mubr.msk.f32.gmra.mrb[152].mxu1 %vm198_vm0, %v90_v46  ;;  %v5921_v52 = vpop.f32.mrb[47].mxu1  ;;  %v8055_v53 = vadd.f32 %v1446_v49, %v653_v45  ;;  %v96_v49 = vld [vmem:[%s10622_s0 + $0x2a4] sm:$0xff] }
 0x136   :  { %v658_v54 = vpop.f32.mrb[48].mxu0  ;;  %6081 = vmatprep.mubr.msk.f32.mxu1 %vm7043_vm1, %v7042_v0 }
 0x137   :  { %v5649_v58 = vpop.f32.mrb[49].mxu0  ;;  %5807 = vmatmul.mubr.msk.f32.gmra.mrb[154].mxu0 %vm198_vm0, %v183_v51 }
 0x138   :  { %v1451_v60 = vpop.f32.mrb[48].mxu1  ;;  %5809 = vmatprep.mubr.msk.f32.mxu0 %vm7043_vm1, %v7042_v0 }
 0x139   :  { %6082 = vmatmul.mubr.msk.f32.gmra.mrb[154].mxu1 %vm198_vm0, %v91_v57  ;;  %v5924_v63 = vpop.f32.mrb[49].mxu1  ;;  %v8069_v2 = vadd.f32 %v1451_v60, %v658_v54  ;;  %v189_v54 = vld [vmem:[%s10622_s0 + $0x2ab] sm:$0xff] }
 0x13a   :  { %v663_v3 = vpop.f32.mrb[50].mxu0  ;;  %6084 = vmatprep.mubr.msk.f32.mxu1 %vm7043_vm1, %v7042_v0 }
 0x13b   :  { %v5652_v7 = vpop.f32.mrb[51].mxu0  ;;  %5810 = vmatmul.mubr.msk.f32.gmra.mrb[156].mxu0 %vm198_vm0, %v184_v61  ;;  %v97_v61 = vld [vmem:[%s10622_s0 + $0x2ac] sm:$0xff] }
 0x13c   :  { %v1456_v8 = vpop.f32.mrb[50].mxu1  ;;  %5812 = vmatprep.mubr.msk.f32.mxu0 %vm7043_vm1, %v7042_v0 }
 0x13d   :  { %6085 = vmatmul.mubr.msk.f32.gmra.mrb[156].mxu1 %vm198_vm0, %v92_v4  ;;  %v5927_v11 = vpop.f32.mrb[51].mxu1  ;;  %v8083_v12 = vadd.f32 %v1456_v8, %v663_v3  ;;  %v190_v4 = vld [vmem:[%s10622_s0 + $0x2b3] sm:$0xff] }
 0x13e   :  { %v668_v14 = vpop.f32.mrb[52].mxu0  ;;  %6087 = vmatprep.mubr.msk.f32.mxu1 %vm7043_vm1, %v7042_v0  ;;  %v98_v11 = vld [vmem:[%s10622_s0 + $0x2b4] sm:$0xff] }
 0x13f   :  { %v5655_v18 = vpop.f32.mrb[53].mxu0  ;;  %5813 = vmatmul.mubr.msk.f32.gmra.mrb[158].mxu0 %vm198_vm0, %v185_v10 }
 0x140   :  { %v1461_v19 = vpop.f32.mrb[52].mxu1  ;;  %5815 = vmatprep.mubr.msk.f32.mxu0 %vm7043_vm1, %v7042_v0  ;;  %v191_v18 = vld [vmem:[%s10622_s0 + $0x2bb] sm:$0xff] }
 0x141   :  { %6088 = vmatmul.mubr.msk.f32.gmra.mrb[158].mxu1 %vm198_vm0, %v93_v16  ;;  %v5930_v22 = vpop.f32.mrb[53].mxu1  ;;  %v8097_v23 = vadd.f32 %v1461_v19, %v668_v14 }
 0x142   :  { %v673_v26 = vpop.f32.mrb[54].mxu0  ;;  %6090 = vmatprep.mubr.msk.f32.mxu1 %vm7043_vm1, %v7042_v0 }
 0x143   :  { %v5658_v29 = vpop.f32.mrb[55].mxu0  ;;  %5816 = vmatmul.mubr.msk.f32.gmra.mrb[160].mxu0 %vm198_vm0, %v186_v21 }
 0x144   :  { %v1466_v30 = vpop.f32.mrb[54].mxu1  ;;  %5818 = vmatprep.mubr.msk.f32.mxu0 %vm7043_vm1, %v7042_v0 }
 0x145   :  { %6091 = vmatmul.mubr.msk.f32.gmra.mrb[160].mxu1 %vm198_vm0, %v94_v28  ;;  %v5933_v32 = vpop.f32.mrb[55].mxu1  ;;  %v8111_v36 = vadd.f32 %v1466_v30, %v673_v26  ;;  %v99_v26 = vld [vmem:[%s10622_s0 + $0x2bc] sm:$0xff] }
 0x146   :  { %v678_v37 = vpop.f32.mrb[56].mxu0  ;;  %6093 = vmatprep.mubr.msk.f32.mxu1 %vm7043_vm1, %v7042_v0  ;;  %v192_v30 = vld [vmem:[%s10622_s0 + $0x2c3] sm:$0xff] }
 0x147   :  { %v5661_v39 = vpop.f32.mrb[57].mxu0  ;;  %5819 = vmatmul.mubr.msk.f32.gmra.mrb[162].mxu0 %vm198_vm0, %v187_v31 }
 0x148   :  { %v1471_v40 = vpop.f32.mrb[56].mxu1  ;;  %5821 = vmatprep.mubr.msk.f32.mxu0 %vm7043_vm1, %v7042_v0 }
 0x149   :  { %6094 = vmatmul.mubr.msk.f32.gmra.mrb[162].mxu1 %vm198_vm0, %v95_v38  ;;  %v5936_v45 = vpop.f32.mrb[57].mxu1  ;;  %v8125_v46 = vadd.f32 %v1471_v40, %v678_v37  ;;  %v100_v38 = vld [vmem:[%s10622_s0 + $0x2c4] sm:$0xff] }
 0x14a   :  { %v683_v47 = vpop.f32.mrb[58].mxu0  ;;  %6096 = vmatprep.mubr.msk.f32.mxu1 %vm7043_vm1, %v7042_v0 }
 0x14b   :  { %v5664_v51 = vpop.f32.mrb[59].mxu0  ;;  %5822 = vmatmul.mubr.msk.f32.gmra.mrb[164].mxu0 %vm198_vm0, %v188_v43  ;;  %v193_v43 = vld [vmem:[%s10622_s0 + $0x2cb] sm:$0xff] }
 0x14c   :  { %v1476_v52 = vpop.f32.mrb[58].mxu1  ;;  %5824 = vmatprep.mubr.msk.f32.mxu0 %vm7043_vm1, %v7042_v0  ;;  %v101_v51 = vld [vmem:[%s10622_s0 + $0x2cc] sm:$0xff] }
 0x14d   :  { %6097 = vmatmul.mubr.msk.f32.gmra.mrb[164].mxu1 %vm198_vm0, %v96_v49  ;;  %v5939_v57 = vpop.f32.mrb[59].mxu1  ;;  %v8139_v58 = vadd.f32 %v1476_v52, %v683_v47 }
 0x14e   :  { %v688_v60 = vpop.f32.mrb[60].mxu0  ;;  %6099 = vmatprep.mubr.msk.f32.mxu1 %vm7043_vm1, %v7042_v0  ;;  %v194_v57 = vld [vmem:[%s10622_s0 + $0x2d3] sm:$0xff] }
 0x14f   :  { %v5667_v63 = vpop.f32.mrb[61].mxu0  ;;  %5825 = vmatmul.mubr.msk.f32.gmra.mrb[166].mxu0 %vm198_vm0, %v189_v54 }
 0x150   :  { %v1481_v3 = vpop.f32.mrb[60].mxu1  ;;  %5827 = vmatprep.mubr.msk.f32.mxu0 %vm7043_vm1, %v7042_v0 }
 0x151   :  { %6100 = vmatmul.mubr.msk.f32.gmra.mrb[166].mxu1 %vm198_vm0, %v97_v61  ;;  %v5942_v7 = vpop.f32.mrb[61].mxu1  ;;  %v8153_v8 = vadd.f32 %v1481_v3, %v688_v60  ;;  %v102_v3 = vld [vmem:[%s10622_s0 + $0x2d4] sm:$0xff] }
 0x152   :  { %v693_v10 = vpop.f32.mrb[62].mxu0  ;;  %6102 = vmatprep.mubr.msk.f32.mxu1 %vm7043_vm1, %v7042_v0 }
 0x153   :  { %v5670_v14 = vpop.f32.mrb[63].mxu0  ;;  %5828 = vmatmul.mubr.msk.f32.gmra.mrb[168].mxu0 %vm198_vm0, %v190_v4 }
 0x154   :  { %v1486_v16 = vpop.f32.mrb[62].mxu1  ;;  %5830 = vmatprep.mubr.msk.f32.mxu0 %vm7043_vm1, %v7042_v0 }
 0x155   :  { %6103 = vmatmul.mubr.msk.f32.gmra.mrb[168].mxu1 %vm198_vm0, %v98_v11  ;;  %v5945_v19 = vpop.f32.mrb[63].mxu1  ;;  %v8167_v21 = vadd.f32 %v1486_v16, %v693_v10  ;;  %v195_v10 = vld [vmem:[%s10622_s0 + $0x2db] sm:$0xff] }
 0x156   :  { %v698_v22 = vpop.f32.mrb[64].mxu0  ;;  %6105 = vmatprep.mubr.msk.f32.mxu1 %vm7043_vm1, %v7042_v0 }
 0x157   :  { %v5673_v28 = vpop.f32.mrb[65].mxu0  ;;  %5831 = vmatmul.mubr.msk.f32.gmra.mrb[170].mxu0 %vm198_vm0, %v191_v18  ;;  %v103_v18 = vld [vmem:[%s10622_s0 + $0x2dc] sm:$0xff] }
 0x158   :  { %v1491_v29 = vpop.f32.mrb[64].mxu1  ;;  %5833 = vmatprep.mubr.msk.f32.mxu0 %vm7043_vm1, %v7042_v0 }
 0x159   :  { %6106 = vmatmul.mubr.msk.f32.gmra.mrb[170].mxu1 %vm198_vm0, %v99_v26  ;;  %v5948_v31 = vpop.f32.mrb[65].mxu1  ;;  %v8181_v32 = vadd.f32 %v1491_v29, %v698_v22  ;;  %v196_v26 = vld [vmem:[%s10622_s0 + $0x2e3] sm:$0xff] }
 0x15a   :  { %v703_v37 = vpop.f32.mrb[66].mxu0  ;;  %6108 = vmatprep.mubr.msk.f32.mxu1 %vm7043_vm1, %v7042_v0  ;;  %v104_v31 = vld [vmem:[%s10622_s0 + $0x2e4] sm:$0xff] }
 0x15b   :  { %v5676_v39 = vpop.f32.mrb[67].mxu0  ;;  %5834 = vmatmul.mubr.msk.f32.gmra.mrb[172].mxu0 %vm198_vm0, %v192_v30 }
 0x15c   :  { %v1496_v40 = vpop.f32.mrb[66].mxu1  ;;  %5836 = vmatprep.mubr.msk.f32.mxu0 %vm7043_vm1, %v7042_v0  ;;  %v1785_v39 = vld [vmem:[%s10622_s0 + $0x1] sm:$0xff] }
 0x15d   :  { %6109 = vmatmul.mubr.msk.f32.gmra.mrb[172].mxu1 %vm198_vm0, %v100_v38  ;;  %v5951_v45 = vpop.f32.mrb[67].mxu1  ;;  %v8195_v47 = vadd.f32 %v1496_v40, %v703_v37 }
 0x15e   :  { %v708_v49 = vpop.f32.mrb[68].mxu0  ;;  %6111 = vmatprep.mubr.msk.f32.mxu1 %vm7043_vm1, %v7042_v0 }
 0x15f   :  { %v5679_v52 = vpop.f32.mrb[69].mxu0  ;;  %5837 = vmatmul.mubr.msk.f32.gmra.mrb[174].mxu0 %vm198_vm0, %v193_v43 }
 0x160   :  { %v1501_v54 = vpop.f32.mrb[68].mxu1  ;;  %5839 = vmatprep.mubr.msk.f32.mxu0 %vm7043_vm1, %v7042_v0 }
 0x161   :  { %6112 = vmatmul.mubr.msk.f32.gmra.mrb[174].mxu1 %vm198_vm0, %v101_v51  ;;  %v5954_v60 = vpop.f32.mrb[69].mxu1  ;;  %v8209_v61 = vadd.f32 %v1501_v54, %v708_v49  ;;  %v2761_v49 = vld [vmem:[%s10622_s0] sm:$0xff]  ;;  %v1786_v54 = vld [vmem:[%s10622_s0 + $0x9] sm:$0xff] }
 0x162   :  { %v713_v63 = vpop.f32.mrb[70].mxu0  ;;  %6114 = vmatprep.mubr.msk.f32.mxu1 %vm7043_vm1, %v7042_v0 }
 0x163   :  { %v5682_v4 = vpop.f32.mrb[71].mxu0  ;;  %5840 = vmatmul.mubr.msk.f32.gmra.mrb[176].mxu0 %vm198_vm0, %v194_v57 }
 0x164   :  { %v1506_v7 = vpop.f32.mrb[70].mxu1  ;;  %5842 = vmatprep.mubr.msk.f32.mxu0 %vm7043_vm1, %v7042_v0 }
 0x165   :  { %6115 = vmatmul.mubr.msk.f32.gmra.mrb[176].mxu1 %vm198_vm0, %v102_v3  ;;  %v5957_v11 = vpop.f32.mrb[71].mxu1  ;;  %v8223_v14 = vadd.f32 %v1506_v7, %v713_v63  ;;  %v2762_v3 = vld [vmem:[%s10622_s0 + $0x8] sm:$0xff] }
 0x166   :  { %v718_v16 = vpop.f32.mrb[72].mxu0  ;;  %6117 = vmatprep.mubr.msk.f32.mxu1 %vm7043_vm1, %v7042_v0 }
 0x167   :  { %v5685_v19 = vpop.f32.mrb[73].mxu0  ;;  %5843 = vmatmul.mubr.msk.f32.gmra.mrb[178].mxu0 %vm198_vm0, %v195_v10  ;;  %v1787_v10 = vld [vmem:[%s10622_s0 + $0x11] sm:$0xff] }
 0x168   :  { %v1511_v22 = vpop.f32.mrb[72].mxu1  ;;  %5845 = vmatprep.mubr.msk.f32.mxu0 %vm7043_vm1, %v7042_v0  ;;  %v2763_v19 = vld [vmem:[%s10622_s0 + $0x10] sm:$0xff] }
 0x169   :  { %6118 = vmatmul.mubr.msk.f32.gmra.mrb[178].mxu1 %vm198_vm0, %v103_v18  ;;  %v5960_v28 = vpop.f32.mrb[73].mxu1  ;;  %v8237_v29 = vadd.f32 %v1511_v22, %v718_v16 }
 0x16a   :  { %v723_v30 = vpop.f32.mrb[74].mxu0  ;;  %6120 = vmatprep.mubr.msk.f32.mxu1 %vm7043_vm1, %v7042_v0  ;;  %v1788_v28 = vld [vmem:[%s10622_s0 + $0x19] sm:$0xff] }
 0x16b   :  { %v5688_v37 = vpop.f32.mrb[75].mxu0  ;;  %5846 = vmatmul.mubr.msk.f32.gmra.mrb[180].mxu0 %vm198_vm0, %v196_v26 }
 0x16c   :  { %v1516_v38 = vpop.f32.mrb[74].mxu1  ;;  %6125 = vmatprep.mubr.msk.f32.mxu0 %vm7043_vm1, %v7042_v0 }
 0x16d   :  { %6121 = vmatmul.mubr.msk.f32.gmra.mrb[180].mxu1 %vm198_vm0, %v104_v31  ;;  %v5963_v40 = vpop.f32.mrb[75].mxu1  ;;  %v8251_v43 = vadd.f32 %v1516_v38, %v723_v30  ;;  %v2764_v38 = vld [vmem:[%s10622_s0 + $0x18] sm:$0xff] }
 0x16e   :  { %v728_v45 = vpop.f32.mrb[76].mxu0  ;;  %6400 = vmatprep.mubr.msk.f32.mxu1 %vm7043_vm1, %v7042_v0 }
 0x16f   :  { %v5691_v51 = vpop.f32.mrb[77].mxu0  ;;  %6126 = vmatmul.mubr.msk.f32.vlgmr.msra.gmra.mrb[182].mxu0 %vm198_vm0, %v1785_v39 }
 0x170   :  { %v1521_v52 = vpop.f32.mrb[76].mxu1  ;;  %6128 = vmatprep.mubr.msk.f32.mxu0 %vm7043_vm1, %v7042_v0 }
 0x171   :  { %v5966_v57 = vpop.f32.mrb[77].mxu1  ;;  %6401 = vmatmul.mubr.msk.f32.vlgmr.msra.gmra.mrb[182].mxu1 %vm198_vm0, %v2761_v49  ;;  %v8265_v60 = vadd.f32 %v1521_v52, %v728_v45  ;;  %v1789_v45 = vld [vmem:[%s10622_s0 + $0x21] sm:$0xff] }
 0x172   :  { %v733_v63 = vpop.f32.mrb[78].mxu0  ;;  %6403 = vmatprep.mubr.msk.f32.mxu1 %vm7043_vm1, %v7042_v0 }
 0x173   :  { %v5694_v4 = vpop.f32.mrb[79].mxu0  ;;  %6129 = vmatmul.mubr.msk.f32.gmra.mrb[184].mxu0 %vm198_vm0, %v1786_v54  ;;  %v2765_v54 = vld [vmem:[%s10622_s0 + $0x20] sm:$0xff] }
 0x174   :  { %v1526_v7 = vpop.f32.mrb[78].mxu1  ;;  %6131 = vmatprep.mubr.msk.f32.mxu0 %vm7043_vm1, %v7042_v0 }
 0x175   :  { %v5969_v11 = vpop.f32.mrb[79].mxu1  ;;  %6404 = vmatmul.mubr.msk.f32.gmra.mrb[184].mxu1 %vm198_vm0, %v2762_v3  ;;  %v8279_v16 = vadd.f32 %v1526_v7, %v733_v63  ;;  %v1790_v3 = vld [vmem:[%s10622_s0 + $0x29] sm:$0xff] }
 0x176   :  { %v738_v18 = vpop.f32.mrb[80].mxu0  ;;  %6406 = vmatprep.mubr.msk.f32.mxu1 %vm7043_vm1, %v7042_v0  ;;  %v2766_v11 = vld [vmem:[%s10622_s0 + $0x28] sm:$0xff] }
 0x177   :  { %v5697_v22 = vpop.f32.mrb[81].mxu0  ;;  %6132 = vmatmul.mubr.msk.f32.gmra.mrb[186].mxu0 %vm198_vm0, %v1787_v10 }
 0x178   :  { %v1531_v26 = vpop.f32.mrb[80].mxu1  ;;  %6134 = vmatprep.mubr.msk.f32.mxu0 %vm7043_vm1, %v7042_v0  ;;  %v1791_v22 = vld [vmem:[%s10622_s0 + $0x31] sm:$0xff] }
 0x179   :  { %v5972_v30 = vpop.f32.mrb[81].mxu1  ;;  %6407 = vmatmul.mubr.msk.f32.gmra.mrb[186].mxu1 %vm198_vm0, %v2763_v19  ;;  %v8293_v31 = vadd.f32 %v1531_v26, %v738_v18 }
 0x17a   :  { %v743_v37 = vpop.f32.mrb[82].mxu0  ;;  %6409 = vmatprep.mubr.msk.f32.mxu1 %vm7043_vm1, %v7042_v0 }
 0x17b   :  { %v5700_v39 = vpop.f32.mrb[83].mxu0  ;;  %6135 = vmatmul.mubr.msk.f32.gmra.mrb[188].mxu0 %vm198_vm0, %v1788_v28 }
 0x17c   :  { %v1536_v40 = vpop.f32.mrb[82].mxu1  ;;  %6137 = vmatprep.mubr.msk.f32.mxu0 %vm7043_vm1, %v7042_v0 }
 0x17d   :  { %v5975_v49 = vpop.f32.mrb[83].mxu1  ;;  %6410 = vmatmul.mubr.msk.f32.gmra.mrb[188].mxu1 %vm198_vm0, %v2764_v38  ;;  %v8307_v51 = vadd.f32 %v1536_v40, %v743_v37  ;;  %v2767_v37 = vld [vmem:[%s10622_s0 + $0x30] sm:$0xff]  ;;  %v1792_v40 = vld [vmem:[%s10622_s0 + $0x39] sm:$0xff] }
 0x17e   :  { %v748_v52 = vpop.f32.mrb[84].mxu0  ;;  %6412 = vmatprep.mubr.msk.f32.mxu1 %vm7043_vm1, %v7042_v0 }
 0x17f   :  { %v5703_v57 = vpop.f32.mrb[85].mxu0  ;;  %6138 = vmatmul.mubr.msk.f32.gmra.mrb[190].mxu0 %vm198_vm0, %v1789_v45 }
 0x180   :  { %v1541_v63 = vpop.f32.mrb[84].mxu1  ;;  %6140 = vmatprep.mubr.msk.f32.mxu0 %vm7043_vm1, %v7042_v0 }
 0x181   :  { %v5978_v4 = vpop.f32.mrb[85].mxu1  ;;  %6413 = vmatmul.mubr.msk.f32.gmra.mrb[190].mxu1 %vm198_vm0, %v2765_v54  ;;  %v8321_v7 = vadd.f32 %v1541_v63, %v748_v52  ;;  %v2768_v54 = vld [vmem:[%s10622_s0 + $0x38] sm:$0xff] }
 0x182   :  { %v753_v10 = vpop.f32.mrb[86].mxu0  ;;  %6415 = vmatprep.mubr.msk.f32.mxu1 %vm7043_vm1, %v7042_v0 }
 0x183   :  { %v5706_v18 = vpop.f32.mrb[87].mxu0  ;;  %6141 = vmatmul.mubr.msk.f32.gmra.mrb[192].mxu0 %vm198_vm0, %v1790_v3  ;;  %v1793_v3 = vld [vmem:[%s10622_s0 + $0x41] sm:$0xff] }
 0x184   :  { %v1546_v19 = vpop.f32.mrb[86].mxu1  ;;  %6143 = vmatprep.mubr.msk.f32.mxu0 %vm7043_vm1, %v7042_v0  ;;  %v2769_v18 = vld [vmem:[%s10622_s0 + $0x40] sm:$0xff] }
 0x185   :  { %v5981_v26 = vpop.f32.mrb[87].mxu1  ;;  %6416 = vmatmul.mubr.msk.f32.gmra.mrb[192].mxu1 %vm198_vm0, %v2766_v11  ;;  %v8335_v28 = vadd.f32 %v1546_v19, %v753_v10 }
 0x186   :  { %v758_v30 = vpop.f32.mrb[88].mxu0  ;;  %6418 = vmatprep.mubr.msk.f32.mxu1 %vm7043_vm1, %v7042_v0  ;;  %v1794_v26 = vld [vmem:[%s10622_s0 + $0x49] sm:$0xff] }
 0x187   :  { %v5709_v38 = vpop.f32.mrb[89].mxu0  ;;  %6144 = vmatmul.mubr.msk.f32.gmra.mrb[194].mxu0 %vm198_vm0, %v1791_v22 }
 0x188   :  { %v1551_v39 = vpop.f32.mrb[88].mxu1  ;;  %6146 = vmatprep.mubr.msk.f32.mxu0 %vm7043_vm1, %v7042_v0 }
 0x189   :  { %v5984_v45 = vpop.f32.mrb[89].mxu1  ;;  %6419 = vmatmul.mubr.msk.f32.gmra.mrb[194].mxu1 %vm198_vm0, %v2767_v37  ;;  %v8349_v49 = vadd.f32 %v1551_v39, %v758_v30  ;;  %v2770_v39 = vld [vmem:[%s10622_s0 + $0x48] sm:$0xff] }
 0x18a   :  { %v763_v52 = vpop.f32.mrb[90].mxu0  ;;  %6421 = vmatprep.mubr.msk.f32.mxu1 %vm7043_vm1, %v7042_v0 }
 0x18b   :  { %v5712_v57 = vpop.f32.mrb[91].mxu0  ;;  %6147 = vmatmul.mubr.msk.f32.gmra.mrb[196].mxu0 %vm198_vm0, %v1792_v40 }
 0x18c   :  { %v1556_v63 = vpop.f32.mrb[90].mxu1  ;;  %6149 = vmatprep.mubr.msk.f32.mxu0 %vm7043_vm1, %v7042_v0 }
 0x18d   :  { %v5987_v4 = vpop.f32.mrb[91].mxu1  ;;  %6422 = vmatmul.mubr.msk.f32.gmra.mrb[196].mxu1 %vm198_vm0, %v2768_v54  ;;  %v8363_v10 = vadd.f32 %v1556_v63, %v763_v52  ;;  %v1795_v52 = vld [vmem:[%s10622_s0 + $0x51] sm:$0xff] }
 0x18e   :  { %v768_v11 = vpop.f32.mrb[92].mxu0  ;;  %6424 = vmatprep.mubr.msk.f32.mxu1 %vm7043_vm1, %v7042_v0 }
 0x18f   :  { %10625 = vst [vmem:[#allocation2_spill] sm:$0xff] %v8363_v10  ;;  %v5715_v19 = vpop.f32.mrb[93].mxu0  ;;  %6150 = vmatmul.mubr.msk.f32.gmra.mrb[198].mxu0 %vm198_vm0, %v1793_v3  ;;  %v2771_v3 = vld [vmem:[%s10622_s0 + $0x50] sm:$0xff] }
 0x190   :  { %v1561_v22 = vpop.f32.mrb[92].mxu1  ;;  %6152 = vmatprep.mubr.msk.f32.mxu0 %vm7043_vm1, %v7042_v0 }
 0x191   :  { %v5990_v30 = vpop.f32.mrb[93].mxu1  ;;  %6425 = vmatmul.mubr.msk.f32.gmra.mrb[198].mxu1 %vm198_vm0, %v2769_v18  ;;  %v8377_v37 = vadd.f32 %v1561_v22, %v768_v11  ;;  %v1796_v18 = vld [vmem:[%s10622_s0 + $0x59] sm:$0xff] }
 0x192   :  { %v773_v38 = vpop.f32.mrb[94].mxu0  ;;  %6427 = vmatprep.mubr.msk.f32.mxu1 %vm7043_vm1, %v7042_v0  ;;  %v2772_v30 = vld [vmem:[%s10622_s0 + $0x58] sm:$0xff] }
 0x193   :  { %10626 = vst [vmem:[#allocation3_spill] sm:$0xff] %v8377_v37  ;;  %v5718_v40 = vpop.f32.mrb[95].mxu0  ;;  %6153 = vmatmul.mubr.msk.f32.gmra.mrb[200].mxu0 %vm198_vm0, %v1794_v26 }
 0x194   :  { %v1566_v45 = vpop.f32.mrb[94].mxu1  ;;  %6155 = vmatprep.mubr.msk.f32.mxu0 %vm7043_vm1, %v7042_v0  ;;  %v1797_v40 = vld [vmem:[%s10622_s0 + $0x61] sm:$0xff] }
 0x195   :  { %v5993_v54 = vpop.f32.mrb[95].mxu1  ;;  %6428 = vmatmul.mubr.msk.f32.gmra.mrb[200].mxu1 %vm198_vm0, %v2770_v39  ;;  %v8391_v57 = vadd.f32 %v1566_v45, %v773_v38 }
 0x196   :  { %v778_v63 = vpop.f32.mrb[96].mxu0  ;;  %6430 = vmatprep.mubr.msk.f32.mxu1 %vm7043_vm1, %v7042_v0 }
 0x197   :  { %10627 = vst [vmem:[#allocation4_spill] sm:$0xff] %v8391_v57  ;;  %v5721_v4 = vpop.f32.mrb[97].mxu0  ;;  %6156 = vmatmul.mubr.msk.f32.gmra.mrb[202].mxu0 %vm198_vm0, %v1795_v52 }
 0x198   :  { %v1571_v11 = vpop.f32.mrb[96].mxu1  ;;  %6158 = vmatprep.mubr.msk.f32.mxu0 %vm7043_vm1, %v7042_v0 }
 0x199   :  { %v5996_v19 = vpop.f32.mrb[97].mxu1  ;;  %6431 = vmatmul.mubr.msk.f32.gmra.mrb[202].mxu1 %vm198_vm0, %v2771_v3  ;;  %v8405_v22 = vadd.f32 %v1571_v11, %v778_v63  ;;  %v2773_v63 = vld [vmem:[%s10622_s0 + $0x60] sm:$0xff]  ;;  %v1798_v11 = vld [vmem:[%s10622_s0 + $0x69] sm:$0xff] }
 0x19a   :  { %v783_v26 = vpop.f32.mrb[98].mxu0  ;;  %6433 = vmatprep.mubr.msk.f32.mxu1 %vm7043_vm1, %v7042_v0 }
 0x19b   :  { %10628 = vst [vmem:[#allocation5_spill] sm:$0xff] %v8405_v22  ;;  %v5724_v38 = vpop.f32.mrb[99].mxu0  ;;  %6159 = vmatmul.mubr.msk.f32.gmra.mrb[204].mxu0 %vm198_vm0, %v1796_v18 }
 0x19c   :  { %v1576_v39 = vpop.f32.mrb[98].mxu1  ;;  %6161 = vmatprep.mubr.msk.f32.mxu0 %vm7043_vm1, %v7042_v0 }
 0x19d   :  { %v5999_v45 = vpop.f32.mrb[99].mxu1  ;;  %6434 = vmatmul.mubr.msk.f32.gmra.mrb[204].mxu1 %vm198_vm0, %v2772_v30  ;;  %v8419_v52 = vadd.f32 %v1576_v39, %v783_v26  ;;  %v2774_v30 = vld [vmem:[%s10622_s0 + $0x68] sm:$0xff] }
 0x19e   :  { %v788_v54 = vpop.f32.mrb[100].mxu0  ;;  %6436 = vmatprep.mubr.msk.f32.mxu1 %vm7043_vm1, %v7042_v0 }
 0x19f   :  { %10629 = vst [vmem:[#allocation6_spill] sm:$0xff] %v8419_v52  ;;  %v5727_v3 = vpop.f32.mrb[101].mxu0  ;;  %6162 = vmatmul.mubr.msk.f32.gmra.mrb[206].mxu0 %vm198_vm0, %v1797_v40  ;;  %v1799_v40 = vld [vmem:[%s10622_s0 + $0x71] sm:$0xff] }
 0x1a0   :  { %v1581_v4 = vpop.f32.mrb[100].mxu1  ;;  %6164 = vmatprep.mubr.msk.f32.mxu0 %vm7043_vm1, %v7042_v0  ;;  %v2775_v3 = vld [vmem:[%s10622_s0 + $0x70] sm:$0xff] }
 0x1a1   :  { %v6002_v18 = vpop.f32.mrb[101].mxu1  ;;  %6437 = vmatmul.mubr.msk.f32.gmra.mrb[206].mxu1 %vm198_vm0, %v2773_v63  ;;  %v8433_v19 = vadd.f32 %v1581_v4, %v788_v54 }
 0x1a2   :  { %v793_v26 = vpop.f32.mrb[102].mxu0  ;;  %6439 = vmatprep.mubr.msk.f32.mxu1 %vm7043_vm1, %v7042_v0  ;;  %v1800_v18 = vld [vmem:[%s10622_s0 + $0x79] sm:$0xff] }
 0x1a3   :  { %10630 = vst [vmem:[#allocation7_spill] sm:$0xff] %v8433_v19  ;;  %v5730_v38 = vpop.f32.mrb[103].mxu0  ;;  %6165 = vmatmul.mubr.msk.f32.gmra.mrb[208].mxu0 %vm198_vm0, %v1798_v11 }
 0x1a4   :  { %v1586_v39 = vpop.f32.mrb[102].mxu1  ;;  %6167 = vmatprep.mubr.msk.f32.mxu0 %vm7043_vm1, %v7042_v0 }
 0x1a5   :  { %v6005_v45 = vpop.f32.mrb[103].mxu1  ;;  %6440 = vmatmul.mubr.msk.f32.gmra.mrb[208].mxu1 %vm198_vm0, %v2774_v30  ;;  %v8447_v54 = vadd.f32 %v1586_v39, %v793_v26  ;;  %v2776_v39 = vld [vmem:[%s10622_s0 + $0x78] sm:$0xff] }
 0x1a6   :  { %v798_v63 = vpop.f32.mrb[104].mxu0  ;;  %6442 = vmatprep.mubr.msk.f32.mxu1 %vm7043_vm1, %v7042_v0 }
 0x1a7   :  { %10631 = vst [vmem:[#allocation8_spill] sm:$0xff] %v8447_v54  ;;  %v5733_v4 = vpop.f32.mrb[105].mxu0  ;;  %6168 = vmatmul.mubr.msk.f32.gmra.mrb[210].mxu0 %vm198_vm0, %v1799_v40 }
 0x1a8   :  { %v1591_v11 = vpop.f32.mrb[104].mxu1  ;;  %6170 = vmatprep.mubr.msk.f32.mxu0 %vm7043_vm1, %v7042_v0 }
 0x1a9   :  { %v6008_v26 = vpop.f32.mrb[105].mxu1  ;;  %6443 = vmatmul.mubr.msk.f32.gmra.mrb[210].mxu1 %vm198_vm0, %v2775_v3  ;;  %v8461_v30 = vadd.f32 %v1591_v11, %v798_v63  ;;  %v1801_v63 = vld [vmem:[%s10622_s0 + $0x81] sm:$0xff] }
 0x1aa   :  { %v803_v38 = vpop.f32.mrb[106].mxu0  ;;  %6445 = vmatprep.mubr.msk.f32.mxu1 %vm7043_vm1, %v7042_v0 }
 0x1ab   :  { %10632 = vst [vmem:[#allocation9_spill] sm:$0xff] %v8461_v30  ;;  %v5736_v40 = vpop.f32.mrb[107].mxu0  ;;  %6171 = vmatmul.mubr.msk.f32.gmra.mrb[212].mxu0 %vm198_vm0, %v1800_v18  ;;  %v2777_v18 = vld [vmem:[%s10622_s0 + $0x80] sm:$0xff] }
 0x1ac   :  { %v1596_v45 = vpop.f32.mrb[106].mxu1  ;;  %6173 = vmatprep.mubr.msk.f32.mxu0 %vm7043_vm1, %v7042_v0 }
 0x1ad   :  { %v6011_v3 = vpop.f32.mrb[107].mxu1  ;;  %6446 = vmatmul.mubr.msk.f32.gmra.mrb[212].mxu1 %vm198_vm0, %v2776_v39  ;;  %v8475_v4 = vadd.f32 %v1596_v45, %v803_v38  ;;  %v1802_v38 = vld [vmem:[%s10622_s0 + $0x89] sm:$0xff] }
 0x1ae   :  { %v808_v11 = vpop.f32.mrb[108].mxu0  ;;  %6448 = vmatprep.mubr.msk.f32.mxu1 %vm7043_vm1, %v7042_v0 }
 0x1af   :  { %10633 = vst [vmem:[#allocation10_spill] sm:$0xff] %v8475_v4  ;;  %v5739_v26 = vpop.f32.mrb[109].mxu0  ;;  %6174 = vmatmul.mubr.msk.f32.gmra.mrb[214].mxu0 %vm198_vm0, %v1801_v63  ;;  %v2778_v63 = vld [vmem:[%s10622_s0 + $0x88] sm:$0xff] }
 0x1b0   :  { %v1601_v40 = vpop.f32.mrb[108].mxu1  ;;  %6176 = vmatprep.mubr.msk.f32.mxu0 %vm7043_vm1, %v7042_v0 }
 0x1b1   :  { %v8488_v39 = vadd.f32 %v1601_v40, %v808_v11  ;;  %v6014_v45 = vpop.f32.mrb[109].mxu1  ;;  %6449 = vmatmul.mubr.msk.f32.gmra.mrb[214].mxu1 %vm198_vm0, %v2777_v18  ;;  %v1803_v11 = vld [vmem:[%s10622_s0 + $0x91] sm:$0xff] }
 0x1b2   :  { %v813_v3 = vpop.f32.mrb[110].mxu0  ;;  %6451 = vmatprep.mubr.msk.f32.mxu1 %vm7043_vm1, %v7042_v0 }
 0x1b3   :  { %10634 = vst [vmem:[#allocation11_spill] sm:$0xff] %v8488_v39  ;;  %v5742_v26 = vpop.f32.mrb[111].mxu0  ;;  %6177 = vmatmul.mubr.msk.f32.gmra.mrb[216].mxu0 %vm198_vm0, %v1802_v38  ;;  %v2779_v38 = vld [vmem:[%s10622_s0 + $0x90] sm:$0xff] }
 0x1b4   :  { %v1606_v4 = vpop.f32.mrb[110].mxu1  ;;  %6179 = vmatprep.mubr.msk.f32.mxu0 %vm7043_vm1, %v7042_v0 }
 0x1b5   :  { %v8502_v18 = vadd.f32 %v1606_v4, %v813_v3  ;;  %v6017_v40 = vpop.f32.mrb[111].mxu1  ;;  %6452 = vmatmul.mubr.msk.f32.gmra.mrb[216].mxu1 %vm198_vm0, %v2778_v63  ;;  %v1804_v4 = vld [vmem:[%s10622_s0 + $0x99] sm:$0xff] }
 0x1b6   :  { %v818_v45 = vpop.f32.mrb[112].mxu0  ;;  %6454 = vmatprep.mubr.msk.f32.mxu1 %vm7043_vm1, %v7042_v0 }
 0x1b7   :  { %10635 = vst [vmem:[#allocation12_spill] sm:$0xff] %v8502_v18  ;;  %v5745_v26 = vpop.f32.mrb[113].mxu0  ;;  %6180 = vmatmul.mubr.msk.f32.gmra.mrb[218].mxu0 %vm198_vm0, %v1803_v11  ;;  %v2780_v11 = vld [vmem:[%s10622_s0 + $0x98] sm:$0xff] }
 0x1b8   :  { %v1611_v39 = vpop.f32.mrb[112].mxu1  ;;  %6182 = vmatprep.mubr.msk.f32.mxu0 %vm7043_vm1, %v7042_v0 }
 0x1b9   :  { %v8516_v3 = vadd.f32 %v1611_v39, %v818_v45  ;;  %v6020_v63 = vpop.f32.mrb[113].mxu1  ;;  %6455 = vmatmul.mubr.msk.f32.gmra.mrb[218].mxu1 %vm198_vm0, %v2779_v38  ;;  %v1805_v39 = vld [vmem:[%s10622_s0 + $0xa1] sm:$0xff] }
 0x1ba   :  { %v823_v40 = vpop.f32.mrb[114].mxu0  ;;  %6457 = vmatprep.mubr.msk.f32.mxu1 %vm7043_vm1, %v7042_v0 }
 0x1bb   :  { %10636 = vst [vmem:[#allocation13_spill] sm:$0xff] %v8516_v3  ;;  %v5748_v26 = vpop.f32.mrb[115].mxu0  ;;  %6183 = vmatmul.mubr.msk.f32.gmra.mrb[220].mxu0 %vm198_vm0, %v1804_v4  ;;  %v2781_v4 = vld [vmem:[%s10622_s0 + $0xa0] sm:$0xff] }
 0x1bc   :  { %v1616_v18 = vpop.f32.mrb[114].mxu1  ;;  %6185 = vmatprep.mubr.msk.f32.mxu0 %vm7043_vm1, %v7042_v0 }
 0x1bd   :  { %v8530_v45 = vadd.f32 %v1616_v18, %v823_v40  ;;  %v6023_v38 = vpop.f32.mrb[115].mxu1  ;;  %6458 = vmatmul.mubr.msk.f32.gmra.mrb[220].mxu1 %vm198_vm0, %v2780_v11  ;;  %v1806_v18 = vld [vmem:[%s10622_s0 + $0xa9] sm:$0xff] }
 0x1be   :  { %v828_v63 = vpop.f32.mrb[116].mxu0  ;;  %6460 = vmatprep.mubr.msk.f32.mxu1 %vm7043_vm1, %v7042_v0 }
 0x1bf   :  { %10637 = vst [vmem:[#allocation14_spill] sm:$0xff] %v8530_v45  ;;  %v5751_v26 = vpop.f32.mrb[117].mxu0  ;;  %6186 = vmatmul.mubr.msk.f32.gmra.mrb[222].mxu0 %vm198_vm0, %v1805_v39  ;;  %v2782_v39 = vld [vmem:[%s10622_s0 + $0xa8] sm:$0xff] }
 0x1c0   :  { %v1621_v3 = vpop.f32.mrb[116].mxu1  ;;  %6188 = vmatprep.mubr.msk.f32.mxu0 %vm7043_vm1, %v7042_v0 }
 0x1c1   :  { %v8544_v40 = vadd.f32 %v1621_v3, %v828_v63  ;;  %v6026_v11 = vpop.f32.mrb[117].mxu1  ;;  %6461 = vmatmul.mubr.msk.f32.gmra.mrb[222].mxu1 %vm198_vm0, %v2781_v4  ;;  %v1807_v3 = vld [vmem:[%s10622_s0 + $0xb1] sm:$0xff] }
 0x1c2   :  { %v833_v38 = vpop.f32.mrb[118].mxu0  ;;  %6463 = vmatprep.mubr.msk.f32.mxu1 %vm7043_vm1, %v7042_v0 }
 0x1c3   :  { %10638 = vst [vmem:[#allocation15_spill] sm:$0xff] %v8544_v40  ;;  %v5754_v26 = vpop.f32.mrb[119].mxu0  ;;  %6189 = vmatmul.mubr.msk.f32.gmra.mrb[224].mxu0 %vm198_vm0, %v1806_v18  ;;  %v2783_v18 = vld [vmem:[%s10622_s0 + $0xb0] sm:$0xff] }
 0x1c4   :  { %v1626_v45 = vpop.f32.mrb[118].mxu1  ;;  %6191 = vmatprep.mubr.msk.f32.mxu0 %vm7043_vm1, %v7042_v0 }
 0x1c5   :  { %v8558_v63 = vadd.f32 %v1626_v45, %v833_v38  ;;  %v6029_v4 = vpop.f32.mrb[119].mxu1  ;;  %6464 = vmatmul.mubr.msk.f32.gmra.mrb[224].mxu1 %vm198_vm0, %v2782_v39  ;;  %v1808_v45 = vld [vmem:[%s10622_s0 + $0xb9] sm:$0xff] }
 0x1c6   :  { %v838_v11 = vpop.f32.mrb[120].mxu0  ;;  %6466 = vmatprep.mubr.msk.f32.mxu1 %vm7043_vm1, %v7042_v0 }
 0x1c7   :  { %10639 = vst [vmem:[#allocation16_spill] sm:$0xff] %v8558_v63  ;;  %v5757_v26 = vpop.f32.mrb[121].mxu0  ;;  %6192 = vmatmul.mubr.msk.f32.gmra.mrb[226].mxu0 %vm198_vm0, %v1807_v3  ;;  %v2784_v3 = vld [vmem:[%s10622_s0 + $0xb8] sm:$0xff] }
 0x1c8   :  { %v1631_v40 = vpop.f32.mrb[120].mxu1  ;;  %6194 = vmatprep.mubr.msk.f32.mxu0 %vm7043_vm1, %v7042_v0 }
 0x1c9   :  { %v8572_v38 = vadd.f32 %v1631_v40, %v838_v11  ;;  %v6032_v39 = vpop.f32.mrb[121].mxu1  ;;  %6467 = vmatmul.mubr.msk.f32.gmra.mrb[226].mxu1 %vm198_vm0, %v2783_v18  ;;  %v1809_v40 = vld [vmem:[%s10622_s0 + $0xc1] sm:$0xff] }
 0x1ca   :  { %v843_v4 = vpop.f32.mrb[122].mxu0  ;;  %6469 = vmatprep.mubr.msk.f32.mxu1 %vm7043_vm1, %v7042_v0 }
 0x1cb   :  { %10640 = vst [vmem:[#allocation17_spill] sm:$0xff] %v8572_v38  ;;  %v5760_v26 = vpop.f32.mrb[123].mxu0  ;;  %6195 = vmatmul.mubr.msk.f32.gmra.mrb[228].mxu0 %vm198_vm0, %v1808_v45  ;;  %v2785_v45 = vld [vmem:[%s10622_s0 + $0xc0] sm:$0xff] }
 0x1cc   :  { %v1636_v63 = vpop.f32.mrb[122].mxu1  ;;  %6197 = vmatprep.mubr.msk.f32.mxu0 %vm7043_vm1, %v7042_v0 }
 0x1cd   :  { %v8586_v11 = vadd.f32 %v1636_v63, %v843_v4  ;;  %v6035_v18 = vpop.f32.mrb[123].mxu1  ;;  %6470 = vmatmul.mubr.msk.f32.gmra.mrb[228].mxu1 %vm198_vm0, %v2784_v3  ;;  %v1810_v63 = vld [vmem:[%s10622_s0 + $0xc9] sm:$0xff] }
 0x1ce   :  { %v848_v39 = vpop.f32.mrb[124].mxu0  ;;  %6472 = vmatprep.mubr.msk.f32.mxu1 %vm7043_vm1, %v7042_v0 }
 0x1cf   :  { %10641 = vst [vmem:[#allocation18_spill] sm:$0xff] %v8586_v11  ;;  %v5763_v26 = vpop.f32.mrb[125].mxu0  ;;  %6198 = vmatmul.mubr.msk.f32.gmra.mrb[230].mxu0 %vm198_vm0, %v1809_v40  ;;  %v2786_v40 = vld [vmem:[%s10622_s0 + $0xc8] sm:$0xff] }
 0x1d0   :  { %v1641_v38 = vpop.f32.mrb[124].mxu1  ;;  %6200 = vmatprep.mubr.msk.f32.mxu0 %vm7043_vm1, %v7042_v0 }
 0x1d1   :  { %v8600_v4 = vadd.f32 %v1641_v38, %v848_v39  ;;  %v6038_v3 = vpop.f32.mrb[125].mxu1  ;;  %6473 = vmatmul.mubr.msk.f32.gmra.mrb[230].mxu1 %vm198_vm0, %v2785_v45  ;;  %v1811_v38 = vld [vmem:[%s10622_s0 + $0xd1] sm:$0xff] }
 0x1d2   :  { %v853_v18 = vpop.f32.mrb[126].mxu0  ;;  %6475 = vmatprep.mubr.msk.f32.mxu1 %vm7043_vm1, %v7042_v0 }
 0x1d3   :  { %10642 = vst [vmem:[#allocation19_spill] sm:$0xff] %v8600_v4  ;;  %v5766_v26 = vpop.f32.mrb[127].mxu0  ;;  %6201 = vmatmul.mubr.msk.f32.gmra.mrb[232].mxu0 %vm198_vm0, %v1810_v63  ;;  %v2787_v63 = vld [vmem:[%s10622_s0 + $0xd0] sm:$0xff] }
 0x1d4   :  { %v1646_v11 = vpop.f32.mrb[126].mxu1  ;;  %6203 = vmatprep.mubr.msk.f32.mxu0 %vm7043_vm1, %v7042_v0 }
 0x1d5   :  { %v8614_v39 = vadd.f32 %v1646_v11, %v853_v18  ;;  %v6041_v45 = vpop.f32.mrb[127].mxu1  ;;  %6476 = vmatmul.mubr.msk.f32.gmra.mrb[232].mxu1 %vm198_vm0, %v2786_v40  ;;  %v1812_v11 = vld [vmem:[%s10622_s0 + $0xd9] sm:$0xff] }
 0x1d6   :  { %v858_v3 = vpop.f32.mrb[128].mxu0  ;;  %6478 = vmatprep.mubr.msk.f32.mxu1 %vm7043_vm1, %v7042_v0 }
 0x1d7   :  { %10643 = vst [vmem:[#allocation20_spill] sm:$0xff] %v8614_v39  ;;  %v5769_v26 = vpop.f32.mrb[129].mxu0  ;;  %6204 = vmatmul.mubr.msk.f32.gmra.mrb[234].mxu0 %vm198_vm0, %v1811_v38  ;;  %v2788_v38 = vld [vmem:[%s10622_s0 + $0xd8] sm:$0xff] }
 0x1d8   :  { %v1651_v4 = vpop.f32.mrb[128].mxu1  ;;  %6206 = vmatprep.mubr.msk.f32.mxu0 %vm7043_vm1, %v7042_v0 }
 0x1d9   :  { %v8628_v18 = vadd.f32 %v1651_v4, %v858_v3  ;;  %v6044_v40 = vpop.f32.mrb[129].mxu1  ;;  %6479 = vmatmul.mubr.msk.f32.gmra.mrb[234].mxu1 %vm198_vm0, %v2787_v63  ;;  %v1813_v4 = vld [vmem:[%s10622_s0 + $0xe1] sm:$0xff] }
 0x1da   :  { %v863_v45 = vpop.f32.mrb[130].mxu0  ;;  %6481 = vmatprep.mubr.msk.f32.mxu1 %vm7043_vm1, %v7042_v0 }
 0x1db   :  { %10644 = vst [vmem:[#allocation21_spill] sm:$0xff] %v8628_v18  ;;  %v5772_v26 = vpop.f32.mrb[131].mxu0  ;;  %6207 = vmatmul.mubr.msk.f32.gmra.mrb[236].mxu0 %vm198_vm0, %v1812_v11  ;;  %v2789_v11 = vld [vmem:[%s10622_s0 + $0xe0] sm:$0xff] }
 0x1dc   :  { %v1656_v39 = vpop.f32.mrb[130].mxu1  ;;  %6209 = vmatprep.mubr.msk.f32.mxu0 %vm7043_vm1, %v7042_v0 }
 0x1dd   :  { %v8642_v3 = vadd.f32 %v1656_v39, %v863_v45  ;;  %v6047_v63 = vpop.f32.mrb[131].mxu1  ;;  %6482 = vmatmul.mubr.msk.f32.gmra.mrb[236].mxu1 %vm198_vm0, %v2788_v38  ;;  %v1814_v39 = vld [vmem:[%s10622_s0 + $0xe9] sm:$0xff] }
 0x1de   :  { %v868_v40 = vpop.f32.mrb[132].mxu0  ;;  %6484 = vmatprep.mubr.msk.f32.mxu1 %vm7043_vm1, %v7042_v0 }
 0x1df   :  { %10645 = vst [vmem:[#allocation22_spill] sm:$0xff] %v8642_v3  ;;  %v5775_v26 = vpop.f32.mrb[133].mxu0  ;;  %6210 = vmatmul.mubr.msk.f32.gmra.mrb[238].mxu0 %vm198_vm0, %v1813_v4  ;;  %v2790_v4 = vld [vmem:[%s10622_s0 + $0xe8] sm:$0xff] }
 0x1e0   :  { %v1661_v18 = vpop.f32.mrb[132].mxu1  ;;  %6212 = vmatprep.mubr.msk.f32.mxu0 %vm7043_vm1, %v7042_v0 }
 0x1e1   :  { %v8656_v45 = vadd.f32 %v1661_v18, %v868_v40  ;;  %v6050_v38 = vpop.f32.mrb[133].mxu1  ;;  %6485 = vmatmul.mubr.msk.f32.gmra.mrb[238].mxu1 %vm198_vm0, %v2789_v11  ;;  %v1815_v18 = vld [vmem:[%s10622_s0 + $0xf1] sm:$0xff] }
 0x1e2   :  { %v873_v63 = vpop.f32.mrb[134].mxu0  ;;  %6487 = vmatprep.mubr.msk.f32.mxu1 %vm7043_vm1, %v7042_v0 }
 0x1e3   :  { %10646 = vst [vmem:[#allocation23_spill] sm:$0xff] %v8656_v45  ;;  %v5778_v26 = vpop.f32.mrb[135].mxu0  ;;  %6213 = vmatmul.mubr.msk.f32.gmra.mrb[240].mxu0 %vm198_vm0, %v1814_v39  ;;  %v2791_v39 = vld [vmem:[%s10622_s0 + $0xf0] sm:$0xff] }
 0x1e4   :  { %v1666_v3 = vpop.f32.mrb[134].mxu1  ;;  %6215 = vmatprep.mubr.msk.f32.mxu0 %vm7043_vm1, %v7042_v0 }
 0x1e5   :  { %v8670_v40 = vadd.f32 %v1666_v3, %v873_v63  ;;  %v6053_v11 = vpop.f32.mrb[135].mxu1  ;;  %6488 = vmatmul.mubr.msk.f32.gmra.mrb[240].mxu1 %vm198_vm0, %v2790_v4  ;;  %v1816_v3 = vld [vmem:[%s10622_s0 + $0xf9] sm:$0xff] }
 0x1e6   :  { %v878_v38 = vpop.f32.mrb[136].mxu0  ;;  %6490 = vmatprep.mubr.msk.f32.mxu1 %vm7043_vm1, %v7042_v0 }
 0x1e7   :  { %10647 = vst [vmem:[#allocation24_spill] sm:$0xff] %v8670_v40  ;;  %v5781_v26 = vpop.f32.mrb[137].mxu0  ;;  %6216 = vmatmul.mubr.msk.f32.gmra.mrb[242].mxu0 %vm198_vm0, %v1815_v18  ;;  %v2792_v18 = vld [vmem:[%s10622_s0 + $0xf8] sm:$0xff] }
 0x1e8   :  { %v1671_v45 = vpop.f32.mrb[136].mxu1  ;;  %6218 = vmatprep.mubr.msk.f32.mxu0 %vm7043_vm1, %v7042_v0 }
 0x1e9   :  { %v8684_v63 = vadd.f32 %v1671_v45, %v878_v38  ;;  %v6056_v4 = vpop.f32.mrb[137].mxu1  ;;  %6491 = vmatmul.mubr.msk.f32.gmra.mrb[242].mxu1 %vm198_vm0, %v2791_v39  ;;  %v1817_v45 = vld [vmem:[%s10622_s0 + $0x101] sm:$0xff] }
 0x1ea   :  { %v883_v11 = vpop.f32.mrb[138].mxu0  ;;  %6493 = vmatprep.mubr.msk.f32.mxu1 %vm7043_vm1, %v7042_v0 }
 0x1eb   :  { %10648 = vst [vmem:[#allocation25_spill] sm:$0xff] %v8684_v63  ;;  %v5784_v26 = vpop.f32.mrb[139].mxu0  ;;  %6219 = vmatmul.mubr.msk.f32.gmra.mrb[244].mxu0 %vm198_vm0, %v1816_v3  ;;  %v2793_v3 = vld [vmem:[%s10622_s0 + $0x100] sm:$0xff] }
 0x1ec   :  { %v1676_v40 = vpop.f32.mrb[138].mxu1  ;;  %6221 = vmatprep.mubr.msk.f32.mxu0 %vm7043_vm1, %v7042_v0 }
 0x1ed   :  { %v8698_v38 = vadd.f32 %v1676_v40, %v883_v11  ;;  %v6059_v39 = vpop.f32.mrb[139].mxu1  ;;  %6494 = vmatmul.mubr.msk.f32.gmra.mrb[244].mxu1 %vm198_vm0, %v2792_v18  ;;  %v1818_v40 = vld [vmem:[%s10622_s0 + $0x109] sm:$0xff] }
 0x1ee   :  { %v888_v4 = vpop.f32.mrb[140].mxu0  ;;  %6496 = vmatprep.mubr.msk.f32.mxu1 %vm7043_vm1, %v7042_v0 }
 0x1ef   :  { %10649 = vst [vmem:[#allocation26_spill] sm:$0xff] %v8698_v38  ;;  %v5787_v26 = vpop.f32.mrb[141].mxu0  ;;  %6222 = vmatmul.mubr.msk.f32.gmra.mrb[246].mxu0 %vm198_vm0, %v1817_v45  ;;  %v2794_v45 = vld [vmem:[%s10622_s0 + $0x108] sm:$0xff] }
 0x1f0   :  { %v1681_v63 = vpop.f32.mrb[140].mxu1  ;;  %6224 = vmatprep.mubr.msk.f32.mxu0 %vm7043_vm1, %v7042_v0 }
 0x1f1   :  { %v8712_v11 = vadd.f32 %v1681_v63, %v888_v4  ;;  %v6062_v18 = vpop.f32.mrb[141].mxu1  ;;  %6497 = vmatmul.mubr.msk.f32.gmra.mrb[246].mxu1 %vm198_vm0, %v2793_v3  ;;  %v1819_v63 = vld [vmem:[%s10622_s0 + $0x111] sm:$0xff] }
 0x1f2   :  { %v893_v39 = vpop.f32.mrb[142].mxu0  ;;  %6499 = vmatprep.mubr.msk.f32.mxu1 %vm7043_vm1, %v7042_v0 }
 0x1f3   :  { %10650 = vst [vmem:[#allocation27_spill] sm:$0xff] %v8712_v11  ;;  %v5790_v26 = vpop.f32.mrb[143].mxu0  ;;  %6225 = vmatmul.mubr.msk.f32.gmra.mrb[248].mxu0 %vm198_vm0, %v1818_v40  ;;  %v2795_v40 = vld [vmem:[%s10622_s0 + $0x110] sm:$0xff] }
 0x1f4   :  { %v1686_v38 = vpop.f32.mrb[142].mxu1  ;;  %6227 = vmatprep.mubr.msk.f32.mxu0 %vm7043_vm1, %v7042_v0 }
 0x1f5   :  { %v8726_v4 = vadd.f32 %v1686_v38, %v893_v39  ;;  %v6065_v3 = vpop.f32.mrb[143].mxu1  ;;  %6500 = vmatmul.mubr.msk.f32.gmra.mrb[248].mxu1 %vm198_vm0, %v2794_v45  ;;  %v1820_v38 = vld [vmem:[%s10622_s0 + $0x119] sm:$0xff] }
 0x1f6   :  { %v898_v18 = vpop.f32.mrb[144].mxu0  ;;  %6502 = vmatprep.mubr.msk.f32.mxu1 %vm7043_vm1, %v7042_v0 }
 0x1f7   :  { %10651 = vst [vmem:[#allocation28_spill] sm:$0xff] %v8726_v4  ;;  %v5793_v26 = vpop.f32.mrb[145].mxu0  ;;  %6228 = vmatmul.mubr.msk.f32.gmra.mrb[250].mxu0 %vm198_vm0, %v1819_v63  ;;  %v2796_v63 = vld [vmem:[%s10622_s0 + $0x118] sm:$0xff] }
 0x1f8   :  { %v1691_v11 = vpop.f32.mrb[144].mxu1  ;;  %6230 = vmatprep.mubr.msk.f32.mxu0 %vm7043_vm1, %v7042_v0 }
 0x1f9   :  { %v8740_v39 = vadd.f32 %v1691_v11, %v898_v18  ;;  %v6068_v45 = vpop.f32.mrb[145].mxu1  ;;  %6503 = vmatmul.mubr.msk.f32.gmra.mrb[250].mxu1 %vm198_vm0, %v2795_v40  ;;  %v1821_v11 = vld [vmem:[%s10622_s0 + $0x121] sm:$0xff] }
 0x1fa   :  { %v903_v3 = vpop.f32.mrb[146].mxu0  ;;  %6505 = vmatprep.mubr.msk.f32.mxu1 %vm7043_vm1, %v7042_v0 }
 0x1fb   :  { %10652 = vst [vmem:[#allocation29_spill] sm:$0xff] %v8740_v39  ;;  %v5796_v26 = vpop.f32.mrb[147].mxu0  ;;  %6231 = vmatmul.mubr.msk.f32.gmra.mrb[252].mxu0 %vm198_vm0, %v1820_v38  ;;  %v2797_v38 = vld [vmem:[%s10622_s0 + $0x120] sm:$0xff] }
 0x1fc   :  { %v1696_v4 = vpop.f32.mrb[146].mxu1  ;;  %6233 = vmatprep.mubr.msk.f32.mxu0 %vm7043_vm1, %v7042_v0 }
 0x1fd   :  { %v8754_v18 = vadd.f32 %v1696_v4, %v903_v3  ;;  %v6071_v40 = vpop.f32.mrb[147].mxu1  ;;  %6506 = vmatmul.mubr.msk.f32.gmra.mrb[252].mxu1 %vm198_vm0, %v2796_v63  ;;  %v1822_v4 = vld [vmem:[%s10622_s0 + $0x129] sm:$0xff] }
 0x1fe   :  { %v908_v45 = vpop.f32.mrb[148].mxu0  ;;  %6508 = vmatprep.mubr.msk.f32.mxu1 %vm7043_vm1, %v7042_v0 }
 0x1ff   :  { %10653 = vst [vmem:[#allocation30_spill] sm:$0xff] %v8754_v18  ;;  %v5799_v26 = vpop.f32.mrb[149].mxu0  ;;  %6234 = vmatmul.mubr.msk.f32.gmra.mrb[254].mxu0 %vm198_vm0, %v1821_v11  ;;  %v2798_v11 = vld [vmem:[%s10622_s0 + $0x128] sm:$0xff] }
 0x200   :  { %v1701_v39 = vpop.f32.mrb[148].mxu1  ;;  %6236 = vmatprep.mubr.msk.f32.mxu0 %vm7043_vm1, %v7042_v0 }
 0x201   :  { %v8768_v3 = vadd.f32 %v1701_v39, %v908_v45  ;;  %v6074_v63 = vpop.f32.mrb[149].mxu1  ;;  %6509 = vmatmul.mubr.msk.f32.gmra.mrb[254].mxu1 %vm198_vm0, %v2797_v38  ;;  %v1823_v39 = vld [vmem:[%s10622_s0 + $0x131] sm:$0xff] }
 0x202   :  { %v913_v40 = vpop.f32.mrb[150].mxu0  ;;  %6511 = vmatprep.mubr.msk.f32.mxu1 %vm7043_vm1, %v7042_v0 }
 0x203   :  { %10654 = vst [vmem:[#allocation31_spill] sm:$0xff] %v8768_v3  ;;  %v5802_v26 = vpop.f32.mrb[151].mxu0  ;;  %6237 = vmatmul.mubr.msk.f32.gmra.mrb[0].mxu0 %vm198_vm0, %v1822_v4  ;;  %v2799_v4 = vld [vmem:[%s10622_s0 + $0x130] sm:$0xff] }
 0x204   :  { %v1706_v18 = vpop.f32.mrb[150].mxu1  ;;  %6239 = vmatprep.mubr.msk.f32.mxu0 %vm7043_vm1, %v7042_v0 }
 0x205   :  { %v8782_v45 = vadd.f32 %v1706_v18, %v913_v40  ;;  %v6077_v38 = vpop.f32.mrb[151].mxu1  ;;  %6512 = vmatmul.mubr.msk.f32.gmra.mrb[0].mxu1 %vm198_vm0, %v2798_v11  ;;  %v1824_v18 = vld [vmem:[%s10622_s0 + $0x139] sm:$0xff] }
 0x206   :  { %v918_v63 = vpop.f32.mrb[152].mxu0  ;;  %6514 = vmatprep.mubr.msk.f32.mxu1 %vm7043_vm1, %v7042_v0 }
 0x207   :  { %10655 = vst [vmem:[#allocation32_spill] sm:$0xff] %v8782_v45  ;;  %v5805_v26 = vpop.f32.mrb[153].mxu0  ;;  %6240 = vmatmul.mubr.msk.f32.gmra.mrb[2].mxu0 %vm198_vm0, %v1823_v39  ;;  %v2800_v39 = vld [vmem:[%s10622_s0 + $0x138] sm:$0xff] }
 0x208   :  { %v1711_v3 = vpop.f32.mrb[152].mxu1  ;;  %6242 = vmatprep.mubr.msk.f32.mxu0 %vm7043_vm1, %v7042_v0 }
 0x209   :  { %v8796_v40 = vadd.f32 %v1711_v3, %v918_v63  ;;  %v6080_v11 = vpop.f32.mrb[153].mxu1  ;;  %6515 = vmatmul.mubr.msk.f32.gmra.mrb[2].mxu1 %vm198_vm0, %v2799_v4  ;;  %v1825_v3 = vld [vmem:[%s10622_s0 + $0x141] sm:$0xff] }
 0x20a   :  { %v923_v38 = vpop.f32.mrb[154].mxu0  ;;  %6517 = vmatprep.mubr.msk.f32.mxu1 %vm7043_vm1, %v7042_v0 }
 0x20b   :  { %10656 = vst [vmem:[#allocation33_spill] sm:$0xff] %v8796_v40  ;;  %v5808_v26 = vpop.f32.mrb[155].mxu0  ;;  %6243 = vmatmul.mubr.msk.f32.gmra.mrb[4].mxu0 %vm198_vm0, %v1824_v18  ;;  %v2801_v18 = vld [vmem:[%s10622_s0 + $0x140] sm:$0xff] }
 0x20c   :  { %v1716_v45 = vpop.f32.mrb[154].mxu1  ;;  %6245 = vmatprep.mubr.msk.f32.mxu0 %vm7043_vm1, %v7042_v0 }
 0x20d   :  { %v8810_v63 = vadd.f32 %v1716_v45, %v923_v38  ;;  %v6083_v4 = vpop.f32.mrb[155].mxu1  ;;  %6518 = vmatmul.mubr.msk.f32.gmra.mrb[4].mxu1 %vm198_vm0, %v2800_v39  ;;  %v1826_v45 = vld [vmem:[%s10622_s0 + $0x149] sm:$0xff] }
 0x20e   :  { %v928_v11 = vpop.f32.mrb[156].mxu0  ;;  %6520 = vmatprep.mubr.msk.f32.mxu1 %vm7043_vm1, %v7042_v0 }
 0x20f   :  { %10657 = vst [vmem:[#allocation34_spill] sm:$0xff] %v8810_v63  ;;  %v5811_v26 = vpop.f32.mrb[157].mxu0  ;;  %6246 = vmatmul.mubr.msk.f32.gmra.mrb[6].mxu0 %vm198_vm0, %v1825_v3  ;;  %v2802_v3 = vld [vmem:[%s10622_s0 + $0x148] sm:$0xff] }
 0x210   :  { %v1721_v40 = vpop.f32.mrb[156].mxu1  ;;  %6248 = vmatprep.mubr.msk.f32.mxu0 %vm7043_vm1, %v7042_v0 }
 0x211   :  { %v8824_v38 = vadd.f32 %v1721_v40, %v928_v11  ;;  %v6086_v39 = vpop.f32.mrb[157].mxu1  ;;  %6521 = vmatmul.mubr.msk.f32.gmra.mrb[6].mxu1 %vm198_vm0, %v2801_v18  ;;  %v1827_v40 = vld [vmem:[%s10622_s0 + $0x151] sm:$0xff] }
 0x212   :  { %v933_v4 = vpop.f32.mrb[158].mxu0  ;;  %6523 = vmatprep.mubr.msk.f32.mxu1 %vm7043_vm1, %v7042_v0 }
 0x213   :  { %10658 = vst [vmem:[#allocation35_spill] sm:$0xff] %v8824_v38  ;;  %v5814_v26 = vpop.f32.mrb[159].mxu0  ;;  %6249 = vmatmul.mubr.msk.f32.gmra.mrb[8].mxu0 %vm198_vm0, %v1826_v45  ;;  %v2803_v45 = vld [vmem:[%s10622_s0 + $0x150] sm:$0xff] }
 0x214   :  { %v1726_v63 = vpop.f32.mrb[158].mxu1  ;;  %6251 = vmatprep.mubr.msk.f32.mxu0 %vm7043_vm1, %v7042_v0 }
 0x215   :  { %v8838_v11 = vadd.f32 %v1726_v63, %v933_v4  ;;  %v6089_v18 = vpop.f32.mrb[159].mxu1  ;;  %6524 = vmatmul.mubr.msk.f32.gmra.mrb[8].mxu1 %vm198_vm0, %v2802_v3  ;;  %v1828_v63 = vld [vmem:[%s10622_s0 + $0x159] sm:$0xff] }
 0x216   :  { %v938_v39 = vpop.f32.mrb[160].mxu0  ;;  %6526 = vmatprep.mubr.msk.f32.mxu1 %vm7043_vm1, %v7042_v0 }
 0x217   :  { %10659 = vst [vmem:[#allocation36_spill] sm:$0xff] %v8838_v11  ;;  %v5817_v26 = vpop.f32.mrb[161].mxu0  ;;  %6252 = vmatmul.mubr.msk.f32.gmra.mrb[10].mxu0 %vm198_vm0, %v1827_v40  ;;  %v2804_v40 = vld [vmem:[%s10622_s0 + $0x158] sm:$0xff] }
 0x218   :  { %v1731_v38 = vpop.f32.mrb[160].mxu1  ;;  %6254 = vmatprep.mubr.msk.f32.mxu0 %vm7043_vm1, %v7042_v0 }
 0x219   :  { %v8852_v4 = vadd.f32 %v1731_v38, %v938_v39  ;;  %v6092_v3 = vpop.f32.mrb[161].mxu1  ;;  %6527 = vmatmul.mubr.msk.f32.gmra.mrb[10].mxu1 %vm198_vm0, %v2803_v45  ;;  %v1829_v38 = vld [vmem:[%s10622_s0 + $0x161] sm:$0xff] }
 0x21a   :  { %v943_v18 = vpop.f32.mrb[162].mxu0  ;;  %6529 = vmatprep.mubr.msk.f32.mxu1 %vm7043_vm1, %v7042_v0 }
 0x21b   :  { %10660 = vst [vmem:[#allocation37_spill] sm:$0xff] %v8852_v4  ;;  %v5820_v26 = vpop.f32.mrb[163].mxu0  ;;  %6255 = vmatmul.mubr.msk.f32.gmra.mrb[12].mxu0 %vm198_vm0, %v1828_v63  ;;  %v2805_v63 = vld [vmem:[%s10622_s0 + $0x160] sm:$0xff] }
 0x21c   :  { %v1736_v11 = vpop.f32.mrb[162].mxu1  ;;  %6257 = vmatprep.mubr.msk.f32.mxu0 %vm7043_vm1, %v7042_v0 }
 0x21d   :  { %v8866_v39 = vadd.f32 %v1736_v11, %v943_v18  ;;  %v6095_v45 = vpop.f32.mrb[163].mxu1  ;;  %6530 = vmatmul.mubr.msk.f32.gmra.mrb[12].mxu1 %vm198_vm0, %v2804_v40  ;;  %v1830_v11 = vld [vmem:[%s10622_s0 + $0x169] sm:$0xff] }
 0x21e   :  { %v948_v3 = vpop.f32.mrb[164].mxu0  ;;  %6532 = vmatprep.mubr.msk.f32.mxu1 %vm7043_vm1, %v7042_v0 }
 0x21f   :  { %10661 = vst [vmem:[#allocation38_spill] sm:$0xff] %v8866_v39  ;;  %v5823_v26 = vpop.f32.mrb[165].mxu0  ;;  %6258 = vmatmul.mubr.msk.f32.gmra.mrb[14].mxu0 %vm198_vm0, %v1829_v38  ;;  %v2806_v38 = vld [vmem:[%s10622_s0 + $0x168] sm:$0xff] }
 0x220   :  { %v1741_v4 = vpop.f32.mrb[164].mxu1  ;;  %6260 = vmatprep.mubr.msk.f32.mxu0 %vm7043_vm1, %v7042_v0 }
 0x221   :  { %v8880_v18 = vadd.f32 %v1741_v4, %v948_v3  ;;  %v6098_v40 = vpop.f32.mrb[165].mxu1  ;;  %6533 = vmatmul.mubr.msk.f32.gmra.mrb[14].mxu1 %vm198_vm0, %v2805_v63  ;;  %v1831_v4 = vld [vmem:[%s10622_s0 + $0x171] sm:$0xff] }
 0x222   :  { %v953_v45 = vpop.f32.mrb[166].mxu0  ;;  %6535 = vmatprep.mubr.msk.f32.mxu1 %vm7043_vm1, %v7042_v0 }
 0x223   :  { %10662 = vst [vmem:[#allocation39_spill] sm:$0xff] %v8880_v18  ;;  %v5826_v26 = vpop.f32.mrb[167].mxu0  ;;  %6261 = vmatmul.mubr.msk.f32.gmra.mrb[16].mxu0 %vm198_vm0, %v1830_v11  ;;  %v2807_v11 = vld [vmem:[%s10622_s0 + $0x170] sm:$0xff] }
 0x224   :  { %v1746_v39 = vpop.f32.mrb[166].mxu1  ;;  %6263 = vmatprep.mubr.msk.f32.mxu0 %vm7043_vm1, %v7042_v0 }
 0x225   :  { %v8894_v3 = vadd.f32 %v1746_v39, %v953_v45  ;;  %v6101_v63 = vpop.f32.mrb[167].mxu1  ;;  %6536 = vmatmul.mubr.msk.f32.gmra.mrb[16].mxu1 %vm198_vm0, %v2806_v38  ;;  %v1832_v39 = vld [vmem:[%s10622_s0 + $0x179] sm:$0xff] }
 0x226   :  { %v958_v40 = vpop.f32.mrb[168].mxu0  ;;  %6538 = vmatprep.mubr.msk.f32.mxu1 %vm7043_vm1, %v7042_v0 }
 0x227   :  { %10663 = vst [vmem:[#allocation40_spill] sm:$0xff] %v8894_v3  ;;  %v5829_v26 = vpop.f32.mrb[169].mxu0  ;;  %6264 = vmatmul.mubr.msk.f32.gmra.mrb[18].mxu0 %vm198_vm0, %v1831_v4  ;;  %v2808_v4 = vld [vmem:[%s10622_s0 + $0x178] sm:$0xff] }
 0x228   :  { %v1751_v18 = vpop.f32.mrb[168].mxu1  ;;  %6266 = vmatprep.mubr.msk.f32.mxu0 %vm7043_vm1, %v7042_v0 }
 0x229   :  { %v8908_v45 = vadd.f32 %v1751_v18, %v958_v40  ;;  %v6104_v38 = vpop.f32.mrb[169].mxu1  ;;  %6539 = vmatmul.mubr.msk.f32.gmra.mrb[18].mxu1 %vm198_vm0, %v2807_v11  ;;  %v1833_v18 = vld [vmem:[%s10622_s0 + $0x181] sm:$0xff] }
 0x22a   :  { %v963_v63 = vpop.f32.mrb[170].mxu0  ;;  %6541 = vmatprep.mubr.msk.f32.mxu1 %vm7043_vm1, %v7042_v0 }
 0x22b   :  { %10664 = vst [vmem:[#allocation41_spill] sm:$0xff] %v8908_v45  ;;  %v5832_v26 = vpop.f32.mrb[171].mxu0  ;;  %6267 = vmatmul.mubr.msk.f32.gmra.mrb[20].mxu0 %vm198_vm0, %v1832_v39  ;;  %v2809_v39 = vld [vmem:[%s10622_s0 + $0x180] sm:$0xff] }
 0x22c   :  { %v1756_v3 = vpop.f32.mrb[170].mxu1  ;;  %6269 = vmatprep.mubr.msk.f32.mxu0 %vm7043_vm1, %v7042_v0 }
 0x22d   :  { %v8922_v40 = vadd.f32 %v1756_v3, %v963_v63  ;;  %v6107_v11 = vpop.f32.mrb[171].mxu1  ;;  %6542 = vmatmul.mubr.msk.f32.gmra.mrb[20].mxu1 %vm198_vm0, %v2808_v4  ;;  %v1834_v3 = vld [vmem:[%s10622_s0 + $0x189] sm:$0xff] }
 0x22e   :  { %v968_v38 = vpop.f32.mrb[172].mxu0  ;;  %6544 = vmatprep.mubr.msk.f32.mxu1 %vm7043_vm1, %v7042_v0 }
 0x22f   :  { %10665 = vst [vmem:[#allocation42_spill] sm:$0xff] %v8922_v40  ;;  %v5835_v26 = vpop.f32.mrb[173].mxu0  ;;  %6270 = vmatmul.mubr.msk.f32.gmra.mrb[22].mxu0 %vm198_vm0, %v1833_v18  ;;  %v2810_v18 = vld [vmem:[%s10622_s0 + $0x188] sm:$0xff] }
 0x230   :  { %v1761_v45 = vpop.f32.mrb[172].mxu1  ;;  %6272 = vmatprep.mubr.msk.f32.mxu0 %vm7043_vm1, %v7042_v0 }
 0x231   :  { %v8936_v63 = vadd.f32 %v1761_v45, %v968_v38  ;;  %v6110_v4 = vpop.f32.mrb[173].mxu1  ;;  %6545 = vmatmul.mubr.msk.f32.gmra.mrb[22].mxu1 %vm198_vm0, %v2809_v39  ;;  %v1835_v45 = vld [vmem:[%s10622_s0 + $0x191] sm:$0xff] }
 0x232   :  { %v973_v11 = vpop.f32.mrb[174].mxu0  ;;  %6547 = vmatprep.mubr.msk.f32.mxu1 %vm7043_vm1, %v7042_v0 }
 0x233   :  { %10666 = vst [vmem:[#allocation43_spill] sm:$0xff] %v8936_v63  ;;  %v5838_v26 = vpop.f32.mrb[175].mxu0  ;;  %6273 = vmatmul.mubr.msk.f32.gmra.mrb[24].mxu0 %vm198_vm0, %v1834_v3  ;;  %v2811_v3 = vld [vmem:[%s10622_s0 + $0x190] sm:$0xff] }
 0x234   :  { %v1766_v40 = vpop.f32.mrb[174].mxu1  ;;  %6275 = vmatprep.mubr.msk.f32.mxu0 %vm7043_vm1, %v7042_v0 }
 0x235   :  { %v8950_v38 = vadd.f32 %v1766_v40, %v973_v11  ;;  %v6113_v39 = vpop.f32.mrb[175].mxu1  ;;  %6548 = vmatmul.mubr.msk.f32.gmra.mrb[24].mxu1 %vm198_vm0, %v2810_v18  ;;  %v1836_v40 = vld [vmem:[%s10622_s0 + $0x199] sm:$0xff] }
 0x236   :  { %v978_v4 = vpop.f32.mrb[176].mxu0  ;;  %6550 = vmatprep.mubr.msk.f32.mxu1 %vm7043_vm1, %v7042_v0 }
 0x237   :  { %10667 = vst [vmem:[#allocation44_spill] sm:$0xff] %v8950_v38  ;;  %v5841_v26 = vpop.f32.mrb[177].mxu0  ;;  %6276 = vmatmul.mubr.msk.f32.gmra.mrb[26].mxu0 %vm198_vm0, %v1835_v45  ;;  %v2812_v45 = vld [vmem:[%s10622_s0 + $0x198] sm:$0xff] }
 0x238   :  { %v1771_v63 = vpop.f32.mrb[176].mxu1  ;;  %6278 = vmatprep.mubr.msk.f32.mxu0 %vm7043_vm1, %v7042_v0 }
 0x239   :  { %v8964_v11 = vadd.f32 %v1771_v63, %v978_v4  ;;  %v6116_v18 = vpop.f32.mrb[177].mxu1  ;;  %6551 = vmatmul.mubr.msk.f32.gmra.mrb[26].mxu1 %vm198_vm0, %v2811_v3  ;;  %v1837_v63 = vld [vmem:[%s10622_s0 + $0x1a1] sm:$0xff] }
 0x23a   :  { %v983_v39 = vpop.f32.mrb[178].mxu0  ;;  %6553 = vmatprep.mubr.msk.f32.mxu1 %vm7043_vm1, %v7042_v0 }
 0x23b   :  { %10668 = vst [vmem:[#allocation45_spill] sm:$0xff] %v8964_v11  ;;  %v5844_v26 = vpop.f32.mrb[179].mxu0  ;;  %6279 = vmatmul.mubr.msk.f32.gmra.mrb[28].mxu0 %vm198_vm0, %v1836_v40  ;;  %v2813_v40 = vld [vmem:[%s10622_s0 + $0x1a0] sm:$0xff] }
 0x23c   :  { %v1776_v38 = vpop.f32.mrb[178].mxu1  ;;  %6281 = vmatprep.mubr.msk.f32.mxu0 %vm7043_vm1, %v7042_v0 }
 0x23d   :  { %v8978_v4 = vadd.f32 %v1776_v38, %v983_v39  ;;  %v6119_v3 = vpop.f32.mrb[179].mxu1  ;;  %6554 = vmatmul.mubr.msk.f32.gmra.mrb[28].mxu1 %vm198_vm0, %v2812_v45  ;;  %v1838_v38 = vld [vmem:[%s10622_s0 + $0x1a9] sm:$0xff] }
 0x23e   :  { %v988_v18 = vpop.f32.mrb[180].mxu0  ;;  %6556 = vmatprep.mubr.msk.f32.mxu1 %vm7043_vm1, %v7042_v0 }
 0x23f   :  { %10669 = vst [vmem:[#allocation46_spill] sm:$0xff] %v8978_v4  ;;  %v5847_v26 = vpop.f32.mrb[181].mxu0  ;;  %6282 = vmatmul.mubr.msk.f32.gmra.mrb[30].mxu0 %vm198_vm0, %v1837_v63  ;;  %v2814_v63 = vld [vmem:[%s10622_s0 + $0x1a8] sm:$0xff] }
 0x240   :  { %v1781_v11 = vpop.f32.mrb[180].mxu1  ;;  %6284 = vmatprep.mubr.msk.f32.mxu0 %vm7043_vm1, %v7042_v0 }
 0x241   :  { %v8992_v39 = vadd.f32 %v1781_v11, %v988_v18  ;;  %v6122_v45 = vpop.f32.mrb[181].mxu1  ;;  %6557 = vmatmul.mubr.msk.f32.gmra.mrb[30].mxu1 %vm198_vm0, %v2813_v40  ;;  %v9005_v11 = vld [vmem:[%s10623_s2] ss:$0 sm:$0xff]  ;;  %v1839_v18 = vld [vmem:[%s10622_s0 + $0x1b1] sm:$0xff] }
 0x242   :  { %v2216_v3 = vpop.f32.mrb[182].mxu0  ;;  %6559 = vmatprep.mubr.msk.f32.mxu1 %vm7043_vm1, %v7042_v0 }
 0x243   :  { %10670 = vst [vmem:[#allocation47_spill] sm:$0xff] %v8992_v39  ;;  %v2670_v26 = vadd.f32 %v2216_v3, %v7733_v55  ;;  %v6127_v4 = vpop.f32.mrb[183].mxu0  ;;  %6285 = vmatmul.mubr.msk.f32.gmra.mrb[32].mxu0 %vm198_vm0, %v1838_v38 }
 0x244   :  { %v3192_v30 = vpop.f32.mrb[182].mxu1  ;;  %6287 = vmatprep.mubr.msk.f32.mxu0 %vm7043_vm1, %v7042_v0  ;;  %v2815_v4 = vld [vmem:[%s10622_s0 + $0x1b0] sm:$0xff] }
 0x245   :  { %v3646_v40 = vadd.f32 %v3192_v30, %v2670_v26  ;;  %v6402_v45 = vpop.f32.mrb[183].mxu1  ;;  %6560 = vmatmul.mubr.msk.f32.gmra.mrb[32].mxu1 %vm198_vm0, %v2814_v63  ;;  %v1840_v63 = vld [vmem:[%s10622_s0 + $0x1b9] sm:$0xff] }
 0x246   :  { %v2221_v55 = vpop.f32.mrb[184].mxu0  ;;  %6562 = vmatprep.mubr.msk.f32.mxu1 %vm7043_vm1, %v7042_v0 }
 0x247   :  { %v9019_v38 = vadd.f32 %v9005_v11, %v3646_v40  ;;  %v2671_v3 = vadd.f32 %v2221_v55, %v7747_v62  ;;  %v6130_v39 = vpop.f32.mrb[185].mxu0  ;;  %6288 = vmatmul.mubr.msk.f32.gmra.mrb[34].mxu0 %vm198_vm0, %v1839_v18  ;;  %v2816_v62 = vld [vmem:[%s10622_s0 + $0x1b8] sm:$0xff] }
 0x248   :  { %v3197_v30 = vpop.f32.mrb[184].mxu1  ;;  %6290 = vmatprep.mubr.msk.f32.mxu0 %vm7043_vm1, %v7042_v0 }
 0x249   :  { %v3835_v26 = vand.u32 2147483647, %v9019_v38  ;;  %v3647_v45 = vadd.f32 %v3197_v30, %v2671_v3  ;;  %v6405_v54 = vpop.f32.mrb[185].mxu1  ;;  %6563 = vmatmul.mubr.msk.f32.gmra.mrb[34].mxu1 %vm198_vm0, %v2815_v4  ;;  %v1841_v4 = vld [vmem:[%s10622_s0 + $0x1c1] sm:$0xff]  ;;  %vm4199_vm2 = vcmp.ge.f32.partialorder %v9019_v38, 0.0 }
 0x24a   :  { %v2226_v40 = vpop.f32.mrb[186].mxu0  ;;  %6565 = vmatprep.mubr.msk.f32.mxu1 %vm7043_vm1, %v7042_v0 }
 0x24b   :  { %v3926_v39 = vsub.f32 0.0, %v3835_v26  ;;  %v9036_v18 = vadd.f32 %v9005_v11, %v3647_v45  ;;  %v2672_v55 = vadd.f32 %v2226_v40, %v7761_v6  ;;  %v6133_v19 = vpop.f32.mrb[187].mxu0  ;;  %6291 = vmatmul.mubr.msk.f32.gmra.mrb[36].mxu0 %vm198_vm0, %v1840_v63  ;;  %v2817_v6 = vld [vmem:[%s10622_s0 + $0x1c0] sm:$0xff] }
 0x24c   :  { %v3202_v54 = vpop.f32.mrb[186].mxu1  ;;  %6293 = vmatprep.mubr.msk.f32.mxu0 %vm7043_vm1, %v7042_v0 }
 0x24d   :  { %v4017_v3 = vmul.f32 1.442695, %v3926_v39  ;;  %v3836_v30 = vand.u32 2147483647, %v9036_v18  ;;  %v3648_v26 = vadd.f32 %v3202_v54, %v2672_v55  ;;  %v6408_v52 = vpop.f32.mrb[187].mxu1  ;;  %6566 = vmatmul.mubr.msk.f32.gmra.mrb[36].mxu1 %vm198_vm0, %v2816_v62  ;;  %v1842_v62 = vld [vmem:[%s10622_s0 + $0x1c9] sm:$0xff] }
 0x24e   :  { %v2231_v45 = vpop.f32.mrb[188].mxu0  ;;  %6568 = vmatprep.mubr.msk.f32.mxu1 %vm7043_vm1, %v7042_v0  ;;  %vm4200_vm3 = vcmp.ge.f32.partialorder %v9036_v18, 0.0 }
 0x24f   :  { %6675 = vpow2.f32 %v4017_v3  ;;  %v3927_v19 = vsub.f32 0.0, %v3836_v30  ;;  %v9053_v63 = vadd.f32 %v9005_v11, %v3648_v26  ;;  %v2673_v40 = vadd.f32 %v2231_v45, %v7775_v13  ;;  %v6136_v39 = vpop.f32.mrb[189].mxu0  ;;  %6294 = vmatmul.mubr.msk.f32.gmra.mrb[38].mxu0 %vm198_vm0, %v1841_v4  ;;  %v2818_v13 = vld [vmem:[%s10622_s0 + $0x1c8] sm:$0xff] }
 0x250   :  { %v3207_v52 = vpop.f32.mrb[188].mxu1  ;;  %6296 = vmatprep.mubr.msk.f32.mxu0 %vm7043_vm1, %v7042_v0 }
 0x251   :  { %v4019_v55 = vmul.f32 1.442695, %v3927_v19  ;;  %v3837_v54 = vand.u32 2147483647, %v9053_v63  ;;  %v3649_v3 = vadd.f32 %v3207_v52, %v2673_v40  ;;  %v6411_v30 = vpop.f32.mrb[189].mxu1  ;;  %6569 = vmatmul.mubr.msk.f32.gmra.mrb[38].mxu1 %vm198_vm0, %v2817_v6  ;;  %v1843_v6 = vld [vmem:[%s10622_s0 + $0x1d1] sm:$0xff] }
 0x252   :  { %v2236_v26 = vpop.f32.mrb[190].mxu0  ;;  %6571 = vmatprep.mubr.msk.f32.mxu1 %vm7043_vm1, %v7042_v0  ;;  %vm4201_vm4 = vcmp.ge.f32.partialorder %v9053_v63, 0.0 }
 0x253   :  { %6677 = vpow2.f32 %v4019_v55  ;;  %v3928_v4 = vsub.f32 0.0, %v3837_v54  ;;  %v9070_v45 = vadd.f32 %v9005_v11, %v3649_v3  ;;  %v2674_v19 = vadd.f32 %v2236_v26, %v7789_v20  ;;  %v6139_v39 = vpop.f32.mrb[191].mxu0  ;;  %6297 = vmatmul.mubr.msk.f32.gmra.mrb[40].mxu0 %vm198_vm0, %v1842_v62  ;;  %v2819_v20 = vld [vmem:[%s10622_s0 + $0x1d0] sm:$0xff] }
 0x254   :  { %v3212_v40 = vpop.f32.mrb[190].mxu1  ;;  %6299 = vmatprep.mubr.msk.f32.mxu0 %vm7043_vm1, %v7042_v0 }
 0x255   :  { %v4021_v52 = vmul.f32 1.442695, %v3928_v4  ;;  %v3838_v55 = vand.u32 2147483647, %v9070_v45  ;;  %v3650_v54 = vadd.f32 %v3212_v40, %v2674_v19  ;;  %v6414_v30 = vpop.f32.mrb[191].mxu1  ;;  %6572 = vmatmul.mubr.msk.f32.gmra.mrb[40].mxu1 %vm198_vm0, %v2818_v13  ;;  %v1844_v13 = vld [vmem:[%s10622_s0 + $0x1d9] sm:$0xff] }
 0x256   :  { %v2241_v3 = vpop.f32.mrb[192].mxu0  ;;  %6574 = vmatprep.mubr.msk.f32.mxu1 %vm7043_vm1, %v7042_v0  ;;  %vm4202_vm5 = vcmp.ge.f32.partialorder %v9070_v45, 0.0 }
 0x257   :  { %6679 = vpow2.f32 %v4021_v52  ;;  %v3929_v62 = vsub.f32 0.0, %v3838_v55  ;;  %v9087_v26 = vadd.f32 %v9005_v11, %v3650_v54  ;;  %v2675_v4 = vadd.f32 %v2241_v3, %v7803_v27  ;;  %v6142_v39 = vpop.f32.mrb[193].mxu0  ;;  %6300 = vmatmul.mubr.msk.f32.gmra.mrb[42].mxu0 %vm198_vm0, %v1843_v6  ;;  %v2820_v3 = vld [vmem:[%s10622_s0 + $0x1d8] sm:$0xff] }
 0x258   :  { %v3217_v19 = vpop.f32.mrb[192].mxu1  ;;  %6302 = vmatprep.mubr.msk.f32.mxu0 %vm7043_vm1, %v7042_v0 }
 0x259   :  { %v9096_v40 = vpop.eup %6675  ;;  %v4023_v52 = vmul.f32 1.442695, %v3929_v62  ;;  %v3839_v55 = vand.u32 2147483647, %v9087_v26  ;;  %v3651_v54 = vadd.f32 %v3217_v19, %v2675_v4  ;;  %v6417_v30 = vpop.f32.mrb[193].mxu1  ;;  %6575 = vmatmul.mubr.msk.f32.gmra.mrb[42].mxu1 %vm198_vm0, %v2819_v20  ;;  %vm4203_vm6 = vcmp.ge.f32.partialorder %v9087_v26, 0.0 }
 0x25a   :  { %v4290_v27 = vadd.f32 1.0, %v9096_v40  ;;  %v2246_v6 = vpop.f32.mrb[194].mxu0  ;;  %6577 = vmatprep.mubr.msk.f32.mxu1 %vm7043_vm1, %v7042_v0  ;;  %v1845_v30 = vld [vmem:[%s10622_s0 + $0x1e1] sm:$0xff] }
 0x25b   :  { %6681 = vpow2.f32 %v4023_v52  ;;  %v3930_v39 = vsub.f32 0.0, %v3839_v55  ;;  %v9107_v62 = vadd.f32 %v9005_v11, %v3651_v54  ;;  %v2676_v4 = vadd.f32 %v2246_v6, %v7817_v34  ;;  %v6145_v19 = vpop.f32.mrb[195].mxu0  ;;  %6303 = vmatmul.mubr.msk.f32.gmra.mrb[44].mxu0 %vm198_vm0, %v1844_v13 }
 0x25c   :  { %6683 = vrcp.f32 %v4290_v27  ;;  %v3222_v20 = vpop.f32.mrb[194].mxu1  ;;  %6305 = vmatprep.mubr.msk.f32.mxu0 %vm7043_vm1, %v7042_v0  ;;  %v2821_v27 = vld [vmem:[%s10622_s0 + $0x1e0] sm:$0xff]  ;;  %v1846_v19 = vld [vmem:[%s10622_s0 + $0x1e9] sm:$0xff] }
 0x25d   :  { %v9116_v22 = vpop.eup %6677  ;;  %v4025_v52 = vmul.f32 1.442695, %v3930_v39  ;;  %v3840_v55 = vand.u32 2147483647, %v9107_v62  ;;  %v3652_v54 = vadd.f32 %v3222_v20, %v2676_v4  ;;  %v6420_v57 = vpop.f32.mrb[195].mxu1  ;;  %6578 = vmatmul.mubr.msk.f32.gmra.mrb[44].mxu1 %vm198_vm0, %v2820_v3  ;;  %vm4204_vm7 = vcmp.ge.f32.partialorder %v9107_v62, 0.0 }
 0x25e   :  { %v4291_v34 = vadd.f32 1.0, %v9116_v22  ;;  %v2251_v13 = vpop.f32.mrb[196].mxu0  ;;  %6580 = vmatprep.mubr.msk.f32.mxu1 %vm7043_vm1, %v7042_v0 }
 0x25f   :  { %6685 = vpow2.f32 %v4025_v52  ;;  %v3931_v6 = vsub.f32 0.0, %v3840_v55  ;;  %v9127_v39 = vadd.f32 %v9005_v11, %v3652_v54  ;;  %v2677_v4 = vadd.f32 %v2251_v13, %v7831_v41  ;;  %v6148_v57 = vpop.f32.mrb[197].mxu0  ;;  %6306 = vmatmul.mubr.msk.f32.gmra.mrb[46].mxu0 %vm198_vm0, %v1845_v30 }
 0x260   :  { %6687 = vrcp.f32 %v4291_v34  ;;  %v3227_v3 = vpop.f32.mrb[196].mxu1  ;;  %6308 = vmatprep.mubr.msk.f32.mxu0 %vm7043_vm1, %v7042_v0  ;;  %v2822_v34 = vld [vmem:[%s10622_s0 + $0x1e8] sm:$0xff]  ;;  %v1847_v57 = vld [vmem:[%s10622_s0 + $0x1f1] sm:$0xff] }
 0x261   :  { %v9136_v20 = vpop.eup %6679  ;;  %v4027_v52 = vmul.f32 1.442695, %v3931_v6  ;;  %v3841_v55 = vand.u32 2147483647, %v9127_v39  ;;  %v3653_v54 = vadd.f32 %v3227_v3, %v2677_v4  ;;  %v6423_v37 = vpop.f32.mrb[197].mxu1  ;;  %6581 = vmatmul.mubr.msk.f32.gmra.mrb[46].mxu1 %vm198_vm0, %v2821_v27  ;;  %vm4205_vm8 = vcmp.ge.f32.partialorder %v9127_v39, 0.0 }
 0x262   :  { %v4292_v41 = vadd.f32 1.0, %v9136_v20  ;;  %v2256_v30 = vpop.f32.mrb[198].mxu0  ;;  %6583 = vmatprep.mubr.msk.f32.mxu1 %vm7043_vm1, %v7042_v0 }
 0x263   :  { %6689 = vpow2.f32 %v4027_v52  ;;  %v3932_v13 = vsub.f32 0.0, %v3841_v55  ;;  %v9147_v6 = vadd.f32 %v9005_v11, %v3653_v54  ;;  %v2678_v4 = vadd.f32 %v2256_v30, %v7845_v48  ;;  %v6151_v37 = vpop.f32.mrb[199].mxu0  ;;  %6309 = vmatmul.mubr.msk.f32.gmra.mrb[48].mxu0 %vm198_vm0, %v1846_v19  ;;  %v2823_v30 = vld [vmem:[%s10622_s0 + $0x1f0] sm:$0xff] }
 0x264   :  { %6691 = vrcp.f32 %v4292_v41  ;;  %v3232_v27 = vpop.f32.mrb[198].mxu1  ;;  %6311 = vmatprep.mubr.msk.f32.mxu0 %vm7043_vm1, %v7042_v0 }
 0x265   :  { %v9156_v3 = vpop.eup %6681  ;;  %v4029_v52 = vmul.f32 1.442695, %v3932_v13  ;;  %v3842_v55 = vand.u32 2147483647, %v9147_v6  ;;  %v3654_v54 = vadd.f32 %v3232_v27, %v2678_v4  ;;  %v6426_v10 = vpop.f32.mrb[199].mxu1  ;;  %6584 = vmatmul.mubr.msk.f32.gmra.mrb[48].mxu1 %vm198_vm0, %v2822_v34  ;;  %vm4206_vm9 = vcmp.ge.f32.partialorder %v9147_v6, 0.0 }
 0x266   :  { %v6684_v48 = vpop.eup %6683  ;;  %v4293_v19 = vadd.f32 1.0, %v9156_v3  ;;  %v2261_v41 = vpop.f32.mrb[200].mxu0  ;;  %6586 = vmatprep.mubr.msk.f32.mxu1 %vm7043_vm1, %v7042_v0 }
 0x267   :  { %v4563_v37 = vmul.f32 %v6684_v48, %v9096_v40  ;;  %6693 = vpow2.f32 %v4029_v52  ;;  %v3933_v13 = vsub.f32 0.0, %v3842_v55  ;;  %v9168_v4 = vadd.f32 %v9005_v11, %v3654_v54  ;;  %v6154_v10 = vpop.f32.mrb[201].mxu0  ;;  %6312 = vmatmul.mubr.msk.f32.gmra.mrb[50].mxu0 %vm198_vm0, %v1847_v57  ;;  %v1848_v40 = vld [vmem:[%s10622_s0 + $0x1f9] sm:$0xff] }
 0x268   :  { %6695 = vrcp.f32 %v4293_v19  ;;  %v2679_v34 = vadd.f32 %v2261_v41, %v7859_v56  ;;  %v3237_v27 = vpop.f32.mrb[200].mxu1  ;;  %6314 = vmatprep.mubr.msk.f32.mxu0 %vm7043_vm1, %v7042_v0 }
 0x269   :  { %v9178_v52 = vpop.eup %6685  ;;  %v4654_v55 = vsel %vm4199_vm2, %v6684_v48, %v4563_v37  ;;  %v4031_v54 = vmul.f32 1.442695, %v3933_v13  ;;  %v3843_v10 = vand.u32 2147483647, %v9168_v4  ;;  %v6429_v57 = vpop.f32.mrb[201].mxu1  ;;  %6587 = vmatmul.mubr.msk.f32.gmra.mrb[50].mxu1 %vm198_vm0, %v2823_v30  ;;  %v2824_v48 = vld [vmem:[%s10622_s0 + $0x1f8] sm:$0xff] }
 0x26a   :  { %v6688_v38 = vpop.eup %6687  ;;  %4745 = vst [vmem:[%s10624_s3] sm:$0xff] %v4654_v55  ;;  %v4294_v56 = vadd.f32 1.0, %v9178_v52  ;;  %v3655_v19 = vadd.f32 %v3237_v27, %v2679_v34  ;;  %v2266_v41 = vpop.f32.mrb[202].mxu0  ;;  %6589 = vmatprep.mubr.msk.f32.mxu1 %vm7043_vm1, %v7042_v0  ;;  %vm4207_vm10 = vcmp.ge.f32.partialorder %v9168_v4, 0.0 }
 0x26b   :  { %v4564_v37 = vmul.f32 %v6688_v38, %v9116_v22  ;;  %6697 = vpow2.f32 %v4031_v54  ;;  %v3934_v30 = vsub.f32 0.0, %v3843_v10  ;;  %v2680_v13 = vadd.f32 %v2266_v41, %v7873_v1  ;;  %v6157_v57 = vpop.f32.mrb[203].mxu0  ;;  %6315 = vmatmul.mubr.msk.f32.gmra.mrb[52].mxu0 %vm198_vm0, %v1848_v40  ;;  %v1849_v22 = vld [vmem:[%s10622_s0 + $0x201] sm:$0xff] }
 0x26c   :  { %6699 = vrcp.f32 %v4294_v56  ;;  %v9196_v34 = vadd.f32 %v9005_v11, %v3655_v19  ;;  %v3242_v27 = vpop.f32.mrb[202].mxu1  ;;  %6317 = vmatprep.mubr.msk.f32.mxu0 %vm7043_vm1, %v7042_v0 }
 0x26d   :  { %v9203_v55 = vpop.eup %6689  ;;  %v4655_v1 = vsel %vm4200_vm3, %v6688_v38, %v4564_v37  ;;  %v4033_v54 = vmul.f32 1.442695, %v3934_v30  ;;  %v3656_v10 = vadd.f32 %v3242_v27, %v2680_v13  ;;  %v6432_v40 = vpop.f32.mrb[203].mxu1  ;;  %6590 = vmatmul.mubr.msk.f32.gmra.mrb[52].mxu1 %vm198_vm0, %v2824_v48  ;;  %v2825_v38 = vld [vmem:[%s10622_s0 + $0x200] sm:$0xff] }
 0x26e   :  { %v6692_v18 = vpop.eup %6691  ;;  %4746 = vst [vmem:[%s10624_s3 + $0x8] sm:$0xff] %v4655_v1  ;;  %v4295_v56 = vadd.f32 1.0, %v9203_v55  ;;  %v3844_v19 = vand.u32 2147483647, %v9196_v34  ;;  %v2271_v41 = vpop.f32.mrb[204].mxu0  ;;  %6592 = vmatprep.mubr.msk.f32.mxu1 %vm7043_vm1, %v7042_v0  ;;  %vm4208_vm11 = vcmp.ge.f32.partialorder %v9196_v34, 0.0 }
 0x26f   :  { %v4565_v37 = vmul.f32 %v6692_v18, %v9136_v20  ;;  %6701 = vpow2.f32 %v4033_v54  ;;  %v9218_v48 = vadd.f32 %v9005_v11, %v3656_v10  ;;  %v2681_v30 = vadd.f32 %v2271_v41, %v7887_v9  ;;  %v6160_v13 = vpop.f32.mrb[205].mxu0  ;;  %6318 = vmatmul.mubr.msk.f32.gmra.mrb[54].mxu0 %vm198_vm0, %v1849_v22  ;;  %v1850_v20 = vld [vmem:[%s10622_s0 + $0x209] sm:$0xff] }
 0x270   :  { %6703 = vrcp.f32 %v4295_v56  ;;  %v3935_v57 = vsub.f32 0.0, %v3844_v19  ;;  %v3247_v27 = vpop.f32.mrb[204].mxu1  ;;  %6320 = vmatprep.mubr.msk.f32.mxu0 %vm7043_vm1, %v7042_v0 }
 0x271   :  { %v9228_v1 = vpop.eup %6693  ;;  %v4656_v54 = vsel %vm4201_vm4, %v6692_v18, %v4565_v37  ;;  %v3845_v9 = vand.u32 2147483647, %v9218_v48  ;;  %v3657_v10 = vadd.f32 %v3247_v27, %v2681_v30  ;;  %v6435_v40 = vpop.f32.mrb[205].mxu1  ;;  %6593 = vmatmul.mubr.msk.f32.gmra.mrb[54].mxu1 %vm198_vm0, %v2825_v38  ;;  %v2826_v18 = vld [vmem:[%s10622_s0 + $0x208] sm:$0xff]  ;;  %vm4209_vm12 = vcmp.ge.f32.partialorder %v9218_v48, 0.0 }
 0x272   :  { %v6696_v63 = vpop.eup %6695  ;;  %4747 = vst [vmem:[%s10624_s3 + $0x10] sm:$0xff] %v4656_v54  ;;  %v4296_v22 = vadd.f32 1.0, %v9228_v1  ;;  %v4035_v56 = vmul.f32 1.442695, %v3935_v57  ;;  %v2276_v19 = vpop.f32.mrb[206].mxu0  ;;  %6595 = vmatprep.mubr.msk.f32.mxu1 %vm7043_vm1, %v7042_v0 }
 0x273   :  { %v4566_v41 = vmul.f32 %v6696_v63, %v9156_v3  ;;  %v3936_v37 = vsub.f32 0.0, %v3845_v9  ;;  %v9243_v38 = vadd.f32 %v9005_v11, %v3657_v10  ;;  %v2682_v30 = vadd.f32 %v2276_v19, %v7901_v17  ;;  %v6163_v13 = vpop.f32.mrb[207].mxu0  ;;  %6321 = vmatmul.mubr.msk.f32.gmra.mrb[56].mxu0 %vm198_vm0, %v1850_v20  ;;  %v1851_v3 = vld [vmem:[%s10622_s0 + $0x211] sm:$0xff] }
 0x274   :  { %6705 = vrcp.f32 %v4296_v22  ;;  %v3252_v57 = vpop.f32.mrb[206].mxu1  ;;  %6323 = vmatprep.mubr.msk.f32.mxu0 %vm7043_vm1, %v7042_v0 }
 0x275   :  { %v9253_v27 = vpop.eup %6697  ;;  %v4657_v54 = vsel %vm4202_vm5, %v6696_v63, %v4566_v41  ;;  %6707 = vpow2.f32 %v4035_v56  ;;  %v4037_v9 = vmul.f32 1.442695, %v3936_v37  ;;  %v3846_v17 = vand.u32 2147483647, %v9243_v38  ;;  %v6438_v10 = vpop.f32.mrb[207].mxu1  ;;  %6596 = vmatmul.mubr.msk.f32.gmra.mrb[56].mxu1 %vm198_vm0, %v2826_v18  ;;  %v2827_v63 = vld [vmem:[%s10622_s0 + $0x210] sm:$0xff] }
 0x276   :  { %v6700_v45 = vpop.eup %6699  ;;  %4748 = vst [vmem:[%s10624_s3 + $0x18] sm:$0xff] %v4657_v54  ;;  %v4297_v20 = vadd.f32 1.0, %v9253_v27  ;;  %v3658_v40 = vadd.f32 %v3252_v57, %v2682_v30  ;;  %v2281_v22 = vpop.f32.mrb[208].mxu0  ;;  %6598 = vmatprep.mubr.msk.f32.mxu1 %vm7043_vm1, %v7042_v0  ;;  %vm4210_vm13 = vcmp.ge.f32.partialorder %v9243_v38, 0.0 }
 0x277   :  { %v4567_v56 = vmul.f32 %v6700_v45, %v9178_v52  ;;  %6709 = vpow2.f32 %v4037_v9  ;;  %v3937_v19 = vsub.f32 0.0, %v3846_v17  ;;  %v2683_v18 = vadd.f32 %v2281_v22, %v7915_v25  ;;  %v6166_v41 = vpop.f32.mrb[209].mxu0  ;;  %6324 = vmatmul.mubr.msk.f32.gmra.mrb[58].mxu0 %vm198_vm0, %v1851_v3  ;;  %v1852_v52 = vld [vmem:[%s10622_s0 + $0x219] sm:$0xff] }
 0x278   :  { %6711 = vrcp.f32 %v4297_v20  ;;  %v9271_v37 = vadd.f32 %v9005_v11, %v3658_v40  ;;  %v3257_v30 = vpop.f32.mrb[208].mxu1  ;;  %6326 = vmatprep.mubr.msk.f32.mxu0 %vm7043_vm1, %v7042_v0 }
 0x279   :  { %v9278_v13 = vpop.eup %6701  ;;  %v4658_v25 = vsel %vm4203_vm6, %v6700_v45, %v4567_v56  ;;  %v4039_v57 = vmul.f32 1.442695, %v3937_v19  ;;  %v3659_v54 = vadd.f32 %v3257_v30, %v2683_v18  ;;  %v6441_v3 = vpop.f32.mrb[209].mxu1  ;;  %6599 = vmatmul.mubr.msk.f32.gmra.mrb[58].mxu1 %vm198_vm0, %v2827_v63  ;;  %v2828_v45 = vld [vmem:[%s10622_s0 + $0x218] sm:$0xff] }
 0x27a   :  { %v6704_v26 = vpop.eup %6703  ;;  %4749 = vst [vmem:[%s10624_s3 + $0x20] sm:$0xff] %v4658_v25  ;;  %v4298_v9 = vadd.f32 1.0, %v9278_v13  ;;  %v3847_v17 = vand.u32 2147483647, %v9271_v37  ;;  %v2286_v10 = vpop.f32.mrb[210].mxu0  ;;  %6601 = vmatprep.mubr.msk.f32.mxu1 %vm7043_vm1, %v7042_v0  ;;  %vm4211_vm14 = vcmp.ge.f32.partialorder %v9271_v37, 0.0 }
 0x27b   :  { %v4568_v20 = vmul.f32 %v6704_v26, %v9203_v55  ;;  %6713 = vpow2.f32 %v4039_v57  ;;  %v9293_v40 = vadd.f32 %v9005_v11, %v3659_v54  ;;  %v2684_v22 = vadd.f32 %v2286_v10, %v7929_v33  ;;  %v6169_v63 = vpop.f32.mrb[211].mxu0  ;;  %6327 = vmatmul.mubr.msk.f32.gmra.mrb[60].mxu0 %vm198_vm0, %v1852_v52  ;;  %v1853_v55 = vld [vmem:[%s10622_s0 + $0x221] sm:$0xff]  ;;  %v2836_v37 = vld [vmem:[%s10622_s0 + $0x258] sm:$0xff] }
 0x27c   :  { %6715 = vrcp.f32 %v4298_v9  ;;  %v3938_v56 = vsub.f32 0.0, %v3847_v17  ;;  %v3262_v19 = vpop.f32.mrb[210].mxu1  ;;  %6329 = vmatprep.mubr.msk.f32.mxu0 %vm7043_vm1, %v7042_v0  ;;  %v2829_v57 = vld [vmem:[%s10622_s0 + $0x220] sm:$0xff] }
 0x27d   :  { %v4659_v18 = vsel %vm4204_vm7, %v6704_v26, %v4568_v20  ;;  %v3848_v41 = vand.u32 2147483647, %v9293_v40  ;;  %v3660_v30 = vadd.f32 %v3262_v19, %v2684_v22  ;;  %v6444_v33 = vpop.f32.mrb[211].mxu1  ;;  %6602 = vmatmul.mubr.msk.f32.gmra.mrb[60].mxu1 %vm198_vm0, %v2828_v45  ;;  %vm4212_vm15 = vcmp.ge.f32.partialorder %v9293_v40, 0.0 }
 0x27e   :  { %v6706_v52 = vpop.eup %6705  ;;  %4750 = vst [vmem:[%s10624_s3 + $0x28] sm:$0xff] %v4659_v18  ;;  %v4041_v62 = vmul.f32 1.442695, %v3938_v56  ;;  %v2291_v25 = vpop.f32.mrb[212].mxu0  ;;  %6604 = vmatprep.mubr.msk.f32.mxu1 %vm7043_vm1, %v7042_v0 }
 0x27f   :  { %v9313_v54 = vpop.eup %6707  ;;  %v4569_v3 = vmul.f32 %v6706_v52, %v9228_v1  ;;  %v3939_v26 = vsub.f32 0.0, %v3848_v41  ;;  %v9317_v9 = vadd.f32 %v9005_v11, %v3660_v30  ;;  %v2685_v17 = vadd.f32 %v2291_v25, %v7943_v42  ;;  %v6172_v10 = vpop.f32.mrb[213].mxu0  ;;  %6330 = vmatmul.mubr.msk.f32.gmra.mrb[62].mxu0 %vm198_vm0, %v1853_v55  ;;  %v1854_v1 = vld [vmem:[%s10622_s0 + $0x229] sm:$0xff] }
 0x280   :  { %v4299_v45 = vadd.f32 1.0, %v9313_v54  ;;  %6717 = vpow2.f32 %v4041_v62  ;;  %v3267_v20 = vpop.f32.mrb[212].mxu1  ;;  %6332 = vmatprep.mubr.msk.f32.mxu0 %vm7043_vm1, %v7042_v0  ;;  %v2830_v30 = vld [vmem:[%s10622_s0 + $0x228] sm:$0xff] }
 0x281   :  { %v9328_v22 = vpop.eup %6709  ;;  %v4660_v63 = vsel %vm4205_vm8, %v6706_v52, %v4569_v3  ;;  %v4043_v42 = vmul.f32 1.442695, %v3939_v26  ;;  %v3849_v56 = vand.u32 2147483647, %v9317_v9  ;;  %v6447_v19 = vpop.f32.mrb[213].mxu1  ;;  %6605 = vmatmul.mubr.msk.f32.gmra.mrb[62].mxu1 %vm198_vm0, %v2829_v57  ;;  %v3661_v18 = vadd.f32 %v3267_v20, %v2685_v17 }
 0x282   :  { %v6712_v39 = vpop.eup %6711  ;;  %4751 = vst [vmem:[%s10624_s3 + $0x30] sm:$0xff] %v4660_v63  ;;  %6719 = vrcp.f32 %v4299_v45  ;;  %v4300_v55 = vadd.f32 1.0, %v9328_v22  ;;  %v2296_v41 = vpop.f32.mrb[214].mxu0  ;;  %6607 = vmatprep.mubr.msk.f32.mxu1 %vm7043_vm1, %v7042_v0  ;;  %vm4213_vm2 = vcmp.ge.f32.partialorder %v9317_v9, 0.0 }
 0x283   :  { %v4570_v33 = vmul.f32 %v6712_v39, %v9253_v27  ;;  %6721 = vpow2.f32 %v4043_v42  ;;  %v3940_v52 = vsub.f32 0.0, %v3849_v56  ;;  %v2686_v62 = vadd.f32 %v2296_v41, %v7957_v50  ;;  %v6175_v25 = vpop.f32.mrb[215].mxu0  ;;  %6333 = vmatmul.mubr.msk.f32.gmra.mrb[64].mxu0 %vm198_vm0, %v1854_v1  ;;  %v1855_v27 = vld [vmem:[%s10622_s0 + $0x231] sm:$0xff] }
 0x284   :  { %6723 = vrcp.f32 %v4300_v55  ;;  %v9346_v57 = vadd.f32 %v9005_v11, %v3661_v18  ;;  %v3272_v3 = vpop.f32.mrb[214].mxu1  ;;  %6335 = vmatprep.mubr.msk.f32.mxu0 %vm7043_vm1, %v7042_v0  ;;  %v2831_v42 = vld [vmem:[%s10622_s0 + $0x230] sm:$0xff] }
 0x285   :  { %v9353_v26 = vpop.eup %6713  ;;  %v4661_v50 = vsel %vm4206_vm9, %v6712_v39, %v4570_v33  ;;  %v4045_v17 = vmul.f32 1.442695, %v3940_v52  ;;  %v3662_v10 = vadd.f32 %v3272_v3, %v2686_v62  ;;  %v6450_v45 = vpop.f32.mrb[215].mxu1  ;;  %6608 = vmatmul.mubr.msk.f32.gmra.mrb[64].mxu1 %vm198_vm0, %v2830_v30  ;;  %v2832_v3 = vld [vmem:[%s10622_s0 + $0x238] sm:$0xff] }
 0x286   :  { %v6716_v6 = vpop.eup %6715  ;;  %4752 = vst [vmem:[%s10624_s3 + $0x38] sm:$0xff] %v4661_v50  ;;  %v4301_v20 = vadd.f32 1.0, %v9353_v26  ;;  %v3850_v1 = vand.u32 2147483647, %v9346_v57  ;;  %v2301_v63 = vpop.f32.mrb[216].mxu0  ;;  %6610 = vmatprep.mubr.msk.f32.mxu1 %vm7043_vm1, %v7042_v0  ;;  %vm4214_vm3 = vcmp.ge.f32.partialorder %v9346_v57, 0.0 }
 0x287   :  { %v4571_v56 = vmul.f32 %v6716_v6, %v9278_v13  ;;  %6725 = vpow2.f32 %v4045_v17  ;;  %v9368_v19 = vadd.f32 %v9005_v11, %v3662_v10  ;;  %v2687_v39 = vadd.f32 %v2301_v63, %v7971_v59  ;;  %v6178_v55 = vpop.f32.mrb[217].mxu0  ;;  %6336 = vmatmul.mubr.msk.f32.gmra.mrb[66].mxu0 %vm198_vm0, %v1855_v27  ;;  %v1856_v13 = vld [vmem:[%s10622_s0 + $0x239] sm:$0xff] }
 0x288   :  { %6727 = vrcp.f32 %v4301_v20  ;;  %v3941_v18 = vsub.f32 0.0, %v3850_v1  ;;  %v3277_v41 = vpop.f32.mrb[216].mxu1  ;;  %6338 = vmatprep.mubr.msk.f32.mxu0 %vm7043_vm1, %v7042_v0  ;;  %v1857_v1 = vld [vmem:[%s10622_s0 + $0x241] sm:$0xff] }
 0x289   :  { %v4662_v30 = vsel %vm4207_vm10, %v6716_v6, %v4571_v56  ;;  %v3851_v33 = vand.u32 2147483647, %v9368_v19  ;;  %v3663_v52 = vadd.f32 %v3277_v41, %v2687_v39  ;;  %v6453_v59 = vpop.f32.mrb[217].mxu1  ;;  %6611 = vmatmul.mubr.msk.f32.gmra.mrb[66].mxu1 %vm198_vm0, %v2831_v42  ;;  %vm4215_vm4 = vcmp.ge.f32.partialorder %v9368_v19, 0.0 }
 0x28a   :  { %v9380_v62 = vpop.eup %6717  ;;  %4753 = vst [vmem:[%s10624_s3 + $0x40] sm:$0xff] %v4662_v30  ;;  %v4047_v4 = vmul.f32 1.442695, %v3941_v18  ;;  %v2306_v25 = vpop.f32.mrb[218].mxu0  ;;  %6613 = vmatprep.mubr.msk.f32.mxu1 %vm7043_vm1, %v7042_v0 }
 0x28b   :  { %v4302_v27 = vadd.f32 1.0, %v9380_v62  ;;  %v3942_v50 = vsub.f32 0.0, %v3851_v33  ;;  %v9392_v17 = vadd.f32 %v9005_v11, %v3663_v52  ;;  %v2688_v10 = vadd.f32 %v2306_v25, %v7985_v5  ;;  %v6181_v45 = vpop.f32.mrb[219].mxu0  ;;  %6339 = vmatmul.mubr.msk.f32.gmra.mrb[68].mxu0 %vm198_vm0, %v1856_v13 }
 0x28c   :  { %v6720_v6 = vpop.eup %6719  ;;  %6729 = vpow2.f32 %v4047_v4  ;;  %v3282_v20 = vpop.f32.mrb[218].mxu1  ;;  %6341 = vmatprep.mubr.msk.f32.mxu0 %vm7043_vm1, %v7042_v0 }
 0x28d   :  { %v9401_v63 = vpop.eup %6721  ;;  %v4572_v42 = vmul.f32 %v6720_v6, %v9313_v54  ;;  %6731 = vrcp.f32 %v4302_v27  ;;  %v4049_v56 = vmul.f32 1.442695, %v3942_v50  ;;  %v3852_v5 = vand.u32 2147483647, %v9392_v17  ;;  %v6456_v39 = vpop.f32.mrb[219].mxu1  ;;  %6614 = vmatmul.mubr.msk.f32.gmra.mrb[68].mxu1 %vm198_vm0, %v2832_v3  ;;  %v2833_v54 = vld [vmem:[%s10622_s0 + $0x240] sm:$0xff] }
 0x28e   :  { %v6724_v55 = vpop.eup %6723  ;;  %v4303_v18 = vadd.f32 1.0, %v9401_v63  ;;  %v3664_v41 = vadd.f32 %v3282_v20, %v2688_v10  ;;  %v2311_v13 = vpop.f32.mrb[220].mxu0  ;;  %6616 = vmatprep.mubr.msk.f32.mxu1 %vm7043_vm1, %v7042_v0  ;;  %vm4216_vm5 = vcmp.ge.f32.partialorder %v9392_v17, 0.0 }
 0x28f   :  { %v4663_v30 = vsel %vm4208_vm11, %v6720_v6, %v4572_v42  ;;  %v4573_v33 = vmul.f32 %v6724_v55, %v9328_v22  ;;  %6733 = vpow2.f32 %v4049_v56  ;;  %v3943_v52 = vsub.f32 0.0, %v3852_v5  ;;  %v6184_v59 = vpop.f32.mrb[221].mxu0  ;;  %6342 = vmatmul.mubr.msk.f32.gmra.mrb[70].mxu0 %vm198_vm0, %v1857_v1  ;;  %v1858_v22 = vld [vmem:[%s10622_s0 + $0x249] sm:$0xff] }
 0x290   :  { %4754 = vst [vmem:[%s10624_s3 + $0x48] sm:$0xff] %v4663_v30  ;;  %6735 = vrcp.f32 %v4303_v18  ;;  %v9420_v34 = vadd.f32 %v9005_v11, %v3664_v41  ;;  %v2689_v4 = vadd.f32 %v2311_v13, %v7999_v15  ;;  %v3287_v25 = vpop.f32.mrb[220].mxu1  ;;  %6344 = vmatprep.mubr.msk.f32.mxu0 %vm7043_vm1, %v7042_v0  ;;  %v2834_v1 = vld [vmem:[%s10622_s0 + $0x248] sm:$0xff] }
 0x291   :  { %v9428_v3 = vpop.eup %6725  ;;  %v4664_v27 = vsel %vm4209_vm12, %v6724_v55, %v4573_v33  ;;  %v4051_v50 = vmul.f32 1.442695, %v3943_v52  ;;  %v6459_v10 = vpop.f32.mrb[221].mxu1  ;;  %6617 = vmatmul.mubr.msk.f32.gmra.mrb[70].mxu1 %vm198_vm0, %v2833_v54  ;;  %v2835_v52 = vld [vmem:[%s10622_s0 + $0x250] sm:$0xff] }
 0x292   :  { %v6728_v48 = vpop.eup %6727  ;;  %4755 = vst [vmem:[%s10624_s3 + $0x50] sm:$0xff] %v4664_v27  ;;  %v4304_v15 = vadd.f32 1.0, %v9428_v3  ;;  %v3853_v45 = vand.u32 2147483647, %v9420_v34  ;;  %v3665_v6 = vadd.f32 %v3287_v25, %v2689_v4  ;;  %v2316_v20 = vpop.f32.mrb[222].mxu0  ;;  %6619 = vmatprep.mubr.msk.f32.mxu1 %vm7043_vm1, %v7042_v0  ;;  %vm4217_vm6 = vcmp.ge.f32.partialorder %v9420_v34, 0.0 }
 0x293   :  { %v4574_v42 = vmul.f32 %v6728_v48, %v9353_v26  ;;  %6737 = vpow2.f32 %v4051_v50  ;;  %v2690_v56 = vadd.f32 %v2316_v20, %v8013_v24  ;;  %v6187_v5 = vpop.f32.mrb[223].mxu0  ;;  %6345 = vmatmul.mubr.msk.f32.gmra.mrb[72].mxu0 %vm198_vm0, %v1858_v22  ;;  %v1859_v26 = vld [vmem:[%s10622_s0 + $0x251] sm:$0xff] }
 0x294   :  { %6739 = vrcp.f32 %v4304_v15  ;;  %v3944_v39 = vsub.f32 0.0, %v3853_v45  ;;  %v9446_v55 = vadd.f32 %v9005_v11, %v3665_v6  ;;  %v3292_v18 = vpop.f32.mrb[222].mxu1  ;;  %6347 = vmatprep.mubr.msk.f32.mxu0 %vm7043_vm1, %v7042_v0  ;;  %v1860_v15 = vld [vmem:[%s10622_s0 + $0x259] sm:$0xff] }
 0x295   :  { %v4665_v41 = vsel %vm4210_vm13, %v6728_v48, %v4574_v42  ;;  %v3666_v24 = vadd.f32 %v3292_v18, %v2690_v56  ;;  %v6462_v13 = vpop.f32.mrb[223].mxu1  ;;  %6620 = vmatmul.mubr.msk.f32.gmra.mrb[72].mxu1 %vm198_vm0, %v2834_v1 }
 0x296   :  { %v9454_v54 = vpop.eup %6729  ;;  %4756 = vst [vmem:[%s10624_s3 + $0x58] sm:$0xff] %v4665_v41  ;;  %v4053_v38 = vmul.f32 1.442695, %v3944_v39  ;;  %v3854_v30 = vand.u32 2147483647, %v9446_v55  ;;  %v2321_v33 = vpop.f32.mrb[224].mxu0  ;;  %6622 = vmatprep.mubr.msk.f32.mxu1 %vm7043_vm1, %v7042_v0 }
 0x297   :  { %v6732_v59 = vpop.eup %6731  ;;  %v4305_v4 = vadd.f32 1.0, %v9454_v54  ;;  %v9467_v25 = vadd.f32 %v9005_v11, %v3666_v24  ;;  %v2691_v22 = vadd.f32 %v2321_v33, %v8027_v35  ;;  %v6190_v27 = vpop.f32.mrb[225].mxu0  ;;  %6348 = vmatmul.mubr.msk.f32.gmra.mrb[74].mxu0 %vm198_vm0, %v1859_v26  ;;  %vm4218_vm7 = vcmp.ge.f32.partialorder %v9446_v55, 0.0 }
 0x298   :  { %v4575_v50 = vmul.f32 %v6732_v59, %v9380_v62  ;;  %6741 = vpow2.f32 %v4053_v38  ;;  %v3945_v10 = vsub.f32 0.0, %v3854_v30  ;;  %v3297_v48 = vpop.f32.mrb[224].mxu1  ;;  %6350 = vmatprep.mubr.msk.f32.mxu0 %vm7043_vm1, %v7042_v0 }
 0x299   :  { %v9477_v45 = vpop.eup %6733  ;;  %6743 = vrcp.f32 %v4305_v4  ;;  %v3855_v35 = vand.u32 2147483647, %v9467_v25  ;;  %v3667_v6 = vadd.f32 %v3297_v48, %v2691_v22  ;;  %v6465_v20 = vpop.f32.mrb[225].mxu1  ;;  %6623 = vmatmul.mubr.msk.f32.gmra.mrb[74].mxu1 %vm198_vm0, %v2835_v52  ;;  %v2837_v22 = vld [vmem:[%s10622_s0 + $0x260] sm:$0xff]  ;;  %vm4219_vm8 = vcmp.ge.f32.partialorder %v9467_v25, 0.0 }
 0x29a   :  { %v6736_v62 = vpop.eup %6735  ;;  %v4666_v1 = vsel %vm4211_vm14, %v6732_v59, %v4575_v50  ;;  %v4306_v42 = vadd.f32 1.0, %v9477_v45  ;;  %v4055_v56 = vmul.f32 1.442695, %v3945_v10  ;;  %v2326_v5 = vpop.f32.mrb[226].mxu0  ;;  %6625 = vmatprep.mubr.msk.f32.mxu1 %vm7043_vm1, %v7042_v0 }
 0x29b   :  { %4757 = vst [vmem:[%s10624_s3 + $0x60] sm:$0xff] %v4666_v1  ;;  %v4576_v39 = vmul.f32 %v6736_v62, %v9401_v63  ;;  %v3946_v18 = vsub.f32 0.0, %v3855_v35  ;;  %v9493_v26 = vadd.f32 %v9005_v11, %v3667_v6  ;;  %v2692_v41 = vadd.f32 %v2326_v5, %v8041_v44  ;;  %v6193_v24 = vpop.f32.mrb[227].mxu0  ;;  %6351 = vmatmul.mubr.msk.f32.gmra.mrb[76].mxu0 %vm198_vm0, %v1860_v15  ;;  %v1861_v63 = vld [vmem:[%s10622_s0 + $0x261] sm:$0xff]  ;;  %v9523_v15 = vld [vmem:[%s10623_s2] ss:$0 sm:$0xff] }
 0x29c   :  { %6745 = vrcp.f32 %v4306_v42  ;;  %v3302_v13 = vpop.f32.mrb[226].mxu1  ;;  %6353 = vmatprep.mubr.msk.f32.mxu0 %vm7043_vm1, %v7042_v0  ;;  %v2838_v5 = vld [vmem:[%s10622_s0 + $0x268] sm:$0xff] }
 0x29d   :  { %v9503_v38 = vpop.eup %6737  ;;  %v4667_v11 = vsel %vm4212_vm15, %v6736_v62, %v4576_v39  ;;  %6747 = vpow2.f32 %v4055_v56  ;;  %v4057_v30 = vmul.f32 1.442695, %v3946_v18  ;;  %v3856_v44 = vand.u32 2147483647, %v9493_v26  ;;  %v6468_v33 = vpop.f32.mrb[227].mxu1  ;;  %6626 = vmatmul.mubr.msk.f32.gmra.mrb[76].mxu1 %vm198_vm0, %v2836_v37 }
 0x29e   :  { %v6740_v40 = vpop.eup %6739  ;;  %4758 = vst [vmem:[%s10624_s3 + $0x68] sm:$0xff] %v4667_v11  ;;  %v4307_v52 = vadd.f32 1.0, %v9503_v38  ;;  %v3668_v59 = vadd.f32 %v3302_v13, %v2692_v41  ;;  %v2331_v4 = vpop.f32.mrb[228].mxu0  ;;  %6628 = vmatprep.mubr.msk.f32.mxu1 %vm7043_vm1, %v7042_v0  ;;  %vm4220_vm9 = vcmp.ge.f32.partialorder %v9493_v26, 0.0 }
 0x29f   :  { %v4577_v27 = vmul.f32 %v6740_v40, %v9428_v3  ;;  %6749 = vpow2.f32 %v4057_v30  ;;  %v3947_v50 = vsub.f32 0.0, %v3856_v44  ;;  %v2693_v10 = vadd.f32 %v2331_v4, %v8055_v53  ;;  %v6196_v48 = vpop.f32.mrb[229].mxu0  ;;  %6354 = vmatmul.mubr.msk.f32.gmra.mrb[78].mxu0 %vm198_vm0, %v1861_v63  ;;  %v1862_v53 = vld [vmem:[%s10622_s0 + $0x269] sm:$0xff]  ;;  %v1863_v30 = vld [vmem:[%s10622_s0 + $0x271] sm:$0xff] }
 0x2a0   :  { %6751 = vrcp.f32 %v4307_v52  ;;  %v9526_v35 = vadd.f32 %v9523_v15, %v3668_v59  ;;  %v3307_v6 = vpop.f32.mrb[228].mxu1  ;;  %6356 = vmatprep.mubr.msk.f32.mxu0 %vm7043_vm1, %v7042_v0  ;;  %v2839_v4 = vld [vmem:[%s10622_s0 + $0x270] sm:$0xff] }
 0x2a1   :  { %v4668_v3 = vsel %vm4213_vm2, %v6740_v40, %v4577_v27  ;;  %v4059_v20 = vmul.f32 1.442695, %v3947_v50  ;;  %v3669_v9 = vadd.f32 %v3307_v6, %v2693_v10  ;;  %v6471_v62 = vpop.f32.mrb[229].mxu1  ;;  %6629 = vmatmul.mubr.msk.f32.gmra.mrb[78].mxu1 %vm198_vm0, %v2837_v22 }
 0x2a2   :  { %v9534_v1 = vpop.eup %6741  ;;  %4759 = vst [vmem:[%s10624_s3 + $0x70] sm:$0xff] %v4668_v3  ;;  %v3857_v42 = vand.u32 2147483647, %v9526_v35  ;;  %v2336_v56 = vpop.f32.mrb[230].mxu0  ;;  %6631 = vmatprep.mubr.msk.f32.mxu1 %vm7043_vm1, %v7042_v0  ;;  %vm4221_vm10 = vcmp.ge.f32.partialorder %v9526_v35, 0.0  ;;  %v2846_v35 = vld [vmem:[%s10622_s0 + $0x2a8] sm:$0xff] }
 0x2a3   :  { %v6744_v37 = vpop.eup %6743  ;;  %v4308_v39 = vadd.f32 1.0, %v9534_v1  ;;  %6753 = vpow2.f32 %v4059_v20  ;;  %v9547_v18 = vadd.f32 %v9523_v15, %v3669_v9  ;;  %v2694_v41 = vadd.f32 %v2336_v56, %v8069_v2  ;;  %v6199_v24 = vpop.f32.mrb[231].mxu0  ;;  %6357 = vmatmul.mubr.msk.f32.gmra.mrb[80].mxu0 %vm198_vm0, %v1862_v53 }
 0x2a4   :  { %v4578_v13 = vmul.f32 %v6744_v37, %v9454_v54  ;;  %v3948_v63 = vsub.f32 0.0, %v3857_v42  ;;  %v3312_v11 = vpop.f32.mrb[230].mxu1  ;;  %6359 = vmatprep.mubr.msk.f32.mxu0 %vm7043_vm1, %v7042_v0 }
 0x2a5   :  { %6755 = vrcp.f32 %v4308_v39  ;;  %v3858_v44 = vand.u32 2147483647, %v9547_v18  ;;  %v3670_v2 = vadd.f32 %v3312_v11, %v2694_v41  ;;  %v6474_v33 = vpop.f32.mrb[231].mxu1  ;;  %6632 = vmatmul.mubr.msk.f32.gmra.mrb[80].mxu1 %vm198_vm0, %v2838_v5  ;;  %vm4222_vm11 = vcmp.ge.f32.partialorder %v9547_v18, 0.0 }
 0x2a6   :  { %v6746_v40 = vpop.eup %6745  ;;  %v4669_v54 = vsel %vm4214_vm3, %v6744_v37, %v4578_v13  ;;  %v4061_v52 = vmul.f32 1.442695, %v3948_v63  ;;  %v2341_v59 = vpop.f32.mrb[232].mxu0  ;;  %6634 = vmatprep.mubr.msk.f32.mxu1 %vm7043_vm1, %v7042_v0  ;;  %v2840_v37 = vld [vmem:[%s10622_s0 + $0x278] sm:$0xff] }
 0x2a7   :  { %v9565_v22 = vpop.eup %6747  ;;  %4760 = vst [vmem:[%s10624_s3 + $0x78] sm:$0xff] %v4669_v54  ;;  %v4579_v57 = vmul.f32 %v6746_v40, %v9477_v45  ;;  %v3949_v27 = vsub.f32 0.0, %v3858_v44  ;;  %v9572_v50 = vadd.f32 %v9523_v15, %v3670_v2  ;;  %v2695_v10 = vadd.f32 %v2341_v59, %v8083_v12  ;;  %v6202_v48 = vpop.f32.mrb[233].mxu0  ;;  %6360 = vmatmul.mubr.msk.f32.gmra.mrb[82].mxu0 %vm198_vm0, %v1863_v30  ;;  %v1864_v45 = vld [vmem:[%s10622_s0 + $0x279] sm:$0xff] }
 0x2a8   :  { %v4309_v6 = vadd.f32 1.0, %v9565_v22  ;;  %6757 = vpow2.f32 %v4061_v52  ;;  %v3317_v53 = vpop.f32.mrb[232].mxu1  ;;  %6362 = vmatprep.mubr.msk.f32.mxu0 %vm7043_vm1, %v7042_v0  ;;  %v2841_v52 = vld [vmem:[%s10622_s0 + $0x280] sm:$0xff] }
 0x2a9   :  { %v9583_v3 = vpop.eup %6749  ;;  %v4670_v20 = vsel %vm4215_vm4, %v6746_v40, %v4579_v57  ;;  %v4063_v12 = vmul.f32 1.442695, %v3949_v27  ;;  %v3859_v9 = vand.u32 2147483647, %v9572_v50  ;;  %v6477_v62 = vpop.f32.mrb[233].mxu1  ;;  %6635 = vmatmul.mubr.msk.f32.gmra.mrb[82].mxu1 %vm198_vm0, %v2839_v4  ;;  %v3671_v56 = vadd.f32 %v3317_v53, %v2695_v10  ;;  %v1866_v53 = vld [vmem:[%s10622_s0 + $0x289] sm:$0xff] }
 0x2aa   :  { %v6752_v19 = vpop.eup %6751  ;;  %4761 = vst [vmem:[%s10624_s3 + $0x80] sm:$0xff] %v4670_v20  ;;  %6759 = vrcp.f32 %v4309_v6  ;;  %v4310_v42 = vadd.f32 1.0, %v9583_v3  ;;  %v2346_v5 = vpop.f32.mrb[234].mxu0  ;;  %6637 = vmatprep.mubr.msk.f32.mxu1 %vm7043_vm1, %v7042_v0  ;;  %vm4223_vm12 = vcmp.ge.f32.partialorder %v9572_v50, 0.0 }
 0x2ab   :  { %v4580_v39 = vmul.f32 %v6752_v19, %v9503_v38  ;;  %6761 = vpow2.f32 %v4063_v12  ;;  %v3950_v41 = vsub.f32 0.0, %v3859_v9  ;;  %v2696_v24 = vadd.f32 %v2346_v5, %v8097_v23  ;;  %v6205_v13 = vpop.f32.mrb[235].mxu0  ;;  %6363 = vmatmul.mubr.msk.f32.gmra.mrb[84].mxu0 %vm198_vm0, %v1864_v45  ;;  %v1865_v38 = vld [vmem:[%s10622_s0 + $0x281] sm:$0xff] }
 0x2ac   :  { %6763 = vrcp.f32 %v4310_v42  ;;  %v9601_v63 = vadd.f32 %v9523_v15, %v3671_v56  ;;  %v3322_v11 = vpop.f32.mrb[234].mxu1  ;;  %6365 = vmatprep.mubr.msk.f32.mxu0 %vm7043_vm1, %v7042_v0 }
 0x2ad   :  { %v9608_v30 = vpop.eup %6753  ;;  %v4671_v23 = vsel %vm4216_vm5, %v6752_v19, %v4580_v39  ;;  %v4065_v44 = vmul.f32 1.442695, %v3950_v41  ;;  %v3672_v2 = vadd.f32 %v3322_v11, %v2696_v24  ;;  %v6480_v33 = vpop.f32.mrb[235].mxu1  ;;  %6638 = vmatmul.mubr.msk.f32.gmra.mrb[84].mxu1 %vm198_vm0, %v2840_v37  ;;  %v2842_v19 = vld [vmem:[%s10622_s0 + $0x288] sm:$0xff]  ;;  %v1867_v24 = vld [vmem:[%s10622_s0 + $0x291] sm:$0xff] }
 0x2ae   :  { %4762 = vst [vmem:[%s10624_s3 + $0x88] sm:$0xff] %v4671_v23  ;;  %v4311_v17 = vadd.f32 1.0, %v9608_v30  ;;  %v3860_v40 = vand.u32 2147483647, %v9601_v63  ;;  %v2351_v54 = vpop.f32.mrb[236].mxu0  ;;  %6640 = vmatprep.mubr.msk.f32.mxu1 %vm7043_vm1, %v7042_v0  ;;  %vm4224_vm13 = vcmp.ge.f32.partialorder %v9601_v63, 0.0 }
 0x2af   :  { %v6756_v59 = vpop.eup %6755  ;;  %6765 = vpow2.f32 %v4065_v44  ;;  %v9622_v4 = vadd.f32 %v9523_v15, %v3672_v2  ;;  %v2697_v57 = vadd.f32 %v2351_v54, %v8111_v36  ;;  %v6208_v27 = vpop.f32.mrb[237].mxu0  ;;  %6366 = vmatmul.mubr.msk.f32.gmra.mrb[86].mxu0 %vm198_vm0, %v1865_v38 }
 0x2b0   :  { %v4581_v10 = vmul.f32 %v6756_v59, %v9534_v1  ;;  %6767 = vrcp.f32 %v4311_v17  ;;  %v3951_v48 = vsub.f32 0.0, %v3860_v40  ;;  %v3327_v6 = vpop.f32.mrb[236].mxu1  ;;  %6368 = vmatprep.mubr.msk.f32.mxu0 %vm7043_vm1, %v7042_v0 }
 0x2b1   :  { %v3861_v45 = vand.u32 2147483647, %v9622_v4  ;;  %v3673_v36 = vadd.f32 %v3327_v6, %v2697_v57  ;;  %v6483_v20 = vpop.f32.mrb[237].mxu1  ;;  %6641 = vmatmul.mubr.msk.f32.gmra.mrb[86].mxu1 %vm198_vm0, %v2841_v52  ;;  %vm4225_vm14 = vcmp.ge.f32.partialorder %v9622_v4, 0.0 }
 0x2b2   :  { %v9635_v12 = vpop.eup %6757  ;;  %v4672_v1 = vsel %vm4217_vm6, %v6756_v59, %v4581_v10  ;;  %v4067_v9 = vmul.f32 1.442695, %v3951_v48  ;;  %v2356_v62 = vpop.f32.mrb[238].mxu0  ;;  %6643 = vmatprep.mubr.msk.f32.mxu1 %vm7043_vm1, %v7042_v0 }
 0x2b3   :  { %4763 = vst [vmem:[%s10624_s3 + $0x90] sm:$0xff] %v4672_v1  ;;  %v4312_v34 = vadd.f32 1.0, %v9635_v12  ;;  %v3952_v42 = vsub.f32 0.0, %v3861_v45  ;;  %v9647_v56 = vadd.f32 %v9523_v15, %v3673_v36  ;;  %v2698_v5 = vadd.f32 %v2356_v62, %v8125_v46  ;;  %v6211_v37 = vpop.f32.mrb[239].mxu0  ;;  %6369 = vmatmul.mubr.msk.f32.gmra.mrb[88].mxu0 %vm198_vm0, %v1866_v53  ;;  %v2844_v1 = vld [vmem:[%s10622_s0 + $0x298] sm:$0xff] }
 0x2b4   :  { %v6760_v39 = vpop.eup %6759  ;;  %6769 = vpow2.f32 %v4067_v9  ;;  %v3332_v41 = vpop.f32.mrb[238].mxu1  ;;  %6371 = vmatprep.mubr.msk.f32.mxu0 %vm7043_vm1, %v7042_v0 }
 0x2b5   :  { %v9656_v13 = vpop.eup %6761  ;;  %v4582_v11 = vmul.f32 %v6760_v39, %v9565_v22  ;;  %6771 = vrcp.f32 %v4312_v34  ;;  %v4069_v38 = vmul.f32 1.442695, %v3952_v42  ;;  %v3862_v46 = vand.u32 2147483647, %v9647_v56  ;;  %v6486_v23 = vpop.f32.mrb[239].mxu1  ;;  %6644 = vmatmul.mubr.msk.f32.gmra.mrb[88].mxu1 %vm198_vm0, %v2842_v19  ;;  %v2843_v22 = vld [vmem:[%s10622_s0 + $0x290] sm:$0xff] }
 0x2b6   :  { %v6764_v44 = vpop.eup %6763  ;;  %v4313_v2 = vadd.f32 1.0, %v9656_v13  ;;  %v3674_v33 = vadd.f32 %v3332_v41, %v2698_v5  ;;  %v2361_v17 = vpop.f32.mrb[240].mxu0  ;;  %6646 = vmatprep.mubr.msk.f32.mxu1 %vm7043_vm1, %v7042_v0  ;;  %vm4226_vm15 = vcmp.ge.f32.partialorder %v9647_v56, 0.0 }
 0x2b7   :  { %v4673_v40 = vsel %vm4218_vm7, %v6760_v39, %v4582_v11  ;;  %v4583_v54 = vmul.f32 %v6764_v44, %v9583_v3  ;;  %6773 = vpow2.f32 %v4069_v38  ;;  %v3953_v52 = vsub.f32 0.0, %v3862_v46  ;;  %v6214_v59 = vpop.f32.mrb[241].mxu0  ;;  %6372 = vmatmul.mubr.msk.f32.gmra.mrb[90].mxu0 %vm198_vm0, %v1867_v24  ;;  %v1868_v3 = vld [vmem:[%s10622_s0 + $0x299] sm:$0xff] }
 0x2b8   :  { %4764 = vst [vmem:[%s10624_s3 + $0x98] sm:$0xff] %v4673_v40  ;;  %6775 = vrcp.f32 %v4313_v2  ;;  %v9675_v55 = vadd.f32 %v9523_v15, %v3674_v33  ;;  %v2699_v57 = vadd.f32 %v2361_v17, %v8139_v58  ;;  %v3337_v27 = vpop.f32.mrb[240].mxu1  ;;  %6374 = vmatprep.mubr.msk.f32.mxu0 %vm7043_vm1, %v7042_v0  ;;  %v2845_v38 = vld [vmem:[%s10622_s0 + $0x2a0] sm:$0xff] }
 0x2b9   :  { %v9683_v10 = vpop.eup %6765  ;;  %v4674_v48 = vsel %vm4219_vm8, %v6764_v44, %v4583_v54  ;;  %v4071_v6 = vmul.f32 1.442695, %v3953_v52  ;;  %v6489_v53 = vpop.f32.mrb[241].mxu1  ;;  %6647 = vmatmul.mubr.msk.f32.gmra.mrb[90].mxu1 %vm198_vm0, %v2843_v22  ;;  %v1870_v54 = vld [vmem:[%s10622_s0 + $0x2a9] sm:$0xff] }
 0x2ba   :  { %v6768_v25 = vpop.eup %6767  ;;  %4765 = vst [vmem:[%s10624_s3 + $0xa0] sm:$0xff] %v4674_v48  ;;  %v4314_v58 = vadd.f32 1.0, %v9683_v10  ;;  %v3863_v45 = vand.u32 2147483647, %v9675_v55  ;;  %v3675_v36 = vadd.f32 %v3337_v27, %v2699_v57  ;;  %v2366_v20 = vpop.f32.mrb[242].mxu0  ;;  %6649 = vmatprep.mubr.msk.f32.mxu1 %vm7043_vm1, %v7042_v0 }
 0x2bb   :  { %v4584_v9 = vmul.f32 %v6768_v25, %v9608_v30  ;;  %6777 = vpow2.f32 %v4071_v6  ;;  %v2700_v62 = vadd.f32 %v2366_v20, %v8153_v8  ;;  %v6217_v19 = vpop.f32.mrb[243].mxu0  ;;  %6375 = vmatmul.mubr.msk.f32.gmra.mrb[92].mxu0 %vm198_vm0, %v1868_v3  ;;  %v1869_v30 = vld [vmem:[%s10622_s0 + $0x2a1] sm:$0xff] }
 0x2bc   :  { %6779 = vrcp.f32 %v4314_v58  ;;  %v3954_v34 = vsub.f32 0.0, %v3863_v45  ;;  %v9701_v42 = vadd.f32 %v9523_v15, %v3675_v36  ;;  %v3342_v5 = vpop.f32.mrb[242].mxu1  ;;  %6377 = vmatprep.mubr.msk.f32.mxu0 %vm7043_vm1, %v7042_v0 }
 0x2bd   :  { %v4675_v37 = vsel %vm4220_vm9, %v6768_v25, %v4584_v9  ;;  %v3676_v8 = vadd.f32 %v3342_v5, %v2700_v62  ;;  %v6492_v39 = vpop.f32.mrb[243].mxu1  ;;  %6650 = vmatmul.mubr.msk.f32.gmra.mrb[92].mxu1 %vm198_vm0, %v2844_v1 }
 0x2be   :  { %v9709_v41 = vpop.eup %6769  ;;  %4766 = vst [vmem:[%s10624_s3 + $0xa8] sm:$0xff] %v4675_v37  ;;  %v4073_v26 = vmul.f32 1.442695, %v3954_v34  ;;  %v3864_v24 = vand.u32 2147483647, %v9701_v42  ;;  %v2371_v11 = vpop.f32.mrb[244].mxu0  ;;  %6652 = vmatprep.mubr.msk.f32.mxu1 %vm7043_vm1, %v7042_v0 }
 0x2bf   :  { %v6772_v46 = vpop.eup %6771  ;;  %v4315_v23 = vadd.f32 1.0, %v9709_v41  ;;  %v9722_v44 = vadd.f32 %v9523_v15, %v3676_v8  ;;  %v2701_v2 = vadd.f32 %v2371_v11, %v8167_v21  ;;  %v6220_v33 = vpop.f32.mrb[245].mxu0  ;;  %6378 = vmatmul.mubr.msk.f32.gmra.mrb[94].mxu0 %vm198_vm0, %v1869_v30  ;;  %v2847_v37 = vld [vmem:[%s10622_s0 + $0x2b0] sm:$0xff] }
 0x2c0   :  { %v4585_v17 = vmul.f32 %v6772_v46, %v9635_v12  ;;  %6781 = vpow2.f32 %v4073_v26  ;;  %v3955_v22 = vsub.f32 0.0, %v3864_v24  ;;  %v3347_v40 = vpop.f32.mrb[244].mxu1  ;;  %6380 = vmatprep.mubr.msk.f32.mxu0 %vm7043_vm1, %v7042_v0 }
 0x2c1   :  { %v9732_v52 = vpop.eup %6773  ;;  %6783 = vrcp.f32 %v4315_v23  ;;  %v3865_v21 = vand.u32 2147483647, %v9722_v44  ;;  %v3677_v59 = vadd.f32 %v3347_v40, %v2701_v2  ;;  %v6495_v57 = vpop.f32.mrb[245].mxu1  ;;  %6653 = vmatmul.mubr.msk.f32.gmra.mrb[94].mxu1 %vm198_vm0, %v2845_v38  ;;  %vm4229_vm2 = vcmp.ge.f32.partialorder %v9722_v44, 0.0 }
 0x2c2   :  { %v6776_v12 = vpop.eup %6775  ;;  %v4676_v27 = vsel %vm4221_vm10, %v6772_v46, %v4585_v17  ;;  %v4316_v3 = vadd.f32 1.0, %v9732_v52  ;;  %v4075_v48 = vmul.f32 1.442695, %v3955_v22  ;;  %v2376_v6 = vpop.f32.mrb[246].mxu0  ;;  %6655 = vmatprep.mubr.msk.f32.mxu1 %vm7043_vm1, %v7042_v0  ;;  %v2848_v22 = vld [vmem:[%s10622_s0 + $0x2b8] sm:$0xff] }
 0x2c3   :  { %4767 = vst [vmem:[%s10624_s3 + $0xb0] sm:$0xff] %v4676_v27  ;;  %v4586_v53 = vmul.f32 %v6776_v12, %v9656_v13  ;;  %v3956_v25 = vsub.f32 0.0, %v3865_v21  ;;  %v9748_v58 = vadd.f32 %v9523_v15, %v3677_v59  ;;  %v2702_v45 = vadd.f32 %v2376_v6, %v8181_v32  ;;  %v6223_v36 = vpop.f32.mrb[247].mxu0  ;;  %6381 = vmatmul.mubr.msk.f32.gmra.mrb[96].mxu0 %vm198_vm0, %v1870_v54  ;;  %v1871_v13 = vld [vmem:[%s10622_s0 + $0x2b1] sm:$0xff] }
 0x2c4   :  { %6785 = vrcp.f32 %v4316_v3  ;;  %v3352_v20 = vpop.f32.mrb[246].mxu1  ;;  %6383 = vmatprep.mubr.msk.f32.mxu0 %vm7043_vm1, %v7042_v0  ;;  %v2849_v36 = vld [vmem:[%s10622_s0 + $0x2c0] sm:$0xff] }
 0x2c5   :  { %v9758_v1 = vpop.eup %6777  ;;  %v4677_v9 = vsel %vm4222_vm11, %v6776_v12, %v4586_v53  ;;  %6787 = vpow2.f32 %v4075_v48  ;;  %v4077_v62 = vmul.f32 1.442695, %v3956_v25  ;;  %v3866_v32 = vand.u32 2147483647, %v9748_v58  ;;  %v6498_v19 = vpop.f32.mrb[247].mxu1  ;;  %6656 = vmatmul.mubr.msk.f32.gmra.mrb[96].mxu1 %vm198_vm0, %v2846_v35  ;;  %v1873_v48 = vld [vmem:[%s10622_s0 + $0x2c1] sm:$0xff] }
 0x2c6   :  { %v6780_v18 = vpop.eup %6779  ;;  %4768 = vst [vmem:[%s10624_s3 + $0xb8] sm:$0xff] %v4677_v9  ;;  %v4317_v34 = vadd.f32 1.0, %v9758_v1  ;;  %v3678_v5 = vadd.f32 %v3352_v20, %v2702_v45  ;;  %v2381_v30 = vpop.f32.mrb[248].mxu0  ;;  %6658 = vmatprep.mubr.msk.f32.mxu1 %vm7043_vm1, %v7042_v0  ;;  %vm4230_vm3 = vcmp.ge.f32.partialorder %v9748_v58, 0.0 }
 0x2c7   :  { %v4587_v8 = vmul.f32 %v6780_v18, %v9683_v10  ;;  %6789 = vpow2.f32 %v4077_v62  ;;  %v3957_v39 = vsub.f32 0.0, %v3866_v32  ;;  %v2703_v26 = vadd.f32 %v2381_v30, %v8195_v47  ;;  %v6226_v24 = vpop.f32.mrb[249].mxu0  ;;  %6384 = vmatmul.mubr.msk.f32.gmra.mrb[98].mxu0 %vm198_vm0, %v1871_v13  ;;  %v1872_v10 = vld [vmem:[%s10622_s0 + $0x2b9] sm:$0xff] }
 0x2c8   :  { %6791 = vrcp.f32 %v4317_v34  ;;  %v9776_v11 = vadd.f32 %v9523_v15, %v3678_v5  ;;  %v3357_v38 = vpop.f32.mrb[248].mxu1  ;;  %6386 = vmatprep.mubr.msk.f32.mxu0 %vm7043_vm1, %v7042_v0  ;;  %v2850_v24 = vld [vmem:[%s10622_s0 + $0x2c8] sm:$0xff] }
 0x2c9   :  { %v4678_v46 = vsel %vm4223_vm12, %v6780_v18, %v4587_v8  ;;  %v4079_v23 = vmul.f32 1.442695, %v3957_v39  ;;  %v3679_v47 = vadd.f32 %v3357_v38, %v2703_v26  ;;  %v6501_v2 = vpop.f32.mrb[249].mxu1  ;;  %6659 = vmatmul.mubr.msk.f32.gmra.mrb[98].mxu1 %vm198_vm0, %v2847_v37 }
 0x2ca   :  { %v9784_v33 = vpop.eup %6781  ;;  %4769 = vst [vmem:[%s10624_s3 + $0xc0] sm:$0xff] %v4678_v46  ;;  %v3867_v50 = vand.u32 2147483647, %v9776_v11  ;;  %v2386_v17 = vpop.f32.mrb[250].mxu0  ;;  %6661 = vmatprep.mubr.msk.f32.mxu1 %vm7043_vm1, %v7042_v0  ;;  %vm4231_vm4 = vcmp.ge.f32.partialorder %v9776_v11, 0.0 }
 0x2cb   :  { %v6784_v40 = vpop.eup %6783  ;;  %v4318_v54 = vadd.f32 1.0, %v9784_v33  ;;  %6793 = vpow2.f32 %v4079_v23  ;;  %v9797_v21 = vadd.f32 %v9523_v15, %v3679_v47  ;;  %v2704_v59 = vadd.f32 %v2386_v17, %v8209_v61  ;;  %v6229_v57 = vpop.f32.mrb[251].mxu0  ;;  %6387 = vmatmul.mubr.msk.f32.gmra.mrb[100].mxu0 %vm198_vm0, %v1872_v10 }
 0x2cc   :  { %v4588_v12 = vmul.f32 %v6784_v40, %v9709_v41  ;;  %v3958_v27 = vsub.f32 0.0, %v3867_v50  ;;  %v3362_v3 = vpop.f32.mrb[250].mxu1  ;;  %6389 = vmatprep.mubr.msk.f32.mxu0 %vm7043_vm1, %v7042_v0  ;;  %v2851_v57 = vld [vmem:[%s10622_s0 + $0x2d0] sm:$0xff] }
 0x2cd   :  { %6795 = vrcp.f32 %v4318_v54  ;;  %v3868_v6 = vand.u32 2147483647, %v9797_v21  ;;  %v3680_v61 = vadd.f32 %v3362_v3, %v2704_v59  ;;  %v6504_v35 = vpop.f32.mrb[251].mxu1  ;;  %6662 = vmatmul.mubr.msk.f32.gmra.mrb[100].mxu1 %vm198_vm0, %v2848_v22  ;;  %vm4232_vm5 = vcmp.ge.f32.partialorder %v9797_v21, 0.0 }
 0x2ce   :  { %v6786_v53 = vpop.eup %6785  ;;  %v4679_v41 = vsel %vm4224_vm13, %v6784_v40, %v4588_v12  ;;  %v4081_v25 = vmul.f32 1.442695, %v3958_v27  ;;  %v2391_v45 = vpop.f32.mrb[252].mxu0  ;;  %6664 = vmatprep.mubr.msk.f32.mxu1 %vm7043_vm1, %v7042_v0 }
 0x2cf   :  { %v9815_v20 = vpop.eup %6787  ;;  %4770 = vst [vmem:[%s10624_s3 + $0xc8] sm:$0xff] %v4679_v41  ;;  %v4589_v63 = vmul.f32 %v6786_v53, %v9732_v52  ;;  %v3959_v13 = vsub.f32 0.0, %v3868_v6  ;;  %v9822_v9 = vadd.f32 %v9523_v15, %v3680_v61  ;;  %v2705_v62 = vadd.f32 %v2391_v45, %v8223_v14  ;;  %v6232_v32 = vpop.f32.mrb[253].mxu0  ;;  %6390 = vmatmul.mubr.msk.f32.gmra.mrb[102].mxu0 %vm198_vm0, %v1873_v48  ;;  %v1874_v52 = vld [vmem:[%s10622_s0 + $0x2c9] sm:$0xff] }
 0x2d0   :  { %v4319_v19 = vadd.f32 1.0, %v9815_v20  ;;  %6797 = vpow2.f32 %v4081_v25  ;;  %v3367_v18 = vpop.f32.mrb[252].mxu1  ;;  %6392 = vmatprep.mubr.msk.f32.mxu0 %vm7043_vm1, %v7042_v0 }
 0x2d1   :  { %v9833_v34 = vpop.eup %6789  ;;  %v4680_v5 = vsel %vm4225_vm14, %v6786_v53, %v4589_v63  ;;  %v4083_v14 = vmul.f32 1.442695, %v3959_v13  ;;  %v3869_v30 = vand.u32 2147483647, %v9822_v9  ;;  %v6507_v37 = vpop.f32.mrb[253].mxu1  ;;  %6665 = vmatmul.mubr.msk.f32.gmra.mrb[102].mxu1 %vm198_vm0, %v2849_v36  ;;  %v3681_v39 = vadd.f32 %v3367_v18, %v2705_v62 }
 0x2d2   :  { %v6792_v4 = vpop.eup %6791  ;;  %4771 = vst [vmem:[%s10624_s3 + $0xd0] sm:$0xff] %v4680_v5  ;;  %6799 = vrcp.f32 %v4319_v19  ;;  %v4320_v8 = vadd.f32 1.0, %v9833_v34  ;;  %v2396_v26 = vpop.f32.mrb[254].mxu0  ;;  %6667 = vmatprep.mubr.msk.f32.mxu1 %vm7043_vm1, %v7042_v0  ;;  %vm4233_vm6 = vcmp.ge.f32.partialorder %v9822_v9, 0.0 }
 0x2d3   :  { %v4590_v38 = vmul.f32 %v6792_v4, %v9758_v1  ;;  %6801 = vpow2.f32 %v4083_v14  ;;  %v3960_v10 = vsub.f32 0.0, %v3869_v30  ;;  %v2706_v46 = vadd.f32 %v2396_v26, %v8237_v29  ;;  %v6235_v23 = vpop.f32.mrb[255].mxu0  ;;  %6393 = vmatmul.mubr.msk.f32.gmra.mrb[104].mxu0 %vm198_vm0, %v1874_v52  ;;  %v1875_v1 = vld [vmem:[%s10622_s0 + $0x2d1] sm:$0xff] }
 0x2d4   :  { %6803 = vrcp.f32 %v4320_v8  ;;  %v9851_v47 = vadd.f32 %v9523_v15, %v3681_v39  ;;  %v3372_v2 = vpop.f32.mrb[254].mxu1  ;;  %6395 = vmatprep.mubr.msk.f32.mxu0 %vm7043_vm1, %v7042_v0 }
 0x2d5   :  { %v9858_v50 = vpop.eup %6793  ;;  %v4681_v29 = vsel %vm4226_vm15, %v6792_v4, %v4590_v38  ;;  %v4085_v17 = vmul.f32 1.442695, %v3960_v10  ;;  %v3682_v22 = vadd.f32 %v3372_v2, %v2706_v46  ;;  %v6510_v40 = vpop.f32.mrb[255].mxu1  ;;  %6668 = vmatmul.mubr.msk.f32.gmra.mrb[104].mxu1 %vm198_vm0, %v2850_v24 }
 0x2d6   :  { %4772 = vst [vmem:[%s10624_s3 + $0xd8] sm:$0xff] %v4681_v29  ;;  %v4321_v56 = vadd.f32 1.0, %v9858_v50  ;;  %v3870_v54 = vand.u32 2147483647, %v9851_v47  ;;  %v2401_v59 = vpop.f32.mrb[0].mxu0  ;;  %6670 = vmatprep.mubr.msk.f32.mxu1 %vm7043_vm1, %v7042_v0  ;;  %vm4227_vm1 = vcmp.ge.f32.partialorder %v9675_v55, 0.0 }
 0x2d7   :  { %v6796_v12 = vpop.eup %6795  ;;  %6805 = vpow2.f32 %v4085_v17  ;;  %v9872_v27 = vadd.f32 %v9523_v15, %v3682_v22  ;;  %v2707_v3 = vadd.f32 %v2401_v59, %v8251_v43  ;;  %v6238_v48 = vpop.f32.mrb[1].mxu0  ;;  %6396 = vmatmul.mubr.msk.f32.gmra.mrb[106].mxu0 %vm198_vm0, %v1875_v1  ;;  %vm4234_vm7 = vcmp.ge.f32.partialorder %v9851_v47, 0.0 }
 0x2d8   :  { %v4591_v6 = vmul.f32 %v6796_v12, %v9784_v33  ;;  %6807 = vrcp.f32 %v4321_v56  ;;  %v3961_v61 = vsub.f32 0.0, %v3870_v54  ;;  %v3377_v35 = vpop.f32.mrb[0].mxu1 }
 0x2d9   :  { %v3871_v0 = vand.u32 2147483647, %v9872_v27  ;;  %v3683_v53 = vadd.f32 %v3377_v35, %v2707_v3  ;;  %v6513_v41 = vpop.f32.mrb[1].mxu1  ;;  %6671 = vmatmul.mubr.msk.f32.gmra.mrb[106].mxu1 %vm198_vm0, %v2851_v57  ;;  %vm4228_vm0 = vcmp.ge.f32.partialorder %v9701_v42, 0.0  ;;  %vm4235_vm8 = vcmp.ge.f32.partialorder %v9872_v27, 0.0 }
 0x2da   :  { %v9880_v25 = vpop.eup %6797  ;;  %v4682_v45 = vsel %vm4227_vm1, %v6796_v12, %v4591_v6  ;;  %v4087_v43 = vmul.f32 1.442695, %v3961_v61  ;;  %v2406_v36 = vpop.f32.mrb[2].mxu0 }
 0x2db   :  { %4773 = vst [vmem:[%s10624_s3 + $0xe0] sm:$0xff] %v4682_v45  ;;  %v4322_v33 = vadd.f32 1.0, %v9880_v25  ;;  %v3962_v63 = vsub.f32 0.0, %v3871_v0  ;;  %v9887_v55 = vadd.f32 %v9523_v15, %v3683_v53  ;;  %v2708_v13 = vadd.f32 %v2406_v36, %v8265_v60  ;;  %v6241_v62 = vpop.f32.mrb[3].mxu0 }
 0x2dc   :  { %v6800_v32 = vpop.eup %6799  ;;  %6809 = vpow2.f32 %v4087_v43  ;;  %v3382_v19 = vpop.f32.mrb[2].mxu1 }
 0x2dd   :  { %v9890_v18 = vpop.eup %6801  ;;  %v4592_v52 = vmul.f32 %v6800_v32, %v9815_v20  ;;  %6811 = vrcp.f32 %v4322_v33  ;;  %v4089_v5 = vmul.f32 1.442695, %v3962_v63  ;;  %v3872_v14 = vand.u32 2147483647, %v9887_v55  ;;  %v6516_v30 = vpop.f32.mrb[3].mxu1 }
 0x2de   :  { %v6804_v37 = vpop.eup %6803  ;;  %v4323_v4 = vadd.f32 1.0, %v9890_v18  ;;  %v3684_v8 = vadd.f32 %v3382_v19, %v2708_v13  ;;  %v2411_v60 = vpop.f32.mrb[4].mxu0  ;;  %vm4236_vm9 = vcmp.ge.f32.partialorder %v9887_v55, 0.0 }
 0x2df   :  { %v4683_v39 = vsel %vm4228_vm0, %v6800_v32, %v4592_v52  ;;  %v4593_v26 = vmul.f32 %v6804_v37, %v9833_v34  ;;  %6813 = vpow2.f32 %v4089_v5  ;;  %v3963_v24 = vsub.f32 0.0, %v3872_v14  ;;  %v6244_v38 = vpop.f32.mrb[5].mxu0 }
 0x2e0   :  { %4774 = vst [vmem:[%s10624_s3 + $0xe8] sm:$0xff] %v4683_v39  ;;  %6815 = vrcp.f32 %v4323_v4  ;;  %v9902_v20 = vadd.f32 %v9523_v15, %v3684_v8  ;;  %v2709_v42 = vadd.f32 %v2411_v60, %v8279_v16  ;;  %v3387_v10 = vpop.f32.mrb[4].mxu1 }
 0x2e1   :  { %v9905_v46 = vpop.eup %6805  ;;  %v4684_v23 = vsel %vm4229_vm2, %v6804_v37, %v4593_v26  ;;  %v4091_v34 = vmul.f32 1.442695, %v3963_v24  ;;  %v6519_v2 = vpop.f32.mrb[5].mxu1 }
 0x2e2   :  { %v6808_v1 = vpop.eup %6807  ;;  %4775 = vst [vmem:[%s10624_s3 + $0xf0] sm:$0xff] %v4684_v23  ;;  %v4324_v29 = vadd.f32 1.0, %v9905_v46  ;;  %v3873_v44 = vand.u32 2147483647, %v9902_v20  ;;  %v3685_v17 = vadd.f32 %v3387_v10, %v2709_v42  ;;  %v2416_v22 = vpop.f32.mrb[6].mxu0  ;;  %vm4237_vm10 = vcmp.ge.f32.partialorder %v9902_v20, 0.0 }
 0x2e3   :  { %v4594_v40 = vmul.f32 %v6808_v1, %v9858_v50  ;;  %6817 = vpow2.f32 %v4091_v34  ;;  %v2710_v16 = vadd.f32 %v2416_v22, %v8293_v31  ;;  %v6247_v56 = vpop.f32.mrb[7].mxu0  ;;  %v10674_v20 = vld [vmem:[#allocation5_spill] sm:$0xff] }
 0x2e4   :  { %6819 = vrcp.f32 %v4324_v29  ;;  %v3964_v54 = vsub.f32 0.0, %v3873_v44  ;;  %v9916_v59 = vadd.f32 %v9523_v15, %v3685_v17  ;;  %v3392_v57 = vpop.f32.mrb[6].mxu1 }
 0x2e5   :  { %v4685_v12 = vsel %vm4230_vm3, %v6808_v1, %v4594_v40  ;;  %v3686_v3 = vadd.f32 %v3392_v57, %v2710_v16  ;;  %v6522_v48 = vpop.f32.mrb[7].mxu1 }
 0x2e6   :  { %v9918_v6 = vpop.eup %6809  ;;  %4776 = vst [vmem:[%s10624_s3 + $0xf8] sm:$0xff] %v4685_v12  ;;  %v4093_v50 = vmul.f32 1.442695, %v3964_v54  ;;  %v3874_v31 = vand.u32 2147483647, %v9916_v59  ;;  %v2421_v61 = vpop.f32.mrb[8].mxu0 }
 0x2e7   :  { %v6812_v58 = vpop.eup %6811  ;;  %v4325_v35 = vadd.f32 1.0, %v9918_v6  ;;  %v9926_v0 = vadd.f32 %v9523_v15, %v3686_v3  ;;  %v2711_v53 = vadd.f32 %v2421_v61, %v8307_v51  ;;  %v6250_v41 = vpop.f32.mrb[9].mxu0  ;;  %vm4238_vm11 = vcmp.ge.f32.partialorder %v9916_v59, 0.0  ;;  %v10675_v59 = vld [vmem:[#allocation6_spill] sm:$0xff] }
 0x2e8   :  { %v4595_v45 = vmul.f32 %v6812_v58, %v9880_v25  ;;  %6821 = vpow2.f32 %v4093_v50  ;;  %v3965_v43 = vsub.f32 0.0, %v3874_v31  ;;  %v3397_v36 = vpop.f32.mrb[8].mxu1 }
 0x2e9   :  { %v9930_v33 = vpop.eup %6813  ;;  %6823 = vrcp.f32 %v4325_v35  ;;  %v3875_v63 = vand.u32 2147483647, %v9926_v0  ;;  %v3687_v13 = vadd.f32 %v3397_v36, %v2711_v53  ;;  %v6525_v62 = vpop.f32.mrb[9].mxu1  ;;  %vm4239_vm12 = vcmp.ge.f32.partialorder %v9926_v0, 0.0 }
 0x2ea   :  { %v6816_v32 = vpop.eup %6815  ;;  %v4686_v19 = vsel %vm4231_vm4, %v6812_v58, %v4595_v45  ;;  %v4326_v52 = vadd.f32 1.0, %v9930_v33  ;;  %v4095_v51 = vmul.f32 1.442695, %v3965_v43  ;;  %v2426_v5 = vpop.f32.mrb[10].mxu0  ;;  %v10671_v43 = vld [vmem:[#allocation2_spill] sm:$0xff] }
 0x2eb   :  { %4777 = vst [vmem:[%s10624_s3 + $0x100] sm:$0xff] %v4686_v19  ;;  %v4596_v25 = vmul.f32 %v6816_v32, %v9890_v18  ;;  %v3966_v14 = vsub.f32 0.0, %v3875_v63  ;;  %v9940_v11 = vadd.f32 %v9523_v15, %v3687_v13  ;;  %v2712_v30 = vadd.f32 %v2426_v5, %v8321_v7  ;;  %v6253_v37 = vpop.f32.mrb[11].mxu0 }
 0x2ec   :  { %6825 = vrcp.f32 %v4326_v52  ;;  %v3402_v4 = vpop.f32.mrb[10].mxu1  ;;  %v10672_v37 = vld [vmem:[#allocation3_spill] sm:$0xff] }
 0x2ed   :  { %v9944_v8 = vpop.eup %6817  ;;  %v4687_v60 = vsel %vm4232_vm5, %v6816_v32, %v4596_v25  ;;  %6827 = vpow2.f32 %v4095_v51  ;;  %v4097_v39 = vmul.f32 1.442695, %v3966_v14  ;;  %v3876_v26 = vand.u32 2147483647, %v9940_v11  ;;  %v6528_v24 = vpop.f32.mrb[11].mxu1 }
 0x2ee   :  { %v6820_v18 = vpop.eup %6819  ;;  %4778 = vst [vmem:[%s10624_s3 + $0x108] sm:$0xff] %v4687_v60  ;;  %v4327_v7 = vadd.f32 1.0, %v9944_v8  ;;  %v3688_v38 = vadd.f32 %v3402_v4, %v2712_v30  ;;  %v2431_v42 = vpop.f32.mrb[12].mxu0  ;;  %vm4240_vm13 = vcmp.ge.f32.partialorder %v9940_v11, 0.0 }
 0x2ef   :  { %v4597_v21 = vmul.f32 %v6820_v18, %v9905_v46  ;;  %6829 = vpow2.f32 %v4097_v39  ;;  %v3967_v10 = vsub.f32 0.0, %v3876_v26  ;;  %v2713_v23 = vadd.f32 %v2431_v42, %v8335_v28  ;;  %v6256_v34 = vpop.f32.mrb[13].mxu0  ;;  %v9996_v39 = vld [vmem:[%s10623_s2] ss:$0 sm:$0xff] }
 0x2f0   :  { %6831 = vrcp.f32 %v4327_v7  ;;  %v9955_v2 = vadd.f32 %v9523_v15, %v3688_v38  ;;  %v3407_v1 = vpop.f32.mrb[12].mxu1 }
 0x2f1   :  { %v4688_v29 = vsel %vm4233_vm6, %v6820_v18, %v4597_v21  ;;  %v4099_v44 = vmul.f32 1.442695, %v3967_v10  ;;  %v3689_v17 = vadd.f32 %v3407_v1, %v2713_v23  ;;  %v6531_v22 = vpop.f32.mrb[13].mxu1  ;;  %v10673_v1 = vld [vmem:[#allocation4_spill] sm:$0xff] }
 0x2f2   :  { %v9957_v40 = vpop.eup %6821  ;;  %4779 = vst [vmem:[%s10624_s3 + $0x110] sm:$0xff] %v4688_v29  ;;  %v3877_v28 = vand.u32 2147483647, %v9955_v2  ;;  %v2436_v46 = vpop.f32.mrb[14].mxu0  ;;  %vm4241_vm14 = vcmp.ge.f32.partialorder %v9955_v2, 0.0 }
 0x2f3   :  { %v6824_v16 = vpop.eup %6823  ;;  %v4328_v9 = vadd.f32 1.0, %v9957_v40  ;;  %6833 = vpow2.f32 %v4099_v44  ;;  %v9965_v56 = vadd.f32 %v9523_v15, %v3689_v17  ;;  %v2714_v54 = vadd.f32 %v2436_v46, %v8349_v49  ;;  %v6259_v57 = vpop.f32.mrb[15].mxu0 }
 0x2f4   :  { %v4598_v12 = vmul.f32 %v6824_v16, %v9918_v6  ;;  %v3968_v3 = vsub.f32 0.0, %v3877_v28  ;;  %v3412_v48 = vpop.f32.mrb[14].mxu1 }
 0x2f5   :  { %6835 = vrcp.f32 %v4328_v9  ;;  %v3878_v50 = vand.u32 2147483647, %v9965_v56  ;;  %v3690_v31 = vadd.f32 %v3412_v48, %v2714_v54  ;;  %v6534_v61 = vpop.f32.mrb[15].mxu1  ;;  %vm4242_vm15 = vcmp.ge.f32.partialorder %v9965_v56, 0.0 }
 0x2f6   :  { %v6826_v58 = vpop.eup %6825  ;;  %v4689_v35 = vsel %vm4234_vm7, %v6824_v16, %v4598_v12  ;;  %v4101_v53 = vmul.f32 1.442695, %v3968_v3  ;;  %v2441_v41 = vpop.f32.mrb[16].mxu0 }
 0x2f7   :  { %v9971_v45 = vpop.eup %6827  ;;  %4780 = vst [vmem:[%s10624_s3 + $0x118] sm:$0xff] %v4689_v35  ;;  %v4599_v49 = vmul.f32 %v6826_v58, %v9930_v33  ;;  %v3969_v6 = vsub.f32 0.0, %v3878_v50  ;;  %v9978_v47 = vadd.f32 %v9523_v15, %v3690_v31  ;;  %v2715_v36 = vadd.f32 %v2441_v41, %v10671_v43  ;;  %v6262_v63 = vpop.f32.mrb[17].mxu0 }
 0x2f8   :  { %v4329_v13 = vadd.f32 1.0, %v9971_v45  ;;  %6837 = vpow2.f32 %v4101_v53  ;;  %v3417_v62 = vpop.f32.mrb[16].mxu1 }
 0x2f9   :  { %v9983_v32 = vpop.eup %6829  ;;  %v4690_v19 = vsel %vm4235_vm8, %v6826_v58, %v4599_v49  ;;  %v4103_v52 = vmul.f32 1.442695, %v3969_v6  ;;  %v3879_v51 = vand.u32 2147483647, %v9978_v47  ;;  %v6537_v33 = vpop.f32.mrb[17].mxu1  ;;  %v3691_v27 = vadd.f32 %v3417_v62, %v2715_v36 }
 0x2fa   :  { %v6832_v5 = vpop.eup %6831  ;;  %4781 = vst [vmem:[%s10624_s3 + $0x120] sm:$0xff] %v4690_v19  ;;  %6839 = vrcp.f32 %v4329_v13  ;;  %v4330_v15 = vadd.f32 1.0, %v9983_v32  ;;  %v2446_v25 = vpop.f32.mrb[18].mxu0  ;;  %vm4243_vm1 = vcmp.ge.f32.partialorder %v9978_v47, 0.0 }
 0x2fb   :  { %v4600_v14 = vmul.f32 %v6832_v5, %v9944_v8  ;;  %6841 = vpow2.f32 %v4103_v52  ;;  %v3970_v30 = vsub.f32 0.0, %v3879_v51  ;;  %v2716_v4 = vadd.f32 %v2446_v25, %v10672_v37  ;;  %v6265_v60 = vpop.f32.mrb[19].mxu0 }
 0x2fc   :  { %6843 = vrcp.f32 %v4330_v15  ;;  %v9999_v26 = vadd.f32 %v9996_v39, %v3691_v27  ;;  %v3422_v24 = vpop.f32.mrb[18].mxu1 }
 0x2fd   :  { %v10001_v18 = vpop.eup %6833  ;;  %v4691_v8 = vsel %vm4236_vm9, %v6832_v5, %v4600_v14  ;;  %v4105_v7 = vmul.f32 1.442695, %v3970_v30  ;;  %v3692_v38 = vadd.f32 %v3422_v24, %v2716_v4  ;;  %v6540_v42 = vpop.f32.mrb[19].mxu1 }
 0x2fe   :  { %4782 = vst [vmem:[%s10624_s3 + $0x128] sm:$0xff] %v4691_v8  ;;  %v4331_v55 = vadd.f32 1.0, %v10001_v18  ;;  %v3880_v21 = vand.u32 2147483647, %v9999_v26  ;;  %v2451_v10 = vpop.f32.mrb[20].mxu0  ;;  %v10676_v8 = vld [vmem:[#allocation7_spill] sm:$0xff] }
 0x2ff   :  { %v6836_v23 = vpop.eup %6835  ;;  %6845 = vpow2.f32 %v4105_v7  ;;  %v10009_v34 = vadd.f32 %v9996_v39, %v3692_v38  ;;  %v2717_v29 = vadd.f32 %v2451_v10, %v10673_v1  ;;  %v6268_v44 = vpop.f32.mrb[21].mxu0  ;;  %vm4244_vm0 = vcmp.ge.f32.partialorder %v9999_v26, 0.0 }
 0x300   :  { %v4601_v17 = vmul.f32 %v6836_v23, %v9957_v40  ;;  %6847 = vrcp.f32 %v4331_v55  ;;  %v3971_v22 = vsub.f32 0.0, %v3880_v21  ;;  %v3427_v28 = vpop.f32.mrb[20].mxu1 }
 0x301   :  { %v3881_v46 = vand.u32 2147483647, %v10009_v34  ;;  %v3693_v16 = vadd.f32 %v3427_v28, %v2717_v29  ;;  %v6543_v9 = vpop.f32.mrb[21].mxu1  ;;  %vm4245_vm2 = vcmp.ge.f32.partialorder %v10009_v34, 0.0 }
 0x302   :  { %v10015_v54 = vpop.eup %6837  ;;  %v4692_v57 = vsel %vm4237_vm10, %v6836_v23, %v4601_v17  ;;  %v4107_v12 = vmul.f32 1.442695, %v3971_v22  ;;  %v2456_v3 = vpop.f32.mrb[22].mxu0 }
 0x303   :  { %4783 = vst [vmem:[%s10624_s3 + $0x130] sm:$0xff] %v4692_v57  ;;  %v4332_v40 = vadd.f32 1.0, %v10015_v54  ;;  %v3972_v48 = vsub.f32 0.0, %v3881_v46  ;;  %v10022_v50 = vadd.f32 %v9996_v39, %v3693_v16  ;;  %v2718_v31 = vadd.f32 %v2456_v3, %v10674_v20  ;;  %v6271_v61 = vpop.f32.mrb[23].mxu0  ;;  %v10677_v46 = vld [vmem:[#allocation8_spill] sm:$0xff] }
 0x304   :  { %v6840_v58 = vpop.eup %6839  ;;  %6849 = vpow2.f32 %v4107_v12  ;;  %v3432_v35 = vpop.f32.mrb[22].mxu1 }
 0x305   :  { %v10025_v53 = vpop.eup %6841  ;;  %v4602_v41 = vmul.f32 %v6840_v58, %v9971_v45  ;;  %6851 = vrcp.f32 %v4332_v40  ;;  %v4109_v49 = vmul.f32 1.442695, %v3972_v48  ;;  %v3882_v6 = vand.u32 2147483647, %v10022_v50  ;;  %v6546_v43 = vpop.f32.mrb[23].mxu1 }
 0x306   :  { %v6844_v36 = vpop.eup %6843  ;;  %v4333_v63 = vadd.f32 1.0, %v10025_v53  ;;  %v3694_v13 = vadd.f32 %v3432_v35, %v2718_v31  ;;  %v2461_v62 = vpop.f32.mrb[24].mxu0  ;;  %v10678_v43 = vld [vmem:[#allocation9_spill] sm:$0xff]  ;;  %vm4246_vm3 = vcmp.ge.f32.partialorder %v10022_v50, 0.0 }
 0x307   :  { %v4693_v19 = vsel %vm4238_vm11, %v6840_v58, %v4602_v41  ;;  %v4603_v52 = vmul.f32 %v6844_v36, %v9983_v32  ;;  %6853 = vpow2.f32 %v4109_v49  ;;  %v3973_v51 = vsub.f32 0.0, %v3882_v6  ;;  %v6274_v33 = vpop.f32.mrb[25].mxu0 }
 0x308   :  { %4784 = vst [vmem:[%s10624_s3 + $0x138] sm:$0xff] %v4693_v19  ;;  %6855 = vrcp.f32 %v4333_v63  ;;  %v10037_v45 = vadd.f32 %v9996_v39, %v3694_v13  ;;  %v2719_v5 = vadd.f32 %v2461_v62, %v10675_v59  ;;  %v3437_v15 = vpop.f32.mrb[24].mxu1 }
 0x309   :  { %v10040_v27 = vpop.eup %6845  ;;  %v4694_v25 = vsel %vm4239_vm12, %v6844_v36, %v4603_v52  ;;  %v4111_v32 = vmul.f32 1.442695, %v3973_v51  ;;  %v6549_v14 = vpop.f32.mrb[25].mxu1 }
 0x30a   :  { %v6848_v30 = vpop.eup %6847  ;;  %4785 = vst [vmem:[%s10624_s3 + $0x140] sm:$0xff] %v4694_v25  ;;  %v4334_v37 = vadd.f32 1.0, %v10040_v27  ;;  %v3883_v0 = vand.u32 2147483647, %v10037_v45  ;;  %v3695_v4 = vadd.f32 %v3437_v15, %v2719_v5  ;;  %v2466_v60 = vpop.f32.mrb[26].mxu0  ;;  %vm4247_vm4 = vcmp.ge.f32.partialorder %v10037_v45, 0.0 }
 0x30b   :  { %v4604_v24 = vmul.f32 %v6848_v30, %v10001_v18  ;;  %6857 = vpow2.f32 %v4111_v32  ;;  %v2720_v7 = vadd.f32 %v2466_v60, %v10676_v8  ;;  %v6277_v38 = vpop.f32.mrb[27].mxu0  ;;  %v10679_v32 = vld [vmem:[#allocation10_spill] sm:$0xff]  ;;  %v10684_v45 = vld [vmem:[#allocation15_spill] sm:$0xff] }
 0x30c   :  { %6859 = vrcp.f32 %v4334_v37  ;;  %v3974_v42 = vsub.f32 0.0, %v3883_v0  ;;  %v10051_v55 = vadd.f32 %v9996_v39, %v3695_v4  ;;  %v3442_v21 = vpop.f32.mrb[26].mxu1 }
 0x30d   :  { %v4695_v10 = vsel %vm4240_vm13, %v6848_v30, %v4604_v24  ;;  %v3696_v23 = vadd.f32 %v3442_v21, %v2720_v7  ;;  %v6552_v1 = vpop.f32.mrb[27].mxu1 }
 0x30e   :  { %v10053_v29 = vpop.eup %6849  ;;  %4786 = vst [vmem:[%s10624_s3 + $0x148] sm:$0xff] %v4695_v10  ;;  %v4113_v18 = vmul.f32 1.442695, %v3974_v42  ;;  %v3884_v44 = vand.u32 2147483647, %v10051_v55  ;;  %v2471_v17 = vpop.f32.mrb[28].mxu0 }
 0x30f   :  { %v6852_v11 = vpop.eup %6851  ;;  %v4335_v22 = vadd.f32 1.0, %v10053_v29  ;;  %v10061_v28 = vadd.f32 %v9996_v39, %v3696_v23  ;;  %v2721_v16 = vadd.f32 %v2471_v17, %v10677_v46  ;;  %v6280_v9 = vpop.f32.mrb[29].mxu0  ;;  %v10680_v10 = vld [vmem:[#allocation11_spill] sm:$0xff]  ;;  %vm4248_vm5 = vcmp.ge.f32.partialorder %v10051_v55, 0.0  ;;  %v10685_v55 = vld [vmem:[#allocation16_spill] sm:$0xff] }
 0x310   :  { %v4605_v57 = vmul.f32 %v6852_v11, %v10015_v54  ;;  %6861 = vpow2.f32 %v4113_v18  ;;  %v3975_v12 = vsub.f32 0.0, %v3884_v44  ;;  %v3447_v3 = vpop.f32.mrb[28].mxu1 }
 0x311   :  { %v10065_v40 = vpop.eup %6853  ;;  %6863 = vrcp.f32 %v4335_v22  ;;  %v3885_v48 = vand.u32 2147483647, %v10061_v28  ;;  %v3697_v20 = vadd.f32 %v3447_v3, %v2721_v16  ;;  %v6555_v31 = vpop.f32.mrb[29].mxu1  ;;  %vm4249_vm6 = vcmp.ge.f32.partialorder %v10061_v28, 0.0 }
 0x312   :  { %v6856_v61 = vpop.eup %6855  ;;  %v4696_v58 = vsel %vm4241_vm14, %v6852_v11, %v4605_v57  ;;  %v4336_v35 = vadd.f32 1.0, %v10065_v40  ;;  %v4115_v41 = vmul.f32 1.442695, %v3975_v12  ;;  %v2476_v49 = vpop.f32.mrb[30].mxu0 }
 0x313   :  { %4787 = vst [vmem:[%s10624_s3 + $0x150] sm:$0xff] %v4696_v58  ;;  %v4606_v54 = vmul.f32 %v6856_v61, %v10025_v53  ;;  %v3976_v6 = vsub.f32 0.0, %v3885_v48  ;;  %v10075_v2 = vadd.f32 %v9996_v39, %v3697_v20  ;;  %v2722_v36 = vadd.f32 %v2476_v49, %v10678_v43  ;;  %v6283_v63 = vpop.f32.mrb[31].mxu0  ;;  %v10681_v20 = vld [vmem:[#allocation12_spill] sm:$0xff] }
 0x314   :  { %6865 = vrcp.f32 %v4336_v35  ;;  %v3452_v13 = vpop.f32.mrb[30].mxu1 }
 0x315   :  { %v10079_v62 = vpop.eup %6857  ;;  %v4697_v19 = vsel %vm4242_vm15, %v6856_v61, %v4606_v54  ;;  %6867 = vpow2.f32 %v4115_v41  ;;  %v4117_v52 = vmul.f32 1.442695, %v3976_v6  ;;  %v3886_v51 = vand.u32 2147483647, %v10075_v2  ;;  %v6558_v33 = vpop.f32.mrb[31].mxu1 }
 0x316   :  { %v6860_v53 = vpop.eup %6859  ;;  %4788 = vst [vmem:[%s10624_s3 + $0x158] sm:$0xff] %v4697_v19  ;;  %v4337_v59 = vadd.f32 1.0, %v10079_v62  ;;  %v3698_v5 = vadd.f32 %v3452_v13, %v2722_v36  ;;  %v2481_v15 = vpop.f32.mrb[32].mxu0  ;;  %vm4250_vm7 = vcmp.ge.f32.partialorder %v10075_v2, 0.0 }
 0x317   :  { %v4607_v56 = vmul.f32 %v6860_v53, %v10040_v27  ;;  %6869 = vpow2.f32 %v4117_v52  ;;  %v3977_v25 = vsub.f32 0.0, %v3886_v51  ;;  %v2723_v14 = vadd.f32 %v2481_v15, %v10679_v32  ;;  %v6286_v30 = vpop.f32.mrb[33].mxu0  ;;  %v10682_v52 = vld [vmem:[#allocation13_spill] sm:$0xff] }
 0x318   :  { %6871 = vrcp.f32 %v4337_v59  ;;  %v10090_v37 = vadd.f32 %v9996_v39, %v3698_v5  ;;  %v3457_v0 = vpop.f32.mrb[32].mxu1 }
 0x319   :  { %v4698_v4 = vsel %vm4243_vm1, %v6860_v53, %v4607_v56  ;;  %v4119_v60 = vmul.f32 1.442695, %v3977_v25  ;;  %v3699_v24 = vadd.f32 %v3457_v0, %v2723_v14  ;;  %v6561_v8 = vpop.f32.mrb[33].mxu1 }
 0x31a   :  { %v10092_v7 = vpop.eup %6861  ;;  %4789 = vst [vmem:[%s10624_s3 + $0x160] sm:$0xff] %v4698_v4  ;;  %v3887_v27 = vand.u32 2147483647, %v10090_v37  ;;  %v2486_v38 = vpop.f32.mrb[34].mxu0  ;;  %v10683_v4 = vld [vmem:[#allocation14_spill] sm:$0xff]  ;;  %vm4251_vm8 = vcmp.ge.f32.partialorder %v10090_v37, 0.0 }
 0x31b   :  { %v6864_v42 = vpop.eup %6863  ;;  %v4338_v47 = vadd.f32 1.0, %v10092_v7  ;;  %6873 = vpow2.f32 %v4119_v60  ;;  %v10100_v21 = vadd.f32 %v9996_v39, %v3699_v24  ;;  %v2724_v23 = vadd.f32 %v2486_v38, %v10680_v10  ;;  %v6289_v1 = vpop.f32.mrb[35].mxu0 }
 0x31c   :  { %v4608_v18 = vmul.f32 %v6864_v42, %v10053_v29  ;;  %v3978_v44 = vsub.f32 0.0, %v3887_v27  ;;  %v3462_v17 = vpop.f32.mrb[34].mxu1 }
 0x31d   :  { %6875 = vrcp.f32 %v4338_v47  ;;  %v3888_v11 = vand.u32 2147483647, %v10100_v21  ;;  %v3700_v22 = vadd.f32 %v3462_v17, %v2724_v23  ;;  %v6564_v46 = vpop.f32.mrb[35].mxu1  ;;  %vm4252_vm9 = vcmp.ge.f32.partialorder %v10100_v21, 0.0 }
 0x31e   :  { %v6866_v16 = vpop.eup %6865  ;;  %v4699_v9 = vsel %vm4244_vm0, %v6864_v42, %v4608_v18  ;;  %v4121_v57 = vmul.f32 1.442695, %v3978_v44  ;;  %v2491_v12 = vpop.f32.mrb[36].mxu0 }
 0x31f   :  { %v10106_v3 = vpop.eup %6867  ;;  %4790 = vst [vmem:[%s10624_s3 + $0x168] sm:$0xff] %v4699_v9  ;;  %v4609_v29 = vmul.f32 %v6866_v16, %v10065_v40  ;;  %v3979_v48 = vsub.f32 0.0, %v3888_v11  ;;  %v10113_v26 = vadd.f32 %v9996_v39, %v3700_v22  ;;  %v2725_v31 = vadd.f32 %v2491_v12, %v10681_v20  ;;  %v6292_v61 = vpop.f32.mrb[37].mxu0 }
 0x320   :  { %v4339_v58 = vadd.f32 1.0, %v10106_v3  ;;  %6877 = vpow2.f32 %v4121_v57  ;;  %v3467_v35 = vpop.f32.mrb[36].mxu1 }
 0x321   :  { %v10118_v41 = vpop.eup %6869  ;;  %v4700_v49 = vsel %vm4245_vm2, %v6866_v16, %v4609_v29  ;;  %v4123_v54 = vmul.f32 1.442695, %v3979_v48  ;;  %v3889_v6 = vand.u32 2147483647, %v10113_v26  ;;  %v6567_v40 = vpop.f32.mrb[37].mxu1  ;;  %v3701_v34 = vadd.f32 %v3467_v35, %v2725_v31 }
 0x322   :  { %v6872_v43 = vpop.eup %6871  ;;  %4791 = vst [vmem:[%s10624_s3 + $0x170] sm:$0xff] %v4700_v49  ;;  %6879 = vrcp.f32 %v4339_v58  ;;  %v4340_v36 = vadd.f32 1.0, %v10118_v41  ;;  %v2496_v63 = vpop.f32.mrb[38].mxu0  ;;  %vm4253_vm10 = vcmp.ge.f32.partialorder %v10113_v26, 0.0 }
 0x323   :  { %v4610_v13 = vmul.f32 %v6872_v43, %v10079_v62  ;;  %6881 = vpow2.f32 %v4123_v54  ;;  %v3980_v19 = vsub.f32 0.0, %v3889_v6  ;;  %v2726_v51 = vadd.f32 %v2496_v63, %v10682_v52  ;;  %v6295_v33 = vpop.f32.mrb[39].mxu0 }
 0x324   :  { %6883 = vrcp.f32 %v4340_v36  ;;  %v10129_v53 = vadd.f32 %v9996_v39, %v3701_v34  ;;  %v3472_v59 = vpop.f32.mrb[38].mxu1 }
 0x325   :  { %v10131_v5 = vpop.eup %6873  ;;  %v4701_v15 = vsel %vm4246_vm3, %v6872_v43, %v4610_v13  ;;  %v4125_v56 = vmul.f32 1.442695, %v3980_v19  ;;  %v3702_v25 = vadd.f32 %v3472_v59, %v2726_v51  ;;  %v6570_v32 = vpop.f32.mrb[39].mxu1 }
 0x326   :  { %4792 = vst [vmem:[%s10624_s3 + $0x178] sm:$0xff] %v4701_v15  ;;  %v4341_v62 = vadd.f32 1.0, %v10131_v5  ;;  %v3890_v14 = vand.u32 2147483647, %v10129_v53  ;;  %v2501_v50 = vpop.f32.mrb[40].mxu0  ;;  %v10686_v15 = vld [vmem:[#allocation17_spill] sm:$0xff] }
 0x327   :  { %v6876_v30 = vpop.eup %6875  ;;  %6885 = vpow2.f32 %v4125_v56  ;;  %v10139_v0 = vadd.f32 %v9996_v39, %v3702_v25  ;;  %v2727_v60 = vadd.f32 %v2501_v50, %v10683_v4  ;;  %v6298_v24 = vpop.f32.mrb[41].mxu0  ;;  %vm4254_vm11 = vcmp.ge.f32.partialorder %v10129_v53, 0.0 }
 0x328   :  { %v4611_v8 = vmul.f32 %v6876_v30, %v10092_v7  ;;  %6887 = vrcp.f32 %v4341_v62  ;;  %v3981_v27 = vsub.f32 0.0, %v3890_v14  ;;  %v3477_v38 = vpop.f32.mrb[40].mxu1 }
 0x329   :  { %v3891_v42 = vand.u32 2147483647, %v10139_v0  ;;  %v3703_v47 = vadd.f32 %v3477_v38, %v2727_v60  ;;  %v6573_v10 = vpop.f32.mrb[41].mxu1  ;;  %vm4255_vm12 = vcmp.ge.f32.partialorder %v10139_v0, 0.0 }
 0x32a   :  { %v10145_v23 = vpop.eup %6877  ;;  %v4702_v1 = vsel %vm4247_vm4, %v6876_v30, %v4611_v8  ;;  %v4127_v18 = vmul.f32 1.442695, %v3981_v27  ;;  %v2506_v44 = vpop.f32.mrb[42].mxu0 }
 0x32b   :  { %4793 = vst [vmem:[%s10624_s3 + $0x180] sm:$0xff] %v4702_v1  ;;  %v4342_v7 = vadd.f32 1.0, %v10145_v23  ;;  %v3982_v17 = vsub.f32 0.0, %v3891_v42  ;;  %v10152_v11 = vadd.f32 %v9996_v39, %v3703_v47  ;;  %v2728_v22 = vadd.f32 %v2506_v44, %v10684_v45  ;;  %v6301_v46 = vpop.f32.mrb[43].mxu0  ;;  %v10687_v42 = vld [vmem:[#allocation18_spill] sm:$0xff] }
 0x32c   :  { %v6880_v16 = vpop.eup %6879  ;;  %6889 = vpow2.f32 %v4127_v18  ;;  %v3482_v9 = vpop.f32.mrb[42].mxu1 }
 0x32d   :  { %v10155_v57 = vpop.eup %6881  ;;  %v4612_v12 = vmul.f32 %v6880_v16, %v10106_v3  ;;  %6891 = vrcp.f32 %v4342_v7  ;;  %v4129_v29 = vmul.f32 1.442695, %v3982_v17  ;;  %v3892_v48 = vand.u32 2147483647, %v10152_v11  ;;  %v6576_v20 = vpop.f32.mrb[43].mxu1 }
 0x32e   :  { %v6884_v31 = vpop.eup %6883  ;;  %v4343_v61 = vadd.f32 1.0, %v10155_v57  ;;  %v3704_v58 = vadd.f32 %v3482_v9, %v2728_v22  ;;  %v2511_v35 = vpop.f32.mrb[44].mxu0  ;;  %v10688_v20 = vld [vmem:[#allocation19_spill] sm:$0xff]  ;;  %vm4256_vm13 = vcmp.ge.f32.partialorder %v10152_v11, 0.0 }
 0x32f   :  { %v4703_v49 = vsel %vm4248_vm5, %v6880_v16, %v4612_v12  ;;  %v4613_v54 = vmul.f32 %v6884_v31, %v10118_v41  ;;  %6893 = vpow2.f32 %v4129_v29  ;;  %v3983_v6 = vsub.f32 0.0, %v3892_v48  ;;  %v6304_v40 = vpop.f32.mrb[45].mxu0 }
 0x330   :  { %4794 = vst [vmem:[%s10624_s3 + $0x188] sm:$0xff] %v4703_v49  ;;  %6895 = vrcp.f32 %v4343_v61  ;;  %v10167_v3 = vadd.f32 %v9996_v39, %v3704_v58  ;;  %v2729_v43 = vadd.f32 %v2511_v35, %v10685_v55  ;;  %v3487_v36 = vpop.f32.mrb[44].mxu1 }
 0x331   :  { %v10170_v34 = vpop.eup %6885  ;;  %v4704_v63 = vsel %vm4249_vm6, %v6884_v31, %v4613_v54  ;;  %v4131_v41 = vmul.f32 1.442695, %v3983_v6  ;;  %v6579_v13 = vpop.f32.mrb[45].mxu1 }
 0x332   :  { %v6888_v19 = vpop.eup %6887  ;;  %4795 = vst [vmem:[%s10624_s3 + $0x190] sm:$0xff] %v4704_v63  ;;  %v4344_v52 = vadd.f32 1.0, %v10170_v34  ;;  %v3893_v28 = vand.u32 2147483647, %v10167_v3  ;;  %v3705_v51 = vadd.f32 %v3487_v36, %v2729_v43  ;;  %v2516_v33 = vpop.f32.mrb[46].mxu0  ;;  %vm4257_vm14 = vcmp.ge.f32.partialorder %v10167_v3, 0.0 }
 0x333   :  { %v4614_v59 = vmul.f32 %v6888_v19, %v10131_v5  ;;  %6897 = vpow2.f32 %v4131_v41  ;;  %v2730_v56 = vadd.f32 %v2516_v33, %v10686_v15  ;;  %v6307_v25 = vpop.f32.mrb[47].mxu0  ;;  %v10689_v41 = vld [vmem:[#allocation20_spill] sm:$0xff]  ;;  %v10694_v3 = vld [vmem:[#allocation25_spill] sm:$0xff] }
 0x334   :  { %6899 = vrcp.f32 %v4344_v52  ;;  %v3984_v32 = vsub.f32 0.0, %v3893_v28  ;;  %v10181_v62 = vadd.f32 %v9996_v39, %v3705_v51  ;;  %v3492_v14 = vpop.f32.mrb[46].mxu1 }
 0x335   :  { %v4705_v50 = vsel %vm4250_vm7, %v6888_v19, %v4614_v59  ;;  %v3706_v30 = vadd.f32 %v3492_v14, %v2730_v56  ;;  %v6582_v4 = vpop.f32.mrb[47].mxu1 }
 0x336   :  { %v10183_v60 = vpop.eup %6889  ;;  %4796 = vst [vmem:[%s10624_s3 + $0x198] sm:$0xff] %v4705_v50  ;;  %v4133_v5 = vmul.f32 1.442695, %v3984_v32  ;;  %v3894_v24 = vand.u32 2147483647, %v10181_v62  ;;  %v2521_v8 = vpop.f32.mrb[48].mxu0 }
 0x337   :  { %v6892_v2 = vpop.eup %6891  ;;  %v4345_v27 = vadd.f32 1.0, %v10183_v60  ;;  %v10191_v38 = vadd.f32 %v9996_v39, %v3706_v30  ;;  %v2731_v47 = vadd.f32 %v2521_v8, %v10687_v42  ;;  %v6310_v10 = vpop.f32.mrb[49].mxu0  ;;  %v10690_v50 = vld [vmem:[#allocation21_spill] sm:$0xff]  ;;  %vm4258_vm15 = vcmp.ge.f32.partialorder %v10181_v62, 0.0  ;;  %v10695_v62 = vld [vmem:[#allocation26_spill] sm:$0xff] }
 0x338   :  { %v4615_v1 = vmul.f32 %v6892_v2, %v10145_v23  ;;  %6901 = vpow2.f32 %v4133_v5  ;;  %v3985_v18 = vsub.f32 0.0, %v3894_v24  ;;  %v3497_v44 = vpop.f32.mrb[48].mxu1 }
 0x339   :  { %v10195_v7 = vpop.eup %6893  ;;  %6903 = vrcp.f32 %v4345_v27  ;;  %v3895_v17 = vand.u32 2147483647, %v10191_v38  ;;  %v3707_v45 = vadd.f32 %v3497_v44, %v2731_v47  ;;  %v6585_v22 = vpop.f32.mrb[49].mxu1  ;;  %vm4259_vm1 = vcmp.ge.f32.partialorder %v10191_v38, 0.0 }
 0x33a   :  { %v6896_v46 = vpop.eup %6895  ;;  %v4706_v16 = vsel %vm4251_vm8, %v6892_v2, %v4615_v1  ;;  %v4346_v9 = vadd.f32 1.0, %v10195_v7  ;;  %v4135_v12 = vmul.f32 1.442695, %v3985_v18  ;;  %v2526_v29 = vpop.f32.mrb[50].mxu0 }
 0x33b   :  { %4797 = vst [vmem:[%s10624_s3 + $0x1a0] sm:$0xff] %v4706_v16  ;;  %v4616_v23 = vmul.f32 %v6896_v46, %v10155_v57  ;;  %v3986_v48 = vsub.f32 0.0, %v3895_v17  ;;  %v10205_v37 = vadd.f32 %v9996_v39, %v3707_v45  ;;  %v2732_v31 = vadd.f32 %v2526_v29, %v10688_v20  ;;  %v6313_v61 = vpop.f32.mrb[51].mxu0  ;;  %v10691_v45 = vld [vmem:[#allocation22_spill] sm:$0xff] }
 0x33c   :  { %6905 = vrcp.f32 %v4346_v9  ;;  %v3502_v58 = vpop.f32.mrb[50].mxu1 }
 0x33d   :  { %v10209_v35 = vpop.eup %6897  ;;  %v4707_v49 = vsel %vm4252_vm9, %v6896_v46, %v4616_v23  ;;  %6907 = vpow2.f32 %v4135_v12  ;;  %v4137_v54 = vmul.f32 1.442695, %v3986_v48  ;;  %v3896_v6 = vand.u32 2147483647, %v10205_v37  ;;  %v6588_v40 = vpop.f32.mrb[51].mxu1 }
 0x33e   :  { %v6900_v57 = vpop.eup %6899  ;;  %4798 = vst [vmem:[%s10624_s3 + $0x1a8] sm:$0xff] %v4707_v49  ;;  %v4347_v55 = vadd.f32 1.0, %v10209_v35  ;;  %v3708_v43 = vadd.f32 %v3502_v58, %v2732_v31  ;;  %v2531_v36 = vpop.f32.mrb[52].mxu0  ;;  %vm4260_vm0 = vcmp.ge.f32.partialorder %v10205_v37, 0.0 }
 0x33f   :  { %v4617_v21 = vmul.f32 %v6900_v57, %v10170_v34  ;;  %6909 = vpow2.f32 %v4137_v54  ;;  %v3987_v63 = vsub.f32 0.0, %v3896_v6  ;;  %v2733_v13 = vadd.f32 %v2531_v36, %v10689_v41  ;;  %v6316_v19 = vpop.f32.mrb[53].mxu0  ;;  %v10692_v54 = vld [vmem:[#allocation23_spill] sm:$0xff] }
 0x340   :  { %6911 = vrcp.f32 %v4347_v55  ;;  %v10220_v52 = vadd.f32 %v9996_v39, %v3708_v43  ;;  %v3507_v28 = vpop.f32.mrb[52].mxu1 }
 0x341   :  { %v4708_v51 = vsel %vm4253_vm10, %v6900_v57, %v4617_v21  ;;  %v4139_v33 = vmul.f32 1.442695, %v3987_v63  ;;  %v3709_v59 = vadd.f32 %v3507_v28, %v2733_v13  ;;  %v6591_v15 = vpop.f32.mrb[53].mxu1 }
 0x342   :  { %v10222_v56 = vpop.eup %6901  ;;  %4799 = vst [vmem:[%s10624_s3 + $0x1b0] sm:$0xff] %v4708_v51  ;;  %v3897_v34 = vand.u32 2147483647, %v10220_v52  ;;  %v2536_v25 = vpop.f32.mrb[54].mxu0  ;;  %v10693_v51 = vld [vmem:[#allocation24_spill] sm:$0xff]  ;;  %vm4261_vm2 = vcmp.ge.f32.partialorder %v10220_v52, 0.0 }
 0x343   :  { %v6904_v32 = vpop.eup %6903  ;;  %v4348_v26 = vadd.f32 1.0, %v10222_v56  ;;  %6913 = vpow2.f32 %v4139_v33  ;;  %v10230_v14 = vadd.f32 %v9996_v39, %v3709_v59  ;;  %v2734_v30 = vadd.f32 %v2536_v25, %v10690_v50  ;;  %v6319_v4 = vpop.f32.mrb[55].mxu0 }
 0x344   :  { %v4618_v5 = vmul.f32 %v6904_v32, %v10183_v60  ;;  %v3988_v24 = vsub.f32 0.0, %v3897_v34  ;;  %v3512_v8 = vpop.f32.mrb[54].mxu1 }
 0x345   :  { %6915 = vrcp.f32 %v4348_v26  ;;  %v3898_v2 = vand.u32 2147483647, %v10230_v14  ;;  %v3710_v27 = vadd.f32 %v3512_v8, %v2734_v30  ;;  %v6594_v42 = vpop.f32.mrb[55].mxu1  ;;  %vm4262_vm3 = vcmp.ge.f32.partialorder %v10230_v14, 0.0 }
 0x346   :  { %v6906_v47 = vpop.eup %6905  ;;  %v4709_v10 = vsel %vm4254_vm11, %v6904_v32, %v4618_v5  ;;  %v4141_v1 = vmul.f32 1.442695, %v3988_v24  ;;  %v2541_v18 = vpop.f32.mrb[56].mxu0 }
 0x347   :  { %v10236_v44 = vpop.eup %6907  ;;  %4800 = vst [vmem:[%s10624_s3 + $0x1b8] sm:$0xff] %v4709_v10  ;;  %v4619_v60 = vmul.f32 %v6906_v47, %v10195_v7  ;;  %v3989_v17 = vsub.f32 0.0, %v3898_v2  ;;  %v10243_v53 = vadd.f32 %v9996_v39, %v3710_v27  ;;  %v2735_v22 = vadd.f32 %v2541_v18, %v10691_v45  ;;  %v6322_v46 = vpop.f32.mrb[57].mxu0 }
 0x348   :  { %v4349_v16 = vadd.f32 1.0, %v10236_v44  ;;  %6917 = vpow2.f32 %v4141_v1  ;;  %v3517_v9 = vpop.f32.mrb[56].mxu1 }
 0x349   :  { %v10248_v12 = vpop.eup %6909  ;;  %v4710_v29 = vsel %vm4255_vm12, %v6906_v47, %v4619_v60  ;;  %v4143_v23 = vmul.f32 1.442695, %v3989_v17  ;;  %v3899_v48 = vand.u32 2147483647, %v10243_v53  ;;  %v6597_v7 = vpop.f32.mrb[57].mxu1  ;;  %v3711_v0 = vadd.f32 %v3517_v9, %v2735_v22 }
 0x34a   :  { %v6912_v20 = vpop.eup %6911  ;;  %4801 = vst [vmem:[%s10624_s3 + $0x1c0] sm:$0xff] %v4710_v29  ;;  %6919 = vrcp.f32 %v4349_v16  ;;  %v4350_v31 = vadd.f32 1.0, %v10248_v12  ;;  %v2546_v61 = vpop.f32.mrb[58].mxu0  ;;  %vm4263_vm4 = vcmp.ge.f32.partialorder %v10243_v53, 0.0 }
 0x34b   :  { %v4620_v58 = vmul.f32 %v6912_v20, %v10209_v35  ;;  %6921 = vpow2.f32 %v4143_v23  ;;  %v3990_v49 = vsub.f32 0.0, %v3899_v48  ;;  %v2736_v6 = vadd.f32 %v2546_v61, %v10692_v54  ;;  %v6325_v40 = vpop.f32.mrb[59].mxu0 }
 0x34c   :  { %6923 = vrcp.f32 %v4350_v31  ;;  %v10259_v57 = vadd.f32 %v9996_v39, %v3711_v0  ;;  %v3522_v55 = vpop.f32.mrb[58].mxu1 }
 0x34d   :  { %v10261_v43 = vpop.eup %6913  ;;  %v4711_v36 = vsel %vm4256_vm13, %v6912_v20, %v4620_v58  ;;  %v4145_v21 = vmul.f32 1.442695, %v3990_v49  ;;  %v3712_v63 = vadd.f32 %v3522_v55, %v2736_v6  ;;  %v6600_v41 = vpop.f32.mrb[59].mxu1 }
 0x34e   :  { %4802 = vst [vmem:[%s10624_s3 + $0x1c8] sm:$0xff] %v4711_v36  ;;  %v4351_v35 = vadd.f32 1.0, %v10261_v43  ;;  %v3900_v13 = vand.u32 2147483647, %v10259_v57  ;;  %v2551_v11 = vpop.f32.mrb[60].mxu0  ;;  %v10696_v36 = vld [vmem:[#allocation27_spill] sm:$0xff] }
 0x34f   :  { %v6916_v19 = vpop.eup %6915  ;;  %6925 = vpow2.f32 %v4145_v21  ;;  %v10269_v28 = vadd.f32 %v9996_v39, %v3712_v63  ;;  %v2737_v33 = vadd.f32 %v2551_v11, %v10693_v51  ;;  %v6328_v59 = vpop.f32.mrb[61].mxu0  ;;  %vm4264_vm5 = vcmp.ge.f32.partialorder %v10259_v57, 0.0 }
 0x350   :  { %v4621_v15 = vmul.f32 %v6916_v19, %v10222_v56  ;;  %6927 = vrcp.f32 %v4351_v35  ;;  %v3991_v34 = vsub.f32 0.0, %v3900_v13  ;;  %v3527_v25 = vpop.f32.mrb[60].mxu1 }
 0x351   :  { %v3901_v32 = vand.u32 2147483647, %v10269_v28  ;;  %v3713_v26 = vadd.f32 %v3527_v25, %v2737_v33  ;;  %v6603_v50 = vpop.f32.mrb[61].mxu1  ;;  %vm4265_vm6 = vcmp.ge.f32.partialorder %v10269_v28, 0.0 }
 0x352   :  { %v10275_v30 = vpop.eup %6917  ;;  %v4712_v4 = vsel %vm4257_vm14, %v6916_v19, %v4621_v15  ;;  %v4147_v5 = vmul.f32 1.442695, %v3991_v34  ;;  %v2556_v24 = vpop.f32.mrb[62].mxu0 }
 0x353   :  { %4803 = vst [vmem:[%s10624_s3 + $0x1d0] sm:$0xff] %v4712_v4  ;;  %v4352_v56 = vadd.f32 1.0, %v10275_v30  ;;  %v3992_v8 = vsub.f32 0.0, %v3901_v32  ;;  %v10282_v2 = vadd.f32 %v9996_v39, %v3713_v26  ;;  %v2738_v27 = vadd.f32 %v2556_v24, %v10694_v3  ;;  %v6331_v42 = vpop.f32.mrb[63].mxu0  ;;  %v10697_v32 = vld [vmem:[#allocation28_spill] sm:$0xff] }
 0x354   :  { %v6920_v47 = vpop.eup %6919  ;;  %6929 = vpow2.f32 %v4147_v5  ;;  %v3532_v10 = vpop.f32.mrb[62].mxu1 }
 0x355   :  { %v10285_v1 = vpop.eup %6921  ;;  %v4622_v18 = vmul.f32 %v6920_v47, %v10236_v44  ;;  %6931 = vrcp.f32 %v4352_v56  ;;  %v4149_v60 = vmul.f32 1.442695, %v3992_v8  ;;  %v3902_v17 = vand.u32 2147483647, %v10282_v2  ;;  %v6606_v45 = vpop.f32.mrb[63].mxu1 }
 0x356   :  { %v6924_v22 = vpop.eup %6923  ;;  %v4353_v46 = vadd.f32 1.0, %v10285_v1  ;;  %v3714_v16 = vadd.f32 %v3532_v10, %v2738_v27  ;;  %v2561_v9 = vpop.f32.mrb[64].mxu0  ;;  %v10698_v45 = vld [vmem:[#allocation29_spill] sm:$0xff]  ;;  %vm4266_vm7 = vcmp.ge.f32.partialorder %v10282_v2, 0.0 }
 0x357   :  { %v4713_v29 = vsel %vm4258_vm15, %v6920_v47, %v4622_v18  ;;  %v4623_v23 = vmul.f32 %v6924_v22, %v10248_v12  ;;  %6933 = vpow2.f32 %v4149_v60  ;;  %v3993_v48 = vsub.f32 0.0, %v3902_v17  ;;  %v6334_v7 = vpop.f32.mrb[65].mxu0 }
 0x358   :  { %4804 = vst [vmem:[%s10624_s3 + $0x1d8] sm:$0xff] %v4713_v29  ;;  %6935 = vrcp.f32 %v4353_v46  ;;  %v10297_v44 = vadd.f32 %v9996_v39, %v3714_v16  ;;  %v2739_v20 = vadd.f32 %v2561_v9, %v10695_v62  ;;  %v3537_v31 = vpop.f32.mrb[64].mxu1 }
 0x359   :  { %v10300_v0 = vpop.eup %6925  ;;  %v4714_v61 = vsel %vm4259_vm1, %v6924_v22, %v4623_v23  ;;  %v4151_v12 = vmul.f32 1.442695, %v3993_v48  ;;  %v6609_v58 = vpop.f32.mrb[65].mxu1 }
 0x35a   :  { %v6928_v49 = vpop.eup %6927  ;;  %4805 = vst [vmem:[%s10624_s3 + $0x1e0] sm:$0xff] %v4714_v61  ;;  %v4354_v54 = vadd.f32 1.0, %v10300_v0  ;;  %v3903_v38 = vand.u32 2147483647, %v10297_v44  ;;  %v3715_v6 = vadd.f32 %v3537_v31, %v2739_v20  ;;  %v2566_v40 = vpop.f32.mrb[66].mxu0  ;;  %v10699_v61 = vld [vmem:[#allocation30_spill] sm:$0xff] }
 0x35b   :  { %v4624_v55 = vmul.f32 %v6928_v49, %v10261_v43  ;;  %6937 = vpow2.f32 %v4151_v12  ;;  %v2740_v21 = vadd.f32 %v2566_v40, %v10696_v36  ;;  %v6337_v63 = vpop.f32.mrb[67].mxu0  ;;  %vm4267_vm8 = vcmp.ge.f32.partialorder %v10297_v44, 0.0  ;;  %v10704_v44 = vld [vmem:[#allocation35_spill] sm:$0xff] }
 0x35c   :  { %6939 = vrcp.f32 %v4354_v54  ;;  %v3994_v41 = vsub.f32 0.0, %v3903_v38  ;;  %v10311_v35 = vadd.f32 %v9996_v39, %v3715_v6  ;;  %v3542_v13 = vpop.f32.mrb[66].mxu1 }
 0x35d   :  { %v4715_v11 = vsel %vm4260_vm0, %v6928_v49, %v4624_v55  ;;  %v3716_v19 = vadd.f32 %v3542_v13, %v2740_v21  ;;  %v6612_v51 = vpop.f32.mrb[67].mxu1  ;;  %v10352_v49 = vld [vmem:[%s10623_s2] ss:$0 sm:$0xff] }
 0x35e   :  { %v10313_v33 = vpop.eup %6929  ;;  %4806 = vst [vmem:[%s10624_s3 + $0x1e8] sm:$0xff] %v4715_v11  ;;  %v4153_v43 = vmul.f32 1.442695, %v3994_v41  ;;  %v3904_v59 = vand.u32 2147483647, %v10311_v35  ;;  %v2571_v15 = vpop.f32.mrb[68].mxu0 }
 0x35f   :  { %v6932_v37 = vpop.eup %6931  ;;  %v4355_v34 = vadd.f32 1.0, %v10313_v33  ;;  %v10321_v25 = vadd.f32 %v9996_v39, %v3716_v19  ;;  %v2741_v26 = vadd.f32 %v2571_v15, %v10697_v32  ;;  %v6340_v50 = vpop.f32.mrb[69].mxu0  ;;  %v10700_v11 = vld [vmem:[#allocation31_spill] sm:$0xff]  ;;  %vm4268_vm9 = vcmp.ge.f32.partialorder %v10311_v35, 0.0  ;;  %v10705_v35 = vld [vmem:[#allocation36_spill] sm:$0xff] }
 0x360   :  { %v4625_v4 = vmul.f32 %v6932_v37, %v10275_v30  ;;  %6941 = vpow2.f32 %v4153_v43  ;;  %v3995_v5 = vsub.f32 0.0, %v3904_v59  ;;  %v3547_v24 = vpop.f32.mrb[68].mxu1 }
 0x361   :  { %v10325_v56 = vpop.eup %6933  ;;  %6943 = vrcp.f32 %v4355_v34  ;;  %v3905_v8 = vand.u32 2147483647, %v10321_v25  ;;  %v3717_v3 = vadd.f32 %v3547_v24, %v2741_v26  ;;  %v6615_v27 = vpop.f32.mrb[69].mxu1  ;;  %vm4269_vm10 = vcmp.ge.f32.partialorder %v10321_v25, 0.0 }
 0x362   :  { %v6936_v42 = vpop.eup %6935  ;;  %v4716_v47 = vsel %vm4261_vm2, %v6932_v37, %v4625_v4  ;;  %v4356_v10 = vadd.f32 1.0, %v10325_v56  ;;  %v4155_v18 = vmul.f32 1.442695, %v3995_v5  ;;  %v2576_v60 = vpop.f32.mrb[70].mxu0 }
 0x363   :  { %4807 = vst [vmem:[%s10624_s3 + $0x1f0] sm:$0xff] %v4716_v47  ;;  %v4626_v30 = vmul.f32 %v6936_v42, %v10285_v1  ;;  %v3996_v17 = vsub.f32 0.0, %v3905_v8  ;;  %v10335_v52 = vadd.f32 %v9996_v39, %v3717_v3  ;;  %v2742_v22 = vadd.f32 %v2576_v60, %v10698_v45  ;;  %v6343_v46 = vpop.f32.mrb[71].mxu0  ;;  %v10701_v3 = vld [vmem:[#allocation32_spill] sm:$0xff] }
 0x364   :  { %6945 = vrcp.f32 %v4356_v10  ;;  %v3552_v16 = vpop.f32.mrb[70].mxu1 }
 0x365   :  { %v10339_v9 = vpop.eup %6937  ;;  %v4717_v29 = vsel %vm4262_vm3, %v6936_v42, %v4626_v30  ;;  %6947 = vpow2.f32 %v4155_v18  ;;  %v4157_v23 = vmul.f32 1.442695, %v3996_v17  ;;  %v3906_v48 = vand.u32 2147483647, %v10335_v52  ;;  %v6618_v7 = vpop.f32.mrb[71].mxu1 }
 0x366   :  { %v6940_v1 = vpop.eup %6939  ;;  %4808 = vst [vmem:[%s10624_s3 + $0x1f8] sm:$0xff] %v4717_v29  ;;  %v4357_v39 = vadd.f32 1.0, %v10339_v9  ;;  %v3718_v62 = vadd.f32 %v3552_v16, %v2742_v22  ;;  %v2581_v20 = vpop.f32.mrb[72].mxu0  ;;  %vm4270_vm11 = vcmp.ge.f32.partialorder %v10335_v52, 0.0 }
 0x367   :  { %v4627_v14 = vmul.f32 %v6940_v1, %v10300_v0  ;;  %6949 = vpow2.f32 %v4157_v23  ;;  %v3997_v31 = vsub.f32 0.0, %v3906_v48  ;;  %v2743_v12 = vadd.f32 %v2581_v20, %v10699_v61  ;;  %v6346_v58 = vpop.f32.mrb[73].mxu0  ;;  %v10702_v23 = vld [vmem:[#allocation33_spill] sm:$0xff] }
 0x368   :  { %6951 = vrcp.f32 %v4357_v39  ;;  %v10355_v54 = vadd.f32 %v10352_v49, %v3718_v62  ;;  %v3557_v38 = vpop.f32.mrb[72].mxu1 }
 0x369   :  { %v4718_v6 = vsel %vm4263_vm4, %v6940_v1, %v4627_v14  ;;  %v4159_v40 = vmul.f32 1.442695, %v3997_v31  ;;  %v3719_v0 = vadd.f32 %v3557_v38, %v2743_v12  ;;  %v6621_v55 = vpop.f32.mrb[73].mxu1 }
 0x36a   :  { %v10357_v36 = vpop.eup %6941  ;;  %4809 = vst [vmem:[%s10624_s3 + $0x200] sm:$0xff] %v4718_v6  ;;  %v3907_v53 = vand.u32 2147483647, %v10355_v54  ;;  %v2586_v21 = vpop.f32.mrb[74].mxu0  ;;  %v10703_v6 = vld [vmem:[#allocation34_spill] sm:$0xff]  ;;  %vm4271_vm12 = vcmp.ge.f32.partialorder %v10355_v54, 0.0 }
 0x36b   :  { %v6944_v63 = vpop.eup %6943  ;;  %v4358_v41 = vadd.f32 1.0, %v10357_v36  ;;  %6953 = vpow2.f32 %v4159_v40  ;;  %v10365_v13 = vadd.f32 %v10352_v49, %v3719_v0  ;;  %v2744_v19 = vadd.f32 %v2586_v21, %v10700_v11  ;;  %v6349_v51 = vpop.f32.mrb[75].mxu0 }
 0x36c   :  { %v4628_v43 = vmul.f32 %v6944_v63, %v10313_v33  ;;  %v3998_v59 = vsub.f32 0.0, %v3907_v53  ;;  %v3562_v15 = vpop.f32.mrb[74].mxu1 }
 0x36d   :  { %6955 = vrcp.f32 %v4358_v41  ;;  %v3908_v37 = vand.u32 2147483647, %v10365_v13  ;;  %v3720_v34 = vadd.f32 %v3562_v15, %v2744_v19  ;;  %v6624_v32 = vpop.f32.mrb[75].mxu1  ;;  %vm4272_vm13 = vcmp.ge.f32.partialorder %v10365_v13, 0.0 }
 0x36e   :  { %v6946_v26 = vpop.eup %6945  ;;  %v4719_v50 = vsel %vm4264_vm5, %v6944_v63, %v4628_v43  ;;  %v4161_v4 = vmul.f32 1.442695, %v3998_v59  ;;  %v2591_v5 = vpop.f32.mrb[76].mxu0 }
 0x36f   :  { %v10371_v24 = vpop.eup %6947  ;;  %4810 = vst [vmem:[%s10624_s3 + $0x208] sm:$0xff] %v4719_v50  ;;  %v4629_v33 = vmul.f32 %v6946_v26, %v10325_v56  ;;  %v3999_v8 = vsub.f32 0.0, %v3908_v37  ;;  %v10378_v57 = vadd.f32 %v10352_v49, %v3720_v34  ;;  %v2745_v27 = vadd.f32 %v2591_v5, %v10701_v3  ;;  %v6352_v42 = vpop.f32.mrb[77].mxu0 }
 0x370   :  { %v4359_v47 = vadd.f32 1.0, %v10371_v24  ;;  %6957 = vpow2.f32 %v4161_v4  ;;  %v3567_v10 = vpop.f32.mrb[76].mxu1 }
 0x371   :  { %v10383_v18 = vpop.eup %6949  ;;  %v4720_v60 = vsel %vm4265_vm6, %v6946_v26, %v4629_v33  ;;  %v4163_v30 = vmul.f32 1.442695, %v3999_v8  ;;  %v3909_v17 = vand.u32 2147483647, %v10378_v57  ;;  %v6627_v56 = vpop.f32.mrb[77].mxu1  ;;  %v3721_v28 = vadd.f32 %v3567_v10, %v2745_v27 }
 0x372   :  { %v6952_v45 = vpop.eup %6951  ;;  %4811 = vst [vmem:[%s10624_s3 + $0x210] sm:$0xff] %v4720_v60  ;;  %6959 = vrcp.f32 %v4359_v47  ;;  %v4360_v22 = vadd.f32 1.0, %v10383_v18  ;;  %v2596_v46 = vpop.f32.mrb[78].mxu0  ;;  %vm4273_vm14 = vcmp.ge.f32.partialorder %v10378_v57, 0.0 }
 0x373   :  { %v4630_v16 = vmul.f32 %v6952_v45, %v10339_v9  ;;  %6961 = vpow2.f32 %v4163_v30  ;;  %v4000_v29 = vsub.f32 0.0, %v3909_v17  ;;  %v2746_v48 = vadd.f32 %v2596_v46, %v10702_v23  ;;  %v6355_v7 = vpop.f32.mrb[79].mxu0 }
 0x374   :  { %6963 = vrcp.f32 %v4360_v22  ;;  %v10394_v1 = vadd.f32 %v10352_v49, %v3721_v28  ;;  %v3572_v39 = vpop.f32.mrb[78].mxu1 }
 0x375   :  { %v10396_v62 = vpop.eup %6953  ;;  %v4721_v20 = vsel %vm4266_vm7, %v6952_v45, %v4630_v16  ;;  %v4165_v14 = vmul.f32 1.442695, %v4000_v29  ;;  %v3722_v31 = vadd.f32 %v3572_v39, %v2746_v48  ;;  %v6630_v61 = vpop.f32.mrb[79].mxu1 }
 0x376   :  { %4812 = vst [vmem:[%s10624_s3 + $0x218] sm:$0xff] %v4721_v20  ;;  %v4361_v9 = vadd.f32 1.0, %v10396_v62  ;;  %v3910_v12 = vand.u32 2147483647, %v10394_v1  ;;  %v2601_v2 = vpop.f32.mrb[80].mxu0  ;;  %v10706_v20 = vld [vmem:[#allocation37_spill] sm:$0xff] }
 0x377   :  { %v6956_v58 = vpop.eup %6955  ;;  %6965 = vpow2.f32 %v4165_v14  ;;  %v10404_v38 = vadd.f32 %v10352_v49, %v3722_v31  ;;  %v2747_v40 = vadd.f32 %v2601_v2, %v10703_v6  ;;  %v6358_v0 = vpop.f32.mrb[81].mxu0  ;;  %vm4274_vm15 = vcmp.ge.f32.partialorder %v10394_v1, 0.0 }
 0x378   :  { %v4631_v55 = vmul.f32 %v6956_v58, %v10357_v36  ;;  %6967 = vrcp.f32 %v4361_v9  ;;  %v4001_v53 = vsub.f32 0.0, %v3910_v12  ;;  %v3577_v21 = vpop.f32.mrb[80].mxu1 }
 0x379   :  { %v3911_v63 = vand.u32 2147483647, %v10404_v38  ;;  %v3723_v41 = vadd.f32 %v3577_v21, %v2747_v40  ;;  %v6633_v11 = vpop.f32.mrb[81].mxu1  ;;  %vm4275_vm1 = vcmp.ge.f32.partialorder %v10404_v38, 0.0 }
 0x37a   :  { %v10410_v19 = vpop.eup %6957  ;;  %v4722_v51 = vsel %vm4267_vm8, %v6956_v58, %v4631_v55  ;;  %v4167_v43 = vmul.f32 1.442695, %v4001_v53  ;;  %v2606_v59 = vpop.f32.mrb[82].mxu0 }
 0x37b   :  { %4813 = vst [vmem:[%s10624_s3 + $0x220] sm:$0xff] %v4722_v51  ;;  %v4362_v36 = vadd.f32 1.0, %v10410_v19  ;;  %v4002_v15 = vsub.f32 0.0, %v3911_v63  ;;  %v10417_v37 = vadd.f32 %v10352_v49, %v3723_v41  ;;  %v2748_v34 = vadd.f32 %v2606_v59, %v10704_v44  ;;  %v6361_v32 = vpop.f32.mrb[83].mxu0  ;;  %v10707_v63 = vld [vmem:[#allocation38_spill] sm:$0xff] }
 0x37c   :  { %v6960_v26 = vpop.eup %6959  ;;  %6969 = vpow2.f32 %v4167_v43  ;;  %v3582_v50 = vpop.f32.mrb[82].mxu1 }
 0x37d   :  { %v10420_v4 = vpop.eup %6961  ;;  %v4632_v5 = vmul.f32 %v6960_v26, %v10371_v24  ;;  %6971 = vrcp.f32 %v4362_v36  ;;  %v4169_v33 = vmul.f32 1.442695, %v4002_v15  ;;  %v3912_v8 = vand.u32 2147483647, %v10417_v37  ;;  %v6636_v3 = vpop.f32.mrb[83].mxu1 }
 0x37e   :  { %v6964_v27 = vpop.eup %6963  ;;  %v4363_v42 = vadd.f32 1.0, %v10420_v4  ;;  %v3724_v47 = vadd.f32 %v3582_v50, %v2748_v34  ;;  %v2611_v10 = vpop.f32.mrb[84].mxu0  ;;  %v10708_v3 = vld [vmem:[#allocation39_spill] sm:$0xff]  ;;  %vm4276_vm0 = vcmp.ge.f32.partialorder %v10417_v37, 0.0 }
 0x37f   :  { %v4723_v60 = vsel %vm4268_vm9, %v6960_v26, %v4632_v5  ;;  %v4633_v30 = vmul.f32 %v6964_v27, %v10383_v18  ;;  %6973 = vpow2.f32 %v4169_v33  ;;  %v4003_v17 = vsub.f32 0.0, %v3912_v8  ;;  %v6364_v56 = vpop.f32.mrb[85].mxu0 }
 0x380   :  { %4814 = vst [vmem:[%s10624_s3 + $0x228] sm:$0xff] %v4723_v60  ;;  %6975 = vrcp.f32 %v4363_v42  ;;  %v10432_v24 = vadd.f32 %v10352_v49, %v3724_v47  ;;  %v2749_v45 = vadd.f32 %v2611_v10, %v10705_v35  ;;  %v3587_v22 = vpop.f32.mrb[84].mxu1 }
 0x381   :  { %v10435_v28 = vpop.eup %6965  ;;  %v4724_v46 = vsel %vm4269_vm10, %v6964_v27, %v4633_v30  ;;  %v4171_v18 = vmul.f32 1.442695, %v4003_v17  ;;  %v6639_v16 = vpop.f32.mrb[85].mxu1 }
 0x382   :  { %v6968_v29 = vpop.eup %6967  ;;  %4815 = vst [vmem:[%s10624_s3 + $0x230] sm:$0xff] %v4724_v46  ;;  %v4364_v23 = vadd.f32 1.0, %v10435_v28  ;;  %v3913_v25 = vand.u32 2147483647, %v10432_v24  ;;  %v3725_v48 = vadd.f32 %v3587_v22, %v2749_v45  ;;  %v2616_v7 = vpop.f32.mrb[86].mxu0  ;;  %vm4277_vm2 = vcmp.ge.f32.partialorder %v10432_v24, 0.0 }
 0x383   :  { %v4634_v39 = vmul.f32 %v6968_v29, %v10396_v62  ;;  %6977 = vpow2.f32 %v4171_v18  ;;  %v2750_v14 = vadd.f32 %v2616_v7, %v10706_v20  ;;  %v6367_v31 = vpop.f32.mrb[87].mxu0  ;;  %v10709_v18 = vld [vmem:[#allocation40_spill] sm:$0xff]  ;;  %v10714_v24 = vld [vmem:[#allocation45_spill] sm:$0xff] }
 0x384   :  { %6979 = vrcp.f32 %v4364_v23  ;;  %v4004_v61 = vsub.f32 0.0, %v3913_v25  ;;  %v10446_v9 = vadd.f32 %v10352_v49, %v3725_v48  ;;  %v3592_v12 = vpop.f32.mrb[86].mxu1 }
 0x385   :  { %v4725_v2 = vsel %vm4270_vm11, %v6968_v29, %v4634_v39  ;;  %v3726_v58 = vadd.f32 %v3592_v12, %v2750_v14  ;;  %v6642_v6 = vpop.f32.mrb[87].mxu1 }
 0x386   :  { %v10448_v40 = vpop.eup %6969  ;;  %4816 = vst [vmem:[%s10624_s3 + $0x238] sm:$0xff] %v4725_v2  ;;  %v4173_v62 = vmul.f32 1.442695, %v4004_v61  ;;  %v3914_v0 = vand.u32 2147483647, %v10446_v9  ;;  %v2621_v55 = vpop.f32.mrb[88].mxu0 }
 0x387   :  { %v6972_v52 = vpop.eup %6971  ;;  %v4365_v53 = vadd.f32 1.0, %v10448_v40  ;;  %v10456_v21 = vadd.f32 %v10352_v49, %v3726_v58  ;;  %v2751_v41 = vadd.f32 %v2621_v55, %v10707_v63  ;;  %v6370_v11 = vpop.f32.mrb[89].mxu0  ;;  %v10710_v2 = vld [vmem:[#allocation41_spill] sm:$0xff]  ;;  %vm4278_vm3 = vcmp.ge.f32.partialorder %v10446_v9, 0.0  ;;  %v10715_v9 = vld [vmem:[#allocation46_spill] sm:$0xff] }
 0x388   :  { %v4635_v51 = vmul.f32 %v6972_v52, %v10410_v19  ;;  %6981 = vpow2.f32 %v4173_v62  ;;  %v4005_v43 = vsub.f32 0.0, %v3914_v0  ;;  %v3597_v59 = vpop.f32.mrb[88].mxu1 }
 0x389   :  { %v10460_v36 = vpop.eup %6973  ;;  %6983 = vrcp.f32 %v4365_v53  ;;  %v3915_v15 = vand.u32 2147483647, %v10456_v21  ;;  %v3727_v44 = vadd.f32 %v3597_v59, %v2751_v41  ;;  %v6645_v34 = vpop.f32.mrb[89].mxu1  ;;  %vm4279_vm4 = vcmp.ge.f32.partialorder %v10456_v21, 0.0 }
 0x38a   :  { %v6976_v32 = vpop.eup %6975  ;;  %v4726_v26 = vsel %vm4271_vm12, %v6972_v52, %v4635_v51  ;;  %v4366_v50 = vadd.f32 1.0, %v10460_v36  ;;  %v4175_v5 = vmul.f32 1.442695, %v4005_v43  ;;  %v2626_v33 = vpop.f32.mrb[90].mxu0 }
 0x38b   :  { %4817 = vst [vmem:[%s10624_s3 + $0x240] sm:$0xff] %v4726_v26  ;;  %v4636_v19 = vmul.f32 %v6976_v32, %v10420_v4  ;;  %v4006_v8 = vsub.f32 0.0, %v3915_v15  ;;  %v10470_v54 = vadd.f32 %v10352_v49, %v3727_v44  ;;  %v2752_v27 = vadd.f32 %v2626_v33, %v10708_v3  ;;  %v6373_v42 = vpop.f32.mrb[91].mxu0  ;;  %v10711_v44 = vld [vmem:[#allocation42_spill] sm:$0xff] }
 0x38c   :  { %6985 = vrcp.f32 %v4366_v50  ;;  %v3602_v47 = vpop.f32.mrb[90].mxu1 }
 0x38d   :  { %v10474_v10 = vpop.eup %6977  ;;  %v4727_v60 = vsel %vm4272_vm13, %v6976_v32, %v4636_v19  ;;  %6987 = vpow2.f32 %v4175_v5  ;;  %v4177_v30 = vmul.f32 1.442695, %v4006_v8  ;;  %v3916_v17 = vand.u32 2147483647, %v10470_v54  ;;  %v6648_v56 = vpop.f32.mrb[91].mxu1 }
 0x38e   :  { %v6980_v4 = vpop.eup %6979  ;;  %4818 = vst [vmem:[%s10624_s3 + $0x248] sm:$0xff] %v4727_v60  ;;  %v4367_v35 = vadd.f32 1.0, %v10474_v10  ;;  %v3728_v45 = vadd.f32 %v3602_v47, %v2752_v27  ;;  %v2631_v22 = vpop.f32.mrb[92].mxu0  ;;  %vm4280_vm5 = vcmp.ge.f32.partialorder %v10470_v54, 0.0 }
 0x38f   :  { %v4637_v13 = vmul.f32 %v6980_v4, %v10435_v28  ;;  %6989 = vpow2.f32 %v4177_v30  ;;  %v4007_v46 = vsub.f32 0.0, %v3916_v17  ;;  %v2753_v16 = vadd.f32 %v2631_v22, %v10709_v18  ;;  %v6376_v29 = vpop.f32.mrb[93].mxu0  ;;  %v10712_v30 = vld [vmem:[#allocation43_spill] sm:$0xff] }
 0x390   :  { %6991 = vrcp.f32 %v4367_v35  ;;  %v10485_v23 = vadd.f32 %v10352_v49, %v3728_v45  ;;  %v3607_v25 = vpop.f32.mrb[92].mxu1 }
 0x391   :  { %v4728_v48 = vsel %vm4273_vm14, %v6980_v4, %v4637_v13  ;;  %v4179_v7 = vmul.f32 1.442695, %v4007_v46  ;;  %v3729_v39 = vadd.f32 %v3607_v25, %v2753_v16  ;;  %v6651_v20 = vpop.f32.mrb[93].mxu1 }
 0x392   :  { %v10487_v14 = vpop.eup %6981  ;;  %4819 = vst [vmem:[%s10624_s3 + $0x250] sm:$0xff] %v4728_v48  ;;  %v3917_v28 = vand.u32 2147483647, %v10485_v23  ;;  %v2636_v31 = vpop.f32.mrb[94].mxu0  ;;  %v10713_v48 = vld [vmem:[#allocation44_spill] sm:$0xff]  ;;  %vm4281_vm6 = vcmp.ge.f32.partialorder %v10485_v23, 0.0 }
 0x393   :  { %v6984_v61 = vpop.eup %6983  ;;  %v4368_v57 = vadd.f32 1.0, %v10487_v14  ;;  %6993 = vpow2.f32 %v4179_v7  ;;  %v10495_v12 = vadd.f32 %v10352_v49, %v3729_v39  ;;  %v2754_v58 = vadd.f32 %v2636_v31, %v10710_v2  ;;  %v6379_v6 = vpop.f32.mrb[95].mxu0 }
 0x394   :  { %v4638_v62 = vmul.f32 %v6984_v61, %v10448_v40  ;;  %v4008_v0 = vsub.f32 0.0, %v3917_v28  ;;  %v3612_v55 = vpop.f32.mrb[94].mxu1 }
 0x395   :  { %6995 = vrcp.f32 %v4368_v57  ;;  %v3918_v52 = vand.u32 2147483647, %v10495_v12  ;;  %v3730_v53 = vadd.f32 %v3612_v55, %v2754_v58  ;;  %v6654_v63 = vpop.f32.mrb[95].mxu1  ;;  %vm4282_vm7 = vcmp.ge.f32.partialorder %v10495_v12, 0.0 }
 0x396   :  { %v6986_v41 = vpop.eup %6985  ;;  %v4729_v11 = vsel %vm4274_vm15, %v6984_v61, %v4638_v62  ;;  %v4181_v51 = vmul.f32 1.442695, %v4008_v0  ;;  %v2641_v43 = vpop.f32.mrb[96].mxu0 }
 0x397   :  { %v10501_v59 = vpop.eup %6987  ;;  %4820 = vst [vmem:[%s10624_s3 + $0x258] sm:$0xff] %v4729_v11  ;;  %v4639_v40 = vmul.f32 %v6986_v41, %v10460_v36  ;;  %v4009_v15 = vsub.f32 0.0, %v3918_v52  ;;  %v10508_v1 = vadd.f32 %v10352_v49, %v3730_v53  ;;  %v2755_v34 = vadd.f32 %v2641_v43, %v10711_v44  ;;  %v6382_v32 = vpop.f32.mrb[97].mxu0 }
 0x398   :  { %v4369_v26 = vadd.f32 1.0, %v10501_v59  ;;  %6997 = vpow2.f32 %v4181_v51  ;;  %v3617_v50 = vpop.f32.mrb[96].mxu1 }
 0x399   :  { %v10513_v5 = vpop.eup %6989  ;;  %v4730_v33 = vsel %vm4275_vm1, %v6986_v41, %v4639_v40  ;;  %v4183_v19 = vmul.f32 1.442695, %v4009_v15  ;;  %v3919_v8 = vand.u32 2147483647, %v10508_v1  ;;  %v6657_v36 = vpop.f32.mrb[97].mxu1  ;;  %v3731_v38 = vadd.f32 %v3617_v50, %v2755_v34 }
 0x39a   :  { %v6992_v3 = vpop.eup %6991  ;;  %4821 = vst [vmem:[%s10624_s3 + $0x260] sm:$0xff] %v4730_v33  ;;  %6999 = vrcp.f32 %v4369_v26  ;;  %v4370_v27 = vadd.f32 1.0, %v10513_v5  ;;  %v2646_v42 = vpop.f32.mrb[98].mxu0  ;;  %vm4283_vm8 = vcmp.ge.f32.partialorder %v10508_v1, 0.0 }
 0x39b   :  { %v4640_v47 = vmul.f32 %v6992_v3, %v10474_v10  ;;  %7001 = vpow2.f32 %v4183_v19  ;;  %v4010_v60 = vsub.f32 0.0, %v3919_v8  ;;  %v2756_v17 = vadd.f32 %v2646_v42, %v10712_v30  ;;  %v6385_v56 = vpop.f32.mrb[99].mxu0 }
 0x39c   :  { %7003 = vrcp.f32 %v4370_v27  ;;  %v10524_v4 = vadd.f32 %v10352_v49, %v3731_v38  ;;  %v3622_v35 = vpop.f32.mrb[98].mxu1 }
 0x39d   :  { %v10526_v45 = vpop.eup %6993  ;;  %v4731_v22 = vsel %vm4276_vm0, %v6992_v3, %v4640_v47  ;;  %v4185_v13 = vmul.f32 1.442695, %v4010_v60  ;;  %v3732_v46 = vadd.f32 %v3622_v35, %v2756_v17  ;;  %v6660_v18 = vpop.f32.mrb[99].mxu1 }
 0x39e   :  { %4822 = vst [vmem:[%s10624_s3 + $0x268] sm:$0xff] %v4731_v22  ;;  %v4371_v10 = vadd.f32 1.0, %v10526_v45  ;;  %v3920_v16 = vand.u32 2147483647, %v10524_v4  ;;  %v2651_v37 = vpop.f32.mrb[100].mxu0  ;;  %v10716_v22 = vld [vmem:[#allocation47_spill] sm:$0xff] }
 0x39f   :  { %v6996_v29 = vpop.eup %6995  ;;  %7005 = vpow2.f32 %v4185_v13  ;;  %v10534_v25 = vadd.f32 %v10352_v49, %v3732_v46  ;;  %v2757_v7 = vadd.f32 %v2651_v37, %v10713_v48  ;;  %v6388_v39 = vpop.f32.mrb[101].mxu0  ;;  %vm4284_vm9 = vcmp.ge.f32.partialorder %v10524_v4, 0.0 }
 0x3a0   :  { %v4641_v20 = vmul.f32 %v6996_v29, %v10487_v14  ;;  %7007 = vrcp.f32 %v4371_v10  ;;  %v4011_v28 = vsub.f32 0.0, %v3920_v16  ;;  %v3627_v31 = vpop.f32.mrb[100].mxu1 }
 0x3a1   :  { %v3921_v61 = vand.u32 2147483647, %v10534_v25  ;;  %v3733_v57 = vadd.f32 %v3627_v31, %v2757_v7  ;;  %v6663_v2 = vpop.f32.mrb[101].mxu1  ;;  %vm4285_vm10 = vcmp.ge.f32.partialorder %v10534_v25, 0.0 }
 0x3a2   :  { %v10540_v58 = vpop.eup %6997  ;;  %v4732_v6 = vsel %vm4277_vm2, %v6996_v29, %v4641_v20  ;;  %v4187_v62 = vmul.f32 1.442695, %v4011_v28  ;;  %v2656_v0 = vpop.f32.mrb[102].mxu0 }
 0x3a3   :  { %4823 = vst [vmem:[%s10624_s3 + $0x270] sm:$0xff] %v4732_v6  ;;  %v4372_v14 = vadd.f32 1.0, %v10540_v58  ;;  %v4012_v55 = vsub.f32 0.0, %v3921_v61  ;;  %v10547_v52 = vadd.f32 %v10352_v49, %v3733_v57  ;;  %v2758_v53 = vadd.f32 %v2656_v0, %v10714_v24  ;;  %v6391_v63 = vpop.f32.mrb[103].mxu0 }
 0x3a4   :  { %v7000_v41 = vpop.eup %6999  ;;  %7009 = vpow2.f32 %v4187_v62  ;;  %v3632_v11 = vpop.f32.mrb[102].mxu1 }
 0x3a5   :  { %v10550_v51 = vpop.eup %7001  ;;  %v4642_v43 = vmul.f32 %v7000_v41, %v10501_v59  ;;  %7011 = vrcp.f32 %v4372_v14  ;;  %v4189_v40 = vmul.f32 1.442695, %v4012_v55  ;;  %v3922_v15 = vand.u32 2147483647, %v10547_v52  ;;  %v6666_v44 = vpop.f32.mrb[103].mxu1 }
 0x3a6   :  { %v7004_v34 = vpop.eup %7003  ;;  %v4373_v32 = vadd.f32 1.0, %v10550_v51  ;;  %v3734_v26 = vadd.f32 %v3632_v11, %v2758_v53  ;;  %v2661_v50 = vpop.f32.mrb[104].mxu0  ;;  %vm4286_vm11 = vcmp.ge.f32.partialorder %v10547_v52, 0.0 }
 0x3a7   :  { %v4733_v33 = vsel %vm4278_vm3, %v7000_v41, %v4642_v43  ;;  %v4643_v19 = vmul.f32 %v7004_v34, %v10513_v5  ;;  %7013 = vpow2.f32 %v4189_v40  ;;  %v4013_v8 = vsub.f32 0.0, %v3922_v15  ;;  %v6394_v36 = vpop.f32.mrb[105].mxu0 }
 0x3a8   :  { %4824 = vst [vmem:[%s10624_s3 + $0x278] sm:$0xff] %v4733_v33  ;;  %7015 = vrcp.f32 %v4373_v32  ;;  %v10562_v59 = vadd.f32 %v10352_v49, %v3734_v26  ;;  %v2759_v3 = vadd.f32 %v2661_v50, %v10715_v9  ;;  %v3637_v27 = vpop.f32.mrb[104].mxu1 }
 0x3a9   :  { %v7006_v38 = vpop.eup %7005  ;;  %v4734_v42 = vsel %vm4279_vm4, %v7004_v34, %v4643_v19  ;;  %v4191_v47 = vmul.f32 1.442695, %v4013_v8  ;;  %v6669_v5 = vpop.f32.mrb[105].mxu1 }
 0x3aa   :  { %v7008_v60 = vpop.eup %7007  ;;  %4825 = vst [vmem:[%s10624_s3 + $0x280] sm:$0xff] %v4734_v42  ;;  %v4374_v30 = vadd.f32 1.0, %v7006_v38  ;;  %v3923_v17 = vand.u32 2147483647, %v10562_v59  ;;  %v3735_v21 = vadd.f32 %v3637_v27, %v2759_v3  ;;  %v2666_v56 = vpop.f32.mrb[106].mxu0  ;;  %vm4287_vm12 = vcmp.ge.f32.partialorder %v10562_v59, 0.0 }
 0x3ab   :  { %v4644_v35 = vmul.f32 %v7008_v60, %v10526_v45  ;;  %7017 = vpow2.f32 %v4191_v47  ;;  %v2760_v13 = vadd.f32 %v2666_v56, %v10716_v22  ;;  %v6397_v46 = vpop.f32.mrb[107].mxu0 }
 0x3ac   :  { %7019 = vrcp.f32 %v4374_v30  ;;  %v4014_v18 = vsub.f32 0.0, %v3923_v17  ;;  %v10573_v10 = vadd.f32 %v10352_v49, %v3735_v21  ;;  %v3642_v16 = vpop.f32.mrb[106].mxu1 }
 0x3ad   :  { %v4735_v37 = vsel %vm4280_vm5, %v7008_v60, %v4644_v35  ;;  %v3736_v29 = vadd.f32 %v3642_v16, %v2760_v13  ;;  %v6672_v48 = vpop.f32.mrb[107].mxu1 }
 0x3ae   :  { %v7010_v7 = vpop.eup %7009  ;;  %4826 = vst [vmem:[%s10624_s3 + $0x288] sm:$0xff] %v4735_v37  ;;  %v4193_v45 = vmul.f32 1.442695, %v4014_v18  ;;  %v3924_v39 = vand.u32 2147483647, %v10573_v10  ;;  %vm4288_vm13 = vcmp.ge.f32.partialorder %v10573_v10, 0.0 }
 0x3af   :  { %v7012_v20 = vpop.eup %7011  ;;  %v4375_v28 = vadd.f32 1.0, %v7010_v7  ;;  %v10580_v54 = vadd.f32 %v10352_v49, %v3736_v29 }
 0x3b0   :  { %v4645_v31 = vmul.f32 %v7012_v20, %v10540_v58  ;;  %7021 = vpow2.f32 %v4193_v45  ;;  %v4015_v61 = vsub.f32 0.0, %v3924_v39 }
 0x3b1   :  { %v7014_v57 = vpop.eup %7013  ;;  %7023 = vrcp.f32 %v4375_v28  ;;  %v3925_v2 = vand.u32 2147483647, %v10580_v54  ;;  %vm4289_vm14 = vcmp.ge.f32.partialorder %v10580_v54, 0.0 }
 0x3b2   :  { %v7016_v6 = vpop.eup %7015  ;;  %v4736_v62 = vsel %vm4281_vm6, %v7012_v20, %v4645_v31  ;;  %v4376_v0 = vadd.f32 1.0, %v7014_v57  ;;  %v4195_v14 = vmul.f32 1.442695, %v4015_v61 }
 0x3b3   :  { %4827 = vst [vmem:[%s10624_s3 + $0x290] sm:$0xff] %v4736_v62  ;;  %v4646_v49 = vmul.f32 %v7016_v6, %v10550_v51  ;;  %v4016_v55 = vsub.f32 0.0, %v3925_v2 }
 0x3b4   :  { %7025 = vrcp.f32 %v4376_v0 }
 0x3b5   :  { %v7018_v58 = vpop.eup %7017  ;;  %v4737_v24 = vsel %vm4282_vm7, %v7016_v6, %v4646_v49  ;;  %7027 = vpow2.f32 %v4195_v14  ;;  %v4197_v23 = vmul.f32 1.442695, %v4016_v55 }
 0x3b6   :  { %v7020_v53 = vpop.eup %7019  ;;  %4828 = vst [vmem:[%s10624_s3 + $0x298] sm:$0xff] %v4737_v24  ;;  %v4377_v63 = vadd.f32 1.0, %v7018_v58 }
 0x3b7   :  { %v4647_v41 = vmul.f32 %v7020_v53, %v7006_v38  ;;  %7029 = vpow2.f32 %v4197_v23 }
 0x3b8   :  { %7031 = vrcp.f32 %v4377_v63 }
 0x3b9   :  { %v4738_v11 = vsel %vm4283_vm8, %v7020_v53, %v4647_v41 }
 0x3ba   :  { %v7022_v51 = vpop.eup %7021  ;;  %4829 = vst [vmem:[%s10624_s3 + $0x2a0] sm:$0xff] %v4738_v11 }
 0x3bb   :  { %v7024_v12 = vpop.eup %7023  ;;  %v4378_v43 = vadd.f32 1.0, %v7022_v51 }
 0x3bc   :  { %v4648_v40 = vmul.f32 %v7024_v12, %v7010_v7 }
 0x3bd   :  { %7033 = vrcp.f32 %v4378_v43 }
 0x3be   :  { %v7026_v15 = vpop.eup %7025  ;;  %v4739_v44 = vsel %vm4284_vm9, %v7024_v12, %v4648_v40 }
 0x3bf   :  { %v7028_v34 = vpop.eup %7027  ;;  %4830 = vst [vmem:[%s10624_s3 + $0x2a8] sm:$0xff] %v4739_v44  ;;  %v4649_v1 = vmul.f32 %v7026_v15, %v7014_v57 }
 0x3c0   :  { %v4379_v32 = vadd.f32 1.0, %v7028_v34 }
 0x3c1   :  { %v7030_v26 = vpop.eup %7029  ;;  %v4740_v50 = vsel %vm4285_vm10, %v7026_v15, %v4649_v1 }
 0x3c2   :  { %v7032_v33 = vpop.eup %7031  ;;  %4831 = vst [vmem:[%s10624_s3 + $0x2b0] sm:$0xff] %v4740_v50  ;;  %7035 = vrcp.f32 %v4379_v32  ;;  %v4380_v4 = vadd.f32 1.0, %v7030_v26 }
 0x3c3   :  { %v4650_v19 = vmul.f32 %v7032_v33, %v7018_v58 }
 0x3c4   :  { %7037 = vrcp.f32 %v4380_v4 }
 0x3c5   :  { %v4741_v8 = vsel %vm4286_vm11, %v7032_v33, %v4650_v19 }
 0x3c6   :  { %4832 = vst [vmem:[%s10624_s3 + $0x2b8] sm:$0xff] %v4741_v8 }
 0x3c7   :  { %v7034_v25 = vpop.eup %7033 }
 0x3c8   :  { %v4651_v36 = vmul.f32 %v7034_v25, %v7022_v51 }
 0x3ca   :  { %v4742_v9 = vsel %vm4287_vm12, %v7034_v25, %v4651_v36 }
 0x3cb   :  { %4833 = vst [vmem:[%s10624_s3 + $0x2c0] sm:$0xff] %v4742_v9 }
 0x3cc   :  { %v7036_v3 = vpop.eup %7035 }
 0x3cd   :  { %v4652_v27 = vmul.f32 %v7036_v3, %v7028_v34 }
 0x3ce   :  { %v7038_v38 = vpop.eup %7037 }
 0x3cf   :  { %v4743_v52 = vsel %vm4288_vm13, %v7036_v3, %v4652_v27  ;;  %v4653_v42 = vmul.f32 %v7038_v38, %v7030_v26 }
 0x3d0   :  { %4834 = vst [vmem:[%s10624_s3 + $0x2c8] sm:$0xff] %v4743_v52 }
 0x3d1   :  { %v4744_v47 = vsel %vm4289_vm14, %v7038_v38, %v4653_v42 }
 0x3d2   :  { %4835 = vst [vmem:[%s10624_s3 + $0x2d0] sm:$0xff] %v4744_v47 }

</bundles_post_ra>
